<compile_context>
chip_gen: v6e
topology: v6e:2x2x1
jax: 0.10.0
libtpu: 0.0.40
codegen_flags: <defaults>
</compile_context>

<pallas_src>
import numpy as np
import jax
import jax.numpy as jnp
from jax.experimental import pallas as pl
from jax.experimental.pallas import tpu as pltpu

NUM_GROUPS = 2      # nn.GroupNorm(2, c) inside Conv_TDF
EPS = 1e-5          # PyTorch GroupNorm / BatchNorm default eps


# ----------------------------------------------------------------------------
# In-kernel building blocks (all operate on channel-first (C, M) tiles).
# ----------------------------------------------------------------------------
def _gn2_relu(y, gamma, beta):
    """GroupNorm(2, C) + ReLU.  Stats per group over (C/2 channels x all M
    spatial positions of the sample) -> matches PyTorch per-sample semantics."""
    C, M = y.shape
    cg = C // NUM_GROUPS
    cnt = float(M * cg)
    rs = jnp.sum(y, axis=1, keepdims=True)          # (C, 1)  - full-tile reduce #1
    rq = jnp.sum(y * y, axis=1, keepdims=True)      # (C, 1)  - full-tile reduce #2
    s0 = jnp.sum(rs[:cg], axis=0, keepdims=True)    # (1, 1)
    s1 = jnp.sum(rs[cg:], axis=0, keepdims=True)
    q0 = jnp.sum(rq[:cg], axis=0, keepdims=True)
    q1 = jnp.sum(rq[cg:], axis=0, keepdims=True)
    m0 = s0 / cnt
    m1 = s1 / cnt
    r0 = jax.lax.rsqrt(jnp.maximum(q0 / cnt - m0 * m0, 0.0) + EPS)
    r1 = jax.lax.rsqrt(jnp.maximum(q1 / cnt - m1 * m1, 0.0) + EPS)
    row = jax.lax.broadcasted_iota(jnp.int32, (C, 1), 0)
    in_g0 = row < cg
    mean = jnp.where(in_g0, m0, m1)                 # (C, 1)
    rstd = jnp.where(in_g0, r0, r1)                 # (C, 1)
    scale = rstd * gamma
    shift = beta - mean * scale
    return jnp.maximum(y * scale + shift, 0.0)


def _conv3x3_gn_relu(x, w_ref, p_ref, m_ref, w_lvl):
    """3x3 'same' conv + GroupNorm(2) + ReLU on a (C, M) tile.

    In-kernel im2col: 9 accumulated (Cout,Cin)x(Cin,M) matmuls over lane-rolled
    copies of the tile; m_ref holds precomputed zero-padding masks per tap."""
    C, M = x.shape
    acc = None
    for dh in range(3):
        for dw in range(3):
            t = dh * 3 + dw
            s = (dh - 1) * w_lvl + (dw - 1)          # flat spatial offset
            if s == 0:
                xt = x
            else:
                xt = pltpu.roll(x, (-s) % M, 1) * m_ref[t]
            c = jnp.dot(w_ref[t], xt, preferred_element_type=jnp.float32)
            acc = c if acc is None else acc + c
    p = p_ref[...]                                   # (C, 3) = [bias, gamma, beta]
    y = acc + p[:, 0:1]
    return _gn2_relu(y, p[:, 1:2], p[:, 2:3])


def _down_relu(x, w_ref, b_ref, selT_ref):
    """2x2 stride-2 conv (eval-BatchNorm folded) + ReLU: (Cin,M)->(Cout,M//4)."""
    acc = None
    for t in range(4):
        a = jnp.dot(w_ref[t], x, preferred_element_type=jnp.float32)
        c = jnp.dot(a, selT_ref[t], preferred_element_type=jnp.float32)
        acc = c if acc is None else acc + c
    return jnp.maximum(acc + b_ref[...], 0.0)


def _up_relu_mul(x, w_ref, b_ref, sel_ref, skip):
    """ConvTranspose2d 2x2 stride-2 (eval-BatchNorm folded) + ReLU, then *skip."""
    acc = None
    for t in range(4):
        a = jnp.dot(w_ref[t], x, preferred_element_type=jnp.float32)
        c = jnp.dot(a, sel_ref[t], preferred_element_type=jnp.float32)
        acc = c if acc is None else acc + c
    return jnp.maximum(acc + b_ref[...], 0.0) * skip


# ----------------------------------------------------------------------------
# Fused whole-network kernel (one grid step == one batch sample).
# ----------------------------------------------------------------------------
def make_kernel(T, F, g, n, l):
    levels = [(T >> r, F >> r) for r in range(n + 1)]

    def kernel(*refs):
        x_ref, o_ref = refs[0], refs[-1]
        it = iter(refs[1:-1])
        nxt = lambda: next(it)

        # ---- parameter refs (same order as pack_inputs) ----
        w1, b1 = nxt(), nxt()
        enc = []
        for _ in range(n):
            layers = [(nxt(), nxt()) for _ in range(l)]
            enc.append((layers, (nxt(), nxt())))
        mid = [(nxt(), nxt()) for _ in range(l)]
        dec = []
        for _ in range(n):
            us = (nxt(), nxt())
            dec.append((us, [(nxt(), nxt()) for _ in range(l)]))
        wf, bf = nxt(), nxt()
        cmask = [nxt() for _ in range(n + 1)]
        sel = [nxt() for _ in range(n)]
        selT = [nxt() for _ in range(n)]

        # ---- first_conv: 1x1 conv + folded BatchNorm + ReLU ----
        x = jnp.maximum(
            jnp.dot(w1[...], x_ref[...], preferred_element_type=jnp.float32)
            + b1[...], 0.0)

        # ---- encoder ----
        skips = []
        for i in range(n):
            _, w_lvl = levels[i]
            for wc, pk in enc[i][0]:
                x = _conv3x3_gn_relu(x, wc, pk, cmask[i], w_lvl)
            skips.append(x)
            x = _down_relu(x, enc[i][1][0], enc[i][1][1], selT[i])

        # ---- bottleneck ----
        _, w_lvl = levels[n]
        for wc, pk in mid:
            x = _conv3x3_gn_relu(x, wc, pk, cmask[n], w_lvl)

        # ---- decoder ----
        for i in range(n):
            lev = n - 1 - i
            _, w_lvl = levels[lev]
            x = _up_relu_mul(x, dec[i][0][0], dec[i][0][1], sel[lev], skips[lev])
            for wc, pk in dec[i][1]:
                x = _conv3x3_gn_relu(x, wc, pk, cmask[lev], w_lvl)

        # ---- final 1x1 conv (no norm / activation), lane-dense store ----
        o_ref[...] = (jnp.dot(wf[...], x, preferred_element_type=jnp.float32)
                      + bf[...])

    return kernel


# ----------------------------------------------------------------------------
# Host-side constant builders (numpy) and parameter packing.
# ----------------------------------------------------------------------------
def _make_conv_masks(H, W):
    """(9, 1, H*W) zero-padding masks for the lane-rolled 3x3 conv taps."""
    M = H * W
    msk = np.zeros((9, 1, M), np.float32)
    for dh in range(3):
        for dw in range(3):
            t = dh * 3 + dw
            for m in range(M):
                h, w = divmod(m, W)
                if 0 <= h + dh - 1 < H and 0 <= w + dw - 1 < W:
                    msk[t, 0, m] = 1.0
    return msk


def _make_sel(H, W):
    """(4, M/4, M) one-hot tap-selection matrices for 2x2 stride-2 resampling
    (tap t = dh*2 + dw).  Transposed -> downsample gather, as-is -> ConvTranspose
    scatter."""
    M, Mo = H * W, (H // 2) * (W // 2)
    S = np.zeros((4, Mo, M), np.float32)
    for ho in range(H // 2):
        for wo in range(W // 2):
            mo = ho * (W // 2) + wo
            for dh in range(2):
                for dw in range(2):
                    S[dh * 2 + dw, mo, (2 * ho + dh) * W + (2 * wo + dw)] = 1.0
    return S


def init_params(key, g, n, l, k):
    """Random parameters in PyTorch layouts (Conv OIHW, ConvTranspose IOHW,
    BatchNorm running stats, GroupNorm affine)."""
    assert k == 3
    keys = iter(jax.random.split(key, 256))

    def conv(cout, cin, kh, kw):
        w = jax.random.normal(next(keys), (cout, cin, kh, kw), jnp.float32)
        w = w / np.sqrt(cin * kh * kw)
        b = 0.02 * jax.random.normal(next(keys), (cout,), jnp.float32)
        return {'w': w, 'b': b}

    def convt(cin, cout, kh, kw):
        w = jax.random.normal(next(keys), (cin, cout, kh, kw), jnp.float32)
        w = w / np.sqrt(cin * kh * kw)
        b = 0.02 * jax.random.normal(next(keys), (cout,), jnp.float32)
        return {'w': w, 'b': b}

    def bn(c):
        return {'gamma': 1.0 + 0.1 * jax.random.normal(next(keys), (c,), jnp.float32),
                'beta': 0.1 * jax.random.normal(next(keys), (c,), jnp.float32),
                'mean': 0.1 * jax.random.normal(next(keys), (c,), jnp.float32),
                'var': jnp.abs(1.0 + 0.1 * jax.random.normal(next(keys), (c,), jnp.float32))}

    def gn(c):
        return {'gamma': 1.0 + 0.1 * jax.random.normal(next(keys), (c,), jnp.float32),
                'beta': 0.1 * jax.random.normal(next(keys), (c,), jnp.float32)}

    p = {'first': {'conv': conv(g, 4, 1, 1), 'bn': bn(g)}}
    c = g
    enc, ds = [], []
    for _ in range(n):
        enc.append([{'conv': conv(c, c, k, k), 'gn': gn(c)} for _ in range(l)])
        ds.append({'conv': conv(c + g, c, 2, 2), 'bn': bn(c + g)})
        c += g
    p['enc'], p['ds'] = enc, ds
    p['mid'] = [{'conv': conv(c, c, k, k), 'gn': gn(c)} for _ in range(l)]
    us, dec = [], []
    for _ in range(n):
        us.append({'conv': convt(c, c - g, 2, 2), 'bn': bn(c - g)})
        c -= g
        dec.append([{'conv': conv(c, c, k, k), 'gn': gn(c)} for _ in range(l)])
    p['us'], p['dec'] = us, dec
    p['final'] = conv(4, c, 1, 1)
    return p


def pack_inputs(params, T, F, g, n, l):
    """Fold eval-mode BatchNorm into conv weights/bias, re-layout everything for
    the channel-first in-kernel math and append the constant spatial helpers."""
    def fold(w_taps, b, bnp):                       # w_taps: (..., Cout, Cin)
        s = bnp['gamma'] / jnp.sqrt(bnp['var'] + EPS)
        w_taps = w_taps * s.reshape((1,) * (w_taps.ndim - 2) + (-1, 1))
        b = (b - bnp['mean']) * s + bnp['beta']
        return w_taps, b

    def conv3_taps(w):                               # (Co, Ci, 3, 3) -> (9, Co, Ci)
        return jnp.transpose(w, (2, 3, 0, 1)).reshape(9, w.shape[0], w.shape[1])

    def gn_pack(conv_p, gn_p):                       # (C, 3) = [bias, gamma, beta]
        return jnp.stack([conv_p['b'], gn_p['gamma'], gn_p['beta']], axis=1)

    flat = []
    # first_conv
    w1 = params['first']['conv']['w'][:, :, 0, 0]                   # (g, 4)
    w1, b1 = fold(w1, params['first']['conv']['b'], params['first']['bn'])
    flat += [w1, b1.reshape(-1, 1)]
    # encoder
    for i in range(n):
        for lay in params['enc'][i]:
            flat += [conv3_taps(lay['conv']['w']), gn_pack(lay['conv'], lay['gn'])]
        dw = params['ds'][i]['conv']['w']                           # (Co, Ci, 2, 2)
        taps = jnp.transpose(dw, (2, 3, 0, 1)).reshape(4, dw.shape[0], dw.shape[1])
        taps, bb = fold(taps, params['ds'][i]['conv']['b'], params['ds'][i]['bn'])
        flat += [taps, bb.reshape(-1, 1)]
    # bottleneck
    for lay in params['mid']:
        flat += [conv3_taps(lay['conv']['w']), gn_pack(lay['conv'], lay['gn'])]
    # decoder
    for i in range(n):
        uw = params['us'][i]['conv']['w']                           # (Ci, Co, 2, 2)
        taps = jnp.transpose(uw, (2, 3, 1, 0)).reshape(4, uw.shape[1], uw.shape[0])
        taps, bb = fold(taps, params['us'][i]['conv']['b'], params['us'][i]['bn'])
        flat += [taps, bb.reshape(-1, 1)]
        for lay in params['dec'][i]:
            flat += [conv3_taps(lay['conv']['w']), gn_pack(lay['conv'], lay['gn'])]
    # final 1x1 conv
    flat += [params['final']['w'][:, :, 0, 0],                      # (4, g)
             params['final']['b'].reshape(-1, 1)]                   # (4, 1)
    # constant spatial helpers
    for r in range(n + 1):
        flat.append(jnp.asarray(_make_conv_masks(T >> r, F >> r)))
    sels = [_make_sel(T >> r, F >> r) for r in range(n)]
    flat += [jnp.asarray(s) for s in sels]
    flat += [jnp.asarray(np.transpose(s, (0, 2, 1))) for s in sels]
    return flat


# ----------------------------------------------------------------------------
# Forward wrapper: only layout plumbing at the kernel boundary.
# ----------------------------------------------------------------------------
def build_forward(T, F, g, n, l):
    M0 = T * F
    kernel = make_kernel(T, F, g, n, l)

    def forward(x_nchw, flat_inputs):
        B = x_nchw.shape[0]
        # (B, 4, F, T) -> channel-first flattened (B, 4, T*F).  The reference's
        # transpose(-1,-2) only swaps the two spatial dims and the 1x1 first /
        # final convs are position-independent, so the whole U-Net runs in the
        # (T, F) orientation and only these boundary transposes remain.
        x = jnp.transpose(x_nchw, (0, 1, 3, 2)).reshape(B, 4, M0)
        x = x.astype(jnp.float32)

        in_specs = [pl.BlockSpec((None, 4, M0), lambda i: (i, 0, 0))]
        for a in flat_inputs:
            in_specs.append(pl.BlockSpec(a.shape, lambda i, nd=a.ndim: (0,) * nd))

        out = pl.pallas_call(
            kernel,
            out_shape=jax.ShapeDtypeStruct((B, 4, M0), jnp.float32),
            grid=(B,),
            in_specs=in_specs,
            out_specs=pl.BlockSpec((None, 4, M0), lambda i: (i, 0, 0)),
            compiler_params=pltpu.CompilerParams(
                dimension_semantics=("parallel",),
                vmem_limit_bytes=32 * 1024 * 1024),
        )(x, *flat_inputs)

        out = out.reshape(B, 4, T, F)
        return jnp.transpose(out, (0, 1, 3, 2))      # back to (B, 4, F, T)

    return forward


if __name__ == "__main__":
    # Small shapes consistent with the module: NCHW input (B, 4, F, T),
    # F and T divisible by 2**n so the U-Net down/up path reconstructs exactly.
    L, l, g, k = 4, 2, 8, 3          # n = L // 2 = 2 encoder/decoder levels
    B, F, T = 2, 16, 8
    n = L // 2

    params = init_params(jax.random.PRNGKey(0), g=g, n=n, l=l, k=k)
    flat = pack_inputs(params, T=T, F=F, g=g, n=n, l=l)
    x = jax.random.normal(jax.random.PRNGKey(0), (B, 4, F, T), dtype=jnp.float32)

    fwd = jax.jit(build_forward(T=T, F=F, g=g, n=n, l=l))
    y = jax.block_until_ready(fwd(x, flat))

    assert y.shape == (B, 4, F, T), y.shape
    assert bool(jnp.all(jnp.isfinite(y)))
    print("KERNEL_OK")
</pallas_src>

<mosaic_0001>
module attributes {stable_mosaic.version = 11 : i64} {
  func.func @kernel(%arg0: i32, %arg1: memref<1x4x128xf32, #tpu.memory_space<vmem>>, %arg2: memref<8x4xf32, #tpu.memory_space<vmem>>, %arg3: memref<8x1xf32, #tpu.memory_space<vmem>>, %arg4: memref<9x8x8xf32, #tpu.memory_space<vmem>>, %arg5: memref<8x3xf32, #tpu.memory_space<vmem>>, %arg6: memref<9x8x8xf32, #tpu.memory_space<vmem>>, %arg7: memref<8x3xf32, #tpu.memory_space<vmem>>, %arg8: memref<4x16x8xf32, #tpu.memory_space<vmem>>, %arg9: memref<16x1xf32, #tpu.memory_space<vmem>>, %arg10: memref<9x16x16xf32, #tpu.memory_space<vmem>>, %arg11: memref<16x3xf32, #tpu.memory_space<vmem>>, %arg12: memref<9x16x16xf32, #tpu.memory_space<vmem>>, %arg13: memref<16x3xf32, #tpu.memory_space<vmem>>, %arg14: memref<4x24x16xf32, #tpu.memory_space<vmem>>, %arg15: memref<24x1xf32, #tpu.memory_space<vmem>>, %arg16: memref<9x24x24xf32, #tpu.memory_space<vmem>>, %arg17: memref<24x3xf32, #tpu.memory_space<vmem>>, %arg18: memref<9x24x24xf32, #tpu.memory_space<vmem>>, %arg19: memref<24x3xf32, #tpu.memory_space<vmem>>, %arg20: memref<4x16x24xf32, #tpu.memory_space<vmem>>, %arg21: memref<16x1xf32, #tpu.memory_space<vmem>>, %arg22: memref<9x16x16xf32, #tpu.memory_space<vmem>>, %arg23: memref<16x3xf32, #tpu.memory_space<vmem>>, %arg24: memref<9x16x16xf32, #tpu.memory_space<vmem>>, %arg25: memref<16x3xf32, #tpu.memory_space<vmem>>, %arg26: memref<4x8x16xf32, #tpu.memory_space<vmem>>, %arg27: memref<8x1xf32, #tpu.memory_space<vmem>>, %arg28: memref<9x8x8xf32, #tpu.memory_space<vmem>>, %arg29: memref<8x3xf32, #tpu.memory_space<vmem>>, %arg30: memref<9x8x8xf32, #tpu.memory_space<vmem>>, %arg31: memref<8x3xf32, #tpu.memory_space<vmem>>, %arg32: memref<4x8xf32, #tpu.memory_space<vmem>>, %arg33: memref<4x1xf32, #tpu.memory_space<vmem>>, %arg34: memref<9x1x128xf32, #tpu.memory_space<vmem>>, %arg35: memref<9x1x32xf32, #tpu.memory_space<vmem>>, %arg36: memref<9x1x8xf32, #tpu.memory_space<vmem>>, %arg37: memref<4x32x128xf32, #tpu.memory_space<vmem>>, %arg38: memref<4x8x32xf32, #tpu.memory_space<vmem>>, %arg39: memref<4x128x32xf32, #tpu.memory_space<vmem>>, %arg40: memref<4x32x8xf32, #tpu.memory_space<vmem>>, %arg41: memref<1x4x128xf32, #tpu.memory_space<vmem>>) attributes {dimension_semantics = [#tpu.dimension_semantics<parallel>], iteration_bounds = array<i64: 2>, scalar_prefetch = 0 : i64, scratch_operands = 0 : i64, tpu.core_type = #tpu.core_type<tc>, window_params = [{transform_indices = @transform_0, window_bounds = array<i64: 1, 4, 128>}, {pipeline_mode = #tpu.pipeline_mode<synchronous>, transform_indices = @transform_1, window_bounds = array<i64: 8, 4>}, {pipeline_mode = #tpu.pipeline_mode<synchronous>, transform_indices = @transform_2, window_bounds = array<i64: 8, 1>}, {pipeline_mode = #tpu.pipeline_mode<synchronous>, transform_indices = @transform_3, window_bounds = array<i64: 9, 8, 8>}, {pipeline_mode = #tpu.pipeline_mode<synchronous>, transform_indices = @transform_4, window_bounds = array<i64: 8, 3>}, {pipeline_mode = #tpu.pipeline_mode<synchronous>, transform_indices = @transform_5, window_bounds = array<i64: 9, 8, 8>}, {pipeline_mode = #tpu.pipeline_mode<synchronous>, transform_indices = @transform_6, window_bounds = array<i64: 8, 3>}, {pipeline_mode = #tpu.pipeline_mode<synchronous>, transform_indices = @transform_7, window_bounds = array<i64: 4, 16, 8>}, {pipeline_mode = #tpu.pipeline_mode<synchronous>, transform_indices = @transform_8, window_bounds = array<i64: 16, 1>}, {pipeline_mode = #tpu.pipeline_mode<synchronous>, transform_indices = @transform_9, window_bounds = array<i64: 9, 16, 16>}, {pipeline_mode = #tpu.pipeline_mode<synchronous>, transform_indices = @transform_10, window_bounds = array<i64: 16, 3>}, {pipeline_mode = #tpu.pipeline_mode<synchronous>, transform_indices = @transform_11, window_bounds = array<i64: 9, 16, 16>}, {pipeline_mode = #tpu.pipeline_mode<synchronous>, transform_indices = @transform_12, window_bounds = array<i64: 16, 3>}, {pipeline_mode = #tpu.pipeline_mode<synchronous>, transform_indices = @transform_13, window_bounds = array<i64: 4, 24, 16>}, {pipeline_mode = #tpu.pipeline_mode<synchronous>, transform_indices = @transform_14, window_bounds = array<i64: 24, 1>}, {pipeline_mode = #tpu.pipeline_mode<synchronous>, transform_indices = @transform_15, window_bounds = array<i64: 9, 24, 24>}, {pipeline_mode = #tpu.pipeline_mode<synchronous>, transform_indices = @transform_16, window_bounds = array<i64: 24, 3>}, {pipeline_mode = #tpu.pipeline_mode<synchronous>, transform_indices = @transform_17, window_bounds = array<i64: 9, 24, 24>}, {pipeline_mode = #tpu.pipeline_mode<synchronous>, transform_indices = @transform_18, window_bounds = array<i64: 24, 3>}, {pipeline_mode = #tpu.pipeline_mode<synchronous>, transform_indices = @transform_19, window_bounds = array<i64: 4, 16, 24>}, {pipeline_mode = #tpu.pipeline_mode<synchronous>, transform_indices = @transform_20, window_bounds = array<i64: 16, 1>}, {pipeline_mode = #tpu.pipeline_mode<synchronous>, transform_indices = @transform_21, window_bounds = array<i64: 9, 16, 16>}, {pipeline_mode = #tpu.pipeline_mode<synchronous>, transform_indices = @transform_22, window_bounds = array<i64: 16, 3>}, {pipeline_mode = #tpu.pipeline_mode<synchronous>, transform_indices = @transform_23, window_bounds = array<i64: 9, 16, 16>}, {pipeline_mode = #tpu.pipeline_mode<synchronous>, transform_indices = @transform_24, window_bounds = array<i64: 16, 3>}, {pipeline_mode = #tpu.pipeline_mode<synchronous>, transform_indices = @transform_25, window_bounds = array<i64: 4, 8, 16>}, {pipeline_mode = #tpu.pipeline_mode<synchronous>, transform_indices = @transform_26, window_bounds = array<i64: 8, 1>}, {pipeline_mode = #tpu.pipeline_mode<synchronous>, transform_indices = @transform_27, window_bounds = array<i64: 9, 8, 8>}, {pipeline_mode = #tpu.pipeline_mode<synchronous>, transform_indices = @transform_28, window_bounds = array<i64: 8, 3>}, {pipeline_mode = #tpu.pipeline_mode<synchronous>, transform_indices = @transform_29, window_bounds = array<i64: 9, 8, 8>}, {pipeline_mode = #tpu.pipeline_mode<synchronous>, transform_indices = @transform_30, window_bounds = array<i64: 8, 3>}, {pipeline_mode = #tpu.pipeline_mode<synchronous>, transform_indices = @transform_31, window_bounds = array<i64: 4, 8>}, {pipeline_mode = #tpu.pipeline_mode<synchronous>, transform_indices = @transform_32, window_bounds = array<i64: 4, 1>}, {pipeline_mode = #tpu.pipeline_mode<synchronous>, transform_indices = @transform_33, window_bounds = array<i64: 9, 1, 128>}, {pipeline_mode = #tpu.pipeline_mode<synchronous>, transform_indices = @transform_34, window_bounds = array<i64: 9, 1, 32>}, {pipeline_mode = #tpu.pipeline_mode<synchronous>, transform_indices = @transform_35, window_bounds = array<i64: 9, 1, 8>}, {pipeline_mode = #tpu.pipeline_mode<synchronous>, transform_indices = @transform_36, window_bounds = array<i64: 4, 32, 128>}, {pipeline_mode = #tpu.pipeline_mode<synchronous>, transform_indices = @transform_37, window_bounds = array<i64: 4, 8, 32>}, {pipeline_mode = #tpu.pipeline_mode<synchronous>, transform_indices = @transform_38, window_bounds = array<i64: 4, 128, 32>}, {pipeline_mode = #tpu.pipeline_mode<synchronous>, transform_indices = @transform_39, window_bounds = array<i64: 4, 32, 8>}, {transform_indices = @transform_40, window_bounds = array<i64: 1, 4, 128>}]} {
    %c0 = arith.constant 0 : index
    %c0_0 = arith.constant 0 : index
    %0 = vector.load %arg2[%c0, %c0_0] : memref<8x4xf32, #tpu.memory_space<vmem>>, vector<8x4xf32>
    %c0_1 = arith.constant 0 : index
    %c0_2 = arith.constant 0 : index
    %c0_3 = arith.constant 0 : index
    %1 = vector.load %arg1[%c0_1, %c0_2, %c0_3] : memref<1x4x128xf32, #tpu.memory_space<vmem>>, vector<1x4x128xf32>
    %2 = vector.shape_cast %1 : vector<1x4x128xf32> to vector<4x128xf32>
    %cst = arith.constant dense<0.000000e+00> : vector<8x128xf32>
    %3 = tpu.matmul %0, %2, %cst {dimension_numbers = #tpu.dot_dimension_numbers<[1], [0], [0], [1], [0, 0, 1, 1], [], []>} : vector<8x4xf32>, vector<4x128xf32>, vector<8x128xf32> -> vector<8x128xf32>
    %c0_4 = arith.constant 0 : index
    %c0_5 = arith.constant 0 : index
    %4 = vector.load %arg3[%c0_4, %c0_5] : memref<8x1xf32, #tpu.memory_space<vmem>>, vector<8x1xf32>
    %5 = vector.broadcast %4 : vector<8x1xf32> to vector<8x128xf32>
    %6 = arith.addf %3, %5 : vector<8x128xf32>
    %cst_6 = arith.constant 0.000000e+00 : f32
    %7 = vector.broadcast %cst_6 : f32 to vector<8x128xf32>
    %8 = arith.maximumf %6, %7 : vector<8x128xf32>
    %c17_i32 = arith.constant 17 : i32
    %9 = tpu.dynamic_rotate %8 by %c17_i32 dim 1 : vector<8x128xf32>, i32 -> vector<8x128xf32>
    %c0_7 = arith.constant 0 : index
    %c0_8 = arith.constant 0 : index
    %c0_9 = arith.constant 0 : index
    %10 = vector.load %arg34[%c0_7, %c0_8, %c0_9] : memref<9x1x128xf32, #tpu.memory_space<vmem>>, vector<1x1x128xf32>
    %11 = vector.shape_cast %10 : vector<1x1x128xf32> to vector<1x128xf32>
    %12 = vector.broadcast %11 : vector<1x128xf32> to vector<8x128xf32>
    %13 = arith.mulf %9, %12 : vector<8x128xf32>
    %c0_10 = arith.constant 0 : index
    %c0_11 = arith.constant 0 : index
    %c0_12 = arith.constant 0 : index
    %14 = vector.load %arg4[%c0_10, %c0_11, %c0_12] : memref<9x8x8xf32, #tpu.memory_space<vmem>>, vector<1x8x8xf32>
    %15 = vector.shape_cast %14 : vector<1x8x8xf32> to vector<8x8xf32>
    %cst_13 = arith.constant dense<0.000000e+00> : vector<8x128xf32>
    %16 = tpu.matmul %15, %13, %cst_13 {dimension_numbers = #tpu.dot_dimension_numbers<[1], [0], [0], [1], [0, 0, 1, 1], [], []>} : vector<8x8xf32>, vector<8x128xf32>, vector<8x128xf32> -> vector<8x128xf32>
    %c16_i32 = arith.constant 16 : i32
    %17 = tpu.dynamic_rotate %8 by %c16_i32 dim 1 : vector<8x128xf32>, i32 -> vector<8x128xf32>
    %c1 = arith.constant 1 : index
    %c0_14 = arith.constant 0 : index
    %c0_15 = arith.constant 0 : index
    %18 = vector.load %arg34[%c1, %c0_14, %c0_15] : memref<9x1x128xf32, #tpu.memory_space<vmem>>, vector<1x1x128xf32>
    %19 = vector.shape_cast %18 : vector<1x1x128xf32> to vector<1x128xf32>
    %20 = vector.broadcast %19 : vector<1x128xf32> to vector<8x128xf32>
    %21 = arith.mulf %17, %20 : vector<8x128xf32>
    %c1_16 = arith.constant 1 : index
    %c0_17 = arith.constant 0 : index
    %c0_18 = arith.constant 0 : index
    %22 = vector.load %arg4[%c1_16, %c0_17, %c0_18] : memref<9x8x8xf32, #tpu.memory_space<vmem>>, vector<1x8x8xf32>
    %23 = vector.shape_cast %22 : vector<1x8x8xf32> to vector<8x8xf32>
    %cst_19 = arith.constant dense<0.000000e+00> : vector<8x128xf32>
    %24 = tpu.matmul %23, %21, %cst_19 {dimension_numbers = #tpu.dot_dimension_numbers<[1], [0], [0], [1], [0, 0, 1, 1], [], []>} : vector<8x8xf32>, vector<8x128xf32>, vector<8x128xf32> -> vector<8x128xf32>
    %25 = arith.addf %16, %24 : vector<8x128xf32>
    %c15_i32 = arith.constant 15 : i32
    %26 = tpu.dynamic_rotate %8 by %c15_i32 dim 1 : vector<8x128xf32>, i32 -> vector<8x128xf32>
    %c2 = arith.constant 2 : index
    %c0_20 = arith.constant 0 : index
    %c0_21 = arith.constant 0 : index
    %27 = vector.load %arg34[%c2, %c0_20, %c0_21] : memref<9x1x128xf32, #tpu.memory_space<vmem>>, vector<1x1x128xf32>
    %28 = vector.shape_cast %27 : vector<1x1x128xf32> to vector<1x128xf32>
    %29 = vector.broadcast %28 : vector<1x128xf32> to vector<8x128xf32>
    %30 = arith.mulf %26, %29 : vector<8x128xf32>
    %c2_22 = arith.constant 2 : index
    %c0_23 = arith.constant 0 : index
    %c0_24 = arith.constant 0 : index
    %31 = vector.load %arg4[%c2_22, %c0_23, %c0_24] : memref<9x8x8xf32, #tpu.memory_space<vmem>>, vector<1x8x8xf32>
    %32 = vector.shape_cast %31 : vector<1x8x8xf32> to vector<8x8xf32>
    %cst_25 = arith.constant dense<0.000000e+00> : vector<8x128xf32>
    %33 = tpu.matmul %32, %30, %cst_25 {dimension_numbers = #tpu.dot_dimension_numbers<[1], [0], [0], [1], [0, 0, 1, 1], [], []>} : vector<8x8xf32>, vector<8x128xf32>, vector<8x128xf32> -> vector<8x128xf32>
    %34 = arith.addf %25, %33 : vector<8x128xf32>
    %c1_i32 = arith.constant 1 : i32
    %35 = tpu.dynamic_rotate %8 by %c1_i32 dim 1 : vector<8x128xf32>, i32 -> vector<8x128xf32>
    %c3 = arith.constant 3 : index
    %c0_26 = arith.constant 0 : index
    %c0_27 = arith.constant 0 : index
    %36 = vector.load %arg34[%c3, %c0_26, %c0_27] : memref<9x1x128xf32, #tpu.memory_space<vmem>>, vector<1x1x128xf32>
    %37 = vector.shape_cast %36 : vector<1x1x128xf32> to vector<1x128xf32>
    %38 = vector.broadcast %37 : vector<1x128xf32> to vector<8x128xf32>
    %39 = arith.mulf %35, %38 : vector<8x128xf32>
    %c3_28 = arith.constant 3 : index
    %c0_29 = arith.constant 0 : index
    %c0_30 = arith.constant 0 : index
    %40 = vector.load %arg4[%c3_28, %c0_29, %c0_30] : memref<9x8x8xf32, #tpu.memory_space<vmem>>, vector<1x8x8xf32>
    %41 = vector.shape_cast %40 : vector<1x8x8xf32> to vector<8x8xf32>
    %cst_31 = arith.constant dense<0.000000e+00> : vector<8x128xf32>
    %42 = tpu.matmul %41, %39, %cst_31 {dimension_numbers = #tpu.dot_dimension_numbers<[1], [0], [0], [1], [0, 0, 1, 1], [], []>} : vector<8x8xf32>, vector<8x128xf32>, vector<8x128xf32> -> vector<8x128xf32>
    %43 = arith.addf %34, %42 : vector<8x128xf32>
    %c4 = arith.constant 4 : index
    %c0_32 = arith.constant 0 : index
    %c0_33 = arith.constant 0 : index
    %44 = vector.load %arg4[%c4, %c0_32, %c0_33] : memref<9x8x8xf32, #tpu.memory_space<vmem>>, vector<1x8x8xf32>
    %45 = vector.shape_cast %44 : vector<1x8x8xf32> to vector<8x8xf32>
    %cst_34 = arith.constant dense<0.000000e+00> : vector<8x128xf32>
    %46 = tpu.matmul %45, %8, %cst_34 {dimension_numbers = #tpu.dot_dimension_numbers<[1], [0], [0], [1], [0, 0, 1, 1], [], []>} : vector<8x8xf32>, vector<8x128xf32>, vector<8x128xf32> -> vector<8x128xf32>
    %47 = arith.addf %43, %46 : vector<8x128xf32>
    %c127_i32 = arith.constant 127 : i32
    %48 = tpu.dynamic_rotate %8 by %c127_i32 dim 1 : vector<8x128xf32>, i32 -> vector<8x128xf32>
    %c5 = arith.constant 5 : index
    %c0_35 = arith.constant 0 : index
    %c0_36 = arith.constant 0 : index
    %49 = vector.load %arg34[%c5, %c0_35, %c0_36] : memref<9x1x128xf32, #tpu.memory_space<vmem>>, vector<1x1x128xf32>
    %50 = vector.shape_cast %49 : vector<1x1x128xf32> to vector<1x128xf32>
    %51 = vector.broadcast %50 : vector<1x128xf32> to vector<8x128xf32>
    %52 = arith.mulf %48, %51 : vector<8x128xf32>
    %c5_37 = arith.constant 5 : index
    %c0_38 = arith.constant 0 : index
    %c0_39 = arith.constant 0 : index
    %53 = vector.load %arg4[%c5_37, %c0_38, %c0_39] : memref<9x8x8xf32, #tpu.memory_space<vmem>>, vector<1x8x8xf32>
    %54 = vector.shape_cast %53 : vector<1x8x8xf32> to vector<8x8xf32>
    %cst_40 = arith.constant dense<0.000000e+00> : vector<8x128xf32>
    %55 = tpu.matmul %54, %52, %cst_40 {dimension_numbers = #tpu.dot_dimension_numbers<[1], [0], [0], [1], [0, 0, 1, 1], [], []>} : vector<8x8xf32>, vector<8x128xf32>, vector<8x128xf32> -> vector<8x128xf32>
    %56 = arith.addf %47, %55 : vector<8x128xf32>
    %c113_i32 = arith.constant 113 : i32
    %57 = tpu.dynamic_rotate %8 by %c113_i32 dim 1 : vector<8x128xf32>, i32 -> vector<8x128xf32>
    %c6 = arith.constant 6 : index
    %c0_41 = arith.constant 0 : index
    %c0_42 = arith.constant 0 : index
    %58 = vector.load %arg34[%c6, %c0_41, %c0_42] : memref<9x1x128xf32, #tpu.memory_space<vmem>>, vector<1x1x128xf32>
    %59 = vector.shape_cast %58 : vector<1x1x128xf32> to vector<1x128xf32>
    %60 = vector.broadcast %59 : vector<1x128xf32> to vector<8x128xf32>
    %61 = arith.mulf %57, %60 : vector<8x128xf32>
    %c6_43 = arith.constant 6 : index
    %c0_44 = arith.constant 0 : index
    %c0_45 = arith.constant 0 : index
    %62 = vector.load %arg4[%c6_43, %c0_44, %c0_45] : memref<9x8x8xf32, #tpu.memory_space<vmem>>, vector<1x8x8xf32>
    %63 = vector.shape_cast %62 : vector<1x8x8xf32> to vector<8x8xf32>
    %cst_46 = arith.constant dense<0.000000e+00> : vector<8x128xf32>
    %64 = tpu.matmul %63, %61, %cst_46 {dimension_numbers = #tpu.dot_dimension_numbers<[1], [0], [0], [1], [0, 0, 1, 1], [], []>} : vector<8x8xf32>, vector<8x128xf32>, vector<8x128xf32> -> vector<8x128xf32>
    %65 = arith.addf %56, %64 : vector<8x128xf32>
    %c112_i32 = arith.constant 112 : i32
    %66 = tpu.dynamic_rotate %8 by %c112_i32 dim 1 : vector<8x128xf32>, i32 -> vector<8x128xf32>
    %c7 = arith.constant 7 : index
    %c0_47 = arith.constant 0 : index
    %c0_48 = arith.constant 0 : index
    %67 = vector.load %arg34[%c7, %c0_47, %c0_48] : memref<9x1x128xf32, #tpu.memory_space<vmem>>, vector<1x1x128xf32>
    %68 = vector.shape_cast %67 : vector<1x1x128xf32> to vector<1x128xf32>
    %69 = vector.broadcast %68 : vector<1x128xf32> to vector<8x128xf32>
    %70 = arith.mulf %66, %69 : vector<8x128xf32>
    %c7_49 = arith.constant 7 : index
    %c0_50 = arith.constant 0 : index
    %c0_51 = arith.constant 0 : index
    %71 = vector.load %arg4[%c7_49, %c0_50, %c0_51] : memref<9x8x8xf32, #tpu.memory_space<vmem>>, vector<1x8x8xf32>
    %72 = vector.shape_cast %71 : vector<1x8x8xf32> to vector<8x8xf32>
    %cst_52 = arith.constant dense<0.000000e+00> : vector<8x128xf32>
    %73 = tpu.matmul %72, %70, %cst_52 {dimension_numbers = #tpu.dot_dimension_numbers<[1], [0], [0], [1], [0, 0, 1, 1], [], []>} : vector<8x8xf32>, vector<8x128xf32>, vector<8x128xf32> -> vector<8x128xf32>
    %74 = arith.addf %65, %73 : vector<8x128xf32>
    %c111_i32 = arith.constant 111 : i32
    %75 = tpu.dynamic_rotate %8 by %c111_i32 dim 1 : vector<8x128xf32>, i32 -> vector<8x128xf32>
    %c8 = arith.constant 8 : index
    %c0_53 = arith.constant 0 : index
    %c0_54 = arith.constant 0 : index
    %76 = vector.load %arg34[%c8, %c0_53, %c0_54] : memref<9x1x128xf32, #tpu.memory_space<vmem>>, vector<1x1x128xf32>
    %77 = vector.shape_cast %76 : vector<1x1x128xf32> to vector<1x128xf32>
    %78 = vector.broadcast %77 : vector<1x128xf32> to vector<8x128xf32>
    %79 = arith.mulf %75, %78 : vector<8x128xf32>
    %c8_55 = arith.constant 8 : index
    %c0_56 = arith.constant 0 : index
    %c0_57 = arith.constant 0 : index
    %80 = vector.load %arg4[%c8_55, %c0_56, %c0_57] : memref<9x8x8xf32, #tpu.memory_space<vmem>>, vector<1x8x8xf32>
    %81 = vector.shape_cast %80 : vector<1x8x8xf32> to vector<8x8xf32>
    %cst_58 = arith.constant dense<0.000000e+00> : vector<8x128xf32>
    %82 = tpu.matmul %81, %79, %cst_58 {dimension_numbers = #tpu.dot_dimension_numbers<[1], [0], [0], [1], [0, 0, 1, 1], [], []>} : vector<8x8xf32>, vector<8x128xf32>, vector<8x128xf32> -> vector<8x128xf32>
    %83 = arith.addf %74, %82 : vector<8x128xf32>
    %c0_59 = arith.constant 0 : index
    %c0_60 = arith.constant 0 : index
    %84 = vector.load %arg5[%c0_59, %c0_60] : memref<8x3xf32, #tpu.memory_space<vmem>>, vector<8x3xf32>
    %85 = vector.extract_strided_slice %84 {offsets = [0, 0], sizes = [8, 1], strides = [1, 1]} : vector<8x3xf32> to vector<8x1xf32>
    %86 = vector.broadcast %85 : vector<8x1xf32> to vector<8x128xf32>
    %87 = arith.addf %83, %86 : vector<8x128xf32>
    %88 = vector.extract_strided_slice %84 {offsets = [0, 1], sizes = [8, 1], strides = [1, 1]} : vector<8x3xf32> to vector<8x1xf32>
    %89 = vector.extract_strided_slice %84 {offsets = [0, 2], sizes = [8, 1], strides = [1, 1]} : vector<8x3xf32> to vector<8x1xf32>
    %cst_61 = arith.constant dense<0.000000e+00> : vector<8xf32>
    %90 = vector.multi_reduction <add>, %87, %cst_61 [1] : vector<8x128xf32> to vector<8xf32>
    %91 = vector.shape_cast %90 : vector<8xf32> to vector<8x1xf32>
    %92 = arith.mulf %87, %87 : vector<8x128xf32>
    %cst_62 = arith.constant dense<0.000000e+00> : vector<8xf32>
    %93 = vector.multi_reduction <add>, %92, %cst_62 [1] : vector<8x128xf32> to vector<8xf32>
    %94 = vector.shape_cast %93 : vector<8xf32> to vector<8x1xf32>
    %95 = vector.extract_strided_slice %91 {offsets = [0, 0], sizes = [4, 1], strides = [1, 1]} : vector<8x1xf32> to vector<4x1xf32>
    %cst_63 = arith.constant dense<0.000000e+00> : vector<1xf32>
    %96 = vector.multi_reduction <add>, %95, %cst_63 [0] : vector<4x1xf32> to vector<1xf32>
    %97 = vector.shape_cast %96 : vector<1xf32> to vector<1x1xf32>
    %98 = vector.extract_strided_slice %91 {offsets = [4, 0], sizes = [4, 1], strides = [1, 1]} : vector<8x1xf32> to vector<4x1xf32>
    %cst_64 = arith.constant dense<0.000000e+00> : vector<1xf32>
    %99 = vector.multi_reduction <add>, %98, %cst_64 [0] : vector<4x1xf32> to vector<1xf32>
    %100 = vector.shape_cast %99 : vector<1xf32> to vector<1x1xf32>
    %101 = vector.extract_strided_slice %94 {offsets = [0, 0], sizes = [4, 1], strides = [1, 1]} : vector<8x1xf32> to vector<4x1xf32>
    %cst_65 = arith.constant dense<0.000000e+00> : vector<1xf32>
    %102 = vector.multi_reduction <add>, %101, %cst_65 [0] : vector<4x1xf32> to vector<1xf32>
    %103 = vector.shape_cast %102 : vector<1xf32> to vector<1x1xf32>
    %104 = vector.extract_strided_slice %94 {offsets = [4, 0], sizes = [4, 1], strides = [1, 1]} : vector<8x1xf32> to vector<4x1xf32>
    %cst_66 = arith.constant dense<0.000000e+00> : vector<1xf32>
    %105 = vector.multi_reduction <add>, %104, %cst_66 [0] : vector<4x1xf32> to vector<1xf32>
    %106 = vector.shape_cast %105 : vector<1xf32> to vector<1x1xf32>
    %cst_67 = arith.constant 5.120000e+02 : f32
    %107 = vector.broadcast %cst_67 : f32 to vector<1x1xf32>
    %108 = arith.divf %97, %107 : vector<1x1xf32>
    %cst_68 = arith.constant 5.120000e+02 : f32
    %109 = vector.broadcast %cst_68 : f32 to vector<1x1xf32>
    %110 = arith.divf %100, %109 : vector<1x1xf32>
    %cst_69 = arith.constant 5.120000e+02 : f32
    %111 = vector.broadcast %cst_69 : f32 to vector<1x1xf32>
    %112 = arith.divf %103, %111 : vector<1x1xf32>
    %113 = arith.mulf %108, %108 : vector<1x1xf32>
    %114 = arith.subf %112, %113 : vector<1x1xf32>
    %cst_70 = arith.constant 0.000000e+00 : f32
    %115 = vector.broadcast %cst_70 : f32 to vector<1x1xf32>
    %116 = arith.maximumf %114, %115 : vector<1x1xf32>
    %cst_71 = arith.constant 9.99999974E-6 : f32
    %117 = vector.broadcast %cst_71 : f32 to vector<1x1xf32>
    %118 = arith.addf %116, %117 : vector<1x1xf32>
    %119 = math.rsqrt %118 : vector<1x1xf32>
    %cst_72 = arith.constant 5.120000e+02 : f32
    %120 = vector.broadcast %cst_72 : f32 to vector<1x1xf32>
    %121 = arith.divf %106, %120 : vector<1x1xf32>
    %122 = arith.mulf %110, %110 : vector<1x1xf32>
    %123 = arith.subf %121, %122 : vector<1x1xf32>
    %cst_73 = arith.constant 0.000000e+00 : f32
    %124 = vector.broadcast %cst_73 : f32 to vector<1x1xf32>
    %125 = arith.maximumf %123, %124 : vector<1x1xf32>
    %cst_74 = arith.constant 9.99999974E-6 : f32
    %126 = vector.broadcast %cst_74 : f32 to vector<1x1xf32>
    %127 = arith.addf %125, %126 : vector<1x1xf32>
    %128 = math.rsqrt %127 : vector<1x1xf32>
    %129 = tpu.iota {dimensions = array<i32: 0>} : vector<8x1xi32>
    %c4_i32 = arith.constant 4 : i32
    %130 = vector.broadcast %c4_i32 : i32 to vector<8x1xi32>
    %131 = arith.cmpi slt, %129, %130 : vector<8x1xi32>
    %132 = vector.shape_cast %108 : vector<1x1xf32> to vector<1x1xf32>
    %133 = vector.broadcast %132 : vector<1x1xf32> to vector<8x1xf32>
    %134 = vector.shape_cast %110 : vector<1x1xf32> to vector<1x1xf32>
    %135 = vector.broadcast %134 : vector<1x1xf32> to vector<8x1xf32>
    %136 = arith.select %131, %133, %135 : vector<8x1xi1>, vector<8x1xf32>
    %137 = vector.shape_cast %119 : vector<1x1xf32> to vector<1x1xf32>
    %138 = vector.broadcast %137 : vector<1x1xf32> to vector<8x1xf32>
    %139 = vector.shape_cast %128 : vector<1x1xf32> to vector<1x1xf32>
    %140 = vector.broadcast %139 : vector<1x1xf32> to vector<8x1xf32>
    %141 = arith.select %131, %138, %140 : vector<8x1xi1>, vector<8x1xf32>
    %142 = arith.mulf %141, %88 : vector<8x1xf32>
    %143 = arith.mulf %136, %142 : vector<8x1xf32>
    %144 = arith.subf %89, %143 : vector<8x1xf32>
    %145 = vector.broadcast %142 : vector<8x1xf32> to vector<8x128xf32>
    %146 = arith.mulf %87, %145 : vector<8x128xf32>
    %147 = vector.broadcast %144 : vector<8x1xf32> to vector<8x128xf32>
    %148 = arith.addf %146, %147 : vector<8x128xf32>
    %cst_75 = arith.constant 0.000000e+00 : f32
    %149 = vector.broadcast %cst_75 : f32 to vector<8x128xf32>
    %150 = arith.maximumf %148, %149 : vector<8x128xf32>
    %c17_i32_76 = arith.constant 17 : i32
    %151 = tpu.dynamic_rotate %150 by %c17_i32_76 dim 1 : vector<8x128xf32>, i32 -> vector<8x128xf32>
    %c0_77 = arith.constant 0 : index
    %c0_78 = arith.constant 0 : index
    %c0_79 = arith.constant 0 : index
    %152 = vector.load %arg34[%c0_77, %c0_78, %c0_79] : memref<9x1x128xf32, #tpu.memory_space<vmem>>, vector<1x1x128xf32>
    %153 = vector.shape_cast %152 : vector<1x1x128xf32> to vector<1x128xf32>
    %154 = vector.broadcast %153 : vector<1x128xf32> to vector<8x128xf32>
    %155 = arith.mulf %151, %154 : vector<8x128xf32>
    %c0_80 = arith.constant 0 : index
    %c0_81 = arith.constant 0 : index
    %c0_82 = arith.constant 0 : index
    %156 = vector.load %arg6[%c0_80, %c0_81, %c0_82] : memref<9x8x8xf32, #tpu.memory_space<vmem>>, vector<1x8x8xf32>
    %157 = vector.shape_cast %156 : vector<1x8x8xf32> to vector<8x8xf32>
    %cst_83 = arith.constant dense<0.000000e+00> : vector<8x128xf32>
    %158 = tpu.matmul %157, %155, %cst_83 {dimension_numbers = #tpu.dot_dimension_numbers<[1], [0], [0], [1], [0, 0, 1, 1], [], []>} : vector<8x8xf32>, vector<8x128xf32>, vector<8x128xf32> -> vector<8x128xf32>
    %c16_i32_84 = arith.constant 16 : i32
    %159 = tpu.dynamic_rotate %150 by %c16_i32_84 dim 1 : vector<8x128xf32>, i32 -> vector<8x128xf32>
    %c1_85 = arith.constant 1 : index
    %c0_86 = arith.constant 0 : index
    %c0_87 = arith.constant 0 : index
    %160 = vector.load %arg34[%c1_85, %c0_86, %c0_87] : memref<9x1x128xf32, #tpu.memory_space<vmem>>, vector<1x1x128xf32>
    %161 = vector.shape_cast %160 : vector<1x1x128xf32> to vector<1x128xf32>
    %162 = vector.broadcast %161 : vector<1x128xf32> to vector<8x128xf32>
    %163 = arith.mulf %159, %162 : vector<8x128xf32>
    %c1_88 = arith.constant 1 : index
    %c0_89 = arith.constant 0 : index
    %c0_90 = arith.constant 0 : index
    %164 = vector.load %arg6[%c1_88, %c0_89, %c0_90] : memref<9x8x8xf32, #tpu.memory_space<vmem>>, vector<1x8x8xf32>
    %165 = vector.shape_cast %164 : vector<1x8x8xf32> to vector<8x8xf32>
    %cst_91 = arith.constant dense<0.000000e+00> : vector<8x128xf32>
    %166 = tpu.matmul %165, %163, %cst_91 {dimension_numbers = #tpu.dot_dimension_numbers<[1], [0], [0], [1], [0, 0, 1, 1], [], []>} : vector<8x8xf32>, vector<8x128xf32>, vector<8x128xf32> -> vector<8x128xf32>
    %167 = arith.addf %158, %166 : vector<8x128xf32>
    %c15_i32_92 = arith.constant 15 : i32
    %168 = tpu.dynamic_rotate %150 by %c15_i32_92 dim 1 : vector<8x128xf32>, i32 -> vector<8x128xf32>
    %c2_93 = arith.constant 2 : index
    %c0_94 = arith.constant 0 : index
    %c0_95 = arith.constant 0 : index
    %169 = vector.load %arg34[%c2_93, %c0_94, %c0_95] : memref<9x1x128xf32, #tpu.memory_space<vmem>>, vector<1x1x128xf32>
    %170 = vector.shape_cast %169 : vector<1x1x128xf32> to vector<1x128xf32>
    %171 = vector.broadcast %170 : vector<1x128xf32> to vector<8x128xf32>
    %172 = arith.mulf %168, %171 : vector<8x128xf32>
    %c2_96 = arith.constant 2 : index
    %c0_97 = arith.constant 0 : index
    %c0_98 = arith.constant 0 : index
    %173 = vector.load %arg6[%c2_96, %c0_97, %c0_98] : memref<9x8x8xf32, #tpu.memory_space<vmem>>, vector<1x8x8xf32>
    %174 = vector.shape_cast %173 : vector<1x8x8xf32> to vector<8x8xf32>
    %cst_99 = arith.constant dense<0.000000e+00> : vector<8x128xf32>
    %175 = tpu.matmul %174, %172, %cst_99 {dimension_numbers = #tpu.dot_dimension_numbers<[1], [0], [0], [1], [0, 0, 1, 1], [], []>} : vector<8x8xf32>, vector<8x128xf32>, vector<8x128xf32> -> vector<8x128xf32>
    %176 = arith.addf %167, %175 : vector<8x128xf32>
    %c1_i32_100 = arith.constant 1 : i32
    %177 = tpu.dynamic_rotate %150 by %c1_i32_100 dim 1 : vector<8x128xf32>, i32 -> vector<8x128xf32>
    %c3_101 = arith.constant 3 : index
    %c0_102 = arith.constant 0 : index
    %c0_103 = arith.constant 0 : index
    %178 = vector.load %arg34[%c3_101, %c0_102, %c0_103] : memref<9x1x128xf32, #tpu.memory_space<vmem>>, vector<1x1x128xf32>
    %179 = vector.shape_cast %178 : vector<1x1x128xf32> to vector<1x128xf32>
    %180 = vector.broadcast %179 : vector<1x128xf32> to vector<8x128xf32>
    %181 = arith.mulf %177, %180 : vector<8x128xf32>
    %c3_104 = arith.constant 3 : index
    %c0_105 = arith.constant 0 : index
    %c0_106 = arith.constant 0 : index
    %182 = vector.load %arg6[%c3_104, %c0_105, %c0_106] : memref<9x8x8xf32, #tpu.memory_space<vmem>>, vector<1x8x8xf32>
    %183 = vector.shape_cast %182 : vector<1x8x8xf32> to vector<8x8xf32>
    %cst_107 = arith.constant dense<0.000000e+00> : vector<8x128xf32>
    %184 = tpu.matmul %183, %181, %cst_107 {dimension_numbers = #tpu.dot_dimension_numbers<[1], [0], [0], [1], [0, 0, 1, 1], [], []>} : vector<8x8xf32>, vector<8x128xf32>, vector<8x128xf32> -> vector<8x128xf32>
    %185 = arith.addf %176, %184 : vector<8x128xf32>
    %c4_108 = arith.constant 4 : index
    %c0_109 = arith.constant 0 : index
    %c0_110 = arith.constant 0 : index
    %186 = vector.load %arg6[%c4_108, %c0_109, %c0_110] : memref<9x8x8xf32, #tpu.memory_space<vmem>>, vector<1x8x8xf32>
    %187 = vector.shape_cast %186 : vector<1x8x8xf32> to vector<8x8xf32>
    %cst_111 = arith.constant dense<0.000000e+00> : vector<8x128xf32>
    %188 = tpu.matmul %187, %150, %cst_111 {dimension_numbers = #tpu.dot_dimension_numbers<[1], [0], [0], [1], [0, 0, 1, 1], [], []>} : vector<8x8xf32>, vector<8x128xf32>, vector<8x128xf32> -> vector<8x128xf32>
    %189 = arith.addf %185, %188 : vector<8x128xf32>
    %c127_i32_112 = arith.constant 127 : i32
    %190 = tpu.dynamic_rotate %150 by %c127_i32_112 dim 1 : vector<8x128xf32>, i32 -> vector<8x128xf32>
    %c5_113 = arith.constant 5 : index
    %c0_114 = arith.constant 0 : index
    %c0_115 = arith.constant 0 : index
    %191 = vector.load %arg34[%c5_113, %c0_114, %c0_115] : memref<9x1x128xf32, #tpu.memory_space<vmem>>, vector<1x1x128xf32>
    %192 = vector.shape_cast %191 : vector<1x1x128xf32> to vector<1x128xf32>
    %193 = vector.broadcast %192 : vector<1x128xf32> to vector<8x128xf32>
    %194 = arith.mulf %190, %193 : vector<8x128xf32>
    %c5_116 = arith.constant 5 : index
    %c0_117 = arith.constant 0 : index
    %c0_118 = arith.constant 0 : index
    %195 = vector.load %arg6[%c5_116, %c0_117, %c0_118] : memref<9x8x8xf32, #tpu.memory_space<vmem>>, vector<1x8x8xf32>
    %196 = vector.shape_cast %195 : vector<1x8x8xf32> to vector<8x8xf32>
    %cst_119 = arith.constant dense<0.000000e+00> : vector<8x128xf32>
    %197 = tpu.matmul %196, %194, %cst_119 {dimension_numbers = #tpu.dot_dimension_numbers<[1], [0], [0], [1], [0, 0, 1, 1], [], []>} : vector<8x8xf32>, vector<8x128xf32>, vector<8x128xf32> -> vector<8x128xf32>
    %198 = arith.addf %189, %197 : vector<8x128xf32>
    %c113_i32_120 = arith.constant 113 : i32
    %199 = tpu.dynamic_rotate %150 by %c113_i32_120 dim 1 : vector<8x128xf32>, i32 -> vector<8x128xf32>
    %c6_121 = arith.constant 6 : index
    %c0_122 = arith.constant 0 : index
    %c0_123 = arith.constant 0 : index
    %200 = vector.load %arg34[%c6_121, %c0_122, %c0_123] : memref<9x1x128xf32, #tpu.memory_space<vmem>>, vector<1x1x128xf32>
    %201 = vector.shape_cast %200 : vector<1x1x128xf32> to vector<1x128xf32>
    %202 = vector.broadcast %201 : vector<1x128xf32> to vector<8x128xf32>
    %203 = arith.mulf %199, %202 : vector<8x128xf32>
    %c6_124 = arith.constant 6 : index
    %c0_125 = arith.constant 0 : index
    %c0_126 = arith.constant 0 : index
    %204 = vector.load %arg6[%c6_124, %c0_125, %c0_126] : memref<9x8x8xf32, #tpu.memory_space<vmem>>, vector<1x8x8xf32>
    %205 = vector.shape_cast %204 : vector<1x8x8xf32> to vector<8x8xf32>
    %cst_127 = arith.constant dense<0.000000e+00> : vector<8x128xf32>
    %206 = tpu.matmul %205, %203, %cst_127 {dimension_numbers = #tpu.dot_dimension_numbers<[1], [0], [0], [1], [0, 0, 1, 1], [], []>} : vector<8x8xf32>, vector<8x128xf32>, vector<8x128xf32> -> vector<8x128xf32>
    %207 = arith.addf %198, %206 : vector<8x128xf32>
    %c112_i32_128 = arith.constant 112 : i32
    %208 = tpu.dynamic_rotate %150 by %c112_i32_128 dim 1 : vector<8x128xf32>, i32 -> vector<8x128xf32>
    %c7_129 = arith.constant 7 : index
    %c0_130 = arith.constant 0 : index
    %c0_131 = arith.constant 0 : index
    %209 = vector.load %arg34[%c7_129, %c0_130, %c0_131] : memref<9x1x128xf32, #tpu.memory_space<vmem>>, vector<1x1x128xf32>
    %210 = vector.shape_cast %209 : vector<1x1x128xf32> to vector<1x128xf32>
    %211 = vector.broadcast %210 : vector<1x128xf32> to vector<8x128xf32>
    %212 = arith.mulf %208, %211 : vector<8x128xf32>
    %c7_132 = arith.constant 7 : index
    %c0_133 = arith.constant 0 : index
    %c0_134 = arith.constant 0 : index
    %213 = vector.load %arg6[%c7_132, %c0_133, %c0_134] : memref<9x8x8xf32, #tpu.memory_space<vmem>>, vector<1x8x8xf32>
    %214 = vector.shape_cast %213 : vector<1x8x8xf32> to vector<8x8xf32>
    %cst_135 = arith.constant dense<0.000000e+00> : vector<8x128xf32>
    %215 = tpu.matmul %214, %212, %cst_135 {dimension_numbers = #tpu.dot_dimension_numbers<[1], [0], [0], [1], [0, 0, 1, 1], [], []>} : vector<8x8xf32>, vector<8x128xf32>, vector<8x128xf32> -> vector<8x128xf32>
    %216 = arith.addf %207, %215 : vector<8x128xf32>
    %c111_i32_136 = arith.constant 111 : i32
    %217 = tpu.dynamic_rotate %150 by %c111_i32_136 dim 1 : vector<8x128xf32>, i32 -> vector<8x128xf32>
    %c8_137 = arith.constant 8 : index
    %c0_138 = arith.constant 0 : index
    %c0_139 = arith.constant 0 : index
    %218 = vector.load %arg34[%c8_137, %c0_138, %c0_139] : memref<9x1x128xf32, #tpu.memory_space<vmem>>, vector<1x1x128xf32>
    %219 = vector.shape_cast %218 : vector<1x1x128xf32> to vector<1x128xf32>
    %220 = vector.broadcast %219 : vector<1x128xf32> to vector<8x128xf32>
    %221 = arith.mulf %217, %220 : vector<8x128xf32>
    %c8_140 = arith.constant 8 : index
    %c0_141 = arith.constant 0 : index
    %c0_142 = arith.constant 0 : index
    %222 = vector.load %arg6[%c8_140, %c0_141, %c0_142] : memref<9x8x8xf32, #tpu.memory_space<vmem>>, vector<1x8x8xf32>
    %223 = vector.shape_cast %222 : vector<1x8x8xf32> to vector<8x8xf32>
    %cst_143 = arith.constant dense<0.000000e+00> : vector<8x128xf32>
    %224 = tpu.matmul %223, %221, %cst_143 {dimension_numbers = #tpu.dot_dimension_numbers<[1], [0], [0], [1], [0, 0, 1, 1], [], []>} : vector<8x8xf32>, vector<8x128xf32>, vector<8x128xf32> -> vector<8x128xf32>
    %225 = arith.addf %216, %224 : vector<8x128xf32>
    %c0_144 = arith.constant 0 : index
    %c0_145 = arith.constant 0 : index
    %226 = vector.load %arg7[%c0_144, %c0_145] : memref<8x3xf32, #tpu.memory_space<vmem>>, vector<8x3xf32>
    %227 = vector.extract_strided_slice %226 {offsets = [0, 0], sizes = [8, 1], strides = [1, 1]} : vector<8x3xf32> to vector<8x1xf32>
    %228 = vector.broadcast %227 : vector<8x1xf32> to vector<8x128xf32>
    %229 = arith.addf %225, %228 : vector<8x128xf32>
    %230 = vector.extract_strided_slice %226 {offsets = [0, 1], sizes = [8, 1], strides = [1, 1]} : vector<8x3xf32> to vector<8x1xf32>
    %231 = vector.extract_strided_slice %226 {offsets = [0, 2], sizes = [8, 1], strides = [1, 1]} : vector<8x3xf32> to vector<8x1xf32>
    %cst_146 = arith.constant dense<0.000000e+00> : vector<8xf32>
    %232 = vector.multi_reduction <add>, %229, %cst_146 [1] : vector<8x128xf32> to vector<8xf32>
    %233 = vector.shape_cast %232 : vector<8xf32> to vector<8x1xf32>
    %234 = arith.mulf %229, %229 : vector<8x128xf32>
    %cst_147 = arith.constant dense<0.000000e+00> : vector<8xf32>
    %235 = vector.multi_reduction <add>, %234, %cst_147 [1] : vector<8x128xf32> to vector<8xf32>
    %236 = vector.shape_cast %235 : vector<8xf32> to vector<8x1xf32>
    %237 = vector.extract_strided_slice %233 {offsets = [0, 0], sizes = [4, 1], strides = [1, 1]} : vector<8x1xf32> to vector<4x1xf32>
    %cst_148 = arith.constant dense<0.000000e+00> : vector<1xf32>
    %238 = vector.multi_reduction <add>, %237, %cst_148 [0] : vector<4x1xf32> to vector<1xf32>
    %239 = vector.shape_cast %238 : vector<1xf32> to vector<1x1xf32>
    %240 = vector.extract_strided_slice %233 {offsets = [4, 0], sizes = [4, 1], strides = [1, 1]} : vector<8x1xf32> to vector<4x1xf32>
    %cst_149 = arith.constant dense<0.000000e+00> : vector<1xf32>
    %241 = vector.multi_reduction <add>, %240, %cst_149 [0] : vector<4x1xf32> to vector<1xf32>
    %242 = vector.shape_cast %241 : vector<1xf32> to vector<1x1xf32>
    %243 = vector.extract_strided_slice %236 {offsets = [0, 0], sizes = [4, 1], strides = [1, 1]} : vector<8x1xf32> to vector<4x1xf32>
    %cst_150 = arith.constant dense<0.000000e+00> : vector<1xf32>
    %244 = vector.multi_reduction <add>, %243, %cst_150 [0] : vector<4x1xf32> to vector<1xf32>
    %245 = vector.shape_cast %244 : vector<1xf32> to vector<1x1xf32>
    %246 = vector.extract_strided_slice %236 {offsets = [4, 0], sizes = [4, 1], strides = [1, 1]} : vector<8x1xf32> to vector<4x1xf32>
    %cst_151 = arith.constant dense<0.000000e+00> : vector<1xf32>
    %247 = vector.multi_reduction <add>, %246, %cst_151 [0] : vector<4x1xf32> to vector<1xf32>
    %248 = vector.shape_cast %247 : vector<1xf32> to vector<1x1xf32>
    %cst_152 = arith.constant 5.120000e+02 : f32
    %249 = vector.broadcast %cst_152 : f32 to vector<1x1xf32>
    %250 = arith.divf %239, %249 : vector<1x1xf32>
    %cst_153 = arith.constant 5.120000e+02 : f32
    %251 = vector.broadcast %cst_153 : f32 to vector<1x1xf32>
    %252 = arith.divf %242, %251 : vector<1x1xf32>
    %cst_154 = arith.constant 5.120000e+02 : f32
    %253 = vector.broadcast %cst_154 : f32 to vector<1x1xf32>
    %254 = arith.divf %245, %253 : vector<1x1xf32>
    %255 = arith.mulf %250, %250 : vector<1x1xf32>
    %256 = arith.subf %254, %255 : vector<1x1xf32>
    %cst_155 = arith.constant 0.000000e+00 : f32
    %257 = vector.broadcast %cst_155 : f32 to vector<1x1xf32>
    %258 = arith.maximumf %256, %257 : vector<1x1xf32>
    %cst_156 = arith.constant 9.99999974E-6 : f32
    %259 = vector.broadcast %cst_156 : f32 to vector<1x1xf32>
    %260 = arith.addf %258, %259 : vector<1x1xf32>
    %261 = math.rsqrt %260 : vector<1x1xf32>
    %cst_157 = arith.constant 5.120000e+02 : f32
    %262 = vector.broadcast %cst_157 : f32 to vector<1x1xf32>
    %263 = arith.divf %248, %262 : vector<1x1xf32>
    %264 = arith.mulf %252, %252 : vector<1x1xf32>
    %265 = arith.subf %263, %264 : vector<1x1xf32>
    %cst_158 = arith.constant 0.000000e+00 : f32
    %266 = vector.broadcast %cst_158 : f32 to vector<1x1xf32>
    %267 = arith.maximumf %265, %266 : vector<1x1xf32>
    %cst_159 = arith.constant 9.99999974E-6 : f32
    %268 = vector.broadcast %cst_159 : f32 to vector<1x1xf32>
    %269 = arith.addf %267, %268 : vector<1x1xf32>
    %270 = math.rsqrt %269 : vector<1x1xf32>
    %271 = tpu.iota {dimensions = array<i32: 0>} : vector<8x1xi32>
    %c4_i32_160 = arith.constant 4 : i32
    %272 = vector.broadcast %c4_i32_160 : i32 to vector<8x1xi32>
    %273 = arith.cmpi slt, %271, %272 : vector<8x1xi32>
    %274 = vector.shape_cast %250 : vector<1x1xf32> to vector<1x1xf32>
    %275 = vector.broadcast %274 : vector<1x1xf32> to vector<8x1xf32>
    %276 = vector.shape_cast %252 : vector<1x1xf32> to vector<1x1xf32>
    %277 = vector.broadcast %276 : vector<1x1xf32> to vector<8x1xf32>
    %278 = arith.select %273, %275, %277 : vector<8x1xi1>, vector<8x1xf32>
    %279 = vector.shape_cast %261 : vector<1x1xf32> to vector<1x1xf32>
    %280 = vector.broadcast %279 : vector<1x1xf32> to vector<8x1xf32>
    %281 = vector.shape_cast %270 : vector<1x1xf32> to vector<1x1xf32>
    %282 = vector.broadcast %281 : vector<1x1xf32> to vector<8x1xf32>
    %283 = arith.select %273, %280, %282 : vector<8x1xi1>, vector<8x1xf32>
    %284 = arith.mulf %283, %230 : vector<8x1xf32>
    %285 = arith.mulf %278, %284 : vector<8x1xf32>
    %286 = arith.subf %231, %285 : vector<8x1xf32>
    %287 = vector.broadcast %284 : vector<8x1xf32> to vector<8x128xf32>
    %288 = arith.mulf %229, %287 : vector<8x128xf32>
    %289 = vector.broadcast %286 : vector<8x1xf32> to vector<8x128xf32>
    %290 = arith.addf %288, %289 : vector<8x128xf32>
    %cst_161 = arith.constant 0.000000e+00 : f32
    %291 = vector.broadcast %cst_161 : f32 to vector<8x128xf32>
    %292 = arith.maximumf %290, %291 : vector<8x128xf32>
    %c0_162 = arith.constant 0 : index
    %c0_163 = arith.constant 0 : index
    %c0_164 = arith.constant 0 : index
    %293 = vector.load %arg8[%c0_162, %c0_163, %c0_164] : memref<4x16x8xf32, #tpu.memory_space<vmem>>, vector<1x16x8xf32>
    %294 = vector.shape_cast %293 : vector<1x16x8xf32> to vector<16x8xf32>
    %cst_165 = arith.constant dense<0.000000e+00> : vector<16x128xf32>
    %295 = tpu.matmul %294, %292, %cst_165 {dimension_numbers = #tpu.dot_dimension_numbers<[1], [0], [0], [1], [0, 0, 1, 1], [], []>} : vector<16x8xf32>, vector<8x128xf32>, vector<16x128xf32> -> vector<16x128xf32>
    %c0_166 = arith.constant 0 : index
    %c0_167 = arith.constant 0 : index
    %c0_168 = arith.constant 0 : index
    %296 = vector.load %arg39[%c0_166, %c0_167, %c0_168] : memref<4x128x32xf32, #tpu.memory_space<vmem>>, vector<1x128x32xf32>
    %297 = vector.shape_cast %296 : vector<1x128x32xf32> to vector<128x32xf32>
    %cst_169 = arith.constant dense<0.000000e+00> : vector<16x32xf32>
    %298 = tpu.matmul %295, %297, %cst_169 {dimension_numbers = #tpu.dot_dimension_numbers<[1], [0], [0], [1], [0, 0, 1, 1], [], []>} : vector<16x128xf32>, vector<128x32xf32>, vector<16x32xf32> -> vector<16x32xf32>
    %c1_170 = arith.constant 1 : index
    %c0_171 = arith.constant 0 : index
    %c0_172 = arith.constant 0 : index
    %299 = vector.load %arg8[%c1_170, %c0_171, %c0_172] : memref<4x16x8xf32, #tpu.memory_space<vmem>>, vector<1x16x8xf32>
    %300 = vector.shape_cast %299 : vector<1x16x8xf32> to vector<16x8xf32>
    %cst_173 = arith.constant dense<0.000000e+00> : vector<16x128xf32>
    %301 = tpu.matmul %300, %292, %cst_173 {dimension_numbers = #tpu.dot_dimension_numbers<[1], [0], [0], [1], [0, 0, 1, 1], [], []>} : vector<16x8xf32>, vector<8x128xf32>, vector<16x128xf32> -> vector<16x128xf32>
    %c1_174 = arith.constant 1 : index
    %c0_175 = arith.constant 0 : index
    %c0_176 = arith.constant 0 : index
    %302 = vector.load %arg39[%c1_174, %c0_175, %c0_176] : memref<4x128x32xf32, #tpu.memory_space<vmem>>, vector<1x128x32xf32>
    %303 = vector.shape_cast %302 : vector<1x128x32xf32> to vector<128x32xf32>
    %cst_177 = arith.constant dense<0.000000e+00> : vector<16x32xf32>
    %304 = tpu.matmul %301, %303, %cst_177 {dimension_numbers = #tpu.dot_dimension_numbers<[1], [0], [0], [1], [0, 0, 1, 1], [], []>} : vector<16x128xf32>, vector<128x32xf32>, vector<16x32xf32> -> vector<16x32xf32>
    %305 = arith.addf %298, %304 : vector<16x32xf32>
    %c2_178 = arith.constant 2 : index
    %c0_179 = arith.constant 0 : index
    %c0_180 = arith.constant 0 : index
    %306 = vector.load %arg8[%c2_178, %c0_179, %c0_180] : memref<4x16x8xf32, #tpu.memory_space<vmem>>, vector<1x16x8xf32>
    %307 = vector.shape_cast %306 : vector<1x16x8xf32> to vector<16x8xf32>
    %cst_181 = arith.constant dense<0.000000e+00> : vector<16x128xf32>
    %308 = tpu.matmul %307, %292, %cst_181 {dimension_numbers = #tpu.dot_dimension_numbers<[1], [0], [0], [1], [0, 0, 1, 1], [], []>} : vector<16x8xf32>, vector<8x128xf32>, vector<16x128xf32> -> vector<16x128xf32>
    %c2_182 = arith.constant 2 : index
    %c0_183 = arith.constant 0 : index
    %c0_184 = arith.constant 0 : index
    %309 = vector.load %arg39[%c2_182, %c0_183, %c0_184] : memref<4x128x32xf32, #tpu.memory_space<vmem>>, vector<1x128x32xf32>
    %310 = vector.shape_cast %309 : vector<1x128x32xf32> to vector<128x32xf32>
    %cst_185 = arith.constant dense<0.000000e+00> : vector<16x32xf32>
    %311 = tpu.matmul %308, %310, %cst_185 {dimension_numbers = #tpu.dot_dimension_numbers<[1], [0], [0], [1], [0, 0, 1, 1], [], []>} : vector<16x128xf32>, vector<128x32xf32>, vector<16x32xf32> -> vector<16x32xf32>
    %312 = arith.addf %305, %311 : vector<16x32xf32>
    %c3_186 = arith.constant 3 : index
    %c0_187 = arith.constant 0 : index
    %c0_188 = arith.constant 0 : index
    %313 = vector.load %arg8[%c3_186, %c0_187, %c0_188] : memref<4x16x8xf32, #tpu.memory_space<vmem>>, vector<1x16x8xf32>
    %314 = vector.shape_cast %313 : vector<1x16x8xf32> to vector<16x8xf32>
    %cst_189 = arith.constant dense<0.000000e+00> : vector<16x128xf32>
    %315 = tpu.matmul %314, %292, %cst_189 {dimension_numbers = #tpu.dot_dimension_numbers<[1], [0], [0], [1], [0, 0, 1, 1], [], []>} : vector<16x8xf32>, vector<8x128xf32>, vector<16x128xf32> -> vector<16x128xf32>
    %c3_190 = arith.constant 3 : index
    %c0_191 = arith.constant 0 : index
    %c0_192 = arith.constant 0 : index
    %316 = vector.load %arg39[%c3_190, %c0_191, %c0_192] : memref<4x128x32xf32, #tpu.memory_space<vmem>>, vector<1x128x32xf32>
    %317 = vector.shape_cast %316 : vector<1x128x32xf32> to vector<128x32xf32>
    %cst_193 = arith.constant dense<0.000000e+00> : vector<16x32xf32>
    %318 = tpu.matmul %315, %317, %cst_193 {dimension_numbers = #tpu.dot_dimension_numbers<[1], [0], [0], [1], [0, 0, 1, 1], [], []>} : vector<16x128xf32>, vector<128x32xf32>, vector<16x32xf32> -> vector<16x32xf32>
    %319 = arith.addf %312, %318 : vector<16x32xf32>
    %c0_194 = arith.constant 0 : index
    %c0_195 = arith.constant 0 : index
    %320 = vector.load %arg9[%c0_194, %c0_195] : memref<16x1xf32, #tpu.memory_space<vmem>>, vector<16x1xf32>
    %321 = vector.broadcast %320 : vector<16x1xf32> to vector<16x32xf32>
    %322 = arith.addf %319, %321 : vector<16x32xf32>
    %cst_196 = arith.constant 0.000000e+00 : f32
    %323 = vector.broadcast %cst_196 : f32 to vector<16x32xf32>
    %324 = arith.maximumf %322, %323 : vector<16x32xf32>
    %c9_i32 = arith.constant 9 : i32
    %325 = tpu.dynamic_rotate %324 by %c9_i32 dim 1 : vector<16x32xf32>, i32 -> vector<16x32xf32>
    %c0_197 = arith.constant 0 : index
    %c0_198 = arith.constant 0 : index
    %c0_199 = arith.constant 0 : index
    %326 = vector.load %arg35[%c0_197, %c0_198, %c0_199] : memref<9x1x32xf32, #tpu.memory_space<vmem>>, vector<1x1x32xf32>
    %327 = vector.shape_cast %326 : vector<1x1x32xf32> to vector<1x32xf32>
    %328 = vector.broadcast %327 : vector<1x32xf32> to vector<16x32xf32>
    %329 = arith.mulf %325, %328 : vector<16x32xf32>
    %c0_200 = arith.constant 0 : index
    %c0_201 = arith.constant 0 : index
    %c0_202 = arith.constant 0 : index
    %330 = vector.load %arg10[%c0_200, %c0_201, %c0_202] : memref<9x16x16xf32, #tpu.memory_space<vmem>>, vector<1x16x16xf32>
    %331 = vector.shape_cast %330 : vector<1x16x16xf32> to vector<16x16xf32>
    %cst_203 = arith.constant dense<0.000000e+00> : vector<16x32xf32>
    %332 = tpu.matmul %331, %329, %cst_203 {dimension_numbers = #tpu.dot_dimension_numbers<[1], [0], [0], [1], [0, 0, 1, 1], [], []>} : vector<16x16xf32>, vector<16x32xf32>, vector<16x32xf32> -> vector<16x32xf32>
    %c8_i32 = arith.constant 8 : i32
    %333 = tpu.dynamic_rotate %324 by %c8_i32 dim 1 : vector<16x32xf32>, i32 -> vector<16x32xf32>
    %c1_204 = arith.constant 1 : index
    %c0_205 = arith.constant 0 : index
    %c0_206 = arith.constant 0 : index
    %334 = vector.load %arg35[%c1_204, %c0_205, %c0_206] : memref<9x1x32xf32, #tpu.memory_space<vmem>>, vector<1x1x32xf32>
    %335 = vector.shape_cast %334 : vector<1x1x32xf32> to vector<1x32xf32>
    %336 = vector.broadcast %335 : vector<1x32xf32> to vector<16x32xf32>
    %337 = arith.mulf %333, %336 : vector<16x32xf32>
    %c1_207 = arith.constant 1 : index
    %c0_208 = arith.constant 0 : index
    %c0_209 = arith.constant 0 : index
    %338 = vector.load %arg10[%c1_207, %c0_208, %c0_209] : memref<9x16x16xf32, #tpu.memory_space<vmem>>, vector<1x16x16xf32>
    %339 = vector.shape_cast %338 : vector<1x16x16xf32> to vector<16x16xf32>
    %cst_210 = arith.constant dense<0.000000e+00> : vector<16x32xf32>
    %340 = tpu.matmul %339, %337, %cst_210 {dimension_numbers = #tpu.dot_dimension_numbers<[1], [0], [0], [1], [0, 0, 1, 1], [], []>} : vector<16x16xf32>, vector<16x32xf32>, vector<16x32xf32> -> vector<16x32xf32>
    %341 = arith.addf %332, %340 : vector<16x32xf32>
    %c7_i32 = arith.constant 7 : i32
    %342 = tpu.dynamic_rotate %324 by %c7_i32 dim 1 : vector<16x32xf32>, i32 -> vector<16x32xf32>
    %c2_211 = arith.constant 2 : index
    %c0_212 = arith.constant 0 : index
    %c0_213 = arith.constant 0 : index
    %343 = vector.load %arg35[%c2_211, %c0_212, %c0_213] : memref<9x1x32xf32, #tpu.memory_space<vmem>>, vector<1x1x32xf32>
    %344 = vector.shape_cast %343 : vector<1x1x32xf32> to vector<1x32xf32>
    %345 = vector.broadcast %344 : vector<1x32xf32> to vector<16x32xf32>
    %346 = arith.mulf %342, %345 : vector<16x32xf32>
    %c2_214 = arith.constant 2 : index
    %c0_215 = arith.constant 0 : index
    %c0_216 = arith.constant 0 : index
    %347 = vector.load %arg10[%c2_214, %c0_215, %c0_216] : memref<9x16x16xf32, #tpu.memory_space<vmem>>, vector<1x16x16xf32>
    %348 = vector.shape_cast %347 : vector<1x16x16xf32> to vector<16x16xf32>
    %cst_217 = arith.constant dense<0.000000e+00> : vector<16x32xf32>
    %349 = tpu.matmul %348, %346, %cst_217 {dimension_numbers = #tpu.dot_dimension_numbers<[1], [0], [0], [1], [0, 0, 1, 1], [], []>} : vector<16x16xf32>, vector<16x32xf32>, vector<16x32xf32> -> vector<16x32xf32>
    %350 = arith.addf %341, %349 : vector<16x32xf32>
    %c1_i32_218 = arith.constant 1 : i32
    %351 = tpu.dynamic_rotate %324 by %c1_i32_218 dim 1 : vector<16x32xf32>, i32 -> vector<16x32xf32>
    %c3_219 = arith.constant 3 : index
    %c0_220 = arith.constant 0 : index
    %c0_221 = arith.constant 0 : index
    %352 = vector.load %arg35[%c3_219, %c0_220, %c0_221] : memref<9x1x32xf32, #tpu.memory_space<vmem>>, vector<1x1x32xf32>
    %353 = vector.shape_cast %352 : vector<1x1x32xf32> to vector<1x32xf32>
    %354 = vector.broadcast %353 : vector<1x32xf32> to vector<16x32xf32>
    %355 = arith.mulf %351, %354 : vector<16x32xf32>
    %c3_222 = arith.constant 3 : index
    %c0_223 = arith.constant 0 : index
    %c0_224 = arith.constant 0 : index
    %356 = vector.load %arg10[%c3_222, %c0_223, %c0_224] : memref<9x16x16xf32, #tpu.memory_space<vmem>>, vector<1x16x16xf32>
    %357 = vector.shape_cast %356 : vector<1x16x16xf32> to vector<16x16xf32>
    %cst_225 = arith.constant dense<0.000000e+00> : vector<16x32xf32>
    %358 = tpu.matmul %357, %355, %cst_225 {dimension_numbers = #tpu.dot_dimension_numbers<[1], [0], [0], [1], [0, 0, 1, 1], [], []>} : vector<16x16xf32>, vector<16x32xf32>, vector<16x32xf32> -> vector<16x32xf32>
    %359 = arith.addf %350, %358 : vector<16x32xf32>
    %c4_226 = arith.constant 4 : index
    %c0_227 = arith.constant 0 : index
    %c0_228 = arith.constant 0 : index
    %360 = vector.load %arg10[%c4_226, %c0_227, %c0_228] : memref<9x16x16xf32, #tpu.memory_space<vmem>>, vector<1x16x16xf32>
    %361 = vector.shape_cast %360 : vector<1x16x16xf32> to vector<16x16xf32>
    %cst_229 = arith.constant dense<0.000000e+00> : vector<16x32xf32>
    %362 = tpu.matmul %361, %324, %cst_229 {dimension_numbers = #tpu.dot_dimension_numbers<[1], [0], [0], [1], [0, 0, 1, 1], [], []>} : vector<16x16xf32>, vector<16x32xf32>, vector<16x32xf32> -> vector<16x32xf32>
    %363 = arith.addf %359, %362 : vector<16x32xf32>
    %c31_i32 = arith.constant 31 : i32
    %364 = tpu.dynamic_rotate %324 by %c31_i32 dim 1 : vector<16x32xf32>, i32 -> vector<16x32xf32>
    %c5_230 = arith.constant 5 : index
    %c0_231 = arith.constant 0 : index
    %c0_232 = arith.constant 0 : index
    %365 = vector.load %arg35[%c5_230, %c0_231, %c0_232] : memref<9x1x32xf32, #tpu.memory_space<vmem>>, vector<1x1x32xf32>
    %366 = vector.shape_cast %365 : vector<1x1x32xf32> to vector<1x32xf32>
    %367 = vector.broadcast %366 : vector<1x32xf32> to vector<16x32xf32>
    %368 = arith.mulf %364, %367 : vector<16x32xf32>
    %c5_233 = arith.constant 5 : index
    %c0_234 = arith.constant 0 : index
    %c0_235 = arith.constant 0 : index
    %369 = vector.load %arg10[%c5_233, %c0_234, %c0_235] : memref<9x16x16xf32, #tpu.memory_space<vmem>>, vector<1x16x16xf32>
    %370 = vector.shape_cast %369 : vector<1x16x16xf32> to vector<16x16xf32>
    %cst_236 = arith.constant dense<0.000000e+00> : vector<16x32xf32>
    %371 = tpu.matmul %370, %368, %cst_236 {dimension_numbers = #tpu.dot_dimension_numbers<[1], [0], [0], [1], [0, 0, 1, 1], [], []>} : vector<16x16xf32>, vector<16x32xf32>, vector<16x32xf32> -> vector<16x32xf32>
    %372 = arith.addf %363, %371 : vector<16x32xf32>
    %c25_i32 = arith.constant 25 : i32
    %373 = tpu.dynamic_rotate %324 by %c25_i32 dim 1 : vector<16x32xf32>, i32 -> vector<16x32xf32>
    %c6_237 = arith.constant 6 : index
    %c0_238 = arith.constant 0 : index
    %c0_239 = arith.constant 0 : index
    %374 = vector.load %arg35[%c6_237, %c0_238, %c0_239] : memref<9x1x32xf32, #tpu.memory_space<vmem>>, vector<1x1x32xf32>
    %375 = vector.shape_cast %374 : vector<1x1x32xf32> to vector<1x32xf32>
    %376 = vector.broadcast %375 : vector<1x32xf32> to vector<16x32xf32>
    %377 = arith.mulf %373, %376 : vector<16x32xf32>
    %c6_240 = arith.constant 6 : index
    %c0_241 = arith.constant 0 : index
    %c0_242 = arith.constant 0 : index
    %378 = vector.load %arg10[%c6_240, %c0_241, %c0_242] : memref<9x16x16xf32, #tpu.memory_space<vmem>>, vector<1x16x16xf32>
    %379 = vector.shape_cast %378 : vector<1x16x16xf32> to vector<16x16xf32>
    %cst_243 = arith.constant dense<0.000000e+00> : vector<16x32xf32>
    %380 = tpu.matmul %379, %377, %cst_243 {dimension_numbers = #tpu.dot_dimension_numbers<[1], [0], [0], [1], [0, 0, 1, 1], [], []>} : vector<16x16xf32>, vector<16x32xf32>, vector<16x32xf32> -> vector<16x32xf32>
    %381 = arith.addf %372, %380 : vector<16x32xf32>
    %c24_i32 = arith.constant 24 : i32
    %382 = tpu.dynamic_rotate %324 by %c24_i32 dim 1 : vector<16x32xf32>, i32 -> vector<16x32xf32>
    %c7_244 = arith.constant 7 : index
    %c0_245 = arith.constant 0 : index
    %c0_246 = arith.constant 0 : index
    %383 = vector.load %arg35[%c7_244, %c0_245, %c0_246] : memref<9x1x32xf32, #tpu.memory_space<vmem>>, vector<1x1x32xf32>
    %384 = vector.shape_cast %383 : vector<1x1x32xf32> to vector<1x32xf32>
    %385 = vector.broadcast %384 : vector<1x32xf32> to vector<16x32xf32>
    %386 = arith.mulf %382, %385 : vector<16x32xf32>
    %c7_247 = arith.constant 7 : index
    %c0_248 = arith.constant 0 : index
    %c0_249 = arith.constant 0 : index
    %387 = vector.load %arg10[%c7_247, %c0_248, %c0_249] : memref<9x16x16xf32, #tpu.memory_space<vmem>>, vector<1x16x16xf32>
    %388 = vector.shape_cast %387 : vector<1x16x16xf32> to vector<16x16xf32>
    %cst_250 = arith.constant dense<0.000000e+00> : vector<16x32xf32>
    %389 = tpu.matmul %388, %386, %cst_250 {dimension_numbers = #tpu.dot_dimension_numbers<[1], [0], [0], [1], [0, 0, 1, 1], [], []>} : vector<16x16xf32>, vector<16x32xf32>, vector<16x32xf32> -> vector<16x32xf32>
    %390 = arith.addf %381, %389 : vector<16x32xf32>
    %c23_i32 = arith.constant 23 : i32
    %391 = tpu.dynamic_rotate %324 by %c23_i32 dim 1 : vector<16x32xf32>, i32 -> vector<16x32xf32>
    %c8_251 = arith.constant 8 : index
    %c0_252 = arith.constant 0 : index
    %c0_253 = arith.constant 0 : index
    %392 = vector.load %arg35[%c8_251, %c0_252, %c0_253] : memref<9x1x32xf32, #tpu.memory_space<vmem>>, vector<1x1x32xf32>
    %393 = vector.shape_cast %392 : vector<1x1x32xf32> to vector<1x32xf32>
    %394 = vector.broadcast %393 : vector<1x32xf32> to vector<16x32xf32>
    %395 = arith.mulf %391, %394 : vector<16x32xf32>
    %c8_254 = arith.constant 8 : index
    %c0_255 = arith.constant 0 : index
    %c0_256 = arith.constant 0 : index
    %396 = vector.load %arg10[%c8_254, %c0_255, %c0_256] : memref<9x16x16xf32, #tpu.memory_space<vmem>>, vector<1x16x16xf32>
    %397 = vector.shape_cast %396 : vector<1x16x16xf32> to vector<16x16xf32>
    %cst_257 = arith.constant dense<0.000000e+00> : vector<16x32xf32>
    %398 = tpu.matmul %397, %395, %cst_257 {dimension_numbers = #tpu.dot_dimension_numbers<[1], [0], [0], [1], [0, 0, 1, 1], [], []>} : vector<16x16xf32>, vector<16x32xf32>, vector<16x32xf32> -> vector<16x32xf32>
    %399 = arith.addf %390, %398 : vector<16x32xf32>
    %c0_258 = arith.constant 0 : index
    %c0_259 = arith.constant 0 : index
    %400 = vector.load %arg11[%c0_258, %c0_259] : memref<16x3xf32, #tpu.memory_space<vmem>>, vector<16x3xf32>
    %401 = vector.extract_strided_slice %400 {offsets = [0, 0], sizes = [16, 1], strides = [1, 1]} : vector<16x3xf32> to vector<16x1xf32>
    %402 = vector.broadcast %401 : vector<16x1xf32> to vector<16x32xf32>
    %403 = arith.addf %399, %402 : vector<16x32xf32>
    %404 = vector.extract_strided_slice %400 {offsets = [0, 1], sizes = [16, 1], strides = [1, 1]} : vector<16x3xf32> to vector<16x1xf32>
    %405 = vector.extract_strided_slice %400 {offsets = [0, 2], sizes = [16, 1], strides = [1, 1]} : vector<16x3xf32> to vector<16x1xf32>
    %cst_260 = arith.constant dense<0.000000e+00> : vector<16xf32>
    %406 = vector.multi_reduction <add>, %403, %cst_260 [1] : vector<16x32xf32> to vector<16xf32>
    %407 = vector.shape_cast %406 : vector<16xf32> to vector<16x1xf32>
    %408 = arith.mulf %403, %403 : vector<16x32xf32>
    %cst_261 = arith.constant dense<0.000000e+00> : vector<16xf32>
    %409 = vector.multi_reduction <add>, %408, %cst_261 [1] : vector<16x32xf32> to vector<16xf32>
    %410 = vector.shape_cast %409 : vector<16xf32> to vector<16x1xf32>
    %411 = vector.extract_strided_slice %407 {offsets = [0, 0], sizes = [8, 1], strides = [1, 1]} : vector<16x1xf32> to vector<8x1xf32>
    %cst_262 = arith.constant dense<0.000000e+00> : vector<1xf32>
    %412 = vector.multi_reduction <add>, %411, %cst_262 [0] : vector<8x1xf32> to vector<1xf32>
    %413 = vector.shape_cast %412 : vector<1xf32> to vector<1x1xf32>
    %414 = vector.extract_strided_slice %407 {offsets = [8, 0], sizes = [8, 1], strides = [1, 1]} : vector<16x1xf32> to vector<8x1xf32>
    %cst_263 = arith.constant dense<0.000000e+00> : vector<1xf32>
    %415 = vector.multi_reduction <add>, %414, %cst_263 [0] : vector<8x1xf32> to vector<1xf32>
    %416 = vector.shape_cast %415 : vector<1xf32> to vector<1x1xf32>
    %417 = vector.extract_strided_slice %410 {offsets = [0, 0], sizes = [8, 1], strides = [1, 1]} : vector<16x1xf32> to vector<8x1xf32>
    %cst_264 = arith.constant dense<0.000000e+00> : vector<1xf32>
    %418 = vector.multi_reduction <add>, %417, %cst_264 [0] : vector<8x1xf32> to vector<1xf32>
    %419 = vector.shape_cast %418 : vector<1xf32> to vector<1x1xf32>
    %420 = vector.extract_strided_slice %410 {offsets = [8, 0], sizes = [8, 1], strides = [1, 1]} : vector<16x1xf32> to vector<8x1xf32>
    %cst_265 = arith.constant dense<0.000000e+00> : vector<1xf32>
    %421 = vector.multi_reduction <add>, %420, %cst_265 [0] : vector<8x1xf32> to vector<1xf32>
    %422 = vector.shape_cast %421 : vector<1xf32> to vector<1x1xf32>
    %cst_266 = arith.constant 2.560000e+02 : f32
    %423 = vector.broadcast %cst_266 : f32 to vector<1x1xf32>
    %424 = arith.divf %413, %423 : vector<1x1xf32>
    %cst_267 = arith.constant 2.560000e+02 : f32
    %425 = vector.broadcast %cst_267 : f32 to vector<1x1xf32>
    %426 = arith.divf %416, %425 : vector<1x1xf32>
    %cst_268 = arith.constant 2.560000e+02 : f32
    %427 = vector.broadcast %cst_268 : f32 to vector<1x1xf32>
    %428 = arith.divf %419, %427 : vector<1x1xf32>
    %429 = arith.mulf %424, %424 : vector<1x1xf32>
    %430 = arith.subf %428, %429 : vector<1x1xf32>
    %cst_269 = arith.constant 0.000000e+00 : f32
    %431 = vector.broadcast %cst_269 : f32 to vector<1x1xf32>
    %432 = arith.maximumf %430, %431 : vector<1x1xf32>
    %cst_270 = arith.constant 9.99999974E-6 : f32
    %433 = vector.broadcast %cst_270 : f32 to vector<1x1xf32>
    %434 = arith.addf %432, %433 : vector<1x1xf32>
    %435 = math.rsqrt %434 : vector<1x1xf32>
    %cst_271 = arith.constant 2.560000e+02 : f32
    %436 = vector.broadcast %cst_271 : f32 to vector<1x1xf32>
    %437 = arith.divf %422, %436 : vector<1x1xf32>
    %438 = arith.mulf %426, %426 : vector<1x1xf32>
    %439 = arith.subf %437, %438 : vector<1x1xf32>
    %cst_272 = arith.constant 0.000000e+00 : f32
    %440 = vector.broadcast %cst_272 : f32 to vector<1x1xf32>
    %441 = arith.maximumf %439, %440 : vector<1x1xf32>
    %cst_273 = arith.constant 9.99999974E-6 : f32
    %442 = vector.broadcast %cst_273 : f32 to vector<1x1xf32>
    %443 = arith.addf %441, %442 : vector<1x1xf32>
    %444 = math.rsqrt %443 : vector<1x1xf32>
    %445 = tpu.iota {dimensions = array<i32: 0>} : vector<16x1xi32>
    %c8_i32_274 = arith.constant 8 : i32
    %446 = vector.broadcast %c8_i32_274 : i32 to vector<16x1xi32>
    %447 = arith.cmpi slt, %445, %446 : vector<16x1xi32>
    %448 = vector.shape_cast %424 : vector<1x1xf32> to vector<1x1xf32>
    %449 = vector.broadcast %448 : vector<1x1xf32> to vector<16x1xf32>
    %450 = vector.shape_cast %426 : vector<1x1xf32> to vector<1x1xf32>
    %451 = vector.broadcast %450 : vector<1x1xf32> to vector<16x1xf32>
    %452 = arith.select %447, %449, %451 : vector<16x1xi1>, vector<16x1xf32>
    %453 = vector.shape_cast %435 : vector<1x1xf32> to vector<1x1xf32>
    %454 = vector.broadcast %453 : vector<1x1xf32> to vector<16x1xf32>
    %455 = vector.shape_cast %444 : vector<1x1xf32> to vector<1x1xf32>
    %456 = vector.broadcast %455 : vector<1x1xf32> to vector<16x1xf32>
    %457 = arith.select %447, %454, %456 : vector<16x1xi1>, vector<16x1xf32>
    %458 = arith.mulf %457, %404 : vector<16x1xf32>
    %459 = arith.mulf %452, %458 : vector<16x1xf32>
    %460 = arith.subf %405, %459 : vector<16x1xf32>
    %461 = vector.broadcast %458 : vector<16x1xf32> to vector<16x32xf32>
    %462 = arith.mulf %403, %461 : vector<16x32xf32>
    %463 = vector.broadcast %460 : vector<16x1xf32> to vector<16x32xf32>
    %464 = arith.addf %462, %463 : vector<16x32xf32>
    %cst_275 = arith.constant 0.000000e+00 : f32
    %465 = vector.broadcast %cst_275 : f32 to vector<16x32xf32>
    %466 = arith.maximumf %464, %465 : vector<16x32xf32>
    %c9_i32_276 = arith.constant 9 : i32
    %467 = tpu.dynamic_rotate %466 by %c9_i32_276 dim 1 : vector<16x32xf32>, i32 -> vector<16x32xf32>
    %c0_277 = arith.constant 0 : index
    %c0_278 = arith.constant 0 : index
    %c0_279 = arith.constant 0 : index
    %468 = vector.load %arg35[%c0_277, %c0_278, %c0_279] : memref<9x1x32xf32, #tpu.memory_space<vmem>>, vector<1x1x32xf32>
    %469 = vector.shape_cast %468 : vector<1x1x32xf32> to vector<1x32xf32>
    %470 = vector.broadcast %469 : vector<1x32xf32> to vector<16x32xf32>
    %471 = arith.mulf %467, %470 : vector<16x32xf32>
    %c0_280 = arith.constant 0 : index
    %c0_281 = arith.constant 0 : index
    %c0_282 = arith.constant 0 : index
    %472 = vector.load %arg12[%c0_280, %c0_281, %c0_282] : memref<9x16x16xf32, #tpu.memory_space<vmem>>, vector<1x16x16xf32>
    %473 = vector.shape_cast %472 : vector<1x16x16xf32> to vector<16x16xf32>
    %cst_283 = arith.constant dense<0.000000e+00> : vector<16x32xf32>
    %474 = tpu.matmul %473, %471, %cst_283 {dimension_numbers = #tpu.dot_dimension_numbers<[1], [0], [0], [1], [0, 0, 1, 1], [], []>} : vector<16x16xf32>, vector<16x32xf32>, vector<16x32xf32> -> vector<16x32xf32>
    %c8_i32_284 = arith.constant 8 : i32
    %475 = tpu.dynamic_rotate %466 by %c8_i32_284 dim 1 : vector<16x32xf32>, i32 -> vector<16x32xf32>
    %c1_285 = arith.constant 1 : index
    %c0_286 = arith.constant 0 : index
    %c0_287 = arith.constant 0 : index
    %476 = vector.load %arg35[%c1_285, %c0_286, %c0_287] : memref<9x1x32xf32, #tpu.memory_space<vmem>>, vector<1x1x32xf32>
    %477 = vector.shape_cast %476 : vector<1x1x32xf32> to vector<1x32xf32>
    %478 = vector.broadcast %477 : vector<1x32xf32> to vector<16x32xf32>
    %479 = arith.mulf %475, %478 : vector<16x32xf32>
    %c1_288 = arith.constant 1 : index
    %c0_289 = arith.constant 0 : index
    %c0_290 = arith.constant 0 : index
    %480 = vector.load %arg12[%c1_288, %c0_289, %c0_290] : memref<9x16x16xf32, #tpu.memory_space<vmem>>, vector<1x16x16xf32>
    %481 = vector.shape_cast %480 : vector<1x16x16xf32> to vector<16x16xf32>
    %cst_291 = arith.constant dense<0.000000e+00> : vector<16x32xf32>
    %482 = tpu.matmul %481, %479, %cst_291 {dimension_numbers = #tpu.dot_dimension_numbers<[1], [0], [0], [1], [0, 0, 1, 1], [], []>} : vector<16x16xf32>, vector<16x32xf32>, vector<16x32xf32> -> vector<16x32xf32>
    %483 = arith.addf %474, %482 : vector<16x32xf32>
    %c7_i32_292 = arith.constant 7 : i32
    %484 = tpu.dynamic_rotate %466 by %c7_i32_292 dim 1 : vector<16x32xf32>, i32 -> vector<16x32xf32>
    %c2_293 = arith.constant 2 : index
    %c0_294 = arith.constant 0 : index
    %c0_295 = arith.constant 0 : index
    %485 = vector.load %arg35[%c2_293, %c0_294, %c0_295] : memref<9x1x32xf32, #tpu.memory_space<vmem>>, vector<1x1x32xf32>
    %486 = vector.shape_cast %485 : vector<1x1x32xf32> to vector<1x32xf32>
    %487 = vector.broadcast %486 : vector<1x32xf32> to vector<16x32xf32>
    %488 = arith.mulf %484, %487 : vector<16x32xf32>
    %c2_296 = arith.constant 2 : index
    %c0_297 = arith.constant 0 : index
    %c0_298 = arith.constant 0 : index
    %489 = vector.load %arg12[%c2_296, %c0_297, %c0_298] : memref<9x16x16xf32, #tpu.memory_space<vmem>>, vector<1x16x16xf32>
    %490 = vector.shape_cast %489 : vector<1x16x16xf32> to vector<16x16xf32>
    %cst_299 = arith.constant dense<0.000000e+00> : vector<16x32xf32>
    %491 = tpu.matmul %490, %488, %cst_299 {dimension_numbers = #tpu.dot_dimension_numbers<[1], [0], [0], [1], [0, 0, 1, 1], [], []>} : vector<16x16xf32>, vector<16x32xf32>, vector<16x32xf32> -> vector<16x32xf32>
    %492 = arith.addf %483, %491 : vector<16x32xf32>
    %c1_i32_300 = arith.constant 1 : i32
    %493 = tpu.dynamic_rotate %466 by %c1_i32_300 dim 1 : vector<16x32xf32>, i32 -> vector<16x32xf32>
    %c3_301 = arith.constant 3 : index
    %c0_302 = arith.constant 0 : index
    %c0_303 = arith.constant 0 : index
    %494 = vector.load %arg35[%c3_301, %c0_302, %c0_303] : memref<9x1x32xf32, #tpu.memory_space<vmem>>, vector<1x1x32xf32>
    %495 = vector.shape_cast %494 : vector<1x1x32xf32> to vector<1x32xf32>
    %496 = vector.broadcast %495 : vector<1x32xf32> to vector<16x32xf32>
    %497 = arith.mulf %493, %496 : vector<16x32xf32>
    %c3_304 = arith.constant 3 : index
    %c0_305 = arith.constant 0 : index
    %c0_306 = arith.constant 0 : index
    %498 = vector.load %arg12[%c3_304, %c0_305, %c0_306] : memref<9x16x16xf32, #tpu.memory_space<vmem>>, vector<1x16x16xf32>
    %499 = vector.shape_cast %498 : vector<1x16x16xf32> to vector<16x16xf32>
    %cst_307 = arith.constant dense<0.000000e+00> : vector<16x32xf32>
    %500 = tpu.matmul %499, %497, %cst_307 {dimension_numbers = #tpu.dot_dimension_numbers<[1], [0], [0], [1], [0, 0, 1, 1], [], []>} : vector<16x16xf32>, vector<16x32xf32>, vector<16x32xf32> -> vector<16x32xf32>
    %501 = arith.addf %492, %500 : vector<16x32xf32>
    %c4_308 = arith.constant 4 : index
    %c0_309 = arith.constant 0 : index
    %c0_310 = arith.constant 0 : index
    %502 = vector.load %arg12[%c4_308, %c0_309, %c0_310] : memref<9x16x16xf32, #tpu.memory_space<vmem>>, vector<1x16x16xf32>
    %503 = vector.shape_cast %502 : vector<1x16x16xf32> to vector<16x16xf32>
    %cst_311 = arith.constant dense<0.000000e+00> : vector<16x32xf32>
    %504 = tpu.matmul %503, %466, %cst_311 {dimension_numbers = #tpu.dot_dimension_numbers<[1], [0], [0], [1], [0, 0, 1, 1], [], []>} : vector<16x16xf32>, vector<16x32xf32>, vector<16x32xf32> -> vector<16x32xf32>
    %505 = arith.addf %501, %504 : vector<16x32xf32>
    %c31_i32_312 = arith.constant 31 : i32
    %506 = tpu.dynamic_rotate %466 by %c31_i32_312 dim 1 : vector<16x32xf32>, i32 -> vector<16x32xf32>
    %c5_313 = arith.constant 5 : index
    %c0_314 = arith.constant 0 : index
    %c0_315 = arith.constant 0 : index
    %507 = vector.load %arg35[%c5_313, %c0_314, %c0_315] : memref<9x1x32xf32, #tpu.memory_space<vmem>>, vector<1x1x32xf32>
    %508 = vector.shape_cast %507 : vector<1x1x32xf32> to vector<1x32xf32>
    %509 = vector.broadcast %508 : vector<1x32xf32> to vector<16x32xf32>
    %510 = arith.mulf %506, %509 : vector<16x32xf32>
    %c5_316 = arith.constant 5 : index
    %c0_317 = arith.constant 0 : index
    %c0_318 = arith.constant 0 : index
    %511 = vector.load %arg12[%c5_316, %c0_317, %c0_318] : memref<9x16x16xf32, #tpu.memory_space<vmem>>, vector<1x16x16xf32>
    %512 = vector.shape_cast %511 : vector<1x16x16xf32> to vector<16x16xf32>
    %cst_319 = arith.constant dense<0.000000e+00> : vector<16x32xf32>
    %513 = tpu.matmul %512, %510, %cst_319 {dimension_numbers = #tpu.dot_dimension_numbers<[1], [0], [0], [1], [0, 0, 1, 1], [], []>} : vector<16x16xf32>, vector<16x32xf32>, vector<16x32xf32> -> vector<16x32xf32>
    %514 = arith.addf %505, %513 : vector<16x32xf32>
    %c25_i32_320 = arith.constant 25 : i32
    %515 = tpu.dynamic_rotate %466 by %c25_i32_320 dim 1 : vector<16x32xf32>, i32 -> vector<16x32xf32>
    %c6_321 = arith.constant 6 : index
    %c0_322 = arith.constant 0 : index
    %c0_323 = arith.constant 0 : index
    %516 = vector.load %arg35[%c6_321, %c0_322, %c0_323] : memref<9x1x32xf32, #tpu.memory_space<vmem>>, vector<1x1x32xf32>
    %517 = vector.shape_cast %516 : vector<1x1x32xf32> to vector<1x32xf32>
    %518 = vector.broadcast %517 : vector<1x32xf32> to vector<16x32xf32>
    %519 = arith.mulf %515, %518 : vector<16x32xf32>
    %c6_324 = arith.constant 6 : index
    %c0_325 = arith.constant 0 : index
    %c0_326 = arith.constant 0 : index
    %520 = vector.load %arg12[%c6_324, %c0_325, %c0_326] : memref<9x16x16xf32, #tpu.memory_space<vmem>>, vector<1x16x16xf32>
    %521 = vector.shape_cast %520 : vector<1x16x16xf32> to vector<16x16xf32>
    %cst_327 = arith.constant dense<0.000000e+00> : vector<16x32xf32>
    %522 = tpu.matmul %521, %519, %cst_327 {dimension_numbers = #tpu.dot_dimension_numbers<[1], [0], [0], [1], [0, 0, 1, 1], [], []>} : vector<16x16xf32>, vector<16x32xf32>, vector<16x32xf32> -> vector<16x32xf32>
    %523 = arith.addf %514, %522 : vector<16x32xf32>
    %c24_i32_328 = arith.constant 24 : i32
    %524 = tpu.dynamic_rotate %466 by %c24_i32_328 dim 1 : vector<16x32xf32>, i32 -> vector<16x32xf32>
    %c7_329 = arith.constant 7 : index
    %c0_330 = arith.constant 0 : index
    %c0_331 = arith.constant 0 : index
    %525 = vector.load %arg35[%c7_329, %c0_330, %c0_331] : memref<9x1x32xf32, #tpu.memory_space<vmem>>, vector<1x1x32xf32>
    %526 = vector.shape_cast %525 : vector<1x1x32xf32> to vector<1x32xf32>
    %527 = vector.broadcast %526 : vector<1x32xf32> to vector<16x32xf32>
    %528 = arith.mulf %524, %527 : vector<16x32xf32>
    %c7_332 = arith.constant 7 : index
    %c0_333 = arith.constant 0 : index
    %c0_334 = arith.constant 0 : index
    %529 = vector.load %arg12[%c7_332, %c0_333, %c0_334] : memref<9x16x16xf32, #tpu.memory_space<vmem>>, vector<1x16x16xf32>
    %530 = vector.shape_cast %529 : vector<1x16x16xf32> to vector<16x16xf32>
    %cst_335 = arith.constant dense<0.000000e+00> : vector<16x32xf32>
    %531 = tpu.matmul %530, %528, %cst_335 {dimension_numbers = #tpu.dot_dimension_numbers<[1], [0], [0], [1], [0, 0, 1, 1], [], []>} : vector<16x16xf32>, vector<16x32xf32>, vector<16x32xf32> -> vector<16x32xf32>
    %532 = arith.addf %523, %531 : vector<16x32xf32>
    %c23_i32_336 = arith.constant 23 : i32
    %533 = tpu.dynamic_rotate %466 by %c23_i32_336 dim 1 : vector<16x32xf32>, i32 -> vector<16x32xf32>
    %c8_337 = arith.constant 8 : index
    %c0_338 = arith.constant 0 : index
    %c0_339 = arith.constant 0 : index
    %534 = vector.load %arg35[%c8_337, %c0_338, %c0_339] : memref<9x1x32xf32, #tpu.memory_space<vmem>>, vector<1x1x32xf32>
    %535 = vector.shape_cast %534 : vector<1x1x32xf32> to vector<1x32xf32>
    %536 = vector.broadcast %535 : vector<1x32xf32> to vector<16x32xf32>
    %537 = arith.mulf %533, %536 : vector<16x32xf32>
    %c8_340 = arith.constant 8 : index
    %c0_341 = arith.constant 0 : index
    %c0_342 = arith.constant 0 : index
    %538 = vector.load %arg12[%c8_340, %c0_341, %c0_342] : memref<9x16x16xf32, #tpu.memory_space<vmem>>, vector<1x16x16xf32>
    %539 = vector.shape_cast %538 : vector<1x16x16xf32> to vector<16x16xf32>
    %cst_343 = arith.constant dense<0.000000e+00> : vector<16x32xf32>
    %540 = tpu.matmul %539, %537, %cst_343 {dimension_numbers = #tpu.dot_dimension_numbers<[1], [0], [0], [1], [0, 0, 1, 1], [], []>} : vector<16x16xf32>, vector<16x32xf32>, vector<16x32xf32> -> vector<16x32xf32>
    %541 = arith.addf %532, %540 : vector<16x32xf32>
    %c0_344 = arith.constant 0 : index
    %c0_345 = arith.constant 0 : index
    %542 = vector.load %arg13[%c0_344, %c0_345] : memref<16x3xf32, #tpu.memory_space<vmem>>, vector<16x3xf32>
    %543 = vector.extract_strided_slice %542 {offsets = [0, 0], sizes = [16, 1], strides = [1, 1]} : vector<16x3xf32> to vector<16x1xf32>
    %544 = vector.broadcast %543 : vector<16x1xf32> to vector<16x32xf32>
    %545 = arith.addf %541, %544 : vector<16x32xf32>
    %546 = vector.extract_strided_slice %542 {offsets = [0, 1], sizes = [16, 1], strides = [1, 1]} : vector<16x3xf32> to vector<16x1xf32>
    %547 = vector.extract_strided_slice %542 {offsets = [0, 2], sizes = [16, 1], strides = [1, 1]} : vector<16x3xf32> to vector<16x1xf32>
    %cst_346 = arith.constant dense<0.000000e+00> : vector<16xf32>
    %548 = vector.multi_reduction <add>, %545, %cst_346 [1] : vector<16x32xf32> to vector<16xf32>
    %549 = vector.shape_cast %548 : vector<16xf32> to vector<16x1xf32>
    %550 = arith.mulf %545, %545 : vector<16x32xf32>
    %cst_347 = arith.constant dense<0.000000e+00> : vector<16xf32>
    %551 = vector.multi_reduction <add>, %550, %cst_347 [1] : vector<16x32xf32> to vector<16xf32>
    %552 = vector.shape_cast %551 : vector<16xf32> to vector<16x1xf32>
    %553 = vector.extract_strided_slice %549 {offsets = [0, 0], sizes = [8, 1], strides = [1, 1]} : vector<16x1xf32> to vector<8x1xf32>
    %cst_348 = arith.constant dense<0.000000e+00> : vector<1xf32>
    %554 = vector.multi_reduction <add>, %553, %cst_348 [0] : vector<8x1xf32> to vector<1xf32>
    %555 = vector.shape_cast %554 : vector<1xf32> to vector<1x1xf32>
    %556 = vector.extract_strided_slice %549 {offsets = [8, 0], sizes = [8, 1], strides = [1, 1]} : vector<16x1xf32> to vector<8x1xf32>
    %cst_349 = arith.constant dense<0.000000e+00> : vector<1xf32>
    %557 = vector.multi_reduction <add>, %556, %cst_349 [0] : vector<8x1xf32> to vector<1xf32>
    %558 = vector.shape_cast %557 : vector<1xf32> to vector<1x1xf32>
    %559 = vector.extract_strided_slice %552 {offsets = [0, 0], sizes = [8, 1], strides = [1, 1]} : vector<16x1xf32> to vector<8x1xf32>
    %cst_350 = arith.constant dense<0.000000e+00> : vector<1xf32>
    %560 = vector.multi_reduction <add>, %559, %cst_350 [0] : vector<8x1xf32> to vector<1xf32>
    %561 = vector.shape_cast %560 : vector<1xf32> to vector<1x1xf32>
    %562 = vector.extract_strided_slice %552 {offsets = [8, 0], sizes = [8, 1], strides = [1, 1]} : vector<16x1xf32> to vector<8x1xf32>
    %cst_351 = arith.constant dense<0.000000e+00> : vector<1xf32>
    %563 = vector.multi_reduction <add>, %562, %cst_351 [0] : vector<8x1xf32> to vector<1xf32>
    %564 = vector.shape_cast %563 : vector<1xf32> to vector<1x1xf32>
    %cst_352 = arith.constant 2.560000e+02 : f32
    %565 = vector.broadcast %cst_352 : f32 to vector<1x1xf32>
    %566 = arith.divf %555, %565 : vector<1x1xf32>
    %cst_353 = arith.constant 2.560000e+02 : f32
    %567 = vector.broadcast %cst_353 : f32 to vector<1x1xf32>
    %568 = arith.divf %558, %567 : vector<1x1xf32>
    %cst_354 = arith.constant 2.560000e+02 : f32
    %569 = vector.broadcast %cst_354 : f32 to vector<1x1xf32>
    %570 = arith.divf %561, %569 : vector<1x1xf32>
    %571 = arith.mulf %566, %566 : vector<1x1xf32>
    %572 = arith.subf %570, %571 : vector<1x1xf32>
    %cst_355 = arith.constant 0.000000e+00 : f32
    %573 = vector.broadcast %cst_355 : f32 to vector<1x1xf32>
    %574 = arith.maximumf %572, %573 : vector<1x1xf32>
    %cst_356 = arith.constant 9.99999974E-6 : f32
    %575 = vector.broadcast %cst_356 : f32 to vector<1x1xf32>
    %576 = arith.addf %574, %575 : vector<1x1xf32>
    %577 = math.rsqrt %576 : vector<1x1xf32>
    %cst_357 = arith.constant 2.560000e+02 : f32
    %578 = vector.broadcast %cst_357 : f32 to vector<1x1xf32>
    %579 = arith.divf %564, %578 : vector<1x1xf32>
    %580 = arith.mulf %568, %568 : vector<1x1xf32>
    %581 = arith.subf %579, %580 : vector<1x1xf32>
    %cst_358 = arith.constant 0.000000e+00 : f32
    %582 = vector.broadcast %cst_358 : f32 to vector<1x1xf32>
    %583 = arith.maximumf %581, %582 : vector<1x1xf32>
    %cst_359 = arith.constant 9.99999974E-6 : f32
    %584 = vector.broadcast %cst_359 : f32 to vector<1x1xf32>
    %585 = arith.addf %583, %584 : vector<1x1xf32>
    %586 = math.rsqrt %585 : vector<1x1xf32>
    %587 = tpu.iota {dimensions = array<i32: 0>} : vector<16x1xi32>
    %c8_i32_360 = arith.constant 8 : i32
    %588 = vector.broadcast %c8_i32_360 : i32 to vector<16x1xi32>
    %589 = arith.cmpi slt, %587, %588 : vector<16x1xi32>
    %590 = vector.shape_cast %566 : vector<1x1xf32> to vector<1x1xf32>
    %591 = vector.broadcast %590 : vector<1x1xf32> to vector<16x1xf32>
    %592 = vector.shape_cast %568 : vector<1x1xf32> to vector<1x1xf32>
    %593 = vector.broadcast %592 : vector<1x1xf32> to vector<16x1xf32>
    %594 = arith.select %589, %591, %593 : vector<16x1xi1>, vector<16x1xf32>
    %595 = vector.shape_cast %577 : vector<1x1xf32> to vector<1x1xf32>
    %596 = vector.broadcast %595 : vector<1x1xf32> to vector<16x1xf32>
    %597 = vector.shape_cast %586 : vector<1x1xf32> to vector<1x1xf32>
    %598 = vector.broadcast %597 : vector<1x1xf32> to vector<16x1xf32>
    %599 = arith.select %589, %596, %598 : vector<16x1xi1>, vector<16x1xf32>
    %600 = arith.mulf %599, %546 : vector<16x1xf32>
    %601 = arith.mulf %594, %600 : vector<16x1xf32>
    %602 = arith.subf %547, %601 : vector<16x1xf32>
    %603 = vector.broadcast %600 : vector<16x1xf32> to vector<16x32xf32>
    %604 = arith.mulf %545, %603 : vector<16x32xf32>
    %605 = vector.broadcast %602 : vector<16x1xf32> to vector<16x32xf32>
    %606 = arith.addf %604, %605 : vector<16x32xf32>
    %cst_361 = arith.constant 0.000000e+00 : f32
    %607 = vector.broadcast %cst_361 : f32 to vector<16x32xf32>
    %608 = arith.maximumf %606, %607 : vector<16x32xf32>
    %c0_362 = arith.constant 0 : index
    %c0_363 = arith.constant 0 : index
    %c0_364 = arith.constant 0 : index
    %609 = vector.load %arg14[%c0_362, %c0_363, %c0_364] : memref<4x24x16xf32, #tpu.memory_space<vmem>>, vector<1x24x16xf32>
    %610 = vector.shape_cast %609 : vector<1x24x16xf32> to vector<24x16xf32>
    %cst_365 = arith.constant dense<0.000000e+00> : vector<24x32xf32>
    %611 = tpu.matmul %610, %608, %cst_365 {dimension_numbers = #tpu.dot_dimension_numbers<[1], [0], [0], [1], [0, 0, 1, 1], [], []>} : vector<24x16xf32>, vector<16x32xf32>, vector<24x32xf32> -> vector<24x32xf32>
    %c0_366 = arith.constant 0 : index
    %c0_367 = arith.constant 0 : index
    %c0_368 = arith.constant 0 : index
    %612 = vector.load %arg40[%c0_366, %c0_367, %c0_368] : memref<4x32x8xf32, #tpu.memory_space<vmem>>, vector<1x32x8xf32>
    %613 = vector.shape_cast %612 : vector<1x32x8xf32> to vector<32x8xf32>
    %cst_369 = arith.constant dense<0.000000e+00> : vector<24x8xf32>
    %614 = tpu.matmul %611, %613, %cst_369 {dimension_numbers = #tpu.dot_dimension_numbers<[1], [0], [0], [1], [0, 0, 1, 1], [], []>} : vector<24x32xf32>, vector<32x8xf32>, vector<24x8xf32> -> vector<24x8xf32>
    %c1_370 = arith.constant 1 : index
    %c0_371 = arith.constant 0 : index
    %c0_372 = arith.constant 0 : index
    %615 = vector.load %arg14[%c1_370, %c0_371, %c0_372] : memref<4x24x16xf32, #tpu.memory_space<vmem>>, vector<1x24x16xf32>
    %616 = vector.shape_cast %615 : vector<1x24x16xf32> to vector<24x16xf32>
    %cst_373 = arith.constant dense<0.000000e+00> : vector<24x32xf32>
    %617 = tpu.matmul %616, %608, %cst_373 {dimension_numbers = #tpu.dot_dimension_numbers<[1], [0], [0], [1], [0, 0, 1, 1], [], []>} : vector<24x16xf32>, vector<16x32xf32>, vector<24x32xf32> -> vector<24x32xf32>
    %c1_374 = arith.constant 1 : index
    %c0_375 = arith.constant 0 : index
    %c0_376 = arith.constant 0 : index
    %618 = vector.load %arg40[%c1_374, %c0_375, %c0_376] : memref<4x32x8xf32, #tpu.memory_space<vmem>>, vector<1x32x8xf32>
    %619 = vector.shape_cast %618 : vector<1x32x8xf32> to vector<32x8xf32>
    %cst_377 = arith.constant dense<0.000000e+00> : vector<24x8xf32>
    %620 = tpu.matmul %617, %619, %cst_377 {dimension_numbers = #tpu.dot_dimension_numbers<[1], [0], [0], [1], [0, 0, 1, 1], [], []>} : vector<24x32xf32>, vector<32x8xf32>, vector<24x8xf32> -> vector<24x8xf32>
    %621 = arith.addf %614, %620 : vector<24x8xf32>
    %c2_378 = arith.constant 2 : index
    %c0_379 = arith.constant 0 : index
    %c0_380 = arith.constant 0 : index
    %622 = vector.load %arg14[%c2_378, %c0_379, %c0_380] : memref<4x24x16xf32, #tpu.memory_space<vmem>>, vector<1x24x16xf32>
    %623 = vector.shape_cast %622 : vector<1x24x16xf32> to vector<24x16xf32>
    %cst_381 = arith.constant dense<0.000000e+00> : vector<24x32xf32>
    %624 = tpu.matmul %623, %608, %cst_381 {dimension_numbers = #tpu.dot_dimension_numbers<[1], [0], [0], [1], [0, 0, 1, 1], [], []>} : vector<24x16xf32>, vector<16x32xf32>, vector<24x32xf32> -> vector<24x32xf32>
    %c2_382 = arith.constant 2 : index
    %c0_383 = arith.constant 0 : index
    %c0_384 = arith.constant 0 : index
    %625 = vector.load %arg40[%c2_382, %c0_383, %c0_384] : memref<4x32x8xf32, #tpu.memory_space<vmem>>, vector<1x32x8xf32>
    %626 = vector.shape_cast %625 : vector<1x32x8xf32> to vector<32x8xf32>
    %cst_385 = arith.constant dense<0.000000e+00> : vector<24x8xf32>
    %627 = tpu.matmul %624, %626, %cst_385 {dimension_numbers = #tpu.dot_dimension_numbers<[1], [0], [0], [1], [0, 0, 1, 1], [], []>} : vector<24x32xf32>, vector<32x8xf32>, vector<24x8xf32> -> vector<24x8xf32>
    %628 = arith.addf %621, %627 : vector<24x8xf32>
    %c3_386 = arith.constant 3 : index
    %c0_387 = arith.constant 0 : index
    %c0_388 = arith.constant 0 : index
    %629 = vector.load %arg14[%c3_386, %c0_387, %c0_388] : memref<4x24x16xf32, #tpu.memory_space<vmem>>, vector<1x24x16xf32>
    %630 = vector.shape_cast %629 : vector<1x24x16xf32> to vector<24x16xf32>
    %cst_389 = arith.constant dense<0.000000e+00> : vector<24x32xf32>
    %631 = tpu.matmul %630, %608, %cst_389 {dimension_numbers = #tpu.dot_dimension_numbers<[1], [0], [0], [1], [0, 0, 1, 1], [], []>} : vector<24x16xf32>, vector<16x32xf32>, vector<24x32xf32> -> vector<24x32xf32>
    %c3_390 = arith.constant 3 : index
    %c0_391 = arith.constant 0 : index
    %c0_392 = arith.constant 0 : index
    %632 = vector.load %arg40[%c3_390, %c0_391, %c0_392] : memref<4x32x8xf32, #tpu.memory_space<vmem>>, vector<1x32x8xf32>
    %633 = vector.shape_cast %632 : vector<1x32x8xf32> to vector<32x8xf32>
    %cst_393 = arith.constant dense<0.000000e+00> : vector<24x8xf32>
    %634 = tpu.matmul %631, %633, %cst_393 {dimension_numbers = #tpu.dot_dimension_numbers<[1], [0], [0], [1], [0, 0, 1, 1], [], []>} : vector<24x32xf32>, vector<32x8xf32>, vector<24x8xf32> -> vector<24x8xf32>
    %635 = arith.addf %628, %634 : vector<24x8xf32>
    %c0_394 = arith.constant 0 : index
    %c0_395 = arith.constant 0 : index
    %636 = vector.load %arg15[%c0_394, %c0_395] : memref<24x1xf32, #tpu.memory_space<vmem>>, vector<24x1xf32>
    %637 = vector.broadcast %636 : vector<24x1xf32> to vector<24x8xf32>
    %638 = arith.addf %635, %637 : vector<24x8xf32>
    %cst_396 = arith.constant 0.000000e+00 : f32
    %639 = vector.broadcast %cst_396 : f32 to vector<24x8xf32>
    %640 = arith.maximumf %638, %639 : vector<24x8xf32>
    %c5_i32 = arith.constant 5 : i32
    %641 = tpu.dynamic_rotate %640 by %c5_i32 dim 1 : vector<24x8xf32>, i32 -> vector<24x8xf32>
    %c0_397 = arith.constant 0 : index
    %c0_398 = arith.constant 0 : index
    %c0_399 = arith.constant 0 : index
    %642 = vector.load %arg36[%c0_397, %c0_398, %c0_399] : memref<9x1x8xf32, #tpu.memory_space<vmem>>, vector<1x1x8xf32>
    %643 = vector.shape_cast %642 : vector<1x1x8xf32> to vector<1x8xf32>
    %644 = vector.broadcast %643 : vector<1x8xf32> to vector<24x8xf32>
    %645 = arith.mulf %641, %644 : vector<24x8xf32>
    %c0_400 = arith.constant 0 : index
    %c0_401 = arith.constant 0 : index
    %c0_402 = arith.constant 0 : index
    %646 = vector.load %arg16[%c0_400, %c0_401, %c0_402] : memref<9x24x24xf32, #tpu.memory_space<vmem>>, vector<1x24x24xf32>
    %647 = vector.shape_cast %646 : vector<1x24x24xf32> to vector<24x24xf32>
    %cst_403 = arith.constant dense<0.000000e+00> : vector<24x8xf32>
    %648 = tpu.matmul %647, %645, %cst_403 {dimension_numbers = #tpu.dot_dimension_numbers<[1], [0], [0], [1], [0, 0, 1, 1], [], []>} : vector<24x24xf32>, vector<24x8xf32>, vector<24x8xf32> -> vector<24x8xf32>
    %c4_i32_404 = arith.constant 4 : i32
    %649 = tpu.dynamic_rotate %640 by %c4_i32_404 dim 1 : vector<24x8xf32>, i32 -> vector<24x8xf32>
    %c1_405 = arith.constant 1 : index
    %c0_406 = arith.constant 0 : index
    %c0_407 = arith.constant 0 : index
    %650 = vector.load %arg36[%c1_405, %c0_406, %c0_407] : memref<9x1x8xf32, #tpu.memory_space<vmem>>, vector<1x1x8xf32>
    %651 = vector.shape_cast %650 : vector<1x1x8xf32> to vector<1x8xf32>
    %652 = vector.broadcast %651 : vector<1x8xf32> to vector<24x8xf32>
    %653 = arith.mulf %649, %652 : vector<24x8xf32>
    %c1_408 = arith.constant 1 : index
    %c0_409 = arith.constant 0 : index
    %c0_410 = arith.constant 0 : index
    %654 = vector.load %arg16[%c1_408, %c0_409, %c0_410] : memref<9x24x24xf32, #tpu.memory_space<vmem>>, vector<1x24x24xf32>
    %655 = vector.shape_cast %654 : vector<1x24x24xf32> to vector<24x24xf32>
    %cst_411 = arith.constant dense<0.000000e+00> : vector<24x8xf32>
    %656 = tpu.matmul %655, %653, %cst_411 {dimension_numbers = #tpu.dot_dimension_numbers<[1], [0], [0], [1], [0, 0, 1, 1], [], []>} : vector<24x24xf32>, vector<24x8xf32>, vector<24x8xf32> -> vector<24x8xf32>
    %657 = arith.addf %648, %656 : vector<24x8xf32>
    %c3_i32 = arith.constant 3 : i32
    %658 = tpu.dynamic_rotate %640 by %c3_i32 dim 1 : vector<24x8xf32>, i32 -> vector<24x8xf32>
    %c2_412 = arith.constant 2 : index
    %c0_413 = arith.constant 0 : index
    %c0_414 = arith.constant 0 : index
    %659 = vector.load %arg36[%c2_412, %c0_413, %c0_414] : memref<9x1x8xf32, #tpu.memory_space<vmem>>, vector<1x1x8xf32>
    %660 = vector.shape_cast %659 : vector<1x1x8xf32> to vector<1x8xf32>
    %661 = vector.broadcast %660 : vector<1x8xf32> to vector<24x8xf32>
    %662 = arith.mulf %658, %661 : vector<24x8xf32>
    %c2_415 = arith.constant 2 : index
    %c0_416 = arith.constant 0 : index
    %c0_417 = arith.constant 0 : index
    %663 = vector.load %arg16[%c2_415, %c0_416, %c0_417] : memref<9x24x24xf32, #tpu.memory_space<vmem>>, vector<1x24x24xf32>
    %664 = vector.shape_cast %663 : vector<1x24x24xf32> to vector<24x24xf32>
    %cst_418 = arith.constant dense<0.000000e+00> : vector<24x8xf32>
    %665 = tpu.matmul %664, %662, %cst_418 {dimension_numbers = #tpu.dot_dimension_numbers<[1], [0], [0], [1], [0, 0, 1, 1], [], []>} : vector<24x24xf32>, vector<24x8xf32>, vector<24x8xf32> -> vector<24x8xf32>
    %666 = arith.addf %657, %665 : vector<24x8xf32>
    %c1_i32_419 = arith.constant 1 : i32
    %667 = tpu.dynamic_rotate %640 by %c1_i32_419 dim 1 : vector<24x8xf32>, i32 -> vector<24x8xf32>
    %c3_420 = arith.constant 3 : index
    %c0_421 = arith.constant 0 : index
    %c0_422 = arith.constant 0 : index
    %668 = vector.load %arg36[%c3_420, %c0_421, %c0_422] : memref<9x1x8xf32, #tpu.memory_space<vmem>>, vector<1x1x8xf32>
    %669 = vector.shape_cast %668 : vector<1x1x8xf32> to vector<1x8xf32>
    %670 = vector.broadcast %669 : vector<1x8xf32> to vector<24x8xf32>
    %671 = arith.mulf %667, %670 : vector<24x8xf32>
    %c3_423 = arith.constant 3 : index
    %c0_424 = arith.constant 0 : index
    %c0_425 = arith.constant 0 : index
    %672 = vector.load %arg16[%c3_423, %c0_424, %c0_425] : memref<9x24x24xf32, #tpu.memory_space<vmem>>, vector<1x24x24xf32>
    %673 = vector.shape_cast %672 : vector<1x24x24xf32> to vector<24x24xf32>
    %cst_426 = arith.constant dense<0.000000e+00> : vector<24x8xf32>
    %674 = tpu.matmul %673, %671, %cst_426 {dimension_numbers = #tpu.dot_dimension_numbers<[1], [0], [0], [1], [0, 0, 1, 1], [], []>} : vector<24x24xf32>, vector<24x8xf32>, vector<24x8xf32> -> vector<24x8xf32>
    %675 = arith.addf %666, %674 : vector<24x8xf32>
    %c4_427 = arith.constant 4 : index
    %c0_428 = arith.constant 0 : index
    %c0_429 = arith.constant 0 : index
    %676 = vector.load %arg16[%c4_427, %c0_428, %c0_429] : memref<9x24x24xf32, #tpu.memory_space<vmem>>, vector<1x24x24xf32>
    %677 = vector.shape_cast %676 : vector<1x24x24xf32> to vector<24x24xf32>
    %cst_430 = arith.constant dense<0.000000e+00> : vector<24x8xf32>
    %678 = tpu.matmul %677, %640, %cst_430 {dimension_numbers = #tpu.dot_dimension_numbers<[1], [0], [0], [1], [0, 0, 1, 1], [], []>} : vector<24x24xf32>, vector<24x8xf32>, vector<24x8xf32> -> vector<24x8xf32>
    %679 = arith.addf %675, %678 : vector<24x8xf32>
    %c7_i32_431 = arith.constant 7 : i32
    %680 = tpu.dynamic_rotate %640 by %c7_i32_431 dim 1 : vector<24x8xf32>, i32 -> vector<24x8xf32>
    %c5_432 = arith.constant 5 : index
    %c0_433 = arith.constant 0 : index
    %c0_434 = arith.constant 0 : index
    %681 = vector.load %arg36[%c5_432, %c0_433, %c0_434] : memref<9x1x8xf32, #tpu.memory_space<vmem>>, vector<1x1x8xf32>
    %682 = vector.shape_cast %681 : vector<1x1x8xf32> to vector<1x8xf32>
    %683 = vector.broadcast %682 : vector<1x8xf32> to vector<24x8xf32>
    %684 = arith.mulf %680, %683 : vector<24x8xf32>
    %c5_435 = arith.constant 5 : index
    %c0_436 = arith.constant 0 : index
    %c0_437 = arith.constant 0 : index
    %685 = vector.load %arg16[%c5_435, %c0_436, %c0_437] : memref<9x24x24xf32, #tpu.memory_space<vmem>>, vector<1x24x24xf32>
    %686 = vector.shape_cast %685 : vector<1x24x24xf32> to vector<24x24xf32>
    %cst_438 = arith.constant dense<0.000000e+00> : vector<24x8xf32>
    %687 = tpu.matmul %686, %684, %cst_438 {dimension_numbers = #tpu.dot_dimension_numbers<[1], [0], [0], [1], [0, 0, 1, 1], [], []>} : vector<24x24xf32>, vector<24x8xf32>, vector<24x8xf32> -> vector<24x8xf32>
    %688 = arith.addf %679, %687 : vector<24x8xf32>
    %c5_i32_439 = arith.constant 5 : i32
    %689 = tpu.dynamic_rotate %640 by %c5_i32_439 dim 1 : vector<24x8xf32>, i32 -> vector<24x8xf32>
    %c6_440 = arith.constant 6 : index
    %c0_441 = arith.constant 0 : index
    %c0_442 = arith.constant 0 : index
    %690 = vector.load %arg36[%c6_440, %c0_441, %c0_442] : memref<9x1x8xf32, #tpu.memory_space<vmem>>, vector<1x1x8xf32>
    %691 = vector.shape_cast %690 : vector<1x1x8xf32> to vector<1x8xf32>
    %692 = vector.broadcast %691 : vector<1x8xf32> to vector<24x8xf32>
    %693 = arith.mulf %689, %692 : vector<24x8xf32>
    %c6_443 = arith.constant 6 : index
    %c0_444 = arith.constant 0 : index
    %c0_445 = arith.constant 0 : index
    %694 = vector.load %arg16[%c6_443, %c0_444, %c0_445] : memref<9x24x24xf32, #tpu.memory_space<vmem>>, vector<1x24x24xf32>
    %695 = vector.shape_cast %694 : vector<1x24x24xf32> to vector<24x24xf32>
    %cst_446 = arith.constant dense<0.000000e+00> : vector<24x8xf32>
    %696 = tpu.matmul %695, %693, %cst_446 {dimension_numbers = #tpu.dot_dimension_numbers<[1], [0], [0], [1], [0, 0, 1, 1], [], []>} : vector<24x24xf32>, vector<24x8xf32>, vector<24x8xf32> -> vector<24x8xf32>
    %697 = arith.addf %688, %696 : vector<24x8xf32>
    %c4_i32_447 = arith.constant 4 : i32
    %698 = tpu.dynamic_rotate %640 by %c4_i32_447 dim 1 : vector<24x8xf32>, i32 -> vector<24x8xf32>
    %c7_448 = arith.constant 7 : index
    %c0_449 = arith.constant 0 : index
    %c0_450 = arith.constant 0 : index
    %699 = vector.load %arg36[%c7_448, %c0_449, %c0_450] : memref<9x1x8xf32, #tpu.memory_space<vmem>>, vector<1x1x8xf32>
    %700 = vector.shape_cast %699 : vector<1x1x8xf32> to vector<1x8xf32>
    %701 = vector.broadcast %700 : vector<1x8xf32> to vector<24x8xf32>
    %702 = arith.mulf %698, %701 : vector<24x8xf32>
    %c7_451 = arith.constant 7 : index
    %c0_452 = arith.constant 0 : index
    %c0_453 = arith.constant 0 : index
    %703 = vector.load %arg16[%c7_451, %c0_452, %c0_453] : memref<9x24x24xf32, #tpu.memory_space<vmem>>, vector<1x24x24xf32>
    %704 = vector.shape_cast %703 : vector<1x24x24xf32> to vector<24x24xf32>
    %cst_454 = arith.constant dense<0.000000e+00> : vector<24x8xf32>
    %705 = tpu.matmul %704, %702, %cst_454 {dimension_numbers = #tpu.dot_dimension_numbers<[1], [0], [0], [1], [0, 0, 1, 1], [], []>} : vector<24x24xf32>, vector<24x8xf32>, vector<24x8xf32> -> vector<24x8xf32>
    %706 = arith.addf %697, %705 : vector<24x8xf32>
    %c3_i32_455 = arith.constant 3 : i32
    %707 = tpu.dynamic_rotate %640 by %c3_i32_455 dim 1 : vector<24x8xf32>, i32 -> vector<24x8xf32>
    %c8_456 = arith.constant 8 : index
    %c0_457 = arith.constant 0 : index
    %c0_458 = arith.constant 0 : index
    %708 = vector.load %arg36[%c8_456, %c0_457, %c0_458] : memref<9x1x8xf32, #tpu.memory_space<vmem>>, vector<1x1x8xf32>
    %709 = vector.shape_cast %708 : vector<1x1x8xf32> to vector<1x8xf32>
    %710 = vector.broadcast %709 : vector<1x8xf32> to vector<24x8xf32>
    %711 = arith.mulf %707, %710 : vector<24x8xf32>
    %c8_459 = arith.constant 8 : index
    %c0_460 = arith.constant 0 : index
    %c0_461 = arith.constant 0 : index
    %712 = vector.load %arg16[%c8_459, %c0_460, %c0_461] : memref<9x24x24xf32, #tpu.memory_space<vmem>>, vector<1x24x24xf32>
    %713 = vector.shape_cast %712 : vector<1x24x24xf32> to vector<24x24xf32>
    %cst_462 = arith.constant dense<0.000000e+00> : vector<24x8xf32>
    %714 = tpu.matmul %713, %711, %cst_462 {dimension_numbers = #tpu.dot_dimension_numbers<[1], [0], [0], [1], [0, 0, 1, 1], [], []>} : vector<24x24xf32>, vector<24x8xf32>, vector<24x8xf32> -> vector<24x8xf32>
    %715 = arith.addf %706, %714 : vector<24x8xf32>
    %c0_463 = arith.constant 0 : index
    %c0_464 = arith.constant 0 : index
    %716 = vector.load %arg17[%c0_463, %c0_464] : memref<24x3xf32, #tpu.memory_space<vmem>>, vector<24x3xf32>
    %717 = vector.extract_strided_slice %716 {offsets = [0, 0], sizes = [24, 1], strides = [1, 1]} : vector<24x3xf32> to vector<24x1xf32>
    %718 = vector.broadcast %717 : vector<24x1xf32> to vector<24x8xf32>
    %719 = arith.addf %715, %718 : vector<24x8xf32>
    %720 = vector.extract_strided_slice %716 {offsets = [0, 1], sizes = [24, 1], strides = [1, 1]} : vector<24x3xf32> to vector<24x1xf32>
    %721 = vector.extract_strided_slice %716 {offsets = [0, 2], sizes = [24, 1], strides = [1, 1]} : vector<24x3xf32> to vector<24x1xf32>
    %cst_465 = arith.constant dense<0.000000e+00> : vector<24xf32>
    %722 = vector.multi_reduction <add>, %719, %cst_465 [1] : vector<24x8xf32> to vector<24xf32>
    %723 = vector.shape_cast %722 : vector<24xf32> to vector<24x1xf32>
    %724 = arith.mulf %719, %719 : vector<24x8xf32>
    %cst_466 = arith.constant dense<0.000000e+00> : vector<24xf32>
    %725 = vector.multi_reduction <add>, %724, %cst_466 [1] : vector<24x8xf32> to vector<24xf32>
    %726 = vector.shape_cast %725 : vector<24xf32> to vector<24x1xf32>
    %727 = vector.extract_strided_slice %723 {offsets = [0, 0], sizes = [12, 1], strides = [1, 1]} : vector<24x1xf32> to vector<12x1xf32>
    %cst_467 = arith.constant dense<0.000000e+00> : vector<1xf32>
    %728 = vector.multi_reduction <add>, %727, %cst_467 [0] : vector<12x1xf32> to vector<1xf32>
    %729 = vector.shape_cast %728 : vector<1xf32> to vector<1x1xf32>
    %730 = vector.extract_strided_slice %723 {offsets = [12, 0], sizes = [12, 1], strides = [1, 1]} : vector<24x1xf32> to vector<12x1xf32>
    %cst_468 = arith.constant dense<0.000000e+00> : vector<1xf32>
    %731 = vector.multi_reduction <add>, %730, %cst_468 [0] : vector<12x1xf32> to vector<1xf32>
    %732 = vector.shape_cast %731 : vector<1xf32> to vector<1x1xf32>
    %733 = vector.extract_strided_slice %726 {offsets = [0, 0], sizes = [12, 1], strides = [1, 1]} : vector<24x1xf32> to vector<12x1xf32>
    %cst_469 = arith.constant dense<0.000000e+00> : vector<1xf32>
    %734 = vector.multi_reduction <add>, %733, %cst_469 [0] : vector<12x1xf32> to vector<1xf32>
    %735 = vector.shape_cast %734 : vector<1xf32> to vector<1x1xf32>
    %736 = vector.extract_strided_slice %726 {offsets = [12, 0], sizes = [12, 1], strides = [1, 1]} : vector<24x1xf32> to vector<12x1xf32>
    %cst_470 = arith.constant dense<0.000000e+00> : vector<1xf32>
    %737 = vector.multi_reduction <add>, %736, %cst_470 [0] : vector<12x1xf32> to vector<1xf32>
    %738 = vector.shape_cast %737 : vector<1xf32> to vector<1x1xf32>
    %cst_471 = arith.constant 9.600000e+01 : f32
    %739 = vector.broadcast %cst_471 : f32 to vector<1x1xf32>
    %740 = arith.divf %729, %739 : vector<1x1xf32>
    %cst_472 = arith.constant 9.600000e+01 : f32
    %741 = vector.broadcast %cst_472 : f32 to vector<1x1xf32>
    %742 = arith.divf %732, %741 : vector<1x1xf32>
    %cst_473 = arith.constant 9.600000e+01 : f32
    %743 = vector.broadcast %cst_473 : f32 to vector<1x1xf32>
    %744 = arith.divf %735, %743 : vector<1x1xf32>
    %745 = arith.mulf %740, %740 : vector<1x1xf32>
    %746 = arith.subf %744, %745 : vector<1x1xf32>
    %cst_474 = arith.constant 0.000000e+00 : f32
    %747 = vector.broadcast %cst_474 : f32 to vector<1x1xf32>
    %748 = arith.maximumf %746, %747 : vector<1x1xf32>
    %cst_475 = arith.constant 9.99999974E-6 : f32
    %749 = vector.broadcast %cst_475 : f32 to vector<1x1xf32>
    %750 = arith.addf %748, %749 : vector<1x1xf32>
    %751 = math.rsqrt %750 : vector<1x1xf32>
    %cst_476 = arith.constant 9.600000e+01 : f32
    %752 = vector.broadcast %cst_476 : f32 to vector<1x1xf32>
    %753 = arith.divf %738, %752 : vector<1x1xf32>
    %754 = arith.mulf %742, %742 : vector<1x1xf32>
    %755 = arith.subf %753, %754 : vector<1x1xf32>
    %cst_477 = arith.constant 0.000000e+00 : f32
    %756 = vector.broadcast %cst_477 : f32 to vector<1x1xf32>
    %757 = arith.maximumf %755, %756 : vector<1x1xf32>
    %cst_478 = arith.constant 9.99999974E-6 : f32
    %758 = vector.broadcast %cst_478 : f32 to vector<1x1xf32>
    %759 = arith.addf %757, %758 : vector<1x1xf32>
    %760 = math.rsqrt %759 : vector<1x1xf32>
    %761 = tpu.iota {dimensions = array<i32: 0>} : vector<24x1xi32>
    %c12_i32 = arith.constant 12 : i32
    %762 = vector.broadcast %c12_i32 : i32 to vector<24x1xi32>
    %763 = arith.cmpi slt, %761, %762 : vector<24x1xi32>
    %764 = vector.shape_cast %740 : vector<1x1xf32> to vector<1x1xf32>
    %765 = vector.broadcast %764 : vector<1x1xf32> to vector<24x1xf32>
    %766 = vector.shape_cast %742 : vector<1x1xf32> to vector<1x1xf32>
    %767 = vector.broadcast %766 : vector<1x1xf32> to vector<24x1xf32>
    %768 = arith.select %763, %765, %767 : vector<24x1xi1>, vector<24x1xf32>
    %769 = vector.shape_cast %751 : vector<1x1xf32> to vector<1x1xf32>
    %770 = vector.broadcast %769 : vector<1x1xf32> to vector<24x1xf32>
    %771 = vector.shape_cast %760 : vector<1x1xf32> to vector<1x1xf32>
    %772 = vector.broadcast %771 : vector<1x1xf32> to vector<24x1xf32>
    %773 = arith.select %763, %770, %772 : vector<24x1xi1>, vector<24x1xf32>
    %774 = arith.mulf %773, %720 : vector<24x1xf32>
    %775 = arith.mulf %768, %774 : vector<24x1xf32>
    %776 = arith.subf %721, %775 : vector<24x1xf32>
    %777 = vector.broadcast %774 : vector<24x1xf32> to vector<24x8xf32>
    %778 = arith.mulf %719, %777 : vector<24x8xf32>
    %779 = vector.broadcast %776 : vector<24x1xf32> to vector<24x8xf32>
    %780 = arith.addf %778, %779 : vector<24x8xf32>
    %cst_479 = arith.constant 0.000000e+00 : f32
    %781 = vector.broadcast %cst_479 : f32 to vector<24x8xf32>
    %782 = arith.maximumf %780, %781 : vector<24x8xf32>
    %c5_i32_480 = arith.constant 5 : i32
    %783 = tpu.dynamic_rotate %782 by %c5_i32_480 dim 1 : vector<24x8xf32>, i32 -> vector<24x8xf32>
    %c0_481 = arith.constant 0 : index
    %c0_482 = arith.constant 0 : index
    %c0_483 = arith.constant 0 : index
    %784 = vector.load %arg36[%c0_481, %c0_482, %c0_483] : memref<9x1x8xf32, #tpu.memory_space<vmem>>, vector<1x1x8xf32>
    %785 = vector.shape_cast %784 : vector<1x1x8xf32> to vector<1x8xf32>
    %786 = vector.broadcast %785 : vector<1x8xf32> to vector<24x8xf32>
    %787 = arith.mulf %783, %786 : vector<24x8xf32>
    %c0_484 = arith.constant 0 : index
    %c0_485 = arith.constant 0 : index
    %c0_486 = arith.constant 0 : index
    %788 = vector.load %arg18[%c0_484, %c0_485, %c0_486] : memref<9x24x24xf32, #tpu.memory_space<vmem>>, vector<1x24x24xf32>
    %789 = vector.shape_cast %788 : vector<1x24x24xf32> to vector<24x24xf32>
    %cst_487 = arith.constant dense<0.000000e+00> : vector<24x8xf32>
    %790 = tpu.matmul %789, %787, %cst_487 {dimension_numbers = #tpu.dot_dimension_numbers<[1], [0], [0], [1], [0, 0, 1, 1], [], []>} : vector<24x24xf32>, vector<24x8xf32>, vector<24x8xf32> -> vector<24x8xf32>
    %c4_i32_488 = arith.constant 4 : i32
    %791 = tpu.dynamic_rotate %782 by %c4_i32_488 dim 1 : vector<24x8xf32>, i32 -> vector<24x8xf32>
    %c1_489 = arith.constant 1 : index
    %c0_490 = arith.constant 0 : index
    %c0_491 = arith.constant 0 : index
    %792 = vector.load %arg36[%c1_489, %c0_490, %c0_491] : memref<9x1x8xf32, #tpu.memory_space<vmem>>, vector<1x1x8xf32>
    %793 = vector.shape_cast %792 : vector<1x1x8xf32> to vector<1x8xf32>
    %794 = vector.broadcast %793 : vector<1x8xf32> to vector<24x8xf32>
    %795 = arith.mulf %791, %794 : vector<24x8xf32>
    %c1_492 = arith.constant 1 : index
    %c0_493 = arith.constant 0 : index
    %c0_494 = arith.constant 0 : index
    %796 = vector.load %arg18[%c1_492, %c0_493, %c0_494] : memref<9x24x24xf32, #tpu.memory_space<vmem>>, vector<1x24x24xf32>
    %797 = vector.shape_cast %796 : vector<1x24x24xf32> to vector<24x24xf32>
    %cst_495 = arith.constant dense<0.000000e+00> : vector<24x8xf32>
    %798 = tpu.matmul %797, %795, %cst_495 {dimension_numbers = #tpu.dot_dimension_numbers<[1], [0], [0], [1], [0, 0, 1, 1], [], []>} : vector<24x24xf32>, vector<24x8xf32>, vector<24x8xf32> -> vector<24x8xf32>
    %799 = arith.addf %790, %798 : vector<24x8xf32>
    %c3_i32_496 = arith.constant 3 : i32
    %800 = tpu.dynamic_rotate %782 by %c3_i32_496 dim 1 : vector<24x8xf32>, i32 -> vector<24x8xf32>
    %c2_497 = arith.constant 2 : index
    %c0_498 = arith.constant 0 : index
    %c0_499 = arith.constant 0 : index
    %801 = vector.load %arg36[%c2_497, %c0_498, %c0_499] : memref<9x1x8xf32, #tpu.memory_space<vmem>>, vector<1x1x8xf32>
    %802 = vector.shape_cast %801 : vector<1x1x8xf32> to vector<1x8xf32>
    %803 = vector.broadcast %802 : vector<1x8xf32> to vector<24x8xf32>
    %804 = arith.mulf %800, %803 : vector<24x8xf32>
    %c2_500 = arith.constant 2 : index
    %c0_501 = arith.constant 0 : index
    %c0_502 = arith.constant 0 : index
    %805 = vector.load %arg18[%c2_500, %c0_501, %c0_502] : memref<9x24x24xf32, #tpu.memory_space<vmem>>, vector<1x24x24xf32>
    %806 = vector.shape_cast %805 : vector<1x24x24xf32> to vector<24x24xf32>
    %cst_503 = arith.constant dense<0.000000e+00> : vector<24x8xf32>
    %807 = tpu.matmul %806, %804, %cst_503 {dimension_numbers = #tpu.dot_dimension_numbers<[1], [0], [0], [1], [0, 0, 1, 1], [], []>} : vector<24x24xf32>, vector<24x8xf32>, vector<24x8xf32> -> vector<24x8xf32>
    %808 = arith.addf %799, %807 : vector<24x8xf32>
    %c1_i32_504 = arith.constant 1 : i32
    %809 = tpu.dynamic_rotate %782 by %c1_i32_504 dim 1 : vector<24x8xf32>, i32 -> vector<24x8xf32>
    %c3_505 = arith.constant 3 : index
    %c0_506 = arith.constant 0 : index
    %c0_507 = arith.constant 0 : index
    %810 = vector.load %arg36[%c3_505, %c0_506, %c0_507] : memref<9x1x8xf32, #tpu.memory_space<vmem>>, vector<1x1x8xf32>
    %811 = vector.shape_cast %810 : vector<1x1x8xf32> to vector<1x8xf32>
    %812 = vector.broadcast %811 : vector<1x8xf32> to vector<24x8xf32>
    %813 = arith.mulf %809, %812 : vector<24x8xf32>
    %c3_508 = arith.constant 3 : index
    %c0_509 = arith.constant 0 : index
    %c0_510 = arith.constant 0 : index
    %814 = vector.load %arg18[%c3_508, %c0_509, %c0_510] : memref<9x24x24xf32, #tpu.memory_space<vmem>>, vector<1x24x24xf32>
    %815 = vector.shape_cast %814 : vector<1x24x24xf32> to vector<24x24xf32>
    %cst_511 = arith.constant dense<0.000000e+00> : vector<24x8xf32>
    %816 = tpu.matmul %815, %813, %cst_511 {dimension_numbers = #tpu.dot_dimension_numbers<[1], [0], [0], [1], [0, 0, 1, 1], [], []>} : vector<24x24xf32>, vector<24x8xf32>, vector<24x8xf32> -> vector<24x8xf32>
    %817 = arith.addf %808, %816 : vector<24x8xf32>
    %c4_512 = arith.constant 4 : index
    %c0_513 = arith.constant 0 : index
    %c0_514 = arith.constant 0 : index
    %818 = vector.load %arg18[%c4_512, %c0_513, %c0_514] : memref<9x24x24xf32, #tpu.memory_space<vmem>>, vector<1x24x24xf32>
    %819 = vector.shape_cast %818 : vector<1x24x24xf32> to vector<24x24xf32>
    %cst_515 = arith.constant dense<0.000000e+00> : vector<24x8xf32>
    %820 = tpu.matmul %819, %782, %cst_515 {dimension_numbers = #tpu.dot_dimension_numbers<[1], [0], [0], [1], [0, 0, 1, 1], [], []>} : vector<24x24xf32>, vector<24x8xf32>, vector<24x8xf32> -> vector<24x8xf32>
    %821 = arith.addf %817, %820 : vector<24x8xf32>
    %c7_i32_516 = arith.constant 7 : i32
    %822 = tpu.dynamic_rotate %782 by %c7_i32_516 dim 1 : vector<24x8xf32>, i32 -> vector<24x8xf32>
    %c5_517 = arith.constant 5 : index
    %c0_518 = arith.constant 0 : index
    %c0_519 = arith.constant 0 : index
    %823 = vector.load %arg36[%c5_517, %c0_518, %c0_519] : memref<9x1x8xf32, #tpu.memory_space<vmem>>, vector<1x1x8xf32>
    %824 = vector.shape_cast %823 : vector<1x1x8xf32> to vector<1x8xf32>
    %825 = vector.broadcast %824 : vector<1x8xf32> to vector<24x8xf32>
    %826 = arith.mulf %822, %825 : vector<24x8xf32>
    %c5_520 = arith.constant 5 : index
    %c0_521 = arith.constant 0 : index
    %c0_522 = arith.constant 0 : index
    %827 = vector.load %arg18[%c5_520, %c0_521, %c0_522] : memref<9x24x24xf32, #tpu.memory_space<vmem>>, vector<1x24x24xf32>
    %828 = vector.shape_cast %827 : vector<1x24x24xf32> to vector<24x24xf32>
    %cst_523 = arith.constant dense<0.000000e+00> : vector<24x8xf32>
    %829 = tpu.matmul %828, %826, %cst_523 {dimension_numbers = #tpu.dot_dimension_numbers<[1], [0], [0], [1], [0, 0, 1, 1], [], []>} : vector<24x24xf32>, vector<24x8xf32>, vector<24x8xf32> -> vector<24x8xf32>
    %830 = arith.addf %821, %829 : vector<24x8xf32>
    %c5_i32_524 = arith.constant 5 : i32
    %831 = tpu.dynamic_rotate %782 by %c5_i32_524 dim 1 : vector<24x8xf32>, i32 -> vector<24x8xf32>
    %c6_525 = arith.constant 6 : index
    %c0_526 = arith.constant 0 : index
    %c0_527 = arith.constant 0 : index
    %832 = vector.load %arg36[%c6_525, %c0_526, %c0_527] : memref<9x1x8xf32, #tpu.memory_space<vmem>>, vector<1x1x8xf32>
    %833 = vector.shape_cast %832 : vector<1x1x8xf32> to vector<1x8xf32>
    %834 = vector.broadcast %833 : vector<1x8xf32> to vector<24x8xf32>
    %835 = arith.mulf %831, %834 : vector<24x8xf32>
    %c6_528 = arith.constant 6 : index
    %c0_529 = arith.constant 0 : index
    %c0_530 = arith.constant 0 : index
    %836 = vector.load %arg18[%c6_528, %c0_529, %c0_530] : memref<9x24x24xf32, #tpu.memory_space<vmem>>, vector<1x24x24xf32>
    %837 = vector.shape_cast %836 : vector<1x24x24xf32> to vector<24x24xf32>
    %cst_531 = arith.constant dense<0.000000e+00> : vector<24x8xf32>
    %838 = tpu.matmul %837, %835, %cst_531 {dimension_numbers = #tpu.dot_dimension_numbers<[1], [0], [0], [1], [0, 0, 1, 1], [], []>} : vector<24x24xf32>, vector<24x8xf32>, vector<24x8xf32> -> vector<24x8xf32>
    %839 = arith.addf %830, %838 : vector<24x8xf32>
    %c4_i32_532 = arith.constant 4 : i32
    %840 = tpu.dynamic_rotate %782 by %c4_i32_532 dim 1 : vector<24x8xf32>, i32 -> vector<24x8xf32>
    %c7_533 = arith.constant 7 : index
    %c0_534 = arith.constant 0 : index
    %c0_535 = arith.constant 0 : index
    %841 = vector.load %arg36[%c7_533, %c0_534, %c0_535] : memref<9x1x8xf32, #tpu.memory_space<vmem>>, vector<1x1x8xf32>
    %842 = vector.shape_cast %841 : vector<1x1x8xf32> to vector<1x8xf32>
    %843 = vector.broadcast %842 : vector<1x8xf32> to vector<24x8xf32>
    %844 = arith.mulf %840, %843 : vector<24x8xf32>
    %c7_536 = arith.constant 7 : index
    %c0_537 = arith.constant 0 : index
    %c0_538 = arith.constant 0 : index
    %845 = vector.load %arg18[%c7_536, %c0_537, %c0_538] : memref<9x24x24xf32, #tpu.memory_space<vmem>>, vector<1x24x24xf32>
    %846 = vector.shape_cast %845 : vector<1x24x24xf32> to vector<24x24xf32>
    %cst_539 = arith.constant dense<0.000000e+00> : vector<24x8xf32>
    %847 = tpu.matmul %846, %844, %cst_539 {dimension_numbers = #tpu.dot_dimension_numbers<[1], [0], [0], [1], [0, 0, 1, 1], [], []>} : vector<24x24xf32>, vector<24x8xf32>, vector<24x8xf32> -> vector<24x8xf32>
    %848 = arith.addf %839, %847 : vector<24x8xf32>
    %c3_i32_540 = arith.constant 3 : i32
    %849 = tpu.dynamic_rotate %782 by %c3_i32_540 dim 1 : vector<24x8xf32>, i32 -> vector<24x8xf32>
    %c8_541 = arith.constant 8 : index
    %c0_542 = arith.constant 0 : index
    %c0_543 = arith.constant 0 : index
    %850 = vector.load %arg36[%c8_541, %c0_542, %c0_543] : memref<9x1x8xf32, #tpu.memory_space<vmem>>, vector<1x1x8xf32>
    %851 = vector.shape_cast %850 : vector<1x1x8xf32> to vector<1x8xf32>
    %852 = vector.broadcast %851 : vector<1x8xf32> to vector<24x8xf32>
    %853 = arith.mulf %849, %852 : vector<24x8xf32>
    %c8_544 = arith.constant 8 : index
    %c0_545 = arith.constant 0 : index
    %c0_546 = arith.constant 0 : index
    %854 = vector.load %arg18[%c8_544, %c0_545, %c0_546] : memref<9x24x24xf32, #tpu.memory_space<vmem>>, vector<1x24x24xf32>
    %855 = vector.shape_cast %854 : vector<1x24x24xf32> to vector<24x24xf32>
    %cst_547 = arith.constant dense<0.000000e+00> : vector<24x8xf32>
    %856 = tpu.matmul %855, %853, %cst_547 {dimension_numbers = #tpu.dot_dimension_numbers<[1], [0], [0], [1], [0, 0, 1, 1], [], []>} : vector<24x24xf32>, vector<24x8xf32>, vector<24x8xf32> -> vector<24x8xf32>
    %857 = arith.addf %848, %856 : vector<24x8xf32>
    %c0_548 = arith.constant 0 : index
    %c0_549 = arith.constant 0 : index
    %858 = vector.load %arg19[%c0_548, %c0_549] : memref<24x3xf32, #tpu.memory_space<vmem>>, vector<24x3xf32>
    %859 = vector.extract_strided_slice %858 {offsets = [0, 0], sizes = [24, 1], strides = [1, 1]} : vector<24x3xf32> to vector<24x1xf32>
    %860 = vector.broadcast %859 : vector<24x1xf32> to vector<24x8xf32>
    %861 = arith.addf %857, %860 : vector<24x8xf32>
    %862 = vector.extract_strided_slice %858 {offsets = [0, 1], sizes = [24, 1], strides = [1, 1]} : vector<24x3xf32> to vector<24x1xf32>
    %863 = vector.extract_strided_slice %858 {offsets = [0, 2], sizes = [24, 1], strides = [1, 1]} : vector<24x3xf32> to vector<24x1xf32>
    %cst_550 = arith.constant dense<0.000000e+00> : vector<24xf32>
    %864 = vector.multi_reduction <add>, %861, %cst_550 [1] : vector<24x8xf32> to vector<24xf32>
    %865 = vector.shape_cast %864 : vector<24xf32> to vector<24x1xf32>
    %866 = arith.mulf %861, %861 : vector<24x8xf32>
    %cst_551 = arith.constant dense<0.000000e+00> : vector<24xf32>
    %867 = vector.multi_reduction <add>, %866, %cst_551 [1] : vector<24x8xf32> to vector<24xf32>
    %868 = vector.shape_cast %867 : vector<24xf32> to vector<24x1xf32>
    %869 = vector.extract_strided_slice %865 {offsets = [0, 0], sizes = [12, 1], strides = [1, 1]} : vector<24x1xf32> to vector<12x1xf32>
    %cst_552 = arith.constant dense<0.000000e+00> : vector<1xf32>
    %870 = vector.multi_reduction <add>, %869, %cst_552 [0] : vector<12x1xf32> to vector<1xf32>
    %871 = vector.shape_cast %870 : vector<1xf32> to vector<1x1xf32>
    %872 = vector.extract_strided_slice %865 {offsets = [12, 0], sizes = [12, 1], strides = [1, 1]} : vector<24x1xf32> to vector<12x1xf32>
    %cst_553 = arith.constant dense<0.000000e+00> : vector<1xf32>
    %873 = vector.multi_reduction <add>, %872, %cst_553 [0] : vector<12x1xf32> to vector<1xf32>
    %874 = vector.shape_cast %873 : vector<1xf32> to vector<1x1xf32>
    %875 = vector.extract_strided_slice %868 {offsets = [0, 0], sizes = [12, 1], strides = [1, 1]} : vector<24x1xf32> to vector<12x1xf32>
    %cst_554 = arith.constant dense<0.000000e+00> : vector<1xf32>
    %876 = vector.multi_reduction <add>, %875, %cst_554 [0] : vector<12x1xf32> to vector<1xf32>
    %877 = vector.shape_cast %876 : vector<1xf32> to vector<1x1xf32>
    %878 = vector.extract_strided_slice %868 {offsets = [12, 0], sizes = [12, 1], strides = [1, 1]} : vector<24x1xf32> to vector<12x1xf32>
    %cst_555 = arith.constant dense<0.000000e+00> : vector<1xf32>
    %879 = vector.multi_reduction <add>, %878, %cst_555 [0] : vector<12x1xf32> to vector<1xf32>
    %880 = vector.shape_cast %879 : vector<1xf32> to vector<1x1xf32>
    %cst_556 = arith.constant 9.600000e+01 : f32
    %881 = vector.broadcast %cst_556 : f32 to vector<1x1xf32>
    %882 = arith.divf %871, %881 : vector<1x1xf32>
    %cst_557 = arith.constant 9.600000e+01 : f32
    %883 = vector.broadcast %cst_557 : f32 to vector<1x1xf32>
    %884 = arith.divf %874, %883 : vector<1x1xf32>
    %cst_558 = arith.constant 9.600000e+01 : f32
    %885 = vector.broadcast %cst_558 : f32 to vector<1x1xf32>
    %886 = arith.divf %877, %885 : vector<1x1xf32>
    %887 = arith.mulf %882, %882 : vector<1x1xf32>
    %888 = arith.subf %886, %887 : vector<1x1xf32>
    %cst_559 = arith.constant 0.000000e+00 : f32
    %889 = vector.broadcast %cst_559 : f32 to vector<1x1xf32>
    %890 = arith.maximumf %888, %889 : vector<1x1xf32>
    %cst_560 = arith.constant 9.99999974E-6 : f32
    %891 = vector.broadcast %cst_560 : f32 to vector<1x1xf32>
    %892 = arith.addf %890, %891 : vector<1x1xf32>
    %893 = math.rsqrt %892 : vector<1x1xf32>
    %cst_561 = arith.constant 9.600000e+01 : f32
    %894 = vector.broadcast %cst_561 : f32 to vector<1x1xf32>
    %895 = arith.divf %880, %894 : vector<1x1xf32>
    %896 = arith.mulf %884, %884 : vector<1x1xf32>
    %897 = arith.subf %895, %896 : vector<1x1xf32>
    %cst_562 = arith.constant 0.000000e+00 : f32
    %898 = vector.broadcast %cst_562 : f32 to vector<1x1xf32>
    %899 = arith.maximumf %897, %898 : vector<1x1xf32>
    %cst_563 = arith.constant 9.99999974E-6 : f32
    %900 = vector.broadcast %cst_563 : f32 to vector<1x1xf32>
    %901 = arith.addf %899, %900 : vector<1x1xf32>
    %902 = math.rsqrt %901 : vector<1x1xf32>
    %903 = tpu.iota {dimensions = array<i32: 0>} : vector<24x1xi32>
    %c12_i32_564 = arith.constant 12 : i32
    %904 = vector.broadcast %c12_i32_564 : i32 to vector<24x1xi32>
    %905 = arith.cmpi slt, %903, %904 : vector<24x1xi32>
    %906 = vector.shape_cast %882 : vector<1x1xf32> to vector<1x1xf32>
    %907 = vector.broadcast %906 : vector<1x1xf32> to vector<24x1xf32>
    %908 = vector.shape_cast %884 : vector<1x1xf32> to vector<1x1xf32>
    %909 = vector.broadcast %908 : vector<1x1xf32> to vector<24x1xf32>
    %910 = arith.select %905, %907, %909 : vector<24x1xi1>, vector<24x1xf32>
    %911 = vector.shape_cast %893 : vector<1x1xf32> to vector<1x1xf32>
    %912 = vector.broadcast %911 : vector<1x1xf32> to vector<24x1xf32>
    %913 = vector.shape_cast %902 : vector<1x1xf32> to vector<1x1xf32>
    %914 = vector.broadcast %913 : vector<1x1xf32> to vector<24x1xf32>
    %915 = arith.select %905, %912, %914 : vector<24x1xi1>, vector<24x1xf32>
    %916 = arith.mulf %915, %862 : vector<24x1xf32>
    %917 = arith.mulf %910, %916 : vector<24x1xf32>
    %918 = arith.subf %863, %917 : vector<24x1xf32>
    %919 = vector.broadcast %916 : vector<24x1xf32> to vector<24x8xf32>
    %920 = arith.mulf %861, %919 : vector<24x8xf32>
    %921 = vector.broadcast %918 : vector<24x1xf32> to vector<24x8xf32>
    %922 = arith.addf %920, %921 : vector<24x8xf32>
    %cst_565 = arith.constant 0.000000e+00 : f32
    %923 = vector.broadcast %cst_565 : f32 to vector<24x8xf32>
    %924 = arith.maximumf %922, %923 : vector<24x8xf32>
    %c0_566 = arith.constant 0 : index
    %c0_567 = arith.constant 0 : index
    %c0_568 = arith.constant 0 : index
    %925 = vector.load %arg20[%c0_566, %c0_567, %c0_568] : memref<4x16x24xf32, #tpu.memory_space<vmem>>, vector<1x16x24xf32>
    %926 = vector.shape_cast %925 : vector<1x16x24xf32> to vector<16x24xf32>
    %cst_569 = arith.constant dense<0.000000e+00> : vector<16x8xf32>
    %927 = tpu.matmul %926, %924, %cst_569 {dimension_numbers = #tpu.dot_dimension_numbers<[1], [0], [0], [1], [0, 0, 1, 1], [], []>} : vector<16x24xf32>, vector<24x8xf32>, vector<16x8xf32> -> vector<16x8xf32>
    %c0_570 = arith.constant 0 : index
    %c0_571 = arith.constant 0 : index
    %c0_572 = arith.constant 0 : index
    %928 = vector.load %arg38[%c0_570, %c0_571, %c0_572] : memref<4x8x32xf32, #tpu.memory_space<vmem>>, vector<1x8x32xf32>
    %929 = vector.shape_cast %928 : vector<1x8x32xf32> to vector<8x32xf32>
    %cst_573 = arith.constant dense<0.000000e+00> : vector<16x32xf32>
    %930 = tpu.matmul %927, %929, %cst_573 {dimension_numbers = #tpu.dot_dimension_numbers<[1], [0], [0], [1], [0, 0, 1, 1], [], []>} : vector<16x8xf32>, vector<8x32xf32>, vector<16x32xf32> -> vector<16x32xf32>
    %c1_574 = arith.constant 1 : index
    %c0_575 = arith.constant 0 : index
    %c0_576 = arith.constant 0 : index
    %931 = vector.load %arg20[%c1_574, %c0_575, %c0_576] : memref<4x16x24xf32, #tpu.memory_space<vmem>>, vector<1x16x24xf32>
    %932 = vector.shape_cast %931 : vector<1x16x24xf32> to vector<16x24xf32>
    %cst_577 = arith.constant dense<0.000000e+00> : vector<16x8xf32>
    %933 = tpu.matmul %932, %924, %cst_577 {dimension_numbers = #tpu.dot_dimension_numbers<[1], [0], [0], [1], [0, 0, 1, 1], [], []>} : vector<16x24xf32>, vector<24x8xf32>, vector<16x8xf32> -> vector<16x8xf32>
    %c1_578 = arith.constant 1 : index
    %c0_579 = arith.constant 0 : index
    %c0_580 = arith.constant 0 : index
    %934 = vector.load %arg38[%c1_578, %c0_579, %c0_580] : memref<4x8x32xf32, #tpu.memory_space<vmem>>, vector<1x8x32xf32>
    %935 = vector.shape_cast %934 : vector<1x8x32xf32> to vector<8x32xf32>
    %cst_581 = arith.constant dense<0.000000e+00> : vector<16x32xf32>
    %936 = tpu.matmul %933, %935, %cst_581 {dimension_numbers = #tpu.dot_dimension_numbers<[1], [0], [0], [1], [0, 0, 1, 1], [], []>} : vector<16x8xf32>, vector<8x32xf32>, vector<16x32xf32> -> vector<16x32xf32>
    %937 = arith.addf %930, %936 : vector<16x32xf32>
    %c2_582 = arith.constant 2 : index
    %c0_583 = arith.constant 0 : index
    %c0_584 = arith.constant 0 : index
    %938 = vector.load %arg20[%c2_582, %c0_583, %c0_584] : memref<4x16x24xf32, #tpu.memory_space<vmem>>, vector<1x16x24xf32>
    %939 = vector.shape_cast %938 : vector<1x16x24xf32> to vector<16x24xf32>
    %cst_585 = arith.constant dense<0.000000e+00> : vector<16x8xf32>
    %940 = tpu.matmul %939, %924, %cst_585 {dimension_numbers = #tpu.dot_dimension_numbers<[1], [0], [0], [1], [0, 0, 1, 1], [], []>} : vector<16x24xf32>, vector<24x8xf32>, vector<16x8xf32> -> vector<16x8xf32>
    %c2_586 = arith.constant 2 : index
    %c0_587 = arith.constant 0 : index
    %c0_588 = arith.constant 0 : index
    %941 = vector.load %arg38[%c2_586, %c0_587, %c0_588] : memref<4x8x32xf32, #tpu.memory_space<vmem>>, vector<1x8x32xf32>
    %942 = vector.shape_cast %941 : vector<1x8x32xf32> to vector<8x32xf32>
    %cst_589 = arith.constant dense<0.000000e+00> : vector<16x32xf32>
    %943 = tpu.matmul %940, %942, %cst_589 {dimension_numbers = #tpu.dot_dimension_numbers<[1], [0], [0], [1], [0, 0, 1, 1], [], []>} : vector<16x8xf32>, vector<8x32xf32>, vector<16x32xf32> -> vector<16x32xf32>
    %944 = arith.addf %937, %943 : vector<16x32xf32>
    %c3_590 = arith.constant 3 : index
    %c0_591 = arith.constant 0 : index
    %c0_592 = arith.constant 0 : index
    %945 = vector.load %arg20[%c3_590, %c0_591, %c0_592] : memref<4x16x24xf32, #tpu.memory_space<vmem>>, vector<1x16x24xf32>
    %946 = vector.shape_cast %945 : vector<1x16x24xf32> to vector<16x24xf32>
    %cst_593 = arith.constant dense<0.000000e+00> : vector<16x8xf32>
    %947 = tpu.matmul %946, %924, %cst_593 {dimension_numbers = #tpu.dot_dimension_numbers<[1], [0], [0], [1], [0, 0, 1, 1], [], []>} : vector<16x24xf32>, vector<24x8xf32>, vector<16x8xf32> -> vector<16x8xf32>
    %c3_594 = arith.constant 3 : index
    %c0_595 = arith.constant 0 : index
    %c0_596 = arith.constant 0 : index
    %948 = vector.load %arg38[%c3_594, %c0_595, %c0_596] : memref<4x8x32xf32, #tpu.memory_space<vmem>>, vector<1x8x32xf32>
    %949 = vector.shape_cast %948 : vector<1x8x32xf32> to vector<8x32xf32>
    %cst_597 = arith.constant dense<0.000000e+00> : vector<16x32xf32>
    %950 = tpu.matmul %947, %949, %cst_597 {dimension_numbers = #tpu.dot_dimension_numbers<[1], [0], [0], [1], [0, 0, 1, 1], [], []>} : vector<16x8xf32>, vector<8x32xf32>, vector<16x32xf32> -> vector<16x32xf32>
    %951 = arith.addf %944, %950 : vector<16x32xf32>
    %c0_598 = arith.constant 0 : index
    %c0_599 = arith.constant 0 : index
    %952 = vector.load %arg21[%c0_598, %c0_599] : memref<16x1xf32, #tpu.memory_space<vmem>>, vector<16x1xf32>
    %953 = vector.broadcast %952 : vector<16x1xf32> to vector<16x32xf32>
    %954 = arith.addf %951, %953 : vector<16x32xf32>
    %cst_600 = arith.constant 0.000000e+00 : f32
    %955 = vector.broadcast %cst_600 : f32 to vector<16x32xf32>
    %956 = arith.maximumf %954, %955 : vector<16x32xf32>
    %957 = arith.mulf %956, %608 : vector<16x32xf32>
    %c9_i32_601 = arith.constant 9 : i32
    %958 = tpu.dynamic_rotate %957 by %c9_i32_601 dim 1 : vector<16x32xf32>, i32 -> vector<16x32xf32>
    %c0_602 = arith.constant 0 : index
    %c0_603 = arith.constant 0 : index
    %c0_604 = arith.constant 0 : index
    %959 = vector.load %arg35[%c0_602, %c0_603, %c0_604] : memref<9x1x32xf32, #tpu.memory_space<vmem>>, vector<1x1x32xf32>
    %960 = vector.shape_cast %959 : vector<1x1x32xf32> to vector<1x32xf32>
    %961 = vector.broadcast %960 : vector<1x32xf32> to vector<16x32xf32>
    %962 = arith.mulf %958, %961 : vector<16x32xf32>
    %c0_605 = arith.constant 0 : index
    %c0_606 = arith.constant 0 : index
    %c0_607 = arith.constant 0 : index
    %963 = vector.load %arg22[%c0_605, %c0_606, %c0_607] : memref<9x16x16xf32, #tpu.memory_space<vmem>>, vector<1x16x16xf32>
    %964 = vector.shape_cast %963 : vector<1x16x16xf32> to vector<16x16xf32>
    %cst_608 = arith.constant dense<0.000000e+00> : vector<16x32xf32>
    %965 = tpu.matmul %964, %962, %cst_608 {dimension_numbers = #tpu.dot_dimension_numbers<[1], [0], [0], [1], [0, 0, 1, 1], [], []>} : vector<16x16xf32>, vector<16x32xf32>, vector<16x32xf32> -> vector<16x32xf32>
    %c8_i32_609 = arith.constant 8 : i32
    %966 = tpu.dynamic_rotate %957 by %c8_i32_609 dim 1 : vector<16x32xf32>, i32 -> vector<16x32xf32>
    %c1_610 = arith.constant 1 : index
    %c0_611 = arith.constant 0 : index
    %c0_612 = arith.constant 0 : index
    %967 = vector.load %arg35[%c1_610, %c0_611, %c0_612] : memref<9x1x32xf32, #tpu.memory_space<vmem>>, vector<1x1x32xf32>
    %968 = vector.shape_cast %967 : vector<1x1x32xf32> to vector<1x32xf32>
    %969 = vector.broadcast %968 : vector<1x32xf32> to vector<16x32xf32>
    %970 = arith.mulf %966, %969 : vector<16x32xf32>
    %c1_613 = arith.constant 1 : index
    %c0_614 = arith.constant 0 : index
    %c0_615 = arith.constant 0 : index
    %971 = vector.load %arg22[%c1_613, %c0_614, %c0_615] : memref<9x16x16xf32, #tpu.memory_space<vmem>>, vector<1x16x16xf32>
    %972 = vector.shape_cast %971 : vector<1x16x16xf32> to vector<16x16xf32>
    %cst_616 = arith.constant dense<0.000000e+00> : vector<16x32xf32>
    %973 = tpu.matmul %972, %970, %cst_616 {dimension_numbers = #tpu.dot_dimension_numbers<[1], [0], [0], [1], [0, 0, 1, 1], [], []>} : vector<16x16xf32>, vector<16x32xf32>, vector<16x32xf32> -> vector<16x32xf32>
    %974 = arith.addf %965, %973 : vector<16x32xf32>
    %c7_i32_617 = arith.constant 7 : i32
    %975 = tpu.dynamic_rotate %957 by %c7_i32_617 dim 1 : vector<16x32xf32>, i32 -> vector<16x32xf32>
    %c2_618 = arith.constant 2 : index
    %c0_619 = arith.constant 0 : index
    %c0_620 = arith.constant 0 : index
    %976 = vector.load %arg35[%c2_618, %c0_619, %c0_620] : memref<9x1x32xf32, #tpu.memory_space<vmem>>, vector<1x1x32xf32>
    %977 = vector.shape_cast %976 : vector<1x1x32xf32> to vector<1x32xf32>
    %978 = vector.broadcast %977 : vector<1x32xf32> to vector<16x32xf32>
    %979 = arith.mulf %975, %978 : vector<16x32xf32>
    %c2_621 = arith.constant 2 : index
    %c0_622 = arith.constant 0 : index
    %c0_623 = arith.constant 0 : index
    %980 = vector.load %arg22[%c2_621, %c0_622, %c0_623] : memref<9x16x16xf32, #tpu.memory_space<vmem>>, vector<1x16x16xf32>
    %981 = vector.shape_cast %980 : vector<1x16x16xf32> to vector<16x16xf32>
    %cst_624 = arith.constant dense<0.000000e+00> : vector<16x32xf32>
    %982 = tpu.matmul %981, %979, %cst_624 {dimension_numbers = #tpu.dot_dimension_numbers<[1], [0], [0], [1], [0, 0, 1, 1], [], []>} : vector<16x16xf32>, vector<16x32xf32>, vector<16x32xf32> -> vector<16x32xf32>
    %983 = arith.addf %974, %982 : vector<16x32xf32>
    %c1_i32_625 = arith.constant 1 : i32
    %984 = tpu.dynamic_rotate %957 by %c1_i32_625 dim 1 : vector<16x32xf32>, i32 -> vector<16x32xf32>
    %c3_626 = arith.constant 3 : index
    %c0_627 = arith.constant 0 : index
    %c0_628 = arith.constant 0 : index
    %985 = vector.load %arg35[%c3_626, %c0_627, %c0_628] : memref<9x1x32xf32, #tpu.memory_space<vmem>>, vector<1x1x32xf32>
    %986 = vector.shape_cast %985 : vector<1x1x32xf32> to vector<1x32xf32>
    %987 = vector.broadcast %986 : vector<1x32xf32> to vector<16x32xf32>
    %988 = arith.mulf %984, %987 : vector<16x32xf32>
    %c3_629 = arith.constant 3 : index
    %c0_630 = arith.constant 0 : index
    %c0_631 = arith.constant 0 : index
    %989 = vector.load %arg22[%c3_629, %c0_630, %c0_631] : memref<9x16x16xf32, #tpu.memory_space<vmem>>, vector<1x16x16xf32>
    %990 = vector.shape_cast %989 : vector<1x16x16xf32> to vector<16x16xf32>
    %cst_632 = arith.constant dense<0.000000e+00> : vector<16x32xf32>
    %991 = tpu.matmul %990, %988, %cst_632 {dimension_numbers = #tpu.dot_dimension_numbers<[1], [0], [0], [1], [0, 0, 1, 1], [], []>} : vector<16x16xf32>, vector<16x32xf32>, vector<16x32xf32> -> vector<16x32xf32>
    %992 = arith.addf %983, %991 : vector<16x32xf32>
    %c4_633 = arith.constant 4 : index
    %c0_634 = arith.constant 0 : index
    %c0_635 = arith.constant 0 : index
    %993 = vector.load %arg22[%c4_633, %c0_634, %c0_635] : memref<9x16x16xf32, #tpu.memory_space<vmem>>, vector<1x16x16xf32>
    %994 = vector.shape_cast %993 : vector<1x16x16xf32> to vector<16x16xf32>
    %cst_636 = arith.constant dense<0.000000e+00> : vector<16x32xf32>
    %995 = tpu.matmul %994, %957, %cst_636 {dimension_numbers = #tpu.dot_dimension_numbers<[1], [0], [0], [1], [0, 0, 1, 1], [], []>} : vector<16x16xf32>, vector<16x32xf32>, vector<16x32xf32> -> vector<16x32xf32>
    %996 = arith.addf %992, %995 : vector<16x32xf32>
    %c31_i32_637 = arith.constant 31 : i32
    %997 = tpu.dynamic_rotate %957 by %c31_i32_637 dim 1 : vector<16x32xf32>, i32 -> vector<16x32xf32>
    %c5_638 = arith.constant 5 : index
    %c0_639 = arith.constant 0 : index
    %c0_640 = arith.constant 0 : index
    %998 = vector.load %arg35[%c5_638, %c0_639, %c0_640] : memref<9x1x32xf32, #tpu.memory_space<vmem>>, vector<1x1x32xf32>
    %999 = vector.shape_cast %998 : vector<1x1x32xf32> to vector<1x32xf32>
    %1000 = vector.broadcast %999 : vector<1x32xf32> to vector<16x32xf32>
    %1001 = arith.mulf %997, %1000 : vector<16x32xf32>
    %c5_641 = arith.constant 5 : index
    %c0_642 = arith.constant 0 : index
    %c0_643 = arith.constant 0 : index
    %1002 = vector.load %arg22[%c5_641, %c0_642, %c0_643] : memref<9x16x16xf32, #tpu.memory_space<vmem>>, vector<1x16x16xf32>
    %1003 = vector.shape_cast %1002 : vector<1x16x16xf32> to vector<16x16xf32>
    %cst_644 = arith.constant dense<0.000000e+00> : vector<16x32xf32>
    %1004 = tpu.matmul %1003, %1001, %cst_644 {dimension_numbers = #tpu.dot_dimension_numbers<[1], [0], [0], [1], [0, 0, 1, 1], [], []>} : vector<16x16xf32>, vector<16x32xf32>, vector<16x32xf32> -> vector<16x32xf32>
    %1005 = arith.addf %996, %1004 : vector<16x32xf32>
    %c25_i32_645 = arith.constant 25 : i32
    %1006 = tpu.dynamic_rotate %957 by %c25_i32_645 dim 1 : vector<16x32xf32>, i32 -> vector<16x32xf32>
    %c6_646 = arith.constant 6 : index
    %c0_647 = arith.constant 0 : index
    %c0_648 = arith.constant 0 : index
    %1007 = vector.load %arg35[%c6_646, %c0_647, %c0_648] : memref<9x1x32xf32, #tpu.memory_space<vmem>>, vector<1x1x32xf32>
    %1008 = vector.shape_cast %1007 : vector<1x1x32xf32> to vector<1x32xf32>
    %1009 = vector.broadcast %1008 : vector<1x32xf32> to vector<16x32xf32>
    %1010 = arith.mulf %1006, %1009 : vector<16x32xf32>
    %c6_649 = arith.constant 6 : index
    %c0_650 = arith.constant 0 : index
    %c0_651 = arith.constant 0 : index
    %1011 = vector.load %arg22[%c6_649, %c0_650, %c0_651] : memref<9x16x16xf32, #tpu.memory_space<vmem>>, vector<1x16x16xf32>
    %1012 = vector.shape_cast %1011 : vector<1x16x16xf32> to vector<16x16xf32>
    %cst_652 = arith.constant dense<0.000000e+00> : vector<16x32xf32>
    %1013 = tpu.matmul %1012, %1010, %cst_652 {dimension_numbers = #tpu.dot_dimension_numbers<[1], [0], [0], [1], [0, 0, 1, 1], [], []>} : vector<16x16xf32>, vector<16x32xf32>, vector<16x32xf32> -> vector<16x32xf32>
    %1014 = arith.addf %1005, %1013 : vector<16x32xf32>
    %c24_i32_653 = arith.constant 24 : i32
    %1015 = tpu.dynamic_rotate %957 by %c24_i32_653 dim 1 : vector<16x32xf32>, i32 -> vector<16x32xf32>
    %c7_654 = arith.constant 7 : index
    %c0_655 = arith.constant 0 : index
    %c0_656 = arith.constant 0 : index
    %1016 = vector.load %arg35[%c7_654, %c0_655, %c0_656] : memref<9x1x32xf32, #tpu.memory_space<vmem>>, vector<1x1x32xf32>
    %1017 = vector.shape_cast %1016 : vector<1x1x32xf32> to vector<1x32xf32>
    %1018 = vector.broadcast %1017 : vector<1x32xf32> to vector<16x32xf32>
    %1019 = arith.mulf %1015, %1018 : vector<16x32xf32>
    %c7_657 = arith.constant 7 : index
    %c0_658 = arith.constant 0 : index
    %c0_659 = arith.constant 0 : index
    %1020 = vector.load %arg22[%c7_657, %c0_658, %c0_659] : memref<9x16x16xf32, #tpu.memory_space<vmem>>, vector<1x16x16xf32>
    %1021 = vector.shape_cast %1020 : vector<1x16x16xf32> to vector<16x16xf32>
    %cst_660 = arith.constant dense<0.000000e+00> : vector<16x32xf32>
    %1022 = tpu.matmul %1021, %1019, %cst_660 {dimension_numbers = #tpu.dot_dimension_numbers<[1], [0], [0], [1], [0, 0, 1, 1], [], []>} : vector<16x16xf32>, vector<16x32xf32>, vector<16x32xf32> -> vector<16x32xf32>
    %1023 = arith.addf %1014, %1022 : vector<16x32xf32>
    %c23_i32_661 = arith.constant 23 : i32
    %1024 = tpu.dynamic_rotate %957 by %c23_i32_661 dim 1 : vector<16x32xf32>, i32 -> vector<16x32xf32>
    %c8_662 = arith.constant 8 : index
    %c0_663 = arith.constant 0 : index
    %c0_664 = arith.constant 0 : index
    %1025 = vector.load %arg35[%c8_662, %c0_663, %c0_664] : memref<9x1x32xf32, #tpu.memory_space<vmem>>, vector<1x1x32xf32>
    %1026 = vector.shape_cast %1025 : vector<1x1x32xf32> to vector<1x32xf32>
    %1027 = vector.broadcast %1026 : vector<1x32xf32> to vector<16x32xf32>
    %1028 = arith.mulf %1024, %1027 : vector<16x32xf32>
    %c8_665 = arith.constant 8 : index
    %c0_666 = arith.constant 0 : index
    %c0_667 = arith.constant 0 : index
    %1029 = vector.load %arg22[%c8_665, %c0_666, %c0_667] : memref<9x16x16xf32, #tpu.memory_space<vmem>>, vector<1x16x16xf32>
    %1030 = vector.shape_cast %1029 : vector<1x16x16xf32> to vector<16x16xf32>
    %cst_668 = arith.constant dense<0.000000e+00> : vector<16x32xf32>
    %1031 = tpu.matmul %1030, %1028, %cst_668 {dimension_numbers = #tpu.dot_dimension_numbers<[1], [0], [0], [1], [0, 0, 1, 1], [], []>} : vector<16x16xf32>, vector<16x32xf32>, vector<16x32xf32> -> vector<16x32xf32>
    %1032 = arith.addf %1023, %1031 : vector<16x32xf32>
    %c0_669 = arith.constant 0 : index
    %c0_670 = arith.constant 0 : index
    %1033 = vector.load %arg23[%c0_669, %c0_670] : memref<16x3xf32, #tpu.memory_space<vmem>>, vector<16x3xf32>
    %1034 = vector.extract_strided_slice %1033 {offsets = [0, 0], sizes = [16, 1], strides = [1, 1]} : vector<16x3xf32> to vector<16x1xf32>
    %1035 = vector.broadcast %1034 : vector<16x1xf32> to vector<16x32xf32>
    %1036 = arith.addf %1032, %1035 : vector<16x32xf32>
    %1037 = vector.extract_strided_slice %1033 {offsets = [0, 1], sizes = [16, 1], strides = [1, 1]} : vector<16x3xf32> to vector<16x1xf32>
    %1038 = vector.extract_strided_slice %1033 {offsets = [0, 2], sizes = [16, 1], strides = [1, 1]} : vector<16x3xf32> to vector<16x1xf32>
    %cst_671 = arith.constant dense<0.000000e+00> : vector<16xf32>
    %1039 = vector.multi_reduction <add>, %1036, %cst_671 [1] : vector<16x32xf32> to vector<16xf32>
    %1040 = vector.shape_cast %1039 : vector<16xf32> to vector<16x1xf32>
    %1041 = arith.mulf %1036, %1036 : vector<16x32xf32>
    %cst_672 = arith.constant dense<0.000000e+00> : vector<16xf32>
    %1042 = vector.multi_reduction <add>, %1041, %cst_672 [1] : vector<16x32xf32> to vector<16xf32>
    %1043 = vector.shape_cast %1042 : vector<16xf32> to vector<16x1xf32>
    %1044 = vector.extract_strided_slice %1040 {offsets = [0, 0], sizes = [8, 1], strides = [1, 1]} : vector<16x1xf32> to vector<8x1xf32>
    %cst_673 = arith.constant dense<0.000000e+00> : vector<1xf32>
    %1045 = vector.multi_reduction <add>, %1044, %cst_673 [0] : vector<8x1xf32> to vector<1xf32>
    %1046 = vector.shape_cast %1045 : vector<1xf32> to vector<1x1xf32>
    %1047 = vector.extract_strided_slice %1040 {offsets = [8, 0], sizes = [8, 1], strides = [1, 1]} : vector<16x1xf32> to vector<8x1xf32>
    %cst_674 = arith.constant dense<0.000000e+00> : vector<1xf32>
    %1048 = vector.multi_reduction <add>, %1047, %cst_674 [0] : vector<8x1xf32> to vector<1xf32>
    %1049 = vector.shape_cast %1048 : vector<1xf32> to vector<1x1xf32>
    %1050 = vector.extract_strided_slice %1043 {offsets = [0, 0], sizes = [8, 1], strides = [1, 1]} : vector<16x1xf32> to vector<8x1xf32>
    %cst_675 = arith.constant dense<0.000000e+00> : vector<1xf32>
    %1051 = vector.multi_reduction <add>, %1050, %cst_675 [0] : vector<8x1xf32> to vector<1xf32>
    %1052 = vector.shape_cast %1051 : vector<1xf32> to vector<1x1xf32>
    %1053 = vector.extract_strided_slice %1043 {offsets = [8, 0], sizes = [8, 1], strides = [1, 1]} : vector<16x1xf32> to vector<8x1xf32>
    %cst_676 = arith.constant dense<0.000000e+00> : vector<1xf32>
    %1054 = vector.multi_reduction <add>, %1053, %cst_676 [0] : vector<8x1xf32> to vector<1xf32>
    %1055 = vector.shape_cast %1054 : vector<1xf32> to vector<1x1xf32>
    %cst_677 = arith.constant 2.560000e+02 : f32
    %1056 = vector.broadcast %cst_677 : f32 to vector<1x1xf32>
    %1057 = arith.divf %1046, %1056 : vector<1x1xf32>
    %cst_678 = arith.constant 2.560000e+02 : f32
    %1058 = vector.broadcast %cst_678 : f32 to vector<1x1xf32>
    %1059 = arith.divf %1049, %1058 : vector<1x1xf32>
    %cst_679 = arith.constant 2.560000e+02 : f32
    %1060 = vector.broadcast %cst_679 : f32 to vector<1x1xf32>
    %1061 = arith.divf %1052, %1060 : vector<1x1xf32>
    %1062 = arith.mulf %1057, %1057 : vector<1x1xf32>
    %1063 = arith.subf %1061, %1062 : vector<1x1xf32>
    %cst_680 = arith.constant 0.000000e+00 : f32
    %1064 = vector.broadcast %cst_680 : f32 to vector<1x1xf32>
    %1065 = arith.maximumf %1063, %1064 : vector<1x1xf32>
    %cst_681 = arith.constant 9.99999974E-6 : f32
    %1066 = vector.broadcast %cst_681 : f32 to vector<1x1xf32>
    %1067 = arith.addf %1065, %1066 : vector<1x1xf32>
    %1068 = math.rsqrt %1067 : vector<1x1xf32>
    %cst_682 = arith.constant 2.560000e+02 : f32
    %1069 = vector.broadcast %cst_682 : f32 to vector<1x1xf32>
    %1070 = arith.divf %1055, %1069 : vector<1x1xf32>
    %1071 = arith.mulf %1059, %1059 : vector<1x1xf32>
    %1072 = arith.subf %1070, %1071 : vector<1x1xf32>
    %cst_683 = arith.constant 0.000000e+00 : f32
    %1073 = vector.broadcast %cst_683 : f32 to vector<1x1xf32>
    %1074 = arith.maximumf %1072, %1073 : vector<1x1xf32>
    %cst_684 = arith.constant 9.99999974E-6 : f32
    %1075 = vector.broadcast %cst_684 : f32 to vector<1x1xf32>
    %1076 = arith.addf %1074, %1075 : vector<1x1xf32>
    %1077 = math.rsqrt %1076 : vector<1x1xf32>
    %1078 = tpu.iota {dimensions = array<i32: 0>} : vector<16x1xi32>
    %c8_i32_685 = arith.constant 8 : i32
    %1079 = vector.broadcast %c8_i32_685 : i32 to vector<16x1xi32>
    %1080 = arith.cmpi slt, %1078, %1079 : vector<16x1xi32>
    %1081 = vector.shape_cast %1057 : vector<1x1xf32> to vector<1x1xf32>
    %1082 = vector.broadcast %1081 : vector<1x1xf32> to vector<16x1xf32>
    %1083 = vector.shape_cast %1059 : vector<1x1xf32> to vector<1x1xf32>
    %1084 = vector.broadcast %1083 : vector<1x1xf32> to vector<16x1xf32>
    %1085 = arith.select %1080, %1082, %1084 : vector<16x1xi1>, vector<16x1xf32>
    %1086 = vector.shape_cast %1068 : vector<1x1xf32> to vector<1x1xf32>
    %1087 = vector.broadcast %1086 : vector<1x1xf32> to vector<16x1xf32>
    %1088 = vector.shape_cast %1077 : vector<1x1xf32> to vector<1x1xf32>
    %1089 = vector.broadcast %1088 : vector<1x1xf32> to vector<16x1xf32>
    %1090 = arith.select %1080, %1087, %1089 : vector<16x1xi1>, vector<16x1xf32>
    %1091 = arith.mulf %1090, %1037 : vector<16x1xf32>
    %1092 = arith.mulf %1085, %1091 : vector<16x1xf32>
    %1093 = arith.subf %1038, %1092 : vector<16x1xf32>
    %1094 = vector.broadcast %1091 : vector<16x1xf32> to vector<16x32xf32>
    %1095 = arith.mulf %1036, %1094 : vector<16x32xf32>
    %1096 = vector.broadcast %1093 : vector<16x1xf32> to vector<16x32xf32>
    %1097 = arith.addf %1095, %1096 : vector<16x32xf32>
    %cst_686 = arith.constant 0.000000e+00 : f32
    %1098 = vector.broadcast %cst_686 : f32 to vector<16x32xf32>
    %1099 = arith.maximumf %1097, %1098 : vector<16x32xf32>
    %c9_i32_687 = arith.constant 9 : i32
    %1100 = tpu.dynamic_rotate %1099 by %c9_i32_687 dim 1 : vector<16x32xf32>, i32 -> vector<16x32xf32>
    %c0_688 = arith.constant 0 : index
    %c0_689 = arith.constant 0 : index
    %c0_690 = arith.constant 0 : index
    %1101 = vector.load %arg35[%c0_688, %c0_689, %c0_690] : memref<9x1x32xf32, #tpu.memory_space<vmem>>, vector<1x1x32xf32>
    %1102 = vector.shape_cast %1101 : vector<1x1x32xf32> to vector<1x32xf32>
    %1103 = vector.broadcast %1102 : vector<1x32xf32> to vector<16x32xf32>
    %1104 = arith.mulf %1100, %1103 : vector<16x32xf32>
    %c0_691 = arith.constant 0 : index
    %c0_692 = arith.constant 0 : index
    %c0_693 = arith.constant 0 : index
    %1105 = vector.load %arg24[%c0_691, %c0_692, %c0_693] : memref<9x16x16xf32, #tpu.memory_space<vmem>>, vector<1x16x16xf32>
    %1106 = vector.shape_cast %1105 : vector<1x16x16xf32> to vector<16x16xf32>
    %cst_694 = arith.constant dense<0.000000e+00> : vector<16x32xf32>
    %1107 = tpu.matmul %1106, %1104, %cst_694 {dimension_numbers = #tpu.dot_dimension_numbers<[1], [0], [0], [1], [0, 0, 1, 1], [], []>} : vector<16x16xf32>, vector<16x32xf32>, vector<16x32xf32> -> vector<16x32xf32>
    %c8_i32_695 = arith.constant 8 : i32
    %1108 = tpu.dynamic_rotate %1099 by %c8_i32_695 dim 1 : vector<16x32xf32>, i32 -> vector<16x32xf32>
    %c1_696 = arith.constant 1 : index
    %c0_697 = arith.constant 0 : index
    %c0_698 = arith.constant 0 : index
    %1109 = vector.load %arg35[%c1_696, %c0_697, %c0_698] : memref<9x1x32xf32, #tpu.memory_space<vmem>>, vector<1x1x32xf32>
    %1110 = vector.shape_cast %1109 : vector<1x1x32xf32> to vector<1x32xf32>
    %1111 = vector.broadcast %1110 : vector<1x32xf32> to vector<16x32xf32>
    %1112 = arith.mulf %1108, %1111 : vector<16x32xf32>
    %c1_699 = arith.constant 1 : index
    %c0_700 = arith.constant 0 : index
    %c0_701 = arith.constant 0 : index
    %1113 = vector.load %arg24[%c1_699, %c0_700, %c0_701] : memref<9x16x16xf32, #tpu.memory_space<vmem>>, vector<1x16x16xf32>
    %1114 = vector.shape_cast %1113 : vector<1x16x16xf32> to vector<16x16xf32>
    %cst_702 = arith.constant dense<0.000000e+00> : vector<16x32xf32>
    %1115 = tpu.matmul %1114, %1112, %cst_702 {dimension_numbers = #tpu.dot_dimension_numbers<[1], [0], [0], [1], [0, 0, 1, 1], [], []>} : vector<16x16xf32>, vector<16x32xf32>, vector<16x32xf32> -> vector<16x32xf32>
    %1116 = arith.addf %1107, %1115 : vector<16x32xf32>
    %c7_i32_703 = arith.constant 7 : i32
    %1117 = tpu.dynamic_rotate %1099 by %c7_i32_703 dim 1 : vector<16x32xf32>, i32 -> vector<16x32xf32>
    %c2_704 = arith.constant 2 : index
    %c0_705 = arith.constant 0 : index
    %c0_706 = arith.constant 0 : index
    %1118 = vector.load %arg35[%c2_704, %c0_705, %c0_706] : memref<9x1x32xf32, #tpu.memory_space<vmem>>, vector<1x1x32xf32>
    %1119 = vector.shape_cast %1118 : vector<1x1x32xf32> to vector<1x32xf32>
    %1120 = vector.broadcast %1119 : vector<1x32xf32> to vector<16x32xf32>
    %1121 = arith.mulf %1117, %1120 : vector<16x32xf32>
    %c2_707 = arith.constant 2 : index
    %c0_708 = arith.constant 0 : index
    %c0_709 = arith.constant 0 : index
    %1122 = vector.load %arg24[%c2_707, %c0_708, %c0_709] : memref<9x16x16xf32, #tpu.memory_space<vmem>>, vector<1x16x16xf32>
    %1123 = vector.shape_cast %1122 : vector<1x16x16xf32> to vector<16x16xf32>
    %cst_710 = arith.constant dense<0.000000e+00> : vector<16x32xf32>
    %1124 = tpu.matmul %1123, %1121, %cst_710 {dimension_numbers = #tpu.dot_dimension_numbers<[1], [0], [0], [1], [0, 0, 1, 1], [], []>} : vector<16x16xf32>, vector<16x32xf32>, vector<16x32xf32> -> vector<16x32xf32>
    %1125 = arith.addf %1116, %1124 : vector<16x32xf32>
    %c1_i32_711 = arith.constant 1 : i32
    %1126 = tpu.dynamic_rotate %1099 by %c1_i32_711 dim 1 : vector<16x32xf32>, i32 -> vector<16x32xf32>
    %c3_712 = arith.constant 3 : index
    %c0_713 = arith.constant 0 : index
    %c0_714 = arith.constant 0 : index
    %1127 = vector.load %arg35[%c3_712, %c0_713, %c0_714] : memref<9x1x32xf32, #tpu.memory_space<vmem>>, vector<1x1x32xf32>
    %1128 = vector.shape_cast %1127 : vector<1x1x32xf32> to vector<1x32xf32>
    %1129 = vector.broadcast %1128 : vector<1x32xf32> to vector<16x32xf32>
    %1130 = arith.mulf %1126, %1129 : vector<16x32xf32>
    %c3_715 = arith.constant 3 : index
    %c0_716 = arith.constant 0 : index
    %c0_717 = arith.constant 0 : index
    %1131 = vector.load %arg24[%c3_715, %c0_716, %c0_717] : memref<9x16x16xf32, #tpu.memory_space<vmem>>, vector<1x16x16xf32>
    %1132 = vector.shape_cast %1131 : vector<1x16x16xf32> to vector<16x16xf32>
    %cst_718 = arith.constant dense<0.000000e+00> : vector<16x32xf32>
    %1133 = tpu.matmul %1132, %1130, %cst_718 {dimension_numbers = #tpu.dot_dimension_numbers<[1], [0], [0], [1], [0, 0, 1, 1], [], []>} : vector<16x16xf32>, vector<16x32xf32>, vector<16x32xf32> -> vector<16x32xf32>
    %1134 = arith.addf %1125, %1133 : vector<16x32xf32>
    %c4_719 = arith.constant 4 : index
    %c0_720 = arith.constant 0 : index
    %c0_721 = arith.constant 0 : index
    %1135 = vector.load %arg24[%c4_719, %c0_720, %c0_721] : memref<9x16x16xf32, #tpu.memory_space<vmem>>, vector<1x16x16xf32>
    %1136 = vector.shape_cast %1135 : vector<1x16x16xf32> to vector<16x16xf32>
    %cst_722 = arith.constant dense<0.000000e+00> : vector<16x32xf32>
    %1137 = tpu.matmul %1136, %1099, %cst_722 {dimension_numbers = #tpu.dot_dimension_numbers<[1], [0], [0], [1], [0, 0, 1, 1], [], []>} : vector<16x16xf32>, vector<16x32xf32>, vector<16x32xf32> -> vector<16x32xf32>
    %1138 = arith.addf %1134, %1137 : vector<16x32xf32>
    %c31_i32_723 = arith.constant 31 : i32
    %1139 = tpu.dynamic_rotate %1099 by %c31_i32_723 dim 1 : vector<16x32xf32>, i32 -> vector<16x32xf32>
    %c5_724 = arith.constant 5 : index
    %c0_725 = arith.constant 0 : index
    %c0_726 = arith.constant 0 : index
    %1140 = vector.load %arg35[%c5_724, %c0_725, %c0_726] : memref<9x1x32xf32, #tpu.memory_space<vmem>>, vector<1x1x32xf32>
    %1141 = vector.shape_cast %1140 : vector<1x1x32xf32> to vector<1x32xf32>
    %1142 = vector.broadcast %1141 : vector<1x32xf32> to vector<16x32xf32>
    %1143 = arith.mulf %1139, %1142 : vector<16x32xf32>
    %c5_727 = arith.constant 5 : index
    %c0_728 = arith.constant 0 : index
    %c0_729 = arith.constant 0 : index
    %1144 = vector.load %arg24[%c5_727, %c0_728, %c0_729] : memref<9x16x16xf32, #tpu.memory_space<vmem>>, vector<1x16x16xf32>
    %1145 = vector.shape_cast %1144 : vector<1x16x16xf32> to vector<16x16xf32>
    %cst_730 = arith.constant dense<0.000000e+00> : vector<16x32xf32>
    %1146 = tpu.matmul %1145, %1143, %cst_730 {dimension_numbers = #tpu.dot_dimension_numbers<[1], [0], [0], [1], [0, 0, 1, 1], [], []>} : vector<16x16xf32>, vector<16x32xf32>, vector<16x32xf32> -> vector<16x32xf32>
    %1147 = arith.addf %1138, %1146 : vector<16x32xf32>
    %c25_i32_731 = arith.constant 25 : i32
    %1148 = tpu.dynamic_rotate %1099 by %c25_i32_731 dim 1 : vector<16x32xf32>, i32 -> vector<16x32xf32>
    %c6_732 = arith.constant 6 : index
    %c0_733 = arith.constant 0 : index
    %c0_734 = arith.constant 0 : index
    %1149 = vector.load %arg35[%c6_732, %c0_733, %c0_734] : memref<9x1x32xf32, #tpu.memory_space<vmem>>, vector<1x1x32xf32>
    %1150 = vector.shape_cast %1149 : vector<1x1x32xf32> to vector<1x32xf32>
    %1151 = vector.broadcast %1150 : vector<1x32xf32> to vector<16x32xf32>
    %1152 = arith.mulf %1148, %1151 : vector<16x32xf32>
    %c6_735 = arith.constant 6 : index
    %c0_736 = arith.constant 0 : index
    %c0_737 = arith.constant 0 : index
    %1153 = vector.load %arg24[%c6_735, %c0_736, %c0_737] : memref<9x16x16xf32, #tpu.memory_space<vmem>>, vector<1x16x16xf32>
    %1154 = vector.shape_cast %1153 : vector<1x16x16xf32> to vector<16x16xf32>
    %cst_738 = arith.constant dense<0.000000e+00> : vector<16x32xf32>
    %1155 = tpu.matmul %1154, %1152, %cst_738 {dimension_numbers = #tpu.dot_dimension_numbers<[1], [0], [0], [1], [0, 0, 1, 1], [], []>} : vector<16x16xf32>, vector<16x32xf32>, vector<16x32xf32> -> vector<16x32xf32>
    %1156 = arith.addf %1147, %1155 : vector<16x32xf32>
    %c24_i32_739 = arith.constant 24 : i32
    %1157 = tpu.dynamic_rotate %1099 by %c24_i32_739 dim 1 : vector<16x32xf32>, i32 -> vector<16x32xf32>
    %c7_740 = arith.constant 7 : index
    %c0_741 = arith.constant 0 : index
    %c0_742 = arith.constant 0 : index
    %1158 = vector.load %arg35[%c7_740, %c0_741, %c0_742] : memref<9x1x32xf32, #tpu.memory_space<vmem>>, vector<1x1x32xf32>
    %1159 = vector.shape_cast %1158 : vector<1x1x32xf32> to vector<1x32xf32>
    %1160 = vector.broadcast %1159 : vector<1x32xf32> to vector<16x32xf32>
    %1161 = arith.mulf %1157, %1160 : vector<16x32xf32>
    %c7_743 = arith.constant 7 : index
    %c0_744 = arith.constant 0 : index
    %c0_745 = arith.constant 0 : index
    %1162 = vector.load %arg24[%c7_743, %c0_744, %c0_745] : memref<9x16x16xf32, #tpu.memory_space<vmem>>, vector<1x16x16xf32>
    %1163 = vector.shape_cast %1162 : vector<1x16x16xf32> to vector<16x16xf32>
    %cst_746 = arith.constant dense<0.000000e+00> : vector<16x32xf32>
    %1164 = tpu.matmul %1163, %1161, %cst_746 {dimension_numbers = #tpu.dot_dimension_numbers<[1], [0], [0], [1], [0, 0, 1, 1], [], []>} : vector<16x16xf32>, vector<16x32xf32>, vector<16x32xf32> -> vector<16x32xf32>
    %1165 = arith.addf %1156, %1164 : vector<16x32xf32>
    %c23_i32_747 = arith.constant 23 : i32
    %1166 = tpu.dynamic_rotate %1099 by %c23_i32_747 dim 1 : vector<16x32xf32>, i32 -> vector<16x32xf32>
    %c8_748 = arith.constant 8 : index
    %c0_749 = arith.constant 0 : index
    %c0_750 = arith.constant 0 : index
    %1167 = vector.load %arg35[%c8_748, %c0_749, %c0_750] : memref<9x1x32xf32, #tpu.memory_space<vmem>>, vector<1x1x32xf32>
    %1168 = vector.shape_cast %1167 : vector<1x1x32xf32> to vector<1x32xf32>
    %1169 = vector.broadcast %1168 : vector<1x32xf32> to vector<16x32xf32>
    %1170 = arith.mulf %1166, %1169 : vector<16x32xf32>
    %c8_751 = arith.constant 8 : index
    %c0_752 = arith.constant 0 : index
    %c0_753 = arith.constant 0 : index
    %1171 = vector.load %arg24[%c8_751, %c0_752, %c0_753] : memref<9x16x16xf32, #tpu.memory_space<vmem>>, vector<1x16x16xf32>
    %1172 = vector.shape_cast %1171 : vector<1x16x16xf32> to vector<16x16xf32>
    %cst_754 = arith.constant dense<0.000000e+00> : vector<16x32xf32>
    %1173 = tpu.matmul %1172, %1170, %cst_754 {dimension_numbers = #tpu.dot_dimension_numbers<[1], [0], [0], [1], [0, 0, 1, 1], [], []>} : vector<16x16xf32>, vector<16x32xf32>, vector<16x32xf32> -> vector<16x32xf32>
    %1174 = arith.addf %1165, %1173 : vector<16x32xf32>
    %c0_755 = arith.constant 0 : index
    %c0_756 = arith.constant 0 : index
    %1175 = vector.load %arg25[%c0_755, %c0_756] : memref<16x3xf32, #tpu.memory_space<vmem>>, vector<16x3xf32>
    %1176 = vector.extract_strided_slice %1175 {offsets = [0, 0], sizes = [16, 1], strides = [1, 1]} : vector<16x3xf32> to vector<16x1xf32>
    %1177 = vector.broadcast %1176 : vector<16x1xf32> to vector<16x32xf32>
    %1178 = arith.addf %1174, %1177 : vector<16x32xf32>
    %1179 = vector.extract_strided_slice %1175 {offsets = [0, 1], sizes = [16, 1], strides = [1, 1]} : vector<16x3xf32> to vector<16x1xf32>
    %1180 = vector.extract_strided_slice %1175 {offsets = [0, 2], sizes = [16, 1], strides = [1, 1]} : vector<16x3xf32> to vector<16x1xf32>
    %cst_757 = arith.constant dense<0.000000e+00> : vector<16xf32>
    %1181 = vector.multi_reduction <add>, %1178, %cst_757 [1] : vector<16x32xf32> to vector<16xf32>
    %1182 = vector.shape_cast %1181 : vector<16xf32> to vector<16x1xf32>
    %1183 = arith.mulf %1178, %1178 : vector<16x32xf32>
    %cst_758 = arith.constant dense<0.000000e+00> : vector<16xf32>
    %1184 = vector.multi_reduction <add>, %1183, %cst_758 [1] : vector<16x32xf32> to vector<16xf32>
    %1185 = vector.shape_cast %1184 : vector<16xf32> to vector<16x1xf32>
    %1186 = vector.extract_strided_slice %1182 {offsets = [0, 0], sizes = [8, 1], strides = [1, 1]} : vector<16x1xf32> to vector<8x1xf32>
    %cst_759 = arith.constant dense<0.000000e+00> : vector<1xf32>
    %1187 = vector.multi_reduction <add>, %1186, %cst_759 [0] : vector<8x1xf32> to vector<1xf32>
    %1188 = vector.shape_cast %1187 : vector<1xf32> to vector<1x1xf32>
    %1189 = vector.extract_strided_slice %1182 {offsets = [8, 0], sizes = [8, 1], strides = [1, 1]} : vector<16x1xf32> to vector<8x1xf32>
    %cst_760 = arith.constant dense<0.000000e+00> : vector<1xf32>
    %1190 = vector.multi_reduction <add>, %1189, %cst_760 [0] : vector<8x1xf32> to vector<1xf32>
    %1191 = vector.shape_cast %1190 : vector<1xf32> to vector<1x1xf32>
    %1192 = vector.extract_strided_slice %1185 {offsets = [0, 0], sizes = [8, 1], strides = [1, 1]} : vector<16x1xf32> to vector<8x1xf32>
    %cst_761 = arith.constant dense<0.000000e+00> : vector<1xf32>
    %1193 = vector.multi_reduction <add>, %1192, %cst_761 [0] : vector<8x1xf32> to vector<1xf32>
    %1194 = vector.shape_cast %1193 : vector<1xf32> to vector<1x1xf32>
    %1195 = vector.extract_strided_slice %1185 {offsets = [8, 0], sizes = [8, 1], strides = [1, 1]} : vector<16x1xf32> to vector<8x1xf32>
    %cst_762 = arith.constant dense<0.000000e+00> : vector<1xf32>
    %1196 = vector.multi_reduction <add>, %1195, %cst_762 [0] : vector<8x1xf32> to vector<1xf32>
    %1197 = vector.shape_cast %1196 : vector<1xf32> to vector<1x1xf32>
    %cst_763 = arith.constant 2.560000e+02 : f32
    %1198 = vector.broadcast %cst_763 : f32 to vector<1x1xf32>
    %1199 = arith.divf %1188, %1198 : vector<1x1xf32>
    %cst_764 = arith.constant 2.560000e+02 : f32
    %1200 = vector.broadcast %cst_764 : f32 to vector<1x1xf32>
    %1201 = arith.divf %1191, %1200 : vector<1x1xf32>
    %cst_765 = arith.constant 2.560000e+02 : f32
    %1202 = vector.broadcast %cst_765 : f32 to vector<1x1xf32>
    %1203 = arith.divf %1194, %1202 : vector<1x1xf32>
    %1204 = arith.mulf %1199, %1199 : vector<1x1xf32>
    %1205 = arith.subf %1203, %1204 : vector<1x1xf32>
    %cst_766 = arith.constant 0.000000e+00 : f32
    %1206 = vector.broadcast %cst_766 : f32 to vector<1x1xf32>
    %1207 = arith.maximumf %1205, %1206 : vector<1x1xf32>
    %cst_767 = arith.constant 9.99999974E-6 : f32
    %1208 = vector.broadcast %cst_767 : f32 to vector<1x1xf32>
    %1209 = arith.addf %1207, %1208 : vector<1x1xf32>
    %1210 = math.rsqrt %1209 : vector<1x1xf32>
    %cst_768 = arith.constant 2.560000e+02 : f32
    %1211 = vector.broadcast %cst_768 : f32 to vector<1x1xf32>
    %1212 = arith.divf %1197, %1211 : vector<1x1xf32>
    %1213 = arith.mulf %1201, %1201 : vector<1x1xf32>
    %1214 = arith.subf %1212, %1213 : vector<1x1xf32>
    %cst_769 = arith.constant 0.000000e+00 : f32
    %1215 = vector.broadcast %cst_769 : f32 to vector<1x1xf32>
    %1216 = arith.maximumf %1214, %1215 : vector<1x1xf32>
    %cst_770 = arith.constant 9.99999974E-6 : f32
    %1217 = vector.broadcast %cst_770 : f32 to vector<1x1xf32>
    %1218 = arith.addf %1216, %1217 : vector<1x1xf32>
    %1219 = math.rsqrt %1218 : vector<1x1xf32>
    %1220 = tpu.iota {dimensions = array<i32: 0>} : vector<16x1xi32>
    %c8_i32_771 = arith.constant 8 : i32
    %1221 = vector.broadcast %c8_i32_771 : i32 to vector<16x1xi32>
    %1222 = arith.cmpi slt, %1220, %1221 : vector<16x1xi32>
    %1223 = vector.shape_cast %1199 : vector<1x1xf32> to vector<1x1xf32>
    %1224 = vector.broadcast %1223 : vector<1x1xf32> to vector<16x1xf32>
    %1225 = vector.shape_cast %1201 : vector<1x1xf32> to vector<1x1xf32>
    %1226 = vector.broadcast %1225 : vector<1x1xf32> to vector<16x1xf32>
    %1227 = arith.select %1222, %1224, %1226 : vector<16x1xi1>, vector<16x1xf32>
    %1228 = vector.shape_cast %1210 : vector<1x1xf32> to vector<1x1xf32>
    %1229 = vector.broadcast %1228 : vector<1x1xf32> to vector<16x1xf32>
    %1230 = vector.shape_cast %1219 : vector<1x1xf32> to vector<1x1xf32>
    %1231 = vector.broadcast %1230 : vector<1x1xf32> to vector<16x1xf32>
    %1232 = arith.select %1222, %1229, %1231 : vector<16x1xi1>, vector<16x1xf32>
    %1233 = arith.mulf %1232, %1179 : vector<16x1xf32>
    %1234 = arith.mulf %1227, %1233 : vector<16x1xf32>
    %1235 = arith.subf %1180, %1234 : vector<16x1xf32>
    %1236 = vector.broadcast %1233 : vector<16x1xf32> to vector<16x32xf32>
    %1237 = arith.mulf %1178, %1236 : vector<16x32xf32>
    %1238 = vector.broadcast %1235 : vector<16x1xf32> to vector<16x32xf32>
    %1239 = arith.addf %1237, %1238 : vector<16x32xf32>
    %cst_772 = arith.constant 0.000000e+00 : f32
    %1240 = vector.broadcast %cst_772 : f32 to vector<16x32xf32>
    %1241 = arith.maximumf %1239, %1240 : vector<16x32xf32>
    %c0_773 = arith.constant 0 : index
    %c0_774 = arith.constant 0 : index
    %c0_775 = arith.constant 0 : index
    %1242 = vector.load %arg26[%c0_773, %c0_774, %c0_775] : memref<4x8x16xf32, #tpu.memory_space<vmem>>, vector<1x8x16xf32>
    %1243 = vector.shape_cast %1242 : vector<1x8x16xf32> to vector<8x16xf32>
    %cst_776 = arith.constant dense<0.000000e+00> : vector<8x32xf32>
    %1244 = tpu.matmul %1243, %1241, %cst_776 {dimension_numbers = #tpu.dot_dimension_numbers<[1], [0], [0], [1], [0, 0, 1, 1], [], []>} : vector<8x16xf32>, vector<16x32xf32>, vector<8x32xf32> -> vector<8x32xf32>
    %c0_777 = arith.constant 0 : index
    %c0_778 = arith.constant 0 : index
    %c0_779 = arith.constant 0 : index
    %1245 = vector.load %arg37[%c0_777, %c0_778, %c0_779] : memref<4x32x128xf32, #tpu.memory_space<vmem>>, vector<1x32x128xf32>
    %1246 = vector.shape_cast %1245 : vector<1x32x128xf32> to vector<32x128xf32>
    %cst_780 = arith.constant dense<0.000000e+00> : vector<8x128xf32>
    %1247 = tpu.matmul %1244, %1246, %cst_780 {dimension_numbers = #tpu.dot_dimension_numbers<[1], [0], [0], [1], [0, 0, 1, 1], [], []>} : vector<8x32xf32>, vector<32x128xf32>, vector<8x128xf32> -> vector<8x128xf32>
    %c1_781 = arith.constant 1 : index
    %c0_782 = arith.constant 0 : index
    %c0_783 = arith.constant 0 : index
    %1248 = vector.load %arg26[%c1_781, %c0_782, %c0_783] : memref<4x8x16xf32, #tpu.memory_space<vmem>>, vector<1x8x16xf32>
    %1249 = vector.shape_cast %1248 : vector<1x8x16xf32> to vector<8x16xf32>
    %cst_784 = arith.constant dense<0.000000e+00> : vector<8x32xf32>
    %1250 = tpu.matmul %1249, %1241, %cst_784 {dimension_numbers = #tpu.dot_dimension_numbers<[1], [0], [0], [1], [0, 0, 1, 1], [], []>} : vector<8x16xf32>, vector<16x32xf32>, vector<8x32xf32> -> vector<8x32xf32>
    %c1_785 = arith.constant 1 : index
    %c0_786 = arith.constant 0 : index
    %c0_787 = arith.constant 0 : index
    %1251 = vector.load %arg37[%c1_785, %c0_786, %c0_787] : memref<4x32x128xf32, #tpu.memory_space<vmem>>, vector<1x32x128xf32>
    %1252 = vector.shape_cast %1251 : vector<1x32x128xf32> to vector<32x128xf32>
    %cst_788 = arith.constant dense<0.000000e+00> : vector<8x128xf32>
    %1253 = tpu.matmul %1250, %1252, %cst_788 {dimension_numbers = #tpu.dot_dimension_numbers<[1], [0], [0], [1], [0, 0, 1, 1], [], []>} : vector<8x32xf32>, vector<32x128xf32>, vector<8x128xf32> -> vector<8x128xf32>
    %1254 = arith.addf %1247, %1253 : vector<8x128xf32>
    %c2_789 = arith.constant 2 : index
    %c0_790 = arith.constant 0 : index
    %c0_791 = arith.constant 0 : index
    %1255 = vector.load %arg26[%c2_789, %c0_790, %c0_791] : memref<4x8x16xf32, #tpu.memory_space<vmem>>, vector<1x8x16xf32>
    %1256 = vector.shape_cast %1255 : vector<1x8x16xf32> to vector<8x16xf32>
    %cst_792 = arith.constant dense<0.000000e+00> : vector<8x32xf32>
    %1257 = tpu.matmul %1256, %1241, %cst_792 {dimension_numbers = #tpu.dot_dimension_numbers<[1], [0], [0], [1], [0, 0, 1, 1], [], []>} : vector<8x16xf32>, vector<16x32xf32>, vector<8x32xf32> -> vector<8x32xf32>
    %c2_793 = arith.constant 2 : index
    %c0_794 = arith.constant 0 : index
    %c0_795 = arith.constant 0 : index
    %1258 = vector.load %arg37[%c2_793, %c0_794, %c0_795] : memref<4x32x128xf32, #tpu.memory_space<vmem>>, vector<1x32x128xf32>
    %1259 = vector.shape_cast %1258 : vector<1x32x128xf32> to vector<32x128xf32>
    %cst_796 = arith.constant dense<0.000000e+00> : vector<8x128xf32>
    %1260 = tpu.matmul %1257, %1259, %cst_796 {dimension_numbers = #tpu.dot_dimension_numbers<[1], [0], [0], [1], [0, 0, 1, 1], [], []>} : vector<8x32xf32>, vector<32x128xf32>, vector<8x128xf32> -> vector<8x128xf32>
    %1261 = arith.addf %1254, %1260 : vector<8x128xf32>
    %c3_797 = arith.constant 3 : index
    %c0_798 = arith.constant 0 : index
    %c0_799 = arith.constant 0 : index
    %1262 = vector.load %arg26[%c3_797, %c0_798, %c0_799] : memref<4x8x16xf32, #tpu.memory_space<vmem>>, vector<1x8x16xf32>
    %1263 = vector.shape_cast %1262 : vector<1x8x16xf32> to vector<8x16xf32>
    %cst_800 = arith.constant dense<0.000000e+00> : vector<8x32xf32>
    %1264 = tpu.matmul %1263, %1241, %cst_800 {dimension_numbers = #tpu.dot_dimension_numbers<[1], [0], [0], [1], [0, 0, 1, 1], [], []>} : vector<8x16xf32>, vector<16x32xf32>, vector<8x32xf32> -> vector<8x32xf32>
    %c3_801 = arith.constant 3 : index
    %c0_802 = arith.constant 0 : index
    %c0_803 = arith.constant 0 : index
    %1265 = vector.load %arg37[%c3_801, %c0_802, %c0_803] : memref<4x32x128xf32, #tpu.memory_space<vmem>>, vector<1x32x128xf32>
    %1266 = vector.shape_cast %1265 : vector<1x32x128xf32> to vector<32x128xf32>
    %cst_804 = arith.constant dense<0.000000e+00> : vector<8x128xf32>
    %1267 = tpu.matmul %1264, %1266, %cst_804 {dimension_numbers = #tpu.dot_dimension_numbers<[1], [0], [0], [1], [0, 0, 1, 1], [], []>} : vector<8x32xf32>, vector<32x128xf32>, vector<8x128xf32> -> vector<8x128xf32>
    %1268 = arith.addf %1261, %1267 : vector<8x128xf32>
    %c0_805 = arith.constant 0 : index
    %c0_806 = arith.constant 0 : index
    %1269 = vector.load %arg27[%c0_805, %c0_806] : memref<8x1xf32, #tpu.memory_space<vmem>>, vector<8x1xf32>
    %1270 = vector.broadcast %1269 : vector<8x1xf32> to vector<8x128xf32>
    %1271 = arith.addf %1268, %1270 : vector<8x128xf32>
    %cst_807 = arith.constant 0.000000e+00 : f32
    %1272 = vector.broadcast %cst_807 : f32 to vector<8x128xf32>
    %1273 = arith.maximumf %1271, %1272 : vector<8x128xf32>
    %1274 = arith.mulf %1273, %292 : vector<8x128xf32>
    %c17_i32_808 = arith.constant 17 : i32
    %1275 = tpu.dynamic_rotate %1274 by %c17_i32_808 dim 1 : vector<8x128xf32>, i32 -> vector<8x128xf32>
    %c0_809 = arith.constant 0 : index
    %c0_810 = arith.constant 0 : index
    %c0_811 = arith.constant 0 : index
    %1276 = vector.load %arg34[%c0_809, %c0_810, %c0_811] : memref<9x1x128xf32, #tpu.memory_space<vmem>>, vector<1x1x128xf32>
    %1277 = vector.shape_cast %1276 : vector<1x1x128xf32> to vector<1x128xf32>
    %1278 = vector.broadcast %1277 : vector<1x128xf32> to vector<8x128xf32>
    %1279 = arith.mulf %1275, %1278 : vector<8x128xf32>
    %c0_812 = arith.constant 0 : index
    %c0_813 = arith.constant 0 : index
    %c0_814 = arith.constant 0 : index
    %1280 = vector.load %arg28[%c0_812, %c0_813, %c0_814] : memref<9x8x8xf32, #tpu.memory_space<vmem>>, vector<1x8x8xf32>
    %1281 = vector.shape_cast %1280 : vector<1x8x8xf32> to vector<8x8xf32>
    %cst_815 = arith.constant dense<0.000000e+00> : vector<8x128xf32>
    %1282 = tpu.matmul %1281, %1279, %cst_815 {dimension_numbers = #tpu.dot_dimension_numbers<[1], [0], [0], [1], [0, 0, 1, 1], [], []>} : vector<8x8xf32>, vector<8x128xf32>, vector<8x128xf32> -> vector<8x128xf32>
    %c16_i32_816 = arith.constant 16 : i32
    %1283 = tpu.dynamic_rotate %1274 by %c16_i32_816 dim 1 : vector<8x128xf32>, i32 -> vector<8x128xf32>
    %c1_817 = arith.constant 1 : index
    %c0_818 = arith.constant 0 : index
    %c0_819 = arith.constant 0 : index
    %1284 = vector.load %arg34[%c1_817, %c0_818, %c0_819] : memref<9x1x128xf32, #tpu.memory_space<vmem>>, vector<1x1x128xf32>
    %1285 = vector.shape_cast %1284 : vector<1x1x128xf32> to vector<1x128xf32>
    %1286 = vector.broadcast %1285 : vector<1x128xf32> to vector<8x128xf32>
    %1287 = arith.mulf %1283, %1286 : vector<8x128xf32>
    %c1_820 = arith.constant 1 : index
    %c0_821 = arith.constant 0 : index
    %c0_822 = arith.constant 0 : index
    %1288 = vector.load %arg28[%c1_820, %c0_821, %c0_822] : memref<9x8x8xf32, #tpu.memory_space<vmem>>, vector<1x8x8xf32>
    %1289 = vector.shape_cast %1288 : vector<1x8x8xf32> to vector<8x8xf32>
    %cst_823 = arith.constant dense<0.000000e+00> : vector<8x128xf32>
    %1290 = tpu.matmul %1289, %1287, %cst_823 {dimension_numbers = #tpu.dot_dimension_numbers<[1], [0], [0], [1], [0, 0, 1, 1], [], []>} : vector<8x8xf32>, vector<8x128xf32>, vector<8x128xf32> -> vector<8x128xf32>
    %1291 = arith.addf %1282, %1290 : vector<8x128xf32>
    %c15_i32_824 = arith.constant 15 : i32
    %1292 = tpu.dynamic_rotate %1274 by %c15_i32_824 dim 1 : vector<8x128xf32>, i32 -> vector<8x128xf32>
    %c2_825 = arith.constant 2 : index
    %c0_826 = arith.constant 0 : index
    %c0_827 = arith.constant 0 : index
    %1293 = vector.load %arg34[%c2_825, %c0_826, %c0_827] : memref<9x1x128xf32, #tpu.memory_space<vmem>>, vector<1x1x128xf32>
    %1294 = vector.shape_cast %1293 : vector<1x1x128xf32> to vector<1x128xf32>
    %1295 = vector.broadcast %1294 : vector<1x128xf32> to vector<8x128xf32>
    %1296 = arith.mulf %1292, %1295 : vector<8x128xf32>
    %c2_828 = arith.constant 2 : index
    %c0_829 = arith.constant 0 : index
    %c0_830 = arith.constant 0 : index
    %1297 = vector.load %arg28[%c2_828, %c0_829, %c0_830] : memref<9x8x8xf32, #tpu.memory_space<vmem>>, vector<1x8x8xf32>
    %1298 = vector.shape_cast %1297 : vector<1x8x8xf32> to vector<8x8xf32>
    %cst_831 = arith.constant dense<0.000000e+00> : vector<8x128xf32>
    %1299 = tpu.matmul %1298, %1296, %cst_831 {dimension_numbers = #tpu.dot_dimension_numbers<[1], [0], [0], [1], [0, 0, 1, 1], [], []>} : vector<8x8xf32>, vector<8x128xf32>, vector<8x128xf32> -> vector<8x128xf32>
    %1300 = arith.addf %1291, %1299 : vector<8x128xf32>
    %c1_i32_832 = arith.constant 1 : i32
    %1301 = tpu.dynamic_rotate %1274 by %c1_i32_832 dim 1 : vector<8x128xf32>, i32 -> vector<8x128xf32>
    %c3_833 = arith.constant 3 : index
    %c0_834 = arith.constant 0 : index
    %c0_835 = arith.constant 0 : index
    %1302 = vector.load %arg34[%c3_833, %c0_834, %c0_835] : memref<9x1x128xf32, #tpu.memory_space<vmem>>, vector<1x1x128xf32>
    %1303 = vector.shape_cast %1302 : vector<1x1x128xf32> to vector<1x128xf32>
    %1304 = vector.broadcast %1303 : vector<1x128xf32> to vector<8x128xf32>
    %1305 = arith.mulf %1301, %1304 : vector<8x128xf32>
    %c3_836 = arith.constant 3 : index
    %c0_837 = arith.constant 0 : index
    %c0_838 = arith.constant 0 : index
    %1306 = vector.load %arg28[%c3_836, %c0_837, %c0_838] : memref<9x8x8xf32, #tpu.memory_space<vmem>>, vector<1x8x8xf32>
    %1307 = vector.shape_cast %1306 : vector<1x8x8xf32> to vector<8x8xf32>
    %cst_839 = arith.constant dense<0.000000e+00> : vector<8x128xf32>
    %1308 = tpu.matmul %1307, %1305, %cst_839 {dimension_numbers = #tpu.dot_dimension_numbers<[1], [0], [0], [1], [0, 0, 1, 1], [], []>} : vector<8x8xf32>, vector<8x128xf32>, vector<8x128xf32> -> vector<8x128xf32>
    %1309 = arith.addf %1300, %1308 : vector<8x128xf32>
    %c4_840 = arith.constant 4 : index
    %c0_841 = arith.constant 0 : index
    %c0_842 = arith.constant 0 : index
    %1310 = vector.load %arg28[%c4_840, %c0_841, %c0_842] : memref<9x8x8xf32, #tpu.memory_space<vmem>>, vector<1x8x8xf32>
    %1311 = vector.shape_cast %1310 : vector<1x8x8xf32> to vector<8x8xf32>
    %cst_843 = arith.constant dense<0.000000e+00> : vector<8x128xf32>
    %1312 = tpu.matmul %1311, %1274, %cst_843 {dimension_numbers = #tpu.dot_dimension_numbers<[1], [0], [0], [1], [0, 0, 1, 1], [], []>} : vector<8x8xf32>, vector<8x128xf32>, vector<8x128xf32> -> vector<8x128xf32>
    %1313 = arith.addf %1309, %1312 : vector<8x128xf32>
    %c127_i32_844 = arith.constant 127 : i32
    %1314 = tpu.dynamic_rotate %1274 by %c127_i32_844 dim 1 : vector<8x128xf32>, i32 -> vector<8x128xf32>
    %c5_845 = arith.constant 5 : index
    %c0_846 = arith.constant 0 : index
    %c0_847 = arith.constant 0 : index
    %1315 = vector.load %arg34[%c5_845, %c0_846, %c0_847] : memref<9x1x128xf32, #tpu.memory_space<vmem>>, vector<1x1x128xf32>
    %1316 = vector.shape_cast %1315 : vector<1x1x128xf32> to vector<1x128xf32>
    %1317 = vector.broadcast %1316 : vector<1x128xf32> to vector<8x128xf32>
    %1318 = arith.mulf %1314, %1317 : vector<8x128xf32>
    %c5_848 = arith.constant 5 : index
    %c0_849 = arith.constant 0 : index
    %c0_850 = arith.constant 0 : index
    %1319 = vector.load %arg28[%c5_848, %c0_849, %c0_850] : memref<9x8x8xf32, #tpu.memory_space<vmem>>, vector<1x8x8xf32>
    %1320 = vector.shape_cast %1319 : vector<1x8x8xf32> to vector<8x8xf32>
    %cst_851 = arith.constant dense<0.000000e+00> : vector<8x128xf32>
    %1321 = tpu.matmul %1320, %1318, %cst_851 {dimension_numbers = #tpu.dot_dimension_numbers<[1], [0], [0], [1], [0, 0, 1, 1], [], []>} : vector<8x8xf32>, vector<8x128xf32>, vector<8x128xf32> -> vector<8x128xf32>
    %1322 = arith.addf %1313, %1321 : vector<8x128xf32>
    %c113_i32_852 = arith.constant 113 : i32
    %1323 = tpu.dynamic_rotate %1274 by %c113_i32_852 dim 1 : vector<8x128xf32>, i32 -> vector<8x128xf32>
    %c6_853 = arith.constant 6 : index
    %c0_854 = arith.constant 0 : index
    %c0_855 = arith.constant 0 : index
    %1324 = vector.load %arg34[%c6_853, %c0_854, %c0_855] : memref<9x1x128xf32, #tpu.memory_space<vmem>>, vector<1x1x128xf32>
    %1325 = vector.shape_cast %1324 : vector<1x1x128xf32> to vector<1x128xf32>
    %1326 = vector.broadcast %1325 : vector<1x128xf32> to vector<8x128xf32>
    %1327 = arith.mulf %1323, %1326 : vector<8x128xf32>
    %c6_856 = arith.constant 6 : index
    %c0_857 = arith.constant 0 : index
    %c0_858 = arith.constant 0 : index
    %1328 = vector.load %arg28[%c6_856, %c0_857, %c0_858] : memref<9x8x8xf32, #tpu.memory_space<vmem>>, vector<1x8x8xf32>
    %1329 = vector.shape_cast %1328 : vector<1x8x8xf32> to vector<8x8xf32>
    %cst_859 = arith.constant dense<0.000000e+00> : vector<8x128xf32>
    %1330 = tpu.matmul %1329, %1327, %cst_859 {dimension_numbers = #tpu.dot_dimension_numbers<[1], [0], [0], [1], [0, 0, 1, 1], [], []>} : vector<8x8xf32>, vector<8x128xf32>, vector<8x128xf32> -> vector<8x128xf32>
    %1331 = arith.addf %1322, %1330 : vector<8x128xf32>
    %c112_i32_860 = arith.constant 112 : i32
    %1332 = tpu.dynamic_rotate %1274 by %c112_i32_860 dim 1 : vector<8x128xf32>, i32 -> vector<8x128xf32>
    %c7_861 = arith.constant 7 : index
    %c0_862 = arith.constant 0 : index
    %c0_863 = arith.constant 0 : index
    %1333 = vector.load %arg34[%c7_861, %c0_862, %c0_863] : memref<9x1x128xf32, #tpu.memory_space<vmem>>, vector<1x1x128xf32>
    %1334 = vector.shape_cast %1333 : vector<1x1x128xf32> to vector<1x128xf32>
    %1335 = vector.broadcast %1334 : vector<1x128xf32> to vector<8x128xf32>
    %1336 = arith.mulf %1332, %1335 : vector<8x128xf32>
    %c7_864 = arith.constant 7 : index
    %c0_865 = arith.constant 0 : index
    %c0_866 = arith.constant 0 : index
    %1337 = vector.load %arg28[%c7_864, %c0_865, %c0_866] : memref<9x8x8xf32, #tpu.memory_space<vmem>>, vector<1x8x8xf32>
    %1338 = vector.shape_cast %1337 : vector<1x8x8xf32> to vector<8x8xf32>
    %cst_867 = arith.constant dense<0.000000e+00> : vector<8x128xf32>
    %1339 = tpu.matmul %1338, %1336, %cst_867 {dimension_numbers = #tpu.dot_dimension_numbers<[1], [0], [0], [1], [0, 0, 1, 1], [], []>} : vector<8x8xf32>, vector<8x128xf32>, vector<8x128xf32> -> vector<8x128xf32>
    %1340 = arith.addf %1331, %1339 : vector<8x128xf32>
    %c111_i32_868 = arith.constant 111 : i32
    %1341 = tpu.dynamic_rotate %1274 by %c111_i32_868 dim 1 : vector<8x128xf32>, i32 -> vector<8x128xf32>
    %c8_869 = arith.constant 8 : index
    %c0_870 = arith.constant 0 : index
    %c0_871 = arith.constant 0 : index
    %1342 = vector.load %arg34[%c8_869, %c0_870, %c0_871] : memref<9x1x128xf32, #tpu.memory_space<vmem>>, vector<1x1x128xf32>
    %1343 = vector.shape_cast %1342 : vector<1x1x128xf32> to vector<1x128xf32>
    %1344 = vector.broadcast %1343 : vector<1x128xf32> to vector<8x128xf32>
    %1345 = arith.mulf %1341, %1344 : vector<8x128xf32>
    %c8_872 = arith.constant 8 : index
    %c0_873 = arith.constant 0 : index
    %c0_874 = arith.constant 0 : index
    %1346 = vector.load %arg28[%c8_872, %c0_873, %c0_874] : memref<9x8x8xf32, #tpu.memory_space<vmem>>, vector<1x8x8xf32>
    %1347 = vector.shape_cast %1346 : vector<1x8x8xf32> to vector<8x8xf32>
    %cst_875 = arith.constant dense<0.000000e+00> : vector<8x128xf32>
    %1348 = tpu.matmul %1347, %1345, %cst_875 {dimension_numbers = #tpu.dot_dimension_numbers<[1], [0], [0], [1], [0, 0, 1, 1], [], []>} : vector<8x8xf32>, vector<8x128xf32>, vector<8x128xf32> -> vector<8x128xf32>
    %1349 = arith.addf %1340, %1348 : vector<8x128xf32>
    %c0_876 = arith.constant 0 : index
    %c0_877 = arith.constant 0 : index
    %1350 = vector.load %arg29[%c0_876, %c0_877] : memref<8x3xf32, #tpu.memory_space<vmem>>, vector<8x3xf32>
    %1351 = vector.extract_strided_slice %1350 {offsets = [0, 0], sizes = [8, 1], strides = [1, 1]} : vector<8x3xf32> to vector<8x1xf32>
    %1352 = vector.broadcast %1351 : vector<8x1xf32> to vector<8x128xf32>
    %1353 = arith.addf %1349, %1352 : vector<8x128xf32>
    %1354 = vector.extract_strided_slice %1350 {offsets = [0, 1], sizes = [8, 1], strides = [1, 1]} : vector<8x3xf32> to vector<8x1xf32>
    %1355 = vector.extract_strided_slice %1350 {offsets = [0, 2], sizes = [8, 1], strides = [1, 1]} : vector<8x3xf32> to vector<8x1xf32>
    %cst_878 = arith.constant dense<0.000000e+00> : vector<8xf32>
    %1356 = vector.multi_reduction <add>, %1353, %cst_878 [1] : vector<8x128xf32> to vector<8xf32>
    %1357 = vector.shape_cast %1356 : vector<8xf32> to vector<8x1xf32>
    %1358 = arith.mulf %1353, %1353 : vector<8x128xf32>
    %cst_879 = arith.constant dense<0.000000e+00> : vector<8xf32>
    %1359 = vector.multi_reduction <add>, %1358, %cst_879 [1] : vector<8x128xf32> to vector<8xf32>
    %1360 = vector.shape_cast %1359 : vector<8xf32> to vector<8x1xf32>
    %1361 = vector.extract_strided_slice %1357 {offsets = [0, 0], sizes = [4, 1], strides = [1, 1]} : vector<8x1xf32> to vector<4x1xf32>
    %cst_880 = arith.constant dense<0.000000e+00> : vector<1xf32>
    %1362 = vector.multi_reduction <add>, %1361, %cst_880 [0] : vector<4x1xf32> to vector<1xf32>
    %1363 = vector.shape_cast %1362 : vector<1xf32> to vector<1x1xf32>
    %1364 = vector.extract_strided_slice %1357 {offsets = [4, 0], sizes = [4, 1], strides = [1, 1]} : vector<8x1xf32> to vector<4x1xf32>
    %cst_881 = arith.constant dense<0.000000e+00> : vector<1xf32>
    %1365 = vector.multi_reduction <add>, %1364, %cst_881 [0] : vector<4x1xf32> to vector<1xf32>
    %1366 = vector.shape_cast %1365 : vector<1xf32> to vector<1x1xf32>
    %1367 = vector.extract_strided_slice %1360 {offsets = [0, 0], sizes = [4, 1], strides = [1, 1]} : vector<8x1xf32> to vector<4x1xf32>
    %cst_882 = arith.constant dense<0.000000e+00> : vector<1xf32>
    %1368 = vector.multi_reduction <add>, %1367, %cst_882 [0] : vector<4x1xf32> to vector<1xf32>
    %1369 = vector.shape_cast %1368 : vector<1xf32> to vector<1x1xf32>
    %1370 = vector.extract_strided_slice %1360 {offsets = [4, 0], sizes = [4, 1], strides = [1, 1]} : vector<8x1xf32> to vector<4x1xf32>
    %cst_883 = arith.constant dense<0.000000e+00> : vector<1xf32>
    %1371 = vector.multi_reduction <add>, %1370, %cst_883 [0] : vector<4x1xf32> to vector<1xf32>
    %1372 = vector.shape_cast %1371 : vector<1xf32> to vector<1x1xf32>
    %cst_884 = arith.constant 5.120000e+02 : f32
    %1373 = vector.broadcast %cst_884 : f32 to vector<1x1xf32>
    %1374 = arith.divf %1363, %1373 : vector<1x1xf32>
    %cst_885 = arith.constant 5.120000e+02 : f32
    %1375 = vector.broadcast %cst_885 : f32 to vector<1x1xf32>
    %1376 = arith.divf %1366, %1375 : vector<1x1xf32>
    %cst_886 = arith.constant 5.120000e+02 : f32
    %1377 = vector.broadcast %cst_886 : f32 to vector<1x1xf32>
    %1378 = arith.divf %1369, %1377 : vector<1x1xf32>
    %1379 = arith.mulf %1374, %1374 : vector<1x1xf32>
    %1380 = arith.subf %1378, %1379 : vector<1x1xf32>
    %cst_887 = arith.constant 0.000000e+00 : f32
    %1381 = vector.broadcast %cst_887 : f32 to vector<1x1xf32>
    %1382 = arith.maximumf %1380, %1381 : vector<1x1xf32>
    %cst_888 = arith.constant 9.99999974E-6 : f32
    %1383 = vector.broadcast %cst_888 : f32 to vector<1x1xf32>
    %1384 = arith.addf %1382, %1383 : vector<1x1xf32>
    %1385 = math.rsqrt %1384 : vector<1x1xf32>
    %cst_889 = arith.constant 5.120000e+02 : f32
    %1386 = vector.broadcast %cst_889 : f32 to vector<1x1xf32>
    %1387 = arith.divf %1372, %1386 : vector<1x1xf32>
    %1388 = arith.mulf %1376, %1376 : vector<1x1xf32>
    %1389 = arith.subf %1387, %1388 : vector<1x1xf32>
    %cst_890 = arith.constant 0.000000e+00 : f32
    %1390 = vector.broadcast %cst_890 : f32 to vector<1x1xf32>
    %1391 = arith.maximumf %1389, %1390 : vector<1x1xf32>
    %cst_891 = arith.constant 9.99999974E-6 : f32
    %1392 = vector.broadcast %cst_891 : f32 to vector<1x1xf32>
    %1393 = arith.addf %1391, %1392 : vector<1x1xf32>
    %1394 = math.rsqrt %1393 : vector<1x1xf32>
    %1395 = tpu.iota {dimensions = array<i32: 0>} : vector<8x1xi32>
    %c4_i32_892 = arith.constant 4 : i32
    %1396 = vector.broadcast %c4_i32_892 : i32 to vector<8x1xi32>
    %1397 = arith.cmpi slt, %1395, %1396 : vector<8x1xi32>
    %1398 = vector.shape_cast %1374 : vector<1x1xf32> to vector<1x1xf32>
    %1399 = vector.broadcast %1398 : vector<1x1xf32> to vector<8x1xf32>
    %1400 = vector.shape_cast %1376 : vector<1x1xf32> to vector<1x1xf32>
    %1401 = vector.broadcast %1400 : vector<1x1xf32> to vector<8x1xf32>
    %1402 = arith.select %1397, %1399, %1401 : vector<8x1xi1>, vector<8x1xf32>
    %1403 = vector.shape_cast %1385 : vector<1x1xf32> to vector<1x1xf32>
    %1404 = vector.broadcast %1403 : vector<1x1xf32> to vector<8x1xf32>
    %1405 = vector.shape_cast %1394 : vector<1x1xf32> to vector<1x1xf32>
    %1406 = vector.broadcast %1405 : vector<1x1xf32> to vector<8x1xf32>
    %1407 = arith.select %1397, %1404, %1406 : vector<8x1xi1>, vector<8x1xf32>
    %1408 = arith.mulf %1407, %1354 : vector<8x1xf32>
    %1409 = arith.mulf %1402, %1408 : vector<8x1xf32>
    %1410 = arith.subf %1355, %1409 : vector<8x1xf32>
    %1411 = vector.broadcast %1408 : vector<8x1xf32> to vector<8x128xf32>
    %1412 = arith.mulf %1353, %1411 : vector<8x128xf32>
    %1413 = vector.broadcast %1410 : vector<8x1xf32> to vector<8x128xf32>
    %1414 = arith.addf %1412, %1413 : vector<8x128xf32>
    %cst_893 = arith.constant 0.000000e+00 : f32
    %1415 = vector.broadcast %cst_893 : f32 to vector<8x128xf32>
    %1416 = arith.maximumf %1414, %1415 : vector<8x128xf32>
    %c17_i32_894 = arith.constant 17 : i32
    %1417 = tpu.dynamic_rotate %1416 by %c17_i32_894 dim 1 : vector<8x128xf32>, i32 -> vector<8x128xf32>
    %c0_895 = arith.constant 0 : index
    %c0_896 = arith.constant 0 : index
    %c0_897 = arith.constant 0 : index
    %1418 = vector.load %arg34[%c0_895, %c0_896, %c0_897] : memref<9x1x128xf32, #tpu.memory_space<vmem>>, vector<1x1x128xf32>
    %1419 = vector.shape_cast %1418 : vector<1x1x128xf32> to vector<1x128xf32>
    %1420 = vector.broadcast %1419 : vector<1x128xf32> to vector<8x128xf32>
    %1421 = arith.mulf %1417, %1420 : vector<8x128xf32>
    %c0_898 = arith.constant 0 : index
    %c0_899 = arith.constant 0 : index
    %c0_900 = arith.constant 0 : index
    %1422 = vector.load %arg30[%c0_898, %c0_899, %c0_900] : memref<9x8x8xf32, #tpu.memory_space<vmem>>, vector<1x8x8xf32>
    %1423 = vector.shape_cast %1422 : vector<1x8x8xf32> to vector<8x8xf32>
    %cst_901 = arith.constant dense<0.000000e+00> : vector<8x128xf32>
    %1424 = tpu.matmul %1423, %1421, %cst_901 {dimension_numbers = #tpu.dot_dimension_numbers<[1], [0], [0], [1], [0, 0, 1, 1], [], []>} : vector<8x8xf32>, vector<8x128xf32>, vector<8x128xf32> -> vector<8x128xf32>
    %c16_i32_902 = arith.constant 16 : i32
    %1425 = tpu.dynamic_rotate %1416 by %c16_i32_902 dim 1 : vector<8x128xf32>, i32 -> vector<8x128xf32>
    %c1_903 = arith.constant 1 : index
    %c0_904 = arith.constant 0 : index
    %c0_905 = arith.constant 0 : index
    %1426 = vector.load %arg34[%c1_903, %c0_904, %c0_905] : memref<9x1x128xf32, #tpu.memory_space<vmem>>, vector<1x1x128xf32>
    %1427 = vector.shape_cast %1426 : vector<1x1x128xf32> to vector<1x128xf32>
    %1428 = vector.broadcast %1427 : vector<1x128xf32> to vector<8x128xf32>
    %1429 = arith.mulf %1425, %1428 : vector<8x128xf32>
    %c1_906 = arith.constant 1 : index
    %c0_907 = arith.constant 0 : index
    %c0_908 = arith.constant 0 : index
    %1430 = vector.load %arg30[%c1_906, %c0_907, %c0_908] : memref<9x8x8xf32, #tpu.memory_space<vmem>>, vector<1x8x8xf32>
    %1431 = vector.shape_cast %1430 : vector<1x8x8xf32> to vector<8x8xf32>
    %cst_909 = arith.constant dense<0.000000e+00> : vector<8x128xf32>
    %1432 = tpu.matmul %1431, %1429, %cst_909 {dimension_numbers = #tpu.dot_dimension_numbers<[1], [0], [0], [1], [0, 0, 1, 1], [], []>} : vector<8x8xf32>, vector<8x128xf32>, vector<8x128xf32> -> vector<8x128xf32>
    %1433 = arith.addf %1424, %1432 : vector<8x128xf32>
    %c15_i32_910 = arith.constant 15 : i32
    %1434 = tpu.dynamic_rotate %1416 by %c15_i32_910 dim 1 : vector<8x128xf32>, i32 -> vector<8x128xf32>
    %c2_911 = arith.constant 2 : index
    %c0_912 = arith.constant 0 : index
    %c0_913 = arith.constant 0 : index
    %1435 = vector.load %arg34[%c2_911, %c0_912, %c0_913] : memref<9x1x128xf32, #tpu.memory_space<vmem>>, vector<1x1x128xf32>
    %1436 = vector.shape_cast %1435 : vector<1x1x128xf32> to vector<1x128xf32>
    %1437 = vector.broadcast %1436 : vector<1x128xf32> to vector<8x128xf32>
    %1438 = arith.mulf %1434, %1437 : vector<8x128xf32>
    %c2_914 = arith.constant 2 : index
    %c0_915 = arith.constant 0 : index
    %c0_916 = arith.constant 0 : index
    %1439 = vector.load %arg30[%c2_914, %c0_915, %c0_916] : memref<9x8x8xf32, #tpu.memory_space<vmem>>, vector<1x8x8xf32>
    %1440 = vector.shape_cast %1439 : vector<1x8x8xf32> to vector<8x8xf32>
    %cst_917 = arith.constant dense<0.000000e+00> : vector<8x128xf32>
    %1441 = tpu.matmul %1440, %1438, %cst_917 {dimension_numbers = #tpu.dot_dimension_numbers<[1], [0], [0], [1], [0, 0, 1, 1], [], []>} : vector<8x8xf32>, vector<8x128xf32>, vector<8x128xf32> -> vector<8x128xf32>
    %1442 = arith.addf %1433, %1441 : vector<8x128xf32>
    %c1_i32_918 = arith.constant 1 : i32
    %1443 = tpu.dynamic_rotate %1416 by %c1_i32_918 dim 1 : vector<8x128xf32>, i32 -> vector<8x128xf32>
    %c3_919 = arith.constant 3 : index
    %c0_920 = arith.constant 0 : index
    %c0_921 = arith.constant 0 : index
    %1444 = vector.load %arg34[%c3_919, %c0_920, %c0_921] : memref<9x1x128xf32, #tpu.memory_space<vmem>>, vector<1x1x128xf32>
    %1445 = vector.shape_cast %1444 : vector<1x1x128xf32> to vector<1x128xf32>
    %1446 = vector.broadcast %1445 : vector<1x128xf32> to vector<8x128xf32>
    %1447 = arith.mulf %1443, %1446 : vector<8x128xf32>
    %c3_922 = arith.constant 3 : index
    %c0_923 = arith.constant 0 : index
    %c0_924 = arith.constant 0 : index
    %1448 = vector.load %arg30[%c3_922, %c0_923, %c0_924] : memref<9x8x8xf32, #tpu.memory_space<vmem>>, vector<1x8x8xf32>
    %1449 = vector.shape_cast %1448 : vector<1x8x8xf32> to vector<8x8xf32>
    %cst_925 = arith.constant dense<0.000000e+00> : vector<8x128xf32>
    %1450 = tpu.matmul %1449, %1447, %cst_925 {dimension_numbers = #tpu.dot_dimension_numbers<[1], [0], [0], [1], [0, 0, 1, 1], [], []>} : vector<8x8xf32>, vector<8x128xf32>, vector<8x128xf32> -> vector<8x128xf32>
    %1451 = arith.addf %1442, %1450 : vector<8x128xf32>
    %c4_926 = arith.constant 4 : index
    %c0_927 = arith.constant 0 : index
    %c0_928 = arith.constant 0 : index
    %1452 = vector.load %arg30[%c4_926, %c0_927, %c0_928] : memref<9x8x8xf32, #tpu.memory_space<vmem>>, vector<1x8x8xf32>
    %1453 = vector.shape_cast %1452 : vector<1x8x8xf32> to vector<8x8xf32>
    %cst_929 = arith.constant dense<0.000000e+00> : vector<8x128xf32>
    %1454 = tpu.matmul %1453, %1416, %cst_929 {dimension_numbers = #tpu.dot_dimension_numbers<[1], [0], [0], [1], [0, 0, 1, 1], [], []>} : vector<8x8xf32>, vector<8x128xf32>, vector<8x128xf32> -> vector<8x128xf32>
    %1455 = arith.addf %1451, %1454 : vector<8x128xf32>
    %c127_i32_930 = arith.constant 127 : i32
    %1456 = tpu.dynamic_rotate %1416 by %c127_i32_930 dim 1 : vector<8x128xf32>, i32 -> vector<8x128xf32>
    %c5_931 = arith.constant 5 : index
    %c0_932 = arith.constant 0 : index
    %c0_933 = arith.constant 0 : index
    %1457 = vector.load %arg34[%c5_931, %c0_932, %c0_933] : memref<9x1x128xf32, #tpu.memory_space<vmem>>, vector<1x1x128xf32>
    %1458 = vector.shape_cast %1457 : vector<1x1x128xf32> to vector<1x128xf32>
    %1459 = vector.broadcast %1458 : vector<1x128xf32> to vector<8x128xf32>
    %1460 = arith.mulf %1456, %1459 : vector<8x128xf32>
    %c5_934 = arith.constant 5 : index
    %c0_935 = arith.constant 0 : index
    %c0_936 = arith.constant 0 : index
    %1461 = vector.load %arg30[%c5_934, %c0_935, %c0_936] : memref<9x8x8xf32, #tpu.memory_space<vmem>>, vector<1x8x8xf32>
    %1462 = vector.shape_cast %1461 : vector<1x8x8xf32> to vector<8x8xf32>
    %cst_937 = arith.constant dense<0.000000e+00> : vector<8x128xf32>
    %1463 = tpu.matmul %1462, %1460, %cst_937 {dimension_numbers = #tpu.dot_dimension_numbers<[1], [0], [0], [1], [0, 0, 1, 1], [], []>} : vector<8x8xf32>, vector<8x128xf32>, vector<8x128xf32> -> vector<8x128xf32>
    %1464 = arith.addf %1455, %1463 : vector<8x128xf32>
    %c113_i32_938 = arith.constant 113 : i32
    %1465 = tpu.dynamic_rotate %1416 by %c113_i32_938 dim 1 : vector<8x128xf32>, i32 -> vector<8x128xf32>
    %c6_939 = arith.constant 6 : index
    %c0_940 = arith.constant 0 : index
    %c0_941 = arith.constant 0 : index
    %1466 = vector.load %arg34[%c6_939, %c0_940, %c0_941] : memref<9x1x128xf32, #tpu.memory_space<vmem>>, vector<1x1x128xf32>
    %1467 = vector.shape_cast %1466 : vector<1x1x128xf32> to vector<1x128xf32>
    %1468 = vector.broadcast %1467 : vector<1x128xf32> to vector<8x128xf32>
    %1469 = arith.mulf %1465, %1468 : vector<8x128xf32>
    %c6_942 = arith.constant 6 : index
    %c0_943 = arith.constant 0 : index
    %c0_944 = arith.constant 0 : index
    %1470 = vector.load %arg30[%c6_942, %c0_943, %c0_944] : memref<9x8x8xf32, #tpu.memory_space<vmem>>, vector<1x8x8xf32>
    %1471 = vector.shape_cast %1470 : vector<1x8x8xf32> to vector<8x8xf32>
    %cst_945 = arith.constant dense<0.000000e+00> : vector<8x128xf32>
    %1472 = tpu.matmul %1471, %1469, %cst_945 {dimension_numbers = #tpu.dot_dimension_numbers<[1], [0], [0], [1], [0, 0, 1, 1], [], []>} : vector<8x8xf32>, vector<8x128xf32>, vector<8x128xf32> -> vector<8x128xf32>
    %1473 = arith.addf %1464, %1472 : vector<8x128xf32>
    %c112_i32_946 = arith.constant 112 : i32
    %1474 = tpu.dynamic_rotate %1416 by %c112_i32_946 dim 1 : vector<8x128xf32>, i32 -> vector<8x128xf32>
    %c7_947 = arith.constant 7 : index
    %c0_948 = arith.constant 0 : index
    %c0_949 = arith.constant 0 : index
    %1475 = vector.load %arg34[%c7_947, %c0_948, %c0_949] : memref<9x1x128xf32, #tpu.memory_space<vmem>>, vector<1x1x128xf32>
    %1476 = vector.shape_cast %1475 : vector<1x1x128xf32> to vector<1x128xf32>
    %1477 = vector.broadcast %1476 : vector<1x128xf32> to vector<8x128xf32>
    %1478 = arith.mulf %1474, %1477 : vector<8x128xf32>
    %c7_950 = arith.constant 7 : index
    %c0_951 = arith.constant 0 : index
    %c0_952 = arith.constant 0 : index
    %1479 = vector.load %arg30[%c7_950, %c0_951, %c0_952] : memref<9x8x8xf32, #tpu.memory_space<vmem>>, vector<1x8x8xf32>
    %1480 = vector.shape_cast %1479 : vector<1x8x8xf32> to vector<8x8xf32>
    %cst_953 = arith.constant dense<0.000000e+00> : vector<8x128xf32>
    %1481 = tpu.matmul %1480, %1478, %cst_953 {dimension_numbers = #tpu.dot_dimension_numbers<[1], [0], [0], [1], [0, 0, 1, 1], [], []>} : vector<8x8xf32>, vector<8x128xf32>, vector<8x128xf32> -> vector<8x128xf32>
    %1482 = arith.addf %1473, %1481 : vector<8x128xf32>
    %c111_i32_954 = arith.constant 111 : i32
    %1483 = tpu.dynamic_rotate %1416 by %c111_i32_954 dim 1 : vector<8x128xf32>, i32 -> vector<8x128xf32>
    %c8_955 = arith.constant 8 : index
    %c0_956 = arith.constant 0 : index
    %c0_957 = arith.constant 0 : index
    %1484 = vector.load %arg34[%c8_955, %c0_956, %c0_957] : memref<9x1x128xf32, #tpu.memory_space<vmem>>, vector<1x1x128xf32>
    %1485 = vector.shape_cast %1484 : vector<1x1x128xf32> to vector<1x128xf32>
    %1486 = vector.broadcast %1485 : vector<1x128xf32> to vector<8x128xf32>
    %1487 = arith.mulf %1483, %1486 : vector<8x128xf32>
    %c8_958 = arith.constant 8 : index
    %c0_959 = arith.constant 0 : index
    %c0_960 = arith.constant 0 : index
    %1488 = vector.load %arg30[%c8_958, %c0_959, %c0_960] : memref<9x8x8xf32, #tpu.memory_space<vmem>>, vector<1x8x8xf32>
    %1489 = vector.shape_cast %1488 : vector<1x8x8xf32> to vector<8x8xf32>
    %cst_961 = arith.constant dense<0.000000e+00> : vector<8x128xf32>
    %1490 = tpu.matmul %1489, %1487, %cst_961 {dimension_numbers = #tpu.dot_dimension_numbers<[1], [0], [0], [1], [0, 0, 1, 1], [], []>} : vector<8x8xf32>, vector<8x128xf32>, vector<8x128xf32> -> vector<8x128xf32>
    %1491 = arith.addf %1482, %1490 : vector<8x128xf32>
    %c0_962 = arith.constant 0 : index
    %c0_963 = arith.constant 0 : index
    %1492 = vector.load %arg31[%c0_962, %c0_963] : memref<8x3xf32, #tpu.memory_space<vmem>>, vector<8x3xf32>
    %1493 = vector.extract_strided_slice %1492 {offsets = [0, 0], sizes = [8, 1], strides = [1, 1]} : vector<8x3xf32> to vector<8x1xf32>
    %1494 = vector.broadcast %1493 : vector<8x1xf32> to vector<8x128xf32>
    %1495 = arith.addf %1491, %1494 : vector<8x128xf32>
    %1496 = vector.extract_strided_slice %1492 {offsets = [0, 1], sizes = [8, 1], strides = [1, 1]} : vector<8x3xf32> to vector<8x1xf32>
    %1497 = vector.extract_strided_slice %1492 {offsets = [0, 2], sizes = [8, 1], strides = [1, 1]} : vector<8x3xf32> to vector<8x1xf32>
    %cst_964 = arith.constant dense<0.000000e+00> : vector<8xf32>
    %1498 = vector.multi_reduction <add>, %1495, %cst_964 [1] : vector<8x128xf32> to vector<8xf32>
    %1499 = vector.shape_cast %1498 : vector<8xf32> to vector<8x1xf32>
    %1500 = arith.mulf %1495, %1495 : vector<8x128xf32>
    %cst_965 = arith.constant dense<0.000000e+00> : vector<8xf32>
    %1501 = vector.multi_reduction <add>, %1500, %cst_965 [1] : vector<8x128xf32> to vector<8xf32>
    %1502 = vector.shape_cast %1501 : vector<8xf32> to vector<8x1xf32>
    %1503 = vector.extract_strided_slice %1499 {offsets = [0, 0], sizes = [4, 1], strides = [1, 1]} : vector<8x1xf32> to vector<4x1xf32>
    %cst_966 = arith.constant dense<0.000000e+00> : vector<1xf32>
    %1504 = vector.multi_reduction <add>, %1503, %cst_966 [0] : vector<4x1xf32> to vector<1xf32>
    %1505 = vector.shape_cast %1504 : vector<1xf32> to vector<1x1xf32>
    %1506 = vector.extract_strided_slice %1499 {offsets = [4, 0], sizes = [4, 1], strides = [1, 1]} : vector<8x1xf32> to vector<4x1xf32>
    %cst_967 = arith.constant dense<0.000000e+00> : vector<1xf32>
    %1507 = vector.multi_reduction <add>, %1506, %cst_967 [0] : vector<4x1xf32> to vector<1xf32>
    %1508 = vector.shape_cast %1507 : vector<1xf32> to vector<1x1xf32>
    %1509 = vector.extract_strided_slice %1502 {offsets = [0, 0], sizes = [4, 1], strides = [1, 1]} : vector<8x1xf32> to vector<4x1xf32>
    %cst_968 = arith.constant dense<0.000000e+00> : vector<1xf32>
    %1510 = vector.multi_reduction <add>, %1509, %cst_968 [0] : vector<4x1xf32> to vector<1xf32>
    %1511 = vector.shape_cast %1510 : vector<1xf32> to vector<1x1xf32>
    %1512 = vector.extract_strided_slice %1502 {offsets = [4, 0], sizes = [4, 1], strides = [1, 1]} : vector<8x1xf32> to vector<4x1xf32>
    %cst_969 = arith.constant dense<0.000000e+00> : vector<1xf32>
    %1513 = vector.multi_reduction <add>, %1512, %cst_969 [0] : vector<4x1xf32> to vector<1xf32>
    %1514 = vector.shape_cast %1513 : vector<1xf32> to vector<1x1xf32>
    %cst_970 = arith.constant 5.120000e+02 : f32
    %1515 = vector.broadcast %cst_970 : f32 to vector<1x1xf32>
    %1516 = arith.divf %1505, %1515 : vector<1x1xf32>
    %cst_971 = arith.constant 5.120000e+02 : f32
    %1517 = vector.broadcast %cst_971 : f32 to vector<1x1xf32>
    %1518 = arith.divf %1508, %1517 : vector<1x1xf32>
    %cst_972 = arith.constant 5.120000e+02 : f32
    %1519 = vector.broadcast %cst_972 : f32 to vector<1x1xf32>
    %1520 = arith.divf %1511, %1519 : vector<1x1xf32>
    %1521 = arith.mulf %1516, %1516 : vector<1x1xf32>
    %1522 = arith.subf %1520, %1521 : vector<1x1xf32>
    %cst_973 = arith.constant 0.000000e+00 : f32
    %1523 = vector.broadcast %cst_973 : f32 to vector<1x1xf32>
    %1524 = arith.maximumf %1522, %1523 : vector<1x1xf32>
    %cst_974 = arith.constant 9.99999974E-6 : f32
    %1525 = vector.broadcast %cst_974 : f32 to vector<1x1xf32>
    %1526 = arith.addf %1524, %1525 : vector<1x1xf32>
    %1527 = math.rsqrt %1526 : vector<1x1xf32>
    %cst_975 = arith.constant 5.120000e+02 : f32
    %1528 = vector.broadcast %cst_975 : f32 to vector<1x1xf32>
    %1529 = arith.divf %1514, %1528 : vector<1x1xf32>
    %1530 = arith.mulf %1518, %1518 : vector<1x1xf32>
    %1531 = arith.subf %1529, %1530 : vector<1x1xf32>
    %cst_976 = arith.constant 0.000000e+00 : f32
    %1532 = vector.broadcast %cst_976 : f32 to vector<1x1xf32>
    %1533 = arith.maximumf %1531, %1532 : vector<1x1xf32>
    %cst_977 = arith.constant 9.99999974E-6 : f32
    %1534 = vector.broadcast %cst_977 : f32 to vector<1x1xf32>
    %1535 = arith.addf %1533, %1534 : vector<1x1xf32>
    %1536 = math.rsqrt %1535 : vector<1x1xf32>
    %1537 = tpu.iota {dimensions = array<i32: 0>} : vector<8x1xi32>
    %c4_i32_978 = arith.constant 4 : i32
    %1538 = vector.broadcast %c4_i32_978 : i32 to vector<8x1xi32>
    %1539 = arith.cmpi slt, %1537, %1538 : vector<8x1xi32>
    %1540 = vector.shape_cast %1516 : vector<1x1xf32> to vector<1x1xf32>
    %1541 = vector.broadcast %1540 : vector<1x1xf32> to vector<8x1xf32>
    %1542 = vector.shape_cast %1518 : vector<1x1xf32> to vector<1x1xf32>
    %1543 = vector.broadcast %1542 : vector<1x1xf32> to vector<8x1xf32>
    %1544 = arith.select %1539, %1541, %1543 : vector<8x1xi1>, vector<8x1xf32>
    %1545 = vector.shape_cast %1527 : vector<1x1xf32> to vector<1x1xf32>
    %1546 = vector.broadcast %1545 : vector<1x1xf32> to vector<8x1xf32>
    %1547 = vector.shape_cast %1536 : vector<1x1xf32> to vector<1x1xf32>
    %1548 = vector.broadcast %1547 : vector<1x1xf32> to vector<8x1xf32>
    %1549 = arith.select %1539, %1546, %1548 : vector<8x1xi1>, vector<8x1xf32>
    %1550 = arith.mulf %1549, %1496 : vector<8x1xf32>
    %1551 = arith.mulf %1544, %1550 : vector<8x1xf32>
    %1552 = arith.subf %1497, %1551 : vector<8x1xf32>
    %1553 = vector.broadcast %1550 : vector<8x1xf32> to vector<8x128xf32>
    %1554 = arith.mulf %1495, %1553 : vector<8x128xf32>
    %1555 = vector.broadcast %1552 : vector<8x1xf32> to vector<8x128xf32>
    %1556 = arith.addf %1554, %1555 : vector<8x128xf32>
    %cst_979 = arith.constant 0.000000e+00 : f32
    %1557 = vector.broadcast %cst_979 : f32 to vector<8x128xf32>
    %1558 = arith.maximumf %1556, %1557 : vector<8x128xf32>
    %c0_980 = arith.constant 0 : index
    %c0_981 = arith.constant 0 : index
    %1559 = vector.load %arg32[%c0_980, %c0_981] : memref<4x8xf32, #tpu.memory_space<vmem>>, vector<4x8xf32>
    %cst_982 = arith.constant dense<0.000000e+00> : vector<4x128xf32>
    %1560 = tpu.matmul %1559, %1558, %cst_982 {dimension_numbers = #tpu.dot_dimension_numbers<[1], [0], [0], [1], [0, 0, 1, 1], [], []>} : vector<4x8xf32>, vector<8x128xf32>, vector<4x128xf32> -> vector<4x128xf32>
    %c0_983 = arith.constant 0 : index
    %c0_984 = arith.constant 0 : index
    %1561 = vector.load %arg33[%c0_983, %c0_984] : memref<4x1xf32, #tpu.memory_space<vmem>>, vector<4x1xf32>
    %1562 = vector.broadcast %1561 : vector<4x1xf32> to vector<4x128xf32>
    %1563 = arith.addf %1560, %1562 : vector<4x128xf32>
    %c0_985 = arith.constant 0 : index
    %c0_986 = arith.constant 0 : index
    %c0_987 = arith.constant 0 : index
    %1564 = vector.load %arg41[%c0_985, %c0_986, %c0_987] : memref<1x4x128xf32, #tpu.memory_space<vmem>>, vector<1x4x128xf32>
    %1565 = vector.shape_cast %1564 : vector<1x4x128xf32> to vector<4x128xf32>
    %1566 = vector.shape_cast %1563 : vector<4x128xf32> to vector<1x4x128xf32>
    tpu.vector_store %arg41[%c0_985, %c0_986, %c0_987], %1566 {strides = array<i32>} : memref<1x4x128xf32, #tpu.memory_space<vmem>>, vector<1x4x128xf32>,
    return
  }
  func.func @transform_0(%arg0: i32) -> (i32, i32, i32) {
    %c0_i32 = arith.constant 0 : i32
    %c0_i32_0 = arith.constant 0 : i32
    %c0_i32_1 = arith.constant 0 : i32
    return %arg0, %c0_i32, %c0_i32_0 : i32, i32, i32
  }
  func.func @transform_1(%arg0: i32) -> (i32, i32) {
    %c0_i32 = arith.constant 0 : i32
    %c0_i32_0 = arith.constant 0 : i32
    %c0_i32_1 = arith.constant 0 : i32
    return %c0_i32, %c0_i32_0 : i32, i32
  }
  func.func @transform_2(%arg0: i32) -> (i32, i32) {
    %c0_i32 = arith.constant 0 : i32
    %c0_i32_0 = arith.constant 0 : i32
    %c0_i32_1 = arith.constant 0 : i32
    return %c0_i32, %c0_i32_0 : i32, i32
  }
  func.func @transform_3(%arg0: i32) -> (i32, i32, i32) {
    %c0_i32 = arith.constant 0 : i32
    %c0_i32_0 = arith.constant 0 : i32
    %c0_i32_1 = arith.constant 0 : i32
    %c0_i32_2 = arith.constant 0 : i32
    return %c0_i32, %c0_i32_0, %c0_i32_1 : i32, i32, i32
  }
  func.func @transform_4(%arg0: i32) -> (i32, i32) {
    %c0_i32 = arith.constant 0 : i32
    %c0_i32_0 = arith.constant 0 : i32
    %c0_i32_1 = arith.constant 0 : i32
    return %c0_i32, %c0_i32_0 : i32, i32
  }
  func.func @transform_5(%arg0: i32) -> (i32, i32, i32) {
    %c0_i32 = arith.constant 0 : i32
    %c0_i32_0 = arith.constant 0 : i32
    %c0_i32_1 = arith.constant 0 : i32
    %c0_i32_2 = arith.constant 0 : i32
    return %c0_i32, %c0_i32_0, %c0_i32_1 : i32, i32, i32
  }
  func.func @transform_6(%arg0: i32) -> (i32, i32) {
    %c0_i32 = arith.constant 0 : i32
    %c0_i32_0 = arith.constant 0 : i32
    %c0_i32_1 = arith.constant 0 : i32
    return %c0_i32, %c0_i32_0 : i32, i32
  }
  func.func @transform_7(%arg0: i32) -> (i32, i32, i32) {
    %c0_i32 = arith.constant 0 : i32
    %c0_i32_0 = arith.constant 0 : i32
    %c0_i32_1 = arith.constant 0 : i32
    %c0_i32_2 = arith.constant 0 : i32
    return %c0_i32, %c0_i32_0, %c0_i32_1 : i32, i32, i32
  }
  func.func @transform_8(%arg0: i32) -> (i32, i32) {
    %c0_i32 = arith.constant 0 : i32
    %c0_i32_0 = arith.constant 0 : i32
    %c0_i32_1 = arith.constant 0 : i32
    return %c0_i32, %c0_i32_0 : i32, i32
  }
  func.func @transform_9(%arg0: i32) -> (i32, i32, i32) {
    %c0_i32 = arith.constant 0 : i32
    %c0_i32_0 = arith.constant 0 : i32
    %c0_i32_1 = arith.constant 0 : i32
    %c0_i32_2 = arith.constant 0 : i32
    return %c0_i32, %c0_i32_0, %c0_i32_1 : i32, i32, i32
  }
  func.func @transform_10(%arg0: i32) -> (i32, i32) {
    %c0_i32 = arith.constant 0 : i32
    %c0_i32_0 = arith.constant 0 : i32
    %c0_i32_1 = arith.constant 0 : i32
    return %c0_i32, %c0_i32_0 : i32, i32
  }
  func.func @transform_11(%arg0: i32) -> (i32, i32, i32) {
    %c0_i32 = arith.constant 0 : i32
    %c0_i32_0 = arith.constant 0 : i32
    %c0_i32_1 = arith.constant 0 : i32
    %c0_i32_2 = arith.constant 0 : i32
    return %c0_i32, %c0_i32_0, %c0_i32_1 : i32, i32, i32
  }
  func.func @transform_12(%arg0: i32) -> (i32, i32) {
    %c0_i32 = arith.constant 0 : i32
    %c0_i32_0 = arith.constant 0 : i32
    %c0_i32_1 = arith.constant 0 : i32
    return %c0_i32, %c0_i32_0 : i32, i32
  }
  func.func @transform_13(%arg0: i32) -> (i32, i32, i32) {
    %c0_i32 = arith.constant 0 : i32
    %c0_i32_0 = arith.constant 0 : i32
    %c0_i32_1 = arith.constant 0 : i32
    %c0_i32_2 = arith.constant 0 : i32
    return %c0_i32, %c0_i32_0, %c0_i32_1 : i32, i32, i32
  }
  func.func @transform_14(%arg0: i32) -> (i32, i32) {
    %c0_i32 = arith.constant 0 : i32
    %c0_i32_0 = arith.constant 0 : i32
    %c0_i32_1 = arith.constant 0 : i32
    return %c0_i32, %c0_i32_0 : i32, i32
  }
  func.func @transform_15(%arg0: i32) -> (i32, i32, i32) {
    %c0_i32 = arith.constant 0 : i32
    %c0_i32_0 = arith.constant 0 : i32
    %c0_i32_1 = arith.constant 0 : i32
    %c0_i32_2 = arith.constant 0 : i32
    return %c0_i32, %c0_i32_0, %c0_i32_1 : i32, i32, i32
  }
  func.func @transform_16(%arg0: i32) -> (i32, i32) {
    %c0_i32 = arith.constant 0 : i32
    %c0_i32_0 = arith.constant 0 : i32
    %c0_i32_1 = arith.constant 0 : i32
    return %c0_i32, %c0_i32_0 : i32, i32
  }
  func.func @transform_17(%arg0: i32) -> (i32, i32, i32) {
    %c0_i32 = arith.constant 0 : i32
    %c0_i32_0 = arith.constant 0 : i32
    %c0_i32_1 = arith.constant 0 : i32
    %c0_i32_2 = arith.constant 0 : i32
    return %c0_i32, %c0_i32_0, %c0_i32_1 : i32, i32, i32
  }
  func.func @transform_18(%arg0: i32) -> (i32, i32) {
    %c0_i32 = arith.constant 0 : i32
    %c0_i32_0 = arith.constant 0 : i32
    %c0_i32_1 = arith.constant 0 : i32
    return %c0_i32, %c0_i32_0 : i32, i32
  }
  func.func @transform_19(%arg0: i32) -> (i32, i32, i32) {
    %c0_i32 = arith.constant 0 : i32
    %c0_i32_0 = arith.constant 0 : i32
    %c0_i32_1 = arith.constant 0 : i32
    %c0_i32_2 = arith.constant 0 : i32
    return %c0_i32, %c0_i32_0, %c0_i32_1 : i32, i32, i32
  }
  func.func @transform_20(%arg0: i32) -> (i32, i32) {
    %c0_i32 = arith.constant 0 : i32
    %c0_i32_0 = arith.constant 0 : i32
    %c0_i32_1 = arith.constant 0 : i32
    return %c0_i32, %c0_i32_0 : i32, i32
  }
  func.func @transform_21(%arg0: i32) -> (i32, i32, i32) {
    %c0_i32 = arith.constant 0 : i32
    %c0_i32_0 = arith.constant 0 : i32
    %c0_i32_1 = arith.constant 0 : i32
    %c0_i32_2 = arith.constant 0 : i32
    return %c0_i32, %c0_i32_0, %c0_i32_1 : i32, i32, i32
  }
  func.func @transform_22(%arg0: i32) -> (i32, i32) {
    %c0_i32 = arith.constant 0 : i32
    %c0_i32_0 = arith.constant 0 : i32
    %c0_i32_1 = arith.constant 0 : i32
    return %c0_i32, %c0_i32_0 : i32, i32
  }
  func.func @transform_23(%arg0: i32) -> (i32, i32, i32) {
    %c0_i32 = arith.constant 0 : i32
    %c0_i32_0 = arith.constant 0 : i32
    %c0_i32_1 = arith.constant 0 : i32
    %c0_i32_2 = arith.constant 0 : i32
    return %c0_i32, %c0_i32_0, %c0_i32_1 : i32, i32, i32
  }
  func.func @transform_24(%arg0: i32) -> (i32, i32) {
    %c0_i32 = arith.constant 0 : i32
    %c0_i32_0 = arith.constant 0 : i32
    %c0_i32_1 = arith.constant 0 : i32
    return %c0_i32, %c0_i32_0 : i32, i32
  }
  func.func @transform_25(%arg0: i32) -> (i32, i32, i32) {
    %c0_i32 = arith.constant 0 : i32
    %c0_i32_0 = arith.constant 0 : i32
    %c0_i32_1 = arith.constant 0 : i32
    %c0_i32_2 = arith.constant 0 : i32
    return %c0_i32, %c0_i32_0, %c0_i32_1 : i32, i32, i32
  }
  func.func @transform_26(%arg0: i32) -> (i32, i32) {
    %c0_i32 = arith.constant 0 : i32
    %c0_i32_0 = arith.constant 0 : i32
    %c0_i32_1 = arith.constant 0 : i32
    return %c0_i32, %c0_i32_0 : i32, i32
  }
  func.func @transform_27(%arg0: i32) -> (i32, i32, i32) {
    %c0_i32 = arith.constant 0 : i32
    %c0_i32_0 = arith.constant 0 : i32
    %c0_i32_1 = arith.constant 0 : i32
    %c0_i32_2 = arith.constant 0 : i32
    return %c0_i32, %c0_i32_0, %c0_i32_1 : i32, i32, i32
  }
  func.func @transform_28(%arg0: i32) -> (i32, i32) {
    %c0_i32 = arith.constant 0 : i32
    %c0_i32_0 = arith.constant 0 : i32
    %c0_i32_1 = arith.constant 0 : i32
    return %c0_i32, %c0_i32_0 : i32, i32
  }
  func.func @transform_29(%arg0: i32) -> (i32, i32, i32) {
    %c0_i32 = arith.constant 0 : i32
    %c0_i32_0 = arith.constant 0 : i32
    %c0_i32_1 = arith.constant 0 : i32
    %c0_i32_2 = arith.constant 0 : i32
    return %c0_i32, %c0_i32_0, %c0_i32_1 : i32, i32, i32
  }
  func.func @transform_30(%arg0: i32) -> (i32, i32) {
    %c0_i32 = arith.constant 0 : i32
    %c0_i32_0 = arith.constant 0 : i32
    %c0_i32_1 = arith.constant 0 : i32
    return %c0_i32, %c0_i32_0 : i32, i32
  }
  func.func @transform_31(%arg0: i32) -> (i32, i32) {
    %c0_i32 = arith.constant 0 : i32
    %c0_i32_0 = arith.constant 0 : i32
    %c0_i32_1 = arith.constant 0 : i32
    return %c0_i32, %c0_i32_0 : i32, i32
  }
  func.func @transform_32(%arg0: i32) -> (i32, i32) {
    %c0_i32 = arith.constant 0 : i32
    %c0_i32_0 = arith.constant 0 : i32
    %c0_i32_1 = arith.constant 0 : i32
    return %c0_i32, %c0_i32_0 : i32, i32
  }
  func.func @transform_33(%arg0: i32) -> (i32, i32, i32) {
    %c0_i32 = arith.constant 0 : i32
    %c0_i32_0 = arith.constant 0 : i32
    %c0_i32_1 = arith.constant 0 : i32
    %c0_i32_2 = arith.constant 0 : i32
    return %c0_i32, %c0_i32_0, %c0_i32_1 : i32, i32, i32
  }
  func.func @transform_34(%arg0: i32) -> (i32, i32, i32) {
    %c0_i32 = arith.constant 0 : i32
    %c0_i32_0 = arith.constant 0 : i32
    %c0_i32_1 = arith.constant 0 : i32
    %c0_i32_2 = arith.constant 0 : i32
    return %c0_i32, %c0_i32_0, %c0_i32_1 : i32, i32, i32
  }
  func.func @transform_35(%arg0: i32) -> (i32, i32, i32) {
    %c0_i32 = arith.constant 0 : i32
    %c0_i32_0 = arith.constant 0 : i32
    %c0_i32_1 = arith.constant 0 : i32
    %c0_i32_2 = arith.constant 0 : i32
    return %c0_i32, %c0_i32_0, %c0_i32_1 : i32, i32, i32
  }
  func.func @transform_36(%arg0: i32) -> (i32, i32, i32) {
    %c0_i32 = arith.constant 0 : i32
    %c0_i32_0 = arith.constant 0 : i32
    %c0_i32_1 = arith.constant 0 : i32
    %c0_i32_2 = arith.constant 0 : i32
    return %c0_i32, %c0_i32_0, %c0_i32_1 : i32, i32, i32
  }
  func.func @transform_37(%arg0: i32) -> (i32, i32, i32) {
    %c0_i32 = arith.constant 0 : i32
    %c0_i32_0 = arith.constant 0 : i32
    %c0_i32_1 = arith.constant 0 : i32
    %c0_i32_2 = arith.constant 0 : i32
    return %c0_i32, %c0_i32_0, %c0_i32_1 : i32, i32, i32
  }
  func.func @transform_38(%arg0: i32) -> (i32, i32, i32) {
    %c0_i32 = arith.constant 0 : i32
    %c0_i32_0 = arith.constant 0 : i32
    %c0_i32_1 = arith.constant 0 : i32
    %c0_i32_2 = arith.constant 0 : i32
    return %c0_i32, %c0_i32_0, %c0_i32_1 : i32, i32, i32
  }
  func.func @transform_39(%arg0: i32) -> (i32, i32, i32) {
    %c0_i32 = arith.constant 0 : i32
    %c0_i32_0 = arith.constant 0 : i32
    %c0_i32_1 = arith.constant 0 : i32
    %c0_i32_2 = arith.constant 0 : i32
    return %c0_i32, %c0_i32_0, %c0_i32_1 : i32, i32, i32
  }
  func.func @transform_40(%arg0: i32) -> (i32, i32, i32) {
    %c0_i32 = arith.constant 0 : i32
    %c0_i32_0 = arith.constant 0 : i32
    %c0_i32_1 = arith.constant 0 : i32
    return %arg0, %c0_i32, %c0_i32_0 : i32, i32, i32
  }
}

</mosaic_0001>

<bundles_post_ra>
// kernel: forward.1
= control target key start
LH: loop header
LB: loop body
LE: loop exit
PB: predicated region body
PF: predicated region fallthrough
CT: control target
= control target key end

     0   :  { %s16216_s6 = smov 1   ;;  %s16217_s10 = smov 2   ;;  %s18364_s0 = inlined_call_operand.smem [shape: u32[41], index: -1, kind: input, shape index: {}] }
   0x1   :  { %s16298_s5 = sld [smem:[%s18364_s0]]   ;;  %s16218_s14 = smov 3  }
   0x2   :  { %s16303_s9 = sld [smem:[%s18364_s0 + %s16216_s6]]   ;;  %s16219_s18 = smov 4  }
   0x3   :  { %s16308_s13 = sld [smem:[%s18364_s0 + %s16217_s10]]   ;;  %s16220_s22 = smov 5  }
   0x4   :  { %s16313_s17 = sld [smem:[%s18364_s0 + %s16218_s14]]   ;;  %s16221_s26 = smov 6  }
   0x5   :  { %s16318_s21 = sld [smem:[%s18364_s0 + %s16219_s18]]   ;;  %s16222_s30 = smov 7  }
   0x6   :  { %s16323_s25 = sld [smem:[%s18364_s0 + %s16220_s22]]   ;;  %s16223_s4 = smov 8  }
   0x7   :  { %18439 = sst [smem:[#allocation2_spill]] %s16298_s5  ;;  %s16224_s10 = smov 9  }
   0x8   :  { %18440 = sst [smem:[#allocation3_spill]] %s16303_s9  ;;  %s16225_s15 = smov 10  }
   0x9   :  { %s16328_s29 = sld [smem:[%s18364_s0 + %s16221_s26]]   ;;  %s16226_s20 = smov 11  }
   0xa   :  { %s16333_s3 = sld [smem:[%s18364_s0 + %s16222_s30]]   ;;  %s16227_s26 = smov 12  }
   0xb   :  { %s16338_s8 = sld [smem:[%s18364_s0 + %s16223_s4]]   ;;  %s16228_s1 = smov 13  }
   0xc   :  { %s16343_s14 = sld [smem:[%s18364_s0 + %s16224_s10]]   ;;  %s16229_s7 = smov 14  }
   0xd   :  { %s16348_s19 = sld [smem:[%s18364_s0 + %s16225_s15]]   ;;  %s16230_s15 = smov 15  }
   0xe   :  { %s16353_s24 = sld [smem:[%s18364_s0 + %s16226_s20]]   ;;  %s16231_s22 = smov 16  }
   0xf   :  { %s16358_s30 = sld [smem:[%s18364_s0 + %s16227_s26]]   ;;  %s16232_s28 = smov 17  }
  0x10   :  { %18441 = sst [smem:[#allocation4_spill]] %s16333_s3 }
  0x11   :  { %18442 = sst [smem:[#allocation5_spill]] %s16338_s8 }
  0x12   :  { %s16363_s6 = sld [smem:[%s18364_s0 + %s16228_s1]]  }
  0x13   :  { %s16368_s12 = sld [smem:[%s18364_s0 + %s16229_s7]]   ;;  %s16233_s7 = smov 18  }
  0x14   :  { %s16373_s20 = sld [smem:[%s18364_s0 + %s16230_s15]]   ;;  %s16234_s15 = smov 19  }
  0x15   :  { %18443 = sst [smem:[#allocation6_spill]] %s16358_s30 }
  0x16   :  { %s16378_s27 = sld [smem:[%s18364_s0 + %s16231_s22]]   ;;  %s16235_s22 = smov 20  }
  0x17   :  { %s16383_s4 = sld [smem:[%s18364_s0 + %s16232_s28]]   ;;  %s16236_s28 = smov 21  }
  0x18   :  { %18444 = sst [smem:[#allocation7_spill]] %s16363_s6 }
  0x19   :  { %18445 = sst [smem:[#allocation8_spill]] %s16368_s12 }
  0x1a   :  { %18446 = sst [smem:[#allocation9_spill]] %s16373_s20 }
  0x1b   :  { %s16388_s12 = sld [smem:[%s18364_s0 + %s16233_s7]]   ;;  %s16237_s7 = smov 22  }
  0x1c   :  { %18447 = sst [smem:[#allocation10_spill]] %s16378_s27 }
  0x1d   :  { %18448 = sst [smem:[#allocation11_spill]] %s16383_s4 }
  0x1e   :  { %s16393_s20 = sld [smem:[%s18364_s0 + %s16234_s15]]   ;;  %s16238_s15 = smov 23  }
  0x1f   :  { %s16398_s27 = sld [smem:[%s18364_s0 + %s16235_s22]]   ;;  %s16239_s22 = smov 24  }
  0x20   :  { %s16403_s4 = sld [smem:[%s18364_s0 + %s16236_s28]]   ;;  %s16240_s28 = smov 25  }
  0x21   :  { %18449 = sst [smem:[#allocation12_spill]] %s16388_s12 }
  0x22   :  { %s16408_s12 = sld [smem:[%s18364_s0 + %s16237_s7]]   ;;  %s16241_s7 = smov 26  }
  0x24   :  { %18450 = sst [smem:[#allocation13_spill]] %s16393_s20 }
  0x25   :  { %18451 = sst [smem:[#allocation14_spill]] %s16398_s27 }
  0x26   :  { %18452 = sst [smem:[#allocation15_spill]] %s16403_s4 }
  0x27   :  { %s16413_s20 = sld [smem:[%s18364_s0 + %s16238_s15]]   ;;  %s16242_s15 = smov 27  }
  0x28   :  { %18453 = sst [smem:[#allocation16_spill]] %s16408_s12 }
  0x29   :  { %s16418_s27 = sld [smem:[%s18364_s0 + %s16239_s22]]   ;;  %s16243_s22 = smov 28  }
  0x2a   :  { %s16423_s4 = sld [smem:[%s18364_s0 + %s16240_s28]]   ;;  %s16244_s28 = smov 29  }
  0x2b   :  { %s16428_s12 = sld [smem:[%s18364_s0 + %s16241_s7]]   ;;  %s16245_s7 = smov 30  }
  0x2d   :  { %18454 = sst [smem:[#allocation17_spill]] %s16413_s20 }
  0x2e   :  { %s16433_s20 = sld [smem:[%s18364_s0 + %s16242_s15]]   ;;  %s16246_s15 = smov 31  }
  0x2f   :  { %18455 = sst [smem:[#allocation18_spill]] %s16418_s27 }
  0x30   :  { %18456 = sst [smem:[#allocation19_spill]] %s16423_s4 }
  0x31   :  { %18457 = sst [smem:[#allocation20_spill]] %s16428_s12 }
  0x32   :  { %s16438_s27 = sld [smem:[%s18364_s0 + %s16243_s22]]   ;;  %s16247_s22 = smov 32  }
  0x33   :  { %s16443_s4 = sld [smem:[%s18364_s0 + %s16244_s28]]   ;;  %s16248_s28 = smov 33  }
  0x34   :  { %18458 = sst [smem:[#allocation21_spill]] %s16433_s20 }
  0x35   :  { %s16448_s12 = sld [smem:[%s18364_s0 + %s16245_s7]]   ;;  %s16249_s7 = smov 34  }
  0x36   :  { %s16453_s20 = sld [smem:[%s18364_s0 + %s16246_s15]]   ;;  %s16250_s15 = smov 35  }
  0x38   :  { %18459 = sst [smem:[#allocation22_spill]] %s16438_s27 }
  0x39   :  { %18460 = sst [smem:[#allocation23_spill]] %s16443_s4 }
  0x3a   :  { %s16458_s27 = sld [smem:[%s18364_s0 + %s16247_s22]]   ;;  %s16251_s22 = smov 36  }
  0x3b   :  { %18461 = sst [smem:[#allocation24_spill]] %s16448_s12 }
  0x3c   :  { %18462 = sst [smem:[#allocation25_spill]] %s16453_s20 }
  0x3d   :  { %s16463_s4 = sld [smem:[%s18364_s0 + %s16248_s28]]   ;;  %s16252_s28 = smov 37  }
  0x3e   :  { %s16468_s12 = sld [smem:[%s18364_s0 + %s16249_s7]]   ;;  %s16253_s7 = smov 38  }
  0x3f   :  { %s16473_s20 = sld [smem:[%s18364_s0 + %s16250_s15]]   ;;  %s16254_s15 = smov 39  }
  0x40   :  { %18463 = sst [smem:[#allocation26_spill]] %s16458_s27 }
  0x41   :  { %s16478_s27 = sld [smem:[%s18364_s0 + %s16251_s22]]   ;;  %s16255_s22 = smov 40  }
  0x42   :  { %s16483_s6 = sld [smem:[%s18364_s0 + %s16252_s28]]   ;;  %s16500_s28 = smov 0  }
  0x43   :  { %18464 = sst [smem:[#allocation27_spill]] %s16463_s4 }
  0x44   :  { %s16488_s30 = sld [smem:[%s18364_s0 + %s16253_s7]]  }
  0x45   :  { %18465 = sst [smem:[#allocation28_spill]] %s16473_s20 }
  0x46   :  { %s16493_s20 = sld [smem:[%s18364_s0 + %s16254_s15]]  }
  0x47   :  { %18466 = sst [smem:[#allocation29_spill]] %s16478_s27 }
  0x48   :  { %18467 = sst [smem:[#allocation30_spill]] %s16483_s6 }
  0x49   :  { %s16498_s27 = sld [smem:[%s18364_s0 + %s16255_s22]]  }
  0x4a LB: > { %s18468_s4 = sld [smem:[#allocation27_spill]]  ;;  %s13872_s1 = sadd.s32 4294967295, %s16214_s28   ;;  %s16214_s28 = sphi %s16500_s28, %s91_s28  }
  0x4b   : > { %s18469_s8 = sld [smem:[#allocation5_spill]]  ;;  %p13876_p0 = scmp.ge.s32.totalorder %s16214_s28, 1 }
  0x4c   : > { %s18470_s6 = sld [smem:[#allocation30_spill]]  ;;  %p1102_p1 = scmp.lt.s32.totalorder %s16214_s28, 3 }
  0x4d   : > { %s18471_s3 = sld [smem:[#allocation4_spill]] }
  0x4e   : > { %p1103_p2 = pnand %p13876_p0, %p1102_p1 }
  0x4f   : > { %p1198_p3 = scmp.lt.s32.totalorder (!%p1103_p2), %s13872_s1, 1  ;;  %s18472_s5 = sld [smem:[#allocation2_spill]] (!%p1103_p2) }
  0x50   : > { %1106 = sbr.rel (%p1103_p2) target bundleno = 12063 (0x2f1f), region = 180  ;;  %s18473_s9 = sld [smem:[#allocation3_spill]] (!%p1103_p2) }
  0x51   : > { %s18390_s7 = smov (!%p1103_p2), 17   ;;  %s18392_s10 = smov (!%p1103_p2), 16  }
  0x52   : > { %s18394_s11 = smov (!%p1103_p2), 15   ;;  %s18421_s15 = smov (!%p1103_p2), 1  }
  0x53   : > { %s18411_s16 = smov (!%p1103_p2), 127   ;;  %s18386_s18 = smov (!%p1103_p2), 113  }
  0x54   : > { %s18388_s22 = smov (!%p1103_p2), 112   ;;  %s18384_s23 = smov (!%p1103_p2), 111  }
  0x55   : > { %v18417_v0 = vmov 0.0   ;;  %vm16257_vm0 = vmmov 0   ;;  %v1208_v1 = vld [vmem:[%s16308_s13] sm:$0xff]  ;;  %s18520_s1 = smov (!%p1198_p3, %s13872_s1), 1  ;;  %v16258_v2 = vmov 0   ;;  %vm1218_vm1 = vcmask 1043456  }
  0x56   : > { %14914 = vmatprep.subr.mxu0 %v18417_v0  ;;  %14916 = vmatprep.mubr.msk.f32.mxu0 %vm16257_vm0, %v18417_v0  ;;  %s18383_s0 = sshll.u32 %s18520_s1, 2  ;;  %v1206_v3 = vld [vmem:[%s18473_s9] sm:$0xff]  ;;  %vm1214_vm2 = vcmask 31744   ;;  %vm1317_vm3 = vcmask 64512   ;;  %v13884_v18 = vld [vmem:[%s16313_s17 + $0x8] sm:$0xff]  ;;  %v13889_v25 = vld [vmem:[%s16313_s17 + $0x10] sm:$0xff] }
  0x57   : > { %16116 = vset.pattern.permute.xlu0 %v16258_v2  ;;  %14919 = vmatprep.subr.mxu1 %v18417_v0  ;;  %s1201_s2 = scalar_lea.vmem %s18472_s5, %s18383_s0  ;;  %v16537_v10 = vld [vmem:[%s16318_s21] sm:$0xff]  ;;  %v13893_v26 = vld [vmem:[%s16313_s17 + $0x18] sm:$0xff]  ;;  %v13899_v35 = vld [vmem:[%s16313_s17 + $0x28] sm:$0xff]  ;;  %s16269_s26 = smov 23   ;;  %vm3657_vm5 = vcmask 1047808   ;;  %vm3706_vm6 = vcmask 130048  }
  0x58   : > { %1211 = vperm.xlu0 %16116, %v1208_v1   ;;  %14921 = vmatprep.mubr.msk.f32.mxu1 %vm16257_vm0, %v18417_v0  ;;  %v1207_v4 = vld [vmem:[%s1201_s2] sm:$0xf]  ;;  %v16569_v27 = vld [vmem:[%s18468_s4 + $0x5] ss:$0 sm:$0xff]  ;;  %v16572_v28 = vld [vmem:[%s18468_s4 + $0x6] ss:$0 sm:$0xff] }
  0x59   : > { %16117 = vset.pattern.permute.xlu1 %v16258_v2  ;;  %14915 = vmatpush3.msk.msra.mxu0 %vm1218_vm1, %v1207_v4  ;;  %v16541_v11 = vld [vmem:[%s18468_s4] ss:$0 sm:$0xff]  ;;  %v16544_v12 = vld [vmem:[%s18468_s4 + $0x1] ss:$0 sm:$0xff]  ;;  %v16551_v19 = vld [vmem:[%s18468_s4 + $0x2] ss:$0 sm:$0xff] }
  0x5a   : > { %14917 = vmatmul.mubr.msk.f32.vlgmr.msra.gmra.mxu0 %vm1214_vm2, %v1206_v3  ;;  %14924 = vmatprep.subr.mxu0 %v18417_v0  ;;  %v1303_v17 = vld [vmem:[%s16313_s17] sm:$0xff]  ;;  %v16588_v36 = vld [vmem:[%s18468_s4 + $0x8] ss:$0 sm:$0xff]  ;;  %v13903_v41 = vld [vmem:[%s16313_s17 + $0x30] sm:$0xff]  ;;  %s16270_s2 = smov 31   ;;  %s18396_s0 = smov 7  }
  0x5b   : > { %14926 = vmatprep.mubr.msk.f32.mxu0 %vm16257_vm0, %v18417_v0  ;;  %v16554_v20 = vld [vmem:[%s18468_s4 + $0x3] ss:$0 sm:$0xff]  ;;  %v16584_v34 = vld [vmem:[%s18468_s4 + $0x7] ss:$0 sm:$0xff]  ;;  %v13907_v42 = vld [vmem:[%s16313_s17 + $0x38] sm:$0xff]  ;;  %vm4613_vm7 = vcmask 261120  }
  0x5c   : > { %v13895_v33 = vld [vmem:[%s16313_s17 + $0x20] sm:$0xff]  ;;  %vm6461_vm8 = vcmask 1047616   ;;  %vm6524_vm9 = vcmask 195584   ;;  %s18494_s5 = smov 104   ;;  %s18498_s9 = sld [smem:[#allocation16_spill]] }
  0x5d   : > { %v13911_v43 = vld [vmem:[%s16313_s17 + $0x40] sm:$0xff] }
  0xd3   : > { %v1212_v5 = vpop.permute.xlu0 %1211 }
 0x11a   : > { %v1288_v6 = vpop.f32.mrf.mxu0 }
 0x11b   : > { %v1289_v7 = vadd.f32 %v1288_v6, %v1212_v5 }
 0x11c   : > { %v14918_v8 = vpop.f32.mrf.mxu0 }
 0x11d   : > { %v1292_v9 = vmax.f32 %v1289_v7, 0.0 }
 0x11f   : > { %1293 = vrot.lane.b32.xlu1 %v1292_v9, %s18390_s7  ;;  %1304 = vrot.lane.b32.xlu0 %v1292_v9, %s18392_s10 }
 0x123   : > { %1464 = vrot.lane.b32.xlu1 %v1292_v9, %s18394_s11  ;;  %1551 = vrot.lane.b32.xlu0 %v1292_v9, %s18421_s15 }
 0x127   : > { %1714 = vrot.lane.b32.xlu1 %v1292_v9, %s18411_s16  ;;  %1801 = vrot.lane.b32.xlu0 %v1292_v9, %s18386_s18 }
 0x12b   : > { %1888 = vrot.lane.b32.xlu1 %v1292_v9, %s18388_s22  ;;  %1975 = vrot.lane.b32.xlu0 %v1292_v9, %s18384_s23 }
 0x12f   : > { %2065 = vperm.xlu1 %16117, %v16537_v10  }
 0x191   : > { %v1294_v13 = vpop.permute.xlu1 %1293  ;;  %v1305_v14 = vpop.permute.xlu0 %1304 }
 0x192   : > { %v1302_v15 = vmul.f32 %v16541_v11, %v1294_v13  ;;  %v1314_v16 = vmul.f32 %v16544_v12, %v1305_v14  ;;  %v18419_v14 = vmov 1  }
 0x193   : > { %16118 = vset.pattern.permute.xlu1 %v18419_v14 }
 0x194   : > { %14920 = vmatpush3.msra.mxu1 %v1314_v16  ;;  %14925 = vmatpush3.msra.mxu0 %v1302_v15 }
 0x195   : > { %14927 = vmatmul.mubr.msk.f32.vlgmr.msra.gmra.mxu0 %vm1317_vm3, %v1303_v17  ;;  %v1465_v21 = vpop.permute.xlu1 %1464  ;;  %14922 = vmatmul.mubr.msk.f32.vlgmr.msra.gmra.mxu1 %vm1317_vm3, %v13884_v18  ;;  %v1552_v22 = vpop.permute.xlu0 %1551 }
 0x196   : > { %v1474_v23 = vmul.f32 %v16551_v19, %v1465_v21  ;;  %v1561_v24 = vmul.f32 %v16554_v20, %v1552_v22  ;;  %14929 = vmatprep.subr.mxu1 %v18417_v0  ;;  %14934 = vmatprep.subr.mxu0 %v18417_v0 }
 0x197   : > { %14931 = vmatprep.mubr.msk.f32.mxu1 %vm16257_vm0, %v18417_v0  ;;  %14936 = vmatprep.mubr.msk.f32.mxu0 %vm16257_vm0, %v18417_v0 }
 0x198   : > { %14930 = vmatpush3.msra.mxu1 %v1474_v23  ;;  %14935 = vmatpush3.msra.mxu0 %v1561_v24 }
 0x199   : > { %v1715_v29 = vpop.permute.xlu1 %1714  ;;  %14932 = vmatmul.mubr.msk.f32.vlgmr.msra.gmra.mxu1 %vm1317_vm3, %v13889_v25  ;;  %14937 = vmatmul.mubr.msk.f32.vlgmr.msra.gmra.mxu0 %vm1317_vm3, %v13893_v26  ;;  %v1802_v30 = vpop.permute.xlu0 %1801 }
 0x19a   : > { %v1724_v31 = vmul.f32 %v16569_v27, %v1715_v29  ;;  %14939 = vmatprep.subr.mxu1 %v18417_v0  ;;  %v1811_v32 = vmul.f32 %v16572_v28, %v1802_v30  ;;  %14944 = vmatprep.subr.mxu0 %v18417_v0 }
 0x19b   : > { %14940 = vmatpush3.msra.mxu1 %v1292_v9  ;;  %14941 = vmatprep.mubr.msk.f32.mxu1 %vm16257_vm0, %v18417_v0 }
 0x19c   : > { %14945 = vmatpush3.msra.mxu0 %v1724_v31  ;;  %14946 = vmatprep.mubr.msk.f32.mxu0 %vm16257_vm0, %v18417_v0 }
 0x19d   : > { %14949 = vmatprep.subr.mxu1 %v18417_v0  ;;  %v1889_v37 = vpop.permute.xlu1 %1888  ;;  %14942 = vmatmul.mubr.msk.f32.vlgmr.msra.gmra.mxu1 %vm1317_vm3, %v13895_v33  ;;  %v1976_v38 = vpop.permute.xlu0 %1975 }
 0x19e   : > { %v1898_v39 = vmul.f32 %v16584_v34, %v1889_v37  ;;  %14947 = vmatmul.mubr.msk.f32.vlgmr.msra.gmra.mxu0 %vm1317_vm3, %v13899_v35  ;;  %14950 = vmatpush3.msra.mxu1 %v1811_v32  ;;  %v1985_v40 = vmul.f32 %v16588_v36, %v1976_v38 }
 0x19f   : > { %14954 = vmatprep.subr.mxu0 %v18417_v0  ;;  %14951 = vmatprep.mubr.msk.f32.mxu1 %vm16257_vm0, %v18417_v0 }
 0x1a0   : > { %14955 = vmatpush3.msra.mxu0 %v1898_v39  ;;  %14956 = vmatprep.mubr.msk.f32.mxu0 %vm16257_vm0, %v18417_v0 }
 0x1a1   : > { %14959 = vmatprep.subr.mxu1 %v18417_v0  ;;  %14952 = vmatmul.mubr.msk.f32.vlgmr.msra.gmra.mxu1 %vm1317_vm3, %v13903_v41 }
 0x1a2   : > { %14957 = vmatmul.mubr.msk.f32.vlgmr.msra.gmra.mxu0 %vm1317_vm3, %v13907_v42  ;;  %14960 = vmatpush3.msra.mxu1 %v1985_v40 }
 0x1a3   : > { %14961 = vmatprep.mubr.msk.f32.mxu1 %vm16257_vm0, %v18417_v0  ;;  %14964 = vmatprep.subr.mxu0 %v18417_v0 }
 0x1a4   : > { %14966 = vmatprep.mubr.msk.f32.mxu0 %vm16257_vm0, %v18417_v0  ;;  %14969 = vmatprep.subr.mxu1 %v18417_v0 }
 0x1a5   : > { %14962 = vmatmul.mubr.msk.f32.vlgmr.msra.gmra.mxu1 %vm1317_vm3, %v13911_v43 }
 0x1a6   : > { %14971 = vmatprep.mubr.msk.f32.mxu1 %vm16257_vm0, %v18417_v0 }
 0x1aa   : > { %v2066_v6 = vpop.permute.xlu1 %2065 }
 0x255   : > { %v1387_v44 = vpop.f32.mrf.mxu1  ;;  %v1460_v45 = vpop.f32.mrf.mxu0 }
 0x256   : > { %v1461_v48 = vadd.f32 %v1460_v45, %v1387_v44 }
 0x257   : > { %v14923_v46 = vpop.f32.mrf.mxu1  ;;  %v14928_v47 = vpop.f32.mrf.mxu0 }
 0x259   : > { %v1546_v49 = vpop.f32.mrf.mxu1  ;;  %v1633_v50 = vpop.f32.mrf.mxu0 }
 0x25a   : > { %v1550_v51 = vadd.f32 %v1546_v49, %v1461_v48 }
 0x25b   : > { %v14933_v52 = vpop.f32.mrf.mxu1  ;;  %v14938_v53 = vpop.f32.mrf.mxu0 }
 0x25c   : > { %v1637_v54 = vadd.f32 %v1633_v50, %v1550_v51 }
 0x25d   : > { %v1709_v55 = vpop.f32.mrf.mxu1 }
 0x25e   : > { %v1713_v56 = vadd.f32 %v1709_v55, %v1637_v54  ;;  %v1796_v57 = vpop.f32.mrf.mxu0 }
 0x25f   : > { %v14943_v58 = vpop.f32.mrf.mxu1 }
 0x260   : > { %v1800_v59 = vadd.f32 %v1796_v57, %v1713_v56  ;;  %v14948_v60 = vpop.f32.mrf.mxu0 }
 0x261   : > { %v1883_v61 = vpop.f32.mrf.mxu1 }
 0x262   : > { %v1887_v62 = vadd.f32 %v1883_v61, %v1800_v59  ;;  %v1970_v63 = vpop.f32.mrf.mxu0 }
 0x263   : > { %v14953_v1 = vpop.f32.mrf.mxu1 }
 0x264   : > { %v1974_v3 = vadd.f32 %v1970_v63, %v1887_v62  ;;  %v14958_v4 = vpop.f32.mrf.mxu0 }
 0x265   : > { %v2057_v5 = vpop.f32.mrf.mxu1  ;;  %v16268_v4 = vmov 2  }
 0x266   : > { %v2061_v7 = vadd.f32 %v2057_v5, %v1974_v3  ;;  %v2123_v3 = vlaneseq  ;;  %16119 = vset.pattern.permute.xlu0 %v16268_v4 }
 0x267   : > { %v14963_v8 = vpop.f32.mrf.mxu1 }
 0x268   : > { %v16617_v9 = vadd.f32 %v2066_v6, %v2061_v7  ;;  %v16628_v5 = vshrl.u32 %v2123_v3, 7 }
 0x26a   : > { %2069 = vadd.xlane.f32.xlu0 %v16617_v9  ;;  %v2071_v13 = vmul.f32 %v16617_v9, %v16617_v9  ;;  %vm2125_vm4 = vcmp.lt.s32.totalorder %v16628_v5, 4 }
 0x26c   : > { %2072 = vadd.xlane.f32.xlu1 %v2071_v13 }
 0x2f3   : > { %v2070_v15 = vpop.xlane.xlu0 %2069 }
 0x2f4   : > { %v2074_v16 = vsel %vm1218_vm1, %v2070_v15, 0.0  ;;  %v2082_v17 = vrot.slane %v2070_v15, 4 }
 0x2f5   : > { %v2075_v18 = vrot.slane %v2074_v16, 4  ;;  %v2073_v21 = vpop.xlane.xlu1 %2072 }
 0x2f6   : > { %v2084_v22 = vsel %vm1218_vm1, %v2082_v17, 0.0  ;;  %v2091_v23 = vsel %vm1218_vm1, %v2073_v21, 0.0  ;;  %v2099_v24 = vrot.slane %v2073_v21, 4 }
 0x2f7   : > { %v2076_v25 = vadd.f32 %v2075_v18, %v2074_v16  ;;  %v2085_v26 = vrot.slane %v2084_v22, 4  ;;  %v2092_v29 = vrot.slane %v2091_v23, 4 }
 0x2f8   : > { %v2101_v30 = vsel %vm1218_vm1, %v2099_v24, 0.0 }
 0x2f9   : > { %v2077_v31 = vrot.slane %v2076_v25, 2  ;;  %v2086_v32 = vadd.f32 %v2085_v26, %v2084_v22  ;;  %v2093_v33 = vadd.f32 %v2092_v29, %v2091_v23  ;;  %v2102_v35 = vrot.slane %v2101_v30, 4 }
 0x2fb   : > { %v2078_v37 = vadd.f32 %v2077_v31, %v2076_v25  ;;  %v2087_v38 = vrot.slane %v2086_v32, 2  ;;  %v2094_v39 = vrot.slane %v2093_v33, 2  ;;  %v2103_v40 = vadd.f32 %v2102_v35, %v2101_v30  ;;  %v13913_v30 = vld [vmem:[%s16323_s25 + $0x8] sm:$0xff]  ;;  %v2151_v35 = vld [vmem:[%s16323_s25] sm:$0xff] }
 0x2fd   : > { %v2079_v41 = vrot.slane %v2078_v37, 1  ;;  %v2088_v42 = vadd.f32 %v2087_v38, %v2086_v32  ;;  %v2095_v43 = vadd.f32 %v2094_v39, %v2093_v33  ;;  %v2104_v44 = vrot.slane %v2103_v40, 2  ;;  %v13920_v39 = vld [vmem:[%s16323_s25 + $0x20] sm:$0xff] }
 0x2ff   : > { %v2080_v45 = vadd.f32 %v2079_v41, %v2078_v37  ;;  %v2089_v46 = vrot.slane %v2088_v42, 1  ;;  %v2096_v47 = vrot.slane %v2095_v43, 1  ;;  %v2105_v48 = vadd.f32 %v2104_v44, %v2103_v40  ;;  %v13916_v37 = vld [vmem:[%s16323_s25 + $0x10] sm:$0xff] }
 0x300   : > { %v13924_v44 = vld [vmem:[%s16323_s25 + $0x30] sm:$0xff] }
 0x301   : > { %v2090_v49 = vadd.f32 %v2089_v46, %v2088_v42  ;;  %v2109_v50 = vmul.f32 0.001953125, %v2080_v45  ;;  %v2097_v51 = vadd.f32 %v2096_v47, %v2095_v43  ;;  %v2106_v52 = vrot.slane %v2105_v48, 1  ;;  %v13922_v43 = vld [vmem:[%s16323_s25 + $0x28] sm:$0xff]  ;;  %v13926_v46 = vld [vmem:[%s16323_s25 + $0x38] sm:$0xff]  ;;  %v13928_v47 = vld [vmem:[%s16323_s25 + $0x40] sm:$0xff] }
 0x303   : > { %v2110_v53 = vmul.f32 0.001953125, %v2090_v49  ;;  %v2112_v54 = vmul.f32 %v2109_v50, %v2109_v50  ;;  %v2107_v55 = vadd.f32 %v2106_v52, %v2105_v48  ;;  %v2111_v56 = vmul.f32 0.001953125, %v2097_v51 }
 0x305   : > { %v2118_v57 = vmul.f32 %v2110_v53, %v2110_v53  ;;  %v2113_v58 = vsub.f32 %v2111_v56, %v2112_v54  ;;  %v2117_v59 = vmul.f32 0.001953125, %v2107_v55  ;;  %v2126_v15 = vsel %vm2125_vm4, %v2109_v50, %v2110_v53 }
 0x307   : > { %v2114_v60 = vmax.f32 %v2113_v58, 0.0  ;;  %v2119_v61 = vsub.f32 %v2117_v59, %v2118_v57 }
 0x309   : > { %v2115_v62 = vadd.f32 1e-05, %v2114_v60  ;;  %v2120_v63 = vmax.f32 %v2119_v61, 0.0 }
 0x30b   : > { %v2121_v1 = vadd.f32 1e-05, %v2120_v63  ;;  %16160 = vrsqrt.f32 %v2115_v62 }
 0x30d   : > { %16162 = vrsqrt.f32 %v2121_v1 }
 0x318   : > { %v16161_v6 = vpop.eup %16160 }
 0x31a   : > { %v16163_v7 = vpop.eup %16162 }
 0x31b   : > { %v2127_v8 = vsel %vm2125_vm4, %v16161_v6, %v16163_v7 }
 0x31c   : > { %v2128_v13 = vmul.f32 %v2127_v8, %v16537_v10 }
 0x31e   : > { %2137 = vperm.xlu1 %16118, %v2128_v13   ;;  %v2129_v16 = vmul.f32 %v2128_v13, %v2126_v15 }
 0x320   : > { %2131 = vrot.lane.b32.xlu0 %v2129_v16, %s18421_s15 }
 0x322   : > { %16122 = vset.pattern.permute.xlu1 %v16268_v4 }
 0x392   : > { %v2132_v17 = vpop.permute.xlu0 %2131 }
 0x393   : > { %v2134_v18 = vsub.f32 %v16537_v10, %v2132_v17  ;;  %v16648_v10 = vld [vmem:[%s16328_s29] sm:$0xff] }
 0x395   : > { %2143 = vperm.xlu0 %16119, %v2134_v18  }
 0x399   : > { %16120 = vset.pattern.permute.xlu0 %v16258_v2  ;;  %v2138_v21 = vpop.permute.xlu1 %2137 }
 0x39a   : > { %v2140_v22 = vmul.f32 %v2138_v21, %v16617_v9 }
 0x410   : > { %v2144_v23 = vpop.permute.xlu0 %2143 }
 0x411   : > { %v2146_v24 = vadd.f32 %v2144_v23, %v2140_v22 }
 0x413   : > { %v2147_v25 = vmax.f32 %v2146_v24, 0.0 }
 0x415   : > { %2303 = vrot.lane.b32.xlu0 %v2147_v25, %s18394_s11  ;;  %2152 = vrot.lane.b32.xlu1 %v2147_v25, %s18392_s10  ;;  %s18415_s10 = smov 121   ;;  %s18401_s11 = smov 120  }
 0x419   : > { %2537 = vrot.lane.b32.xlu0 %v2147_v25, %s18411_s16  ;;  %2148 = vrot.lane.b32.xlu1 %v2147_v25, %s18390_s7  ;;  %s18403_s7 = smov 97  }
 0x41d   : > { %2695 = vrot.lane.b32.xlu0 %v2147_v25, %s18388_s22  ;;  %2382 = vrot.lane.b32.xlu1 %v2147_v25, %s18421_s15  ;;  %s18405_s22 = smov 103  }
 0x421   : > { %2616 = vrot.lane.b32.xlu1 %v2147_v25, %s18386_s18  ;;  %2856 = vperm.xlu0 %16120, %v16648_v10   ;;  %s18407_s18 = smov 105  }
 0x425   : > { %2774 = vrot.lane.b32.xlu1 %v2147_v25, %s18384_s23  ;;  %16121 = vset.pattern.permute.xlu0 %v18419_v14  ;;  %s16272_s23 = smov 9  }
 0x487   : > { %v2304_v9 = vpop.permute.xlu0 %2303  ;;  %v2153_v26 = vpop.permute.xlu1 %2152 }
 0x488   : > { %v2154_v29 = vmul.f32 %v16544_v12, %v2153_v26  ;;  %v2305_v31 = vmul.f32 %v16551_v19, %v2304_v9 }
 0x48a   : > { %14965 = vmatpush3.msra.mxu0 %v2154_v29 }
 0x48b   : > { %14967 = vmatmul.mubr.msk.f32.vlgmr.msra.gmra.mxu0 %vm1317_vm3, %v13913_v30  ;;  %14974 = vmatprep.subr.mxu0 %v18417_v0  ;;  %v2149_v32 = vpop.permute.xlu1 %2148  ;;  %v2538_v12 = vpop.permute.xlu0 %2537 }
 0x48c   : > { %v2150_v33 = vmul.f32 %v16541_v11, %v2149_v32  ;;  %14975 = vmatpush3.msra.mxu0 %v2305_v31  ;;  %14976 = vmatprep.mubr.msk.f32.mxu0 %vm16257_vm0, %v18417_v0  ;;  %v13918_v11 = vld [vmem:[%s16323_s25 + $0x18] sm:$0xff]  ;;  %v2539_v40 = vmul.f32 %v16569_v27, %v2538_v12 }
 0x48d   : > { %14984 = vmatprep.subr.mxu0 %v18417_v0 }
 0x48e   : > { %14970 = vmatpush3.msra.mxu1 %v2150_v33 }
 0x48f   : > { %14972 = vmatmul.mubr.msk.f32.vlgmr.msra.gmra.mxu1 %vm1317_vm3, %v2151_v35  ;;  %14977 = vmatmul.mubr.msk.f32.vlgmr.msra.gmra.mxu0 %vm1317_vm3, %v13916_v37  ;;  %v2383_v19 = vpop.permute.xlu1 %2382  ;;  %v2696_v41 = vpop.permute.xlu0 %2695 }
 0x490   : > { %14985 = vmatpush3.msra.mxu0 %v2147_v25  ;;  %v2384_v38 = vmul.f32 %v16554_v20, %v2383_v19  ;;  %14979 = vmatprep.subr.mxu1 %v18417_v0  ;;  %v2697_v27 = vmul.f32 %v16584_v34, %v2696_v41 }
 0x491   : > { %14981 = vmatprep.mubr.msk.f32.mxu1 %vm16257_vm0, %v18417_v0  ;;  %14986 = vmatprep.mubr.msk.f32.mxu0 %vm16257_vm0, %v18417_v0 }
 0x492   : > { %14980 = vmatpush3.msra.mxu1 %v2384_v38  ;;  %14994 = vmatprep.subr.mxu0 %v18417_v0 }
 0x493   : > { %14982 = vmatmul.mubr.msk.f32.vlgmr.msra.gmra.mxu1 %vm1317_vm3, %v13918_v11  ;;  %14987 = vmatmul.mubr.msk.f32.vlgmr.msra.gmra.mxu0 %vm1317_vm3, %v13920_v39  ;;  %v2617_v20 = vpop.permute.xlu1 %2616 }
 0x494   : > { %14989 = vmatprep.subr.mxu1 %v18417_v0  ;;  %v2618_v42 = vmul.f32 %v16572_v28, %v2617_v20  ;;  %14991 = vmatprep.mubr.msk.f32.mxu1 %vm16257_vm0, %v18417_v0 }
 0x495   : > { %14990 = vmatpush3.msra.mxu1 %v2539_v40  ;;  %14996 = vmatprep.mubr.msk.f32.mxu0 %vm16257_vm0, %v18417_v0 }
 0x496   : > { %14995 = vmatpush3.msra.mxu0 %v2618_v42  ;;  %14999 = vmatprep.subr.mxu1 %v18417_v0 }
 0x497   : > { %14992 = vmatmul.mubr.msk.f32.vlgmr.msra.gmra.mxu1 %vm1317_vm3, %v13922_v43  ;;  %14997 = vmatmul.mubr.msk.f32.vlgmr.msra.gmra.mxu0 %vm1317_vm3, %v13924_v44  ;;  %v2775_v28 = vpop.permute.xlu1 %2774 }
 0x498   : > { %15000 = vmatpush3.msra.mxu1 %v2697_v27  ;;  %v2776_v45 = vmul.f32 %v16588_v36, %v2775_v28  ;;  %15004 = vmatprep.subr.mxu0 %v18417_v0 }
 0x499   : > { %15001 = vmatprep.mubr.msk.f32.mxu1 %vm16257_vm0, %v18417_v0  ;;  %15006 = vmatprep.mubr.msk.f32.mxu0 %vm16257_vm0, %v18417_v0 }
 0x49a   : > { %15005 = vmatpush3.msra.mxu0 %v2776_v45 }
 0x49b   : > { %15002 = vmatmul.mubr.msk.f32.vlgmr.msra.gmra.mxu1 %vm1317_vm3, %v13926_v46  ;;  %15007 = vmatmul.mubr.msk.f32.vlgmr.msra.gmra.mxu0 %vm1317_vm3, %v13928_v47 }
 0x49c   : > { %v2857_v13 = vpop.permute.xlu0 %2856 }
 0x54b   : > { %v2226_v34 = vpop.f32.mrf.mxu0 }
 0x54d   : > { %v14968_v48 = vpop.f32.mrf.mxu0 }
 0x54f   : > { %v2299_v49 = vpop.f32.mrf.mxu1  ;;  %v2377_v50 = vpop.f32.mrf.mxu0 }
 0x550   : > { %v2300_v36 = vadd.f32 %v2299_v49, %v2226_v34 }
 0x551   : > { %v14973_v51 = vpop.f32.mrf.mxu1  ;;  %v14978_v52 = vpop.f32.mrf.mxu0 }
 0x552   : > { %v2381_v53 = vadd.f32 %v2377_v50, %v2300_v36 }
 0x553   : > { %v2456_v54 = vpop.f32.mrf.mxu1  ;;  %v2532_v55 = vpop.f32.mrf.mxu0 }
 0x554   : > { %v2460_v56 = vadd.f32 %v2456_v54, %v2381_v53 }
 0x555   : > { %v14983_v57 = vpop.f32.mrf.mxu1  ;;  %v14988_v58 = vpop.f32.mrf.mxu0 }
 0x556   : > { %v2536_v59 = vadd.f32 %v2532_v55, %v2460_v56 }
 0x557   : > { %v2611_v60 = vpop.f32.mrf.mxu1  ;;  %v2690_v61 = vpop.f32.mrf.mxu0 }
 0x558   : > { %v2615_v62 = vadd.f32 %v2611_v60, %v2536_v59 }
 0x559   : > { %v14993_v63 = vpop.f32.mrf.mxu1  ;;  %v14998_v1 = vpop.f32.mrf.mxu0 }
 0x55a   : > { %v2694_v3 = vadd.f32 %v2690_v61, %v2615_v62 }
 0x55b   : > { %v2769_v6 = vpop.f32.mrf.mxu1  ;;  %v2848_v7 = vpop.f32.mrf.mxu0 }
 0x55c   : > { %v2773_v8 = vadd.f32 %v2769_v6, %v2694_v3 }
 0x55d   : > { %v15003_v15 = vpop.f32.mrf.mxu1  ;;  %v15008_v16 = vpop.f32.mrf.mxu0 }
 0x55e   : > { %v2852_v17 = vadd.f32 %v2848_v7, %v2773_v8  ;;  %v13932_v15 = vld [vmem:[%s18471_s3 + $0x10] sm:$0xff] }
 0x55f   : > { %15016 = vmatprep.mubr.msk.f32.mxu0 %vm1317_vm3, %v13932_v15  ;;  %v13987_v15 = vld [vmem:[%s16488_s30 + $0x1d8] sm:$0xff] }
 0x560   : > { %v16701_v18 = vadd.f32 %v2857_v13, %v2852_v17  ;;  %v2935_v13 = vld [vmem:[%s18471_s3] sm:$0xff] }
 0x561   : > { %15011 = vmatprep.mubr.msk.f32.mxu1 %vm1317_vm3, %v2935_v13  ;;  %v13965_v13 = vld [vmem:[%s16488_s30 + $0x148] sm:$0xff] }
 0x562   : > { %2860 = vadd.xlane.f32.xlu1 %v16701_v18  ;;  %v2862_v21 = vmul.f32 %v16701_v18, %v16701_v18 }
 0x564   : > { %2863 = vadd.xlane.f32.xlu0 %v2862_v21 }
 0x5eb   : > { %v2861_v22 = vpop.xlane.xlu1 %2860 }
 0x5ec   : > { %v2865_v23 = vsel %vm1218_vm1, %v2861_v22, 0.0  ;;  %v2873_v24 = vrot.slane %v2861_v22, 4 }
 0x5ed   : > { %v2866_v25 = vrot.slane %v2865_v23, 4  ;;  %v2864_v9 = vpop.xlane.xlu0 %2863 }
 0x5ee   : > { %v2875_v26 = vsel %vm1218_vm1, %v2873_v24, 0.0  ;;  %v2882_v29 = vsel %vm1218_vm1, %v2864_v9, 0.0  ;;  %v2890_v30 = vrot.slane %v2864_v9, 4  ;;  %v13933_v24 = vld [vmem:[%s18471_s3 + $0x18] sm:$0xff] }
 0x5ef   : > { %v2867_v31 = vadd.f32 %v2866_v25, %v2865_v23  ;;  %v2876_v32 = vrot.slane %v2875_v26, 4  ;;  %v2883_v33 = vrot.slane %v2882_v29, 4  ;;  %v13951_v25 = vld [vmem:[%s16488_s30 + $0xf8] sm:$0xff] }
 0x5f0   : > { %v2892_v35 = vsel %vm1218_vm1, %v2890_v30, 0.0  ;;  %v3033_v9 = vld [vmem:[%s16488_s30 + $0x78] sm:$0xff]  ;;  %v3031_v30 = vld [vmem:[%s16488_s30 + $0x68] sm:$0xff] }
 0x5f1   : > { %v2868_v37 = vrot.slane %v2867_v31, 2  ;;  %v2877_v12 = vadd.f32 %v2876_v32, %v2875_v26  ;;  %v2884_v19 = vadd.f32 %v2883_v33, %v2882_v29  ;;  %v2893_v38 = vrot.slane %v2892_v35, 4  ;;  %v3032_v26 = vld [vmem:[%s16488_s30 + $0x70] sm:$0xff]  ;;  %v13949_v29 = vld [vmem:[%s16488_s30 + $0xe8] sm:$0xff]  ;;  %v3030_v32 = vld [vmem:[%s16488_s30 + $0x60] sm:$0xff] }
 0x5f2   : > { %v13947_v33 = vld [vmem:[%s16488_s30 + $0xd8] sm:$0xff] }
 0x5f3   : > { %v2869_v11 = vadd.f32 %v2868_v37, %v2867_v31  ;;  %v2878_v39 = vrot.slane %v2877_v12, 2  ;;  %v2885_v40 = vrot.slane %v2884_v19, 2  ;;  %v2894_v41 = vadd.f32 %v2893_v38, %v2892_v35  ;;  %v13948_v31 = vld [vmem:[%s16488_s30 + $0xe0] sm:$0xff]  ;;  %v3029_v35 = vld [vmem:[%s16488_s30 + $0x58] sm:$0xff]  ;;  %v13946_v37 = vld [vmem:[%s16488_s30 + $0xd0] sm:$0xff] }
 0x5f4   : > { %v3027_v38 = vld [vmem:[%s16488_s30 + $0x48] sm:$0xff] }
 0x5f5   : > { %v2870_v20 = vrot.slane %v2869_v11, 1  ;;  %v2879_v42 = vadd.f32 %v2878_v39, %v2877_v12  ;;  %v2886_v43 = vadd.f32 %v2885_v40, %v2884_v19  ;;  %v2895_v44 = vrot.slane %v2894_v41, 2  ;;  %v3028_v12 = vld [vmem:[%s16488_s30 + $0x50] sm:$0xff]  ;;  %v13945_v19 = vld [vmem:[%s16488_s30 + $0xc8] sm:$0xff]  ;;  %v3026_v39 = vld [vmem:[%s16488_s30 + $0x40] sm:$0xff] }
 0x5f6   : > { %v13943_v40 = vld [vmem:[%s16488_s30 + $0xb8] sm:$0xff] }
 0x5f7   : > { %v2871_v27 = vadd.f32 %v2870_v20, %v2869_v11  ;;  %v2880_v28 = vrot.slane %v2879_v42, 1  ;;  %v2887_v45 = vrot.slane %v2886_v43, 1  ;;  %v2896_v46 = vadd.f32 %v2895_v44, %v2894_v41  ;;  %v13944_v11 = vld [vmem:[%s16488_s30 + $0xc0] sm:$0xff]  ;;  %v3025_v41 = vld [vmem:[%s16488_s30 + $0x38] sm:$0xff]  ;;  %v13942_v20 = vld [vmem:[%s16488_s30 + $0xb0] sm:$0xff] }
 0x5f8   : > { %v3023_v44 = vld [vmem:[%s16488_s30 + $0x28] sm:$0xff] }
 0x5f9   : > { %v2881_v47 = vadd.f32 %v2880_v28, %v2879_v42  ;;  %v2899_v34 = vmul.f32 0.001953125, %v2871_v27  ;;  %v2888_v48 = vadd.f32 %v2887_v45, %v2886_v43  ;;  %v2897_v49 = vrot.slane %v2896_v46, 1  ;;  %v3024_v42 = vld [vmem:[%s16488_s30 + $0x30] sm:$0xff]  ;;  %v13941_v43 = vld [vmem:[%s16488_s30 + $0xa8] sm:$0xff]  ;;  %v13940_v27 = vld [vmem:[%s16488_s30 + $0xa0] sm:$0xff] }
 0x5fa   : > { %v3022_v28 = vld [vmem:[%s16488_s30 + $0x20] sm:$0xff]  ;;  %v13939_v45 = vld [vmem:[%s16488_s30 + $0x98] sm:$0xff] }
 0x5fb   : > { %v2900_v50 = vmul.f32 0.001953125, %v2881_v47  ;;  %v2902_v36 = vmul.f32 %v2899_v34, %v2899_v34  ;;  %v2898_v51 = vadd.f32 %v2897_v49, %v2896_v46  ;;  %v2901_v52 = vmul.f32 0.001953125, %v2888_v48  ;;  %v3021_v46 = vld [vmem:[%s16488_s30 + $0x18] sm:$0xff]  ;;  %v13938_v47 = vld [vmem:[%s16488_s30 + $0x90] sm:$0xff]  ;;  %v13937_v48 = vld [vmem:[%s16488_s30 + $0x88] sm:$0xff] }
 0x5fc   : > { %v13936_v49 = vld [vmem:[%s16488_s30 + $0x80] sm:$0xff] }
 0x5fd   : > { %v2908_v53 = vmul.f32 %v2900_v50, %v2900_v50  ;;  %v2903_v54 = vsub.f32 %v2901_v52, %v2902_v36  ;;  %v2907_v55 = vmul.f32 0.001953125, %v2898_v51  ;;  %v2913_v3 = vsel %vm2125_vm4, %v2899_v34, %v2900_v50  ;;  %v3020_v34 = vld [vmem:[%s16488_s30 + $0x10] sm:$0xff]  ;;  %v3019_v50 = vld [vmem:[%s16488_s30 + $0x8] sm:$0xff]  ;;  %v3018_v36 = vld [vmem:[%s16488_s30] sm:$0xff] }
 0x5fe   : > { %v13971_v51 = vld [vmem:[%s16488_s30 + $0x178] sm:$0xff] }
 0x5ff   : > { %v2904_v56 = vmax.f32 %v2903_v54, 0.0  ;;  %v2909_v57 = vsub.f32 %v2907_v55, %v2908_v53 }
 0x601   : > { %v2905_v58 = vadd.f32 1e-05, %v2904_v56  ;;  %v2910_v59 = vmax.f32 %v2909_v57, 0.0  ;;  %v13952_v56 = vld [vmem:[%s18471_s3 + $0x20] sm:$0xff]  ;;  %v13970_v57 = vld [vmem:[%s16488_s30 + $0x170] sm:$0xff] }
 0x603   : > { %v2911_v60 = vadd.f32 1e-05, %v2910_v59  ;;  %16164 = vrsqrt.f32 %v2905_v58  ;;  %v13953_v58 = vld [vmem:[%s18471_s3 + $0x28] sm:$0xff]  ;;  %v13972_v59 = vld [vmem:[%s18471_s3 + $0x30] sm:$0xff] }
 0x605   : > { %16166 = vrsqrt.f32 %v2911_v60  ;;  %v13969_v60 = vld [vmem:[%s16488_s30 + $0x168] sm:$0xff] }
 0x610   : > { %v16165_v61 = vpop.eup %16164 }
 0x612   : > { %v16167_v62 = vpop.eup %16166 }
 0x613   : > { %v2914_v63 = vsel %vm2125_vm4, %v16165_v61, %v16167_v62  ;;  %v13991_v61 = vld [vmem:[%s16488_s30 + $0x1f8] sm:$0xff] }
 0x614   : > { %v2915_v1 = vmul.f32 %v2914_v63, %v16648_v10  ;;  %v13973_v62 = vld [vmem:[%s18471_s3 + $0x38] sm:$0xff]  ;;  %v13968_v63 = vld [vmem:[%s16488_s30 + $0x160] sm:$0xff] }
 0x616   : > { %2924 = vperm.xlu0 %16121, %v2915_v1   ;;  %v2916_v6 = vmul.f32 %v2915_v1, %v2913_v3  ;;  %v13990_v1 = vld [vmem:[%s16488_s30 + $0x1f0] sm:$0xff]  ;;  %v13967_v3 = vld [vmem:[%s16488_s30 + $0x158] sm:$0xff] }
 0x618   : > { %2918 = vrot.lane.b32.xlu1 %v2916_v6, %s18421_s15  ;;  %v13989_v6 = vld [vmem:[%s16488_s30 + $0x1e8] sm:$0xff] }
 0x61a   : > { %16124 = vset.pattern.permute.xlu0 %v16258_v2 }
 0x68a   : > { %v2919_v7 = vpop.permute.xlu1 %2918 }
 0x68b   : > { %v2921_v8 = vsub.f32 %v16648_v10, %v2919_v7  ;;  %v2936_v10 = vld [vmem:[%s18471_s3 + $0x8] sm:$0xff]  ;;  %v13966_v7 = vld [vmem:[%s16488_s30 + $0x150] sm:$0xff]  ;;  %s18493_s3 = smov 32  }
 0x68d   : > { %2930 = vperm.xlu1 %16122, %v2921_v8   ;;  %v13988_v8 = vld [vmem:[%s16488_s30 + $0x1e0] sm:$0xff] }
 0x691   : > { %16123 = vset.pattern.permute.xlu1 %v16258_v2  ;;  %v2925_v16 = vpop.permute.xlu0 %2924 }
 0x692   : > { %v2927_v17 = vmul.f32 %v2925_v16, %v16701_v18  ;;  %v13950_v18 = vld [vmem:[%s16488_s30 + $0xf0] sm:$0xff]  ;;  %v13964_v16 = vld [vmem:[%s16488_s30 + $0x140] sm:$0xff] }
 0x708   : > { %v2931_v21 = vpop.permute.xlu1 %2930 }
 0x709   : > { %v2933_v22 = vadd.f32 %v2931_v21, %v2927_v17  ;;  %v13986_v17 = vld [vmem:[%s16488_s30 + $0x1d0] sm:$0xff]  ;;  %v13963_v21 = vld [vmem:[%s16488_s30 + $0x138] sm:$0xff] }
 0x70b   : > { %v16724_v23 = vmax.f32 %v2933_v22, 0.0  ;;  %v13985_v22 = vld [vmem:[%s16488_s30 + $0x1c8] sm:$0xff] }
 0x70d   : > { %15009 = vmatprep.subr.mxu1 %v16724_v23  ;;  %15014 = vmatprep.subr.mxu0 %v16724_v23 }
 0x70e   : > { %15010 = vmatpush3.msra.mxu1 %v16724_v23  ;;  %15015 = vmatpush3.msra.mxu0 %v16724_v23 }
 0x70f   : > { %15012 = vmatmul.mubr.msk.f32.vlgmr.msra.gmra.mxu1 %vm1317_vm3, %v2936_v10  ;;  %15017 = vmatmul.mubr.msk.f32.vlgmr.msra.gmra.mxu0 %vm1317_vm3, %v13933_v24  ;;  %v13962_v10 = vld [vmem:[%s16488_s30 + $0x130] sm:$0xff]  ;;  %v13984_v24 = vld [vmem:[%s16488_s30 + $0x1c0] sm:$0xff] }
 0x710   : > { %15019 = vmatprep.subr.mxu1 %v13951_v25  ;;  %15054 = vmatprep.subr.mxu0 %v3033_v9 }
 0x711   : > { %15020 = vmatpush3.msra.mxu1 %v13951_v25  ;;  %15055 = vmatpush3.msra.mxu0 %v3033_v9  ;;  %v13961_v25 = vld [vmem:[%s16488_s30 + $0x128] sm:$0xff]  ;;  %v13983_v9 = vld [vmem:[%s16488_s30 + $0x1b8] sm:$0xff] }
 0x712   : > { %15021 = vmatprep.subr.mxu1 %v13950_v18  ;;  %15056 = vmatprep.subr.mxu0 %v3032_v26 }
 0x713   : > { %15022 = vmatpush3.msra.mxu1 %v13950_v18  ;;  %15057 = vmatpush3.msra.mxu0 %v3032_v26  ;;  %v13960_v18 = vld [vmem:[%s16488_s30 + $0x120] sm:$0xff]  ;;  %v13982_v26 = vld [vmem:[%s16488_s30 + $0x1b0] sm:$0xff] }
 0x714   : > { %15023 = vmatprep.subr.mxu1 %v13949_v29  ;;  %15058 = vmatprep.subr.mxu0 %v3031_v30 }
 0x715   : > { %15024 = vmatpush3.msra.mxu1 %v13949_v29  ;;  %15059 = vmatpush3.msra.mxu0 %v3031_v30  ;;  %v13959_v29 = vld [vmem:[%s16488_s30 + $0x118] sm:$0xff]  ;;  %v13981_v30 = vld [vmem:[%s16488_s30 + $0x1a8] sm:$0xff] }
 0x716   : > { %15025 = vmatprep.subr.mxu1 %v13948_v31  ;;  %15060 = vmatprep.subr.mxu0 %v3030_v32 }
 0x717   : > { %15026 = vmatpush3.msra.mxu1 %v13948_v31  ;;  %15061 = vmatpush3.msra.mxu0 %v3030_v32  ;;  %v13958_v31 = vld [vmem:[%s16488_s30 + $0x110] sm:$0xff]  ;;  %v13980_v32 = vld [vmem:[%s16488_s30 + $0x1a0] sm:$0xff] }
 0x718   : > { %15027 = vmatprep.subr.mxu1 %v13947_v33  ;;  %15062 = vmatprep.subr.mxu0 %v3029_v35 }
 0x719   : > { %15028 = vmatpush3.msra.mxu1 %v13947_v33  ;;  %15063 = vmatpush3.msra.mxu0 %v3029_v35  ;;  %v13957_v33 = vld [vmem:[%s16488_s30 + $0x108] sm:$0xff]  ;;  %v13979_v35 = vld [vmem:[%s16488_s30 + $0x198] sm:$0xff] }
 0x71a   : > { %15029 = vmatprep.subr.mxu1 %v13946_v37  ;;  %15064 = vmatprep.subr.mxu0 %v3028_v12 }
 0x71b   : > { %15030 = vmatpush3.msra.mxu1 %v13946_v37  ;;  %15065 = vmatpush3.msra.mxu0 %v3028_v12  ;;  %v13956_v37 = vld [vmem:[%s16488_s30 + $0x100] sm:$0xff]  ;;  %v13978_v12 = vld [vmem:[%s16488_s30 + $0x190] sm:$0xff] }
 0x71c   : > { %15031 = vmatprep.subr.mxu1 %v13945_v19  ;;  %15066 = vmatprep.subr.mxu0 %v3027_v38 }
 0x71d   : > { %15032 = vmatpush3.msra.mxu1 %v13945_v19  ;;  %15067 = vmatpush3.msra.mxu0 %v3027_v38  ;;  %v13977_v19 = vld [vmem:[%s16488_s30 + $0x188] sm:$0xff]  ;;  %v13976_v38 = vld [vmem:[%s16488_s30 + $0x180] sm:$0xff] }
 0x71e   : > { %15033 = vmatprep.subr.mxu1 %v13944_v11  ;;  %15068 = vmatprep.subr.mxu0 %v3026_v39 }
 0x71f   : > { %15034 = vmatpush3.msra.mxu1 %v13944_v11  ;;  %15069 = vmatpush3.msra.mxu0 %v3026_v39  ;;  %v3642_v11 = vld [vmem:[%s18469_s8 + $0x8] sm:$0xff]  ;;  %v3641_v39 = vld [vmem:[%s18469_s8] sm:$0xff]  ;;  %s18497_s8 = smov 97  }
 0x720   : > { %15035 = vmatprep.subr.mxu1 %v13943_v40  ;;  %15070 = vmatprep.subr.mxu0 %v3025_v41 }
 0x721   : > { %15036 = vmatpush3.msra.mxu1 %v13943_v40  ;;  %15071 = vmatpush3.msra.mxu0 %v3025_v41 }
 0x722   : > { %15037 = vmatprep.subr.mxu1 %v13942_v20  ;;  %15072 = vmatprep.subr.mxu0 %v3024_v42 }
 0x723   : > { %15038 = vmatpush3.msra.mxu1 %v13942_v20  ;;  %15073 = vmatpush3.msra.mxu0 %v3024_v42 }
 0x724   : > { %15039 = vmatprep.subr.mxu1 %v13941_v43  ;;  %15074 = vmatprep.subr.mxu0 %v3023_v44 }
 0x725   : > { %15040 = vmatpush3.msra.mxu1 %v13941_v43  ;;  %15075 = vmatpush3.msra.mxu0 %v3023_v44 }
 0x726   : > { %15041 = vmatprep.subr.mxu1 %v13940_v27  ;;  %15076 = vmatprep.subr.mxu0 %v3022_v28 }
 0x727   : > { %15042 = vmatpush3.msra.mxu1 %v13940_v27  ;;  %15077 = vmatpush3.msra.mxu0 %v3022_v28  ;;  %v13992_v27 = vld [vmem:[%s16468_s12] ss:$0 sm:$0xff]  ;;  %v14008_v28 = vld [vmem:[%s16468_s12 + $0x3] ss:$0 sm:$0xff] }
 0x728   : > { %15043 = vmatprep.subr.mxu1 %v13939_v45  ;;  %15078 = vmatprep.subr.mxu0 %v3021_v46 }
 0x729   : > { %15044 = vmatpush3.msra.mxu1 %v13939_v45  ;;  %15079 = vmatpush3.msra.mxu0 %v3021_v46  ;;  %v14024_v45 = vld [vmem:[%s16468_s12 + $0x6] ss:$0 sm:$0xff] }
 0x72a   : > { %15045 = vmatprep.subr.mxu1 %v13938_v47  ;;  %15080 = vmatprep.subr.mxu0 %v3020_v34 }
 0x72b   : > { %15046 = vmatpush3.msra.mxu1 %v13938_v47  ;;  %15081 = vmatpush3.msra.mxu0 %v3020_v34  ;;  %v14036_v34 = vld [vmem:[%s16468_s12 + $0x8] ss:$0 sm:$0xff] }
 0x72c   : > { %15047 = vmatprep.subr.mxu1 %v13937_v48  ;;  %15082 = vmatprep.subr.mxu0 %v3019_v50 }
 0x72d   : > { %15048 = vmatpush3.msra.mxu1 %v13937_v48  ;;  %15083 = vmatpush3.msra.mxu0 %v3019_v50 }
 0x72e   : > { %15049 = vmatprep.subr.mxu1 %v13936_v49  ;;  %15084 = vmatprep.subr.mxu0 %v3018_v36 }
 0x72f   : > { %15050 = vmatpush3.msra.mxu1 %v13936_v49  ;;  %15085 = vmatpush3.msra.mxu0 %v3018_v36 }
 0x730   : > { %15089 = vmatprep.subr.mxu1 %v16724_v23  ;;  %15094 = vmatprep.subr.mxu0 %v13971_v51 }
 0x731   : > { %3650 = vperm.xlu1 %16123, %v3642_v11   ;;  %3676 = vrot.lane.b32.xlu0 %v13992_v27, %s16269_s26  ;;  %s18409_s26 = smov 32  }
 0x735   : > { %3645 = vperm.xlu1 %16123, %v3641_v39   ;;  %3990 = vrot.lane.b32.xlu0 %v14008_v28, %s16270_s2  ;;  %s16275_s2 = smov 25   ;;  %v16892_v28 = vld [vmem:[%s16348_s19 + $0x8] sm:$0xff] }
 0x739   : > { %4288 = vrot.lane.b32.xlu0 %v14024_v45, %s18396_s0  ;;  %s18399_s0 = smov 119  }
 0x73d   : > { %4500 = vrot.lane.b32.xlu0 %v14036_v34, %s16272_s23  ;;  %s16274_s23 = smov 24  }
 0x7ac   : > { %v3651_v50 = vpop.permute.xlu1 %3650 }
 0x7cf   : > { %v15013_v52 = vpop.f32.mrf.mxu1  ;;  %v15018_v53 = vpop.f32.mrf.mxu0 }
 0x7d1   : > { %v3009_v54 = vpop.f32.mrf.mxu1  ;;  %v3109_v55 = vpop.f32.mrf.mxu0 }
 0x7d2   : > { %15051 = vmatprep.mubr.f32.mxu1 %v3109_v55  ;;  %15086 = vmatprep.mubr.f32.mxu0 %v3009_v54 }
 0x7d3   : > { %15052 = vmatmul.mubr.f32.vlgmr.msra.gmra.mxu1 %v15018_v53  ;;  %15087 = vmatmul.mubr.f32.vlgmr.msra.gmra.mxu0 %v15013_v52 }
 0x7d4   : > { %15090 = vmatpush3.msra.mxu1 %v16724_v23  ;;  %15091 = vmatprep.mubr.msk.f32.mxu1 %vm1317_vm3, %v13952_v56 }
 0x7d5   : > { %15129 = vmatprep.subr.mxu1 %v16724_v23  ;;  %15095 = vmatpush3.msra.mxu0 %v13971_v51 }
 0x7d6   : > { %15096 = vmatprep.subr.mxu0 %v13970_v57 }
 0x7d7   : > { %15092 = vmatmul.mubr.msk.f32.vlgmr.msra.gmra.mxu1 %vm1317_vm3, %v13953_v58  ;;  %15097 = vmatpush3.msra.mxu0 %v13970_v57 }
 0x7d8   : > { %15130 = vmatpush3.msra.mxu1 %v16724_v23  ;;  %15131 = vmatprep.mubr.msk.f32.mxu1 %vm1317_vm3, %v13972_v59  ;;  %v3646_v59 = vpop.permute.xlu1 %3645 }
 0x7d9   : > { %15098 = vmatprep.subr.mxu0 %v13969_v60  ;;  %15134 = vmatprep.subr.mxu1 %v13991_v61 }
 0x7da   : > { %15099 = vmatpush3.msra.mxu0 %v13969_v60 }
 0x7db   : > { %15132 = vmatmul.mubr.msk.f32.vlgmr.msra.gmra.mxu1 %vm1317_vm3, %v13973_v62  ;;  %15100 = vmatprep.subr.mxu0 %v13968_v63 }
 0x7dc   : > { %15135 = vmatpush3.msra.mxu1 %v13991_v61  ;;  %15101 = vmatpush3.msra.mxu0 %v13968_v63  ;;  %v13994_v63 = vld [vmem:[%s16468_s12 + $0x1] ss:$0 sm:$0xff] }
 0x7dd   : > { %15136 = vmatprep.subr.mxu1 %v13990_v1  ;;  %15102 = vmatprep.subr.mxu0 %v13967_v3 }
 0x7de   : > { %15137 = vmatpush3.msra.mxu1 %v13990_v1  ;;  %15103 = vmatpush3.msra.mxu0 %v13967_v3 }
 0x7df   : > { %15138 = vmatprep.subr.mxu1 %v13989_v6  ;;  %15104 = vmatprep.subr.mxu0 %v13966_v7 }
 0x7e0   : > { %15139 = vmatpush3.msra.mxu1 %v13989_v6  ;;  %15105 = vmatpush3.msra.mxu0 %v13966_v7 }
 0x7e1   : > { %15140 = vmatprep.subr.mxu1 %v13988_v8  ;;  %15106 = vmatprep.subr.mxu0 %v13965_v13 }
 0x7e2   : > { %15141 = vmatpush3.msra.mxu1 %v13988_v8  ;;  %15107 = vmatpush3.msra.mxu0 %v13965_v13  ;;  %v14002_v8 = vld [vmem:[%s16468_s12 + $0x2] ss:$0 sm:$0xff]  ;;  %v14018_v13 = vld [vmem:[%s16468_s12 + $0x5] ss:$0 sm:$0xff] }
 0x7e3   : > { %15142 = vmatprep.subr.mxu1 %v13987_v15  ;;  %15108 = vmatprep.subr.mxu0 %v13964_v16 }
 0x7e4   : > { %15143 = vmatpush3.msra.mxu1 %v13987_v15  ;;  %15109 = vmatpush3.msra.mxu0 %v13964_v16  ;;  %v14030_v15 = vld [vmem:[%s16468_s12 + $0x7] ss:$0 sm:$0xff] }
 0x7e5   : > { %15144 = vmatprep.subr.mxu1 %v13986_v17  ;;  %15110 = vmatprep.subr.mxu0 %v13963_v21 }
 0x7e6   : > { %15145 = vmatpush3.msra.mxu1 %v13986_v17  ;;  %15111 = vmatpush3.msra.mxu0 %v13963_v21  ;;  %v13995_v17 = vld [vmem:[%s16343_s14 + $0x10] sm:$0xff] }
 0x7e7   : > { %15146 = vmatprep.subr.mxu1 %v13985_v22  ;;  %15112 = vmatprep.subr.mxu0 %v13962_v10 }
 0x7e8   : > { %15147 = vmatpush3.msra.mxu1 %v13985_v22  ;;  %15113 = vmatpush3.msra.mxu0 %v13962_v10 }
 0x7e9   : > { %15148 = vmatprep.subr.mxu1 %v13984_v24  ;;  %15114 = vmatprep.subr.mxu0 %v13961_v25 }
 0x7ea   : > { %15149 = vmatpush3.msra.mxu1 %v13984_v24  ;;  %15115 = vmatpush3.msra.mxu0 %v13961_v25  ;;  %v14003_v25 = vld [vmem:[%s16343_s14 + $0x20] sm:$0xff] }
 0x7eb   : > { %15150 = vmatprep.subr.mxu1 %v13983_v9  ;;  %15116 = vmatprep.subr.mxu0 %v13960_v18 }
 0x7ec   : > { %15151 = vmatpush3.msra.mxu1 %v13983_v9  ;;  %15117 = vmatpush3.msra.mxu0 %v13960_v18  ;;  %v16846_v9 = vpop.permute.xlu0 %3676 }
 0x7ed   : > { %15152 = vmatprep.subr.mxu1 %v13982_v26  ;;  %15118 = vmatprep.subr.mxu0 %v13959_v29 }
 0x7ee   : > { %15153 = vmatpush3.msra.mxu1 %v13982_v26  ;;  %15119 = vmatpush3.msra.mxu0 %v13959_v29 }
 0x7ef   : > { %15154 = vmatprep.subr.mxu1 %v13981_v30  ;;  %15120 = vmatprep.subr.mxu0 %v13958_v31 }
 0x7f0   : > { %15155 = vmatpush3.msra.mxu1 %v13981_v30  ;;  %15121 = vmatpush3.msra.mxu0 %v13958_v31 }
 0x7f1   : > { %15156 = vmatprep.subr.mxu1 %v13980_v32  ;;  %15122 = vmatprep.subr.mxu0 %v13957_v33 }
 0x7f2   : > { %15157 = vmatpush3.msra.mxu1 %v13980_v32  ;;  %15123 = vmatpush3.msra.mxu0 %v13957_v33  ;;  %v16861_v33 = vpop.permute.xlu0 %3990 }
 0x7f3   : > { %15158 = vmatprep.subr.mxu1 %v13979_v35  ;;  %15124 = vmatprep.subr.mxu0 %v13956_v37 }
 0x7f4   : > { %15159 = vmatpush3.msra.mxu1 %v13979_v35  ;;  %15125 = vmatpush3.msra.mxu0 %v13956_v37 }
 0x7f5   : > { %15160 = vmatprep.subr.mxu1 %v13978_v12 }
 0x7f6   : > { %15161 = vmatpush3.msra.mxu1 %v13978_v12  ;;  %v16873_v11 = vpop.permute.xlu0 %4288 }
 0x7f7   : > { %15162 = vmatprep.subr.mxu1 %v13977_v19 }
 0x7f8   : > { %15163 = vmatpush3.msra.mxu1 %v13977_v19 }
 0x7f9   : > { %15164 = vmatprep.subr.mxu1 %v13976_v38 }
 0x7fa   : > { %15165 = vmatpush3.msra.mxu1 %v13976_v38 }
 0x893   : > { %v15053_v40 = vpop.f32.mrf.mxu1  ;;  %v15088_v46 = vpop.f32.mrf.mxu0 }
 0x894   : > { %v3282_v49 = vadd.f32 %v15088_v46, %v15053_v40  ;;  %v16898_v46 = vld [vmem:[%s16348_s19] sm:$0xff] }
 0x895   : > { %v3201_v41 = vpop.f32.mrf.mxu1  ;;  %v3276_v47 = vpop.f32.mrf.mxu0 }
 0x896   : > { %v3277_v51 = vadd.f32 %v3276_v47, %v3201_v41 }
 0x897   : > { %v15093_v20 = vpop.f32.mrf.mxu1 }
 0x899   : > { %v3360_v42 = vpop.f32.mrf.mxu1 }
 0x89a   : > { %15126 = vmatprep.mubr.f32.mxu0 %v3360_v42 }
 0x89b   : > { %15127 = vmatmul.mubr.f32.vlgmr.msra.gmra.mxu0 %v15093_v20  ;;  %v15133_v43 = vpop.f32.mrf.mxu1 }
 0x89c   : > { %15173 = vmatprep.mubr.msk.f32.mxu0 %vm3706_vm6, %v13995_v17  ;;  %v14037_v17 = vld [vmem:[%s16343_s14 + $0x80] sm:$0xff] }
 0x89d   : > { %v3538_v44 = vpop.f32.mrf.mxu1 }
 0x89e   : > { %15166 = vmatprep.mubr.f32.mxu1 %v3538_v44 }
 0x89f   : > { %15167 = vmatmul.mubr.f32.vlgmr.msra.gmra.mxu1 %v15133_v43  ;;  %v16883_v43 = vpop.permute.xlu0 %4500 }
 0x8a0   : > { %15187 = vmatprep.mubr.msk.f32.mxu1 %vm3706_vm6, %v14003_v25  ;;  %v14038_v25 = vld [vmem:[%s16343_s14 + $0x88] sm:$0xff] }
 0x95b   : > { %v15128_v48 = vpop.f32.mrf.mxu0 }
 0x95c   : > { %v3462_v52 = vadd.f32 %v15128_v48, %v3282_v49  ;;  %v13996_v49 = vld [vmem:[%s16343_s14 + $0x18] sm:$0xff] }
 0x95d   : > { %v3452_v36 = vpop.f32.mrf.mxu0 }
 0x95e   : > { %v3461_v54 = vadd.f32 %v3452_v36, %v3277_v51 }
 0x95f   : > { %v15168_v53 = vpop.f32.mrf.mxu1 }
 0x960   : > { %v3640_v55 = vadd.f32 %v15168_v53, %v3462_v52  ;;  %v3682_v52 = vld [vmem:[%s16343_s14 + $0x8] sm:$0xff]  ;;  %v14009_v53 = vld [vmem:[%s16343_s14 + $0x30] sm:$0xff] }
 0x961   : > { %v3630_v56 = vpop.f32.mrf.mxu1 }
 0x962   : > { %v3654_v57 = vadd.f32 %v3651_v50, %v3640_v55  ;;  %v3639_v58 = vadd.f32 %v3630_v56, %v3461_v54  ;;  %v3681_v50 = vld [vmem:[%s16343_s14] sm:$0xff]  ;;  %v14004_v56 = vld [vmem:[%s16343_s14 + $0x28] sm:$0xff] }
 0x964   : > { %v16817_v60 = vmax.f32 %v3654_v57, 0.0  ;;  %v3653_v61 = vadd.f32 %v3646_v59, %v3639_v58  ;;  %v14013_v57 = vld [vmem:[%s16343_s14 + $0x40] sm:$0xff] }
 0x966   : > { %3661 = vrot.lane.b32.xlu1 %v16817_v60, %s18409_s26  ;;  %v16821_v62 = vmax.f32 %v3653_v61, 0.0  ;;  %v14010_v61 = vld [vmem:[%s16343_s14 + $0x38] sm:$0xff] }
 0x96a   : > { %3658 = vrot.lane.b32.xlu1 %v16821_v62, %s18409_s26 }
 0x96e   : > { %3690 = vrot.lane.b32.xlu1 %v13994_v63, %s16274_s23  ;;  %s18413_s23 = smov 8   ;;  %v14014_v63 = vld [vmem:[%s16343_s14 + $0x48] sm:$0xff] }
 0x9d8   : > { %v3662_v1 = vpop.permute.xlu1 %3661 }
 0x9d9   : > { %v3663_v3 = vsel %vm3657_vm5, %v3662_v1, %v16817_v60  ;;  %v14019_v1 = vld [vmem:[%s16343_s14 + $0x50] sm:$0xff] }
 0x9da   : > { %3666 = vrot.lane.b32.xlu1 %v3663_v3, %s18409_s26 }
 0x9dc   : > { %v3659_v6 = vpop.permute.xlu1 %3658 }
 0x9dd   : > { %v3660_v7 = vsel %vm3657_vm5, %v3659_v6, %v16821_v62  ;;  %v14020_v6 = vld [vmem:[%s16343_s14 + $0x58] sm:$0xff] }
 0x9de   : > { %3664 = vrot.lane.b32.xlu1 %v3660_v7, %s18409_s26  ;;  %v14025_v7 = vld [vmem:[%s16343_s14 + $0x60] sm:$0xff] }
 0x9e0   : > { %v16837_v16 = vpop.permute.xlu1 %3690 }
 0x9e2   : > { %3884 = vrot.lane.b32.xlu1 %v14002_v8, %s16275_s2  ;;  %s18397_s2 = smov 104   ;;  %v14031_v8 = vld [vmem:[%s16343_s14 + $0x70] sm:$0xff] }
 0x9e6   : > { %4182 = vrot.lane.b32.xlu1 %v14018_v13, %s18421_s15 }
 0x9ea   : > { %4394 = vrot.lane.b32.xlu1 %v14030_v15, %s18413_s23  ;;  %v14026_v15 = vld [vmem:[%s16343_s14 + $0x68] sm:$0xff] }
 0xa4c   : > { %v3667_v21 = vpop.permute.xlu1 %3666 }
 0xa4d   : > { %v3669_v22 = vsel %vm3657_vm5, %v3667_v21, %v16817_v60 }
 0xa4e   : > { %v3694_v10 = vmul.f32 %v16837_v16, %v3669_v22  ;;  %v3680_v26 = vmul.f32 %v16846_v9, %v3669_v22  ;;  %v3994_v35 = vmul.f32 %v16861_v33, %v3669_v22  ;;  %v4292_v39 = vmul.f32 %v16873_v11, %v3669_v22 }
 0xa4f   : > { %v4504_v44 = vmul.f32 %v16883_v43, %v3669_v22 }
 0xa50   : > { %3702 = vrot.lane.b32.xlu1 %v3694_v10, %s18397_s2  ;;  %v3665_v24 = vpop.permute.xlu1 %3664  ;;  %v14032_v10 = vld [vmem:[%s16343_s14 + $0x78] sm:$0xff] }
 0xa51   : > { %v3668_v18 = vsel %vm3657_vm5, %v3665_v24, %v16821_v62 }
 0xa52   : > { %v3693_v29 = vmul.f32 %v16837_v16, %v3668_v18  ;;  %v3679_v32 = vmul.f32 %v16846_v9, %v3668_v18  ;;  %v3993_v19 = vmul.f32 %v16861_v33, %v3668_v18  ;;  %v4291_v20 = vmul.f32 %v16873_v11, %v3668_v18 }
 0xa53   : > { %v4503_v45 = vmul.f32 %v16883_v43, %v3668_v18 }
 0xa54   : > { %3792 = vrot.lane.b32.xlu1 %v3680_v26, %s18407_s18  ;;  %3700 = vrot.lane.b32.xlu0 %v3693_v29, %s18397_s2  ;;  %v16855_v30 = vpop.permute.xlu1 %3884 }
 0xa55   : > { %v3888_v31 = vmul.f32 %v16855_v30, %v3669_v22  ;;  %v3887_v37 = vmul.f32 %v16855_v30, %v3668_v18 }
 0xa58   : > { %3790 = vrot.lane.b32.xlu0 %v3679_v32, %s18407_s18  ;;  %3896 = vrot.lane.b32.xlu1 %v3888_v31, %s18405_s22  ;;  %v16865_v12 = vpop.permute.xlu1 %4182 }
 0xa59   : > { %v4186_v38 = vmul.f32 %v16865_v12, %v3669_v22  ;;  %v4185_v40 = vmul.f32 %v16865_v12, %v3668_v18 }
 0xa5c   : > { %4002 = vrot.lane.b32.xlu1 %v3994_v35, %s18403_s7  ;;  %3894 = vrot.lane.b32.xlu0 %v3887_v37, %s18405_s22  ;;  %v16877_v41 = vpop.permute.xlu1 %4394 }
 0xa5d   : > { %v4398_v42 = vmul.f32 %v16877_v41, %v3669_v22  ;;  %v4397_v27 = vmul.f32 %v16877_v41, %v3668_v18 }
 0xa60   : > { %4000 = vrot.lane.b32.xlu0 %v3993_v19, %s18403_s7  ;;  %4194 = vrot.lane.b32.xlu1 %v4186_v38, %s18411_s16 }
 0xa64   : > { %4300 = vrot.lane.b32.xlu1 %v4292_v39, %s18415_s10  ;;  %4192 = vrot.lane.b32.xlu0 %v4185_v40, %s18411_s16 }
 0xa68   : > { %4298 = vrot.lane.b32.xlu0 %v4291_v20, %s18415_s10  ;;  %4406 = vrot.lane.b32.xlu1 %v4398_v42, %s18401_s11 }
 0xa6c   : > { %4512 = vrot.lane.b32.xlu1 %v4504_v44, %s18399_s0  ;;  %4404 = vrot.lane.b32.xlu0 %v4397_v27, %s18401_s11 }
 0xa70   : > { %4608 = vperm.xlu1 %16123, %v16892_v28   ;;  %4510 = vrot.lane.b32.xlu0 %v4503_v45, %s18399_s0 }
 0xa74   : > { %4603 = vperm.xlu0 %16124, %v16898_v46   ;;  %16125 = vset.pattern.permute.xlu1 %v18419_v14 }
 0xa78   : > { %16126 = vset.pattern.permute.xlu0 %v16268_v4 }
 0xac2   : > { %v3703_v47 = vpop.permute.xlu1 %3702 }
 0xac3   : > { %15169 = vmatprep.subr.mxu0 %v3703_v47 }
 0xac4   : > { %15170 = vmatpush3.msra.mxu0 %v3703_v47 }
 0xac6   : > { %v3701_v34 = vpop.permute.xlu0 %3700  ;;  %v3793_v48 = vpop.permute.xlu1 %3792 }
 0xac7   : > { %15171 = vmatprep.subr.mxu0 %v3701_v34 }
 0xac8   : > { %15172 = vmatpush3.msra.mxu0 %v3701_v34 }
 0xac9   : > { %15176 = vmatprep.subr.mxu0 %v3793_v48  ;;  %15174 = vmatmul.mubr.msk.f32.vlgmr.msra.gmra.mxu0 %vm3706_vm6, %v13996_v49 }
 0xaca   : > { %v3791_v36 = vpop.permute.xlu0 %3790  ;;  %15177 = vmatpush3.msra.mxu0 %v3793_v48  ;;  %v3897_v51 = vpop.permute.xlu1 %3896  ;;  %15180 = vmatprep.mubr.msk.f32.mxu0 %vm3706_vm6, %v3681_v50 }
 0xacb   : > { %15178 = vmatprep.subr.mxu0 %v3791_v36  ;;  %15183 = vmatprep.subr.mxu1 %v3897_v51 }
 0xacc   : > { %15179 = vmatpush3.msra.mxu0 %v3791_v36  ;;  %15184 = vmatpush3.msra.mxu1 %v3897_v51 }
 0xacd   : > { %15181 = vmatmul.mubr.msk.f32.vlgmr.msra.gmra.mxu0 %vm3706_vm6, %v3682_v52 }
 0xace   : > { %v3895_v54 = vpop.permute.xlu0 %3894  ;;  %v4003_v55 = vpop.permute.xlu1 %4002  ;;  %15194 = vmatprep.mubr.msk.f32.mxu0 %vm3706_vm6, %v14009_v53 }
 0xacf   : > { %15185 = vmatprep.subr.mxu1 %v3895_v54  ;;  %15190 = vmatprep.subr.mxu0 %v4003_v55 }
 0xad0   : > { %15186 = vmatpush3.msra.mxu1 %v3895_v54  ;;  %15191 = vmatpush3.msra.mxu0 %v4003_v55 }
 0xad1   : > { %15197 = vmatprep.subr.mxu1 %v16817_v60  ;;  %15188 = vmatmul.mubr.msk.f32.vlgmr.msra.gmra.mxu1 %vm3706_vm6, %v14004_v56 }
 0xad2   : > { %v4001_v58 = vpop.permute.xlu0 %4000  ;;  %15198 = vmatpush3.msra.mxu1 %v16817_v60  ;;  %v4195_v59 = vpop.permute.xlu1 %4194  ;;  %15201 = vmatprep.mubr.msk.f32.mxu1 %vm3706_vm6, %v14013_v57 }
 0xad3   : > { %15192 = vmatprep.subr.mxu0 %v4001_v58  ;;  %15199 = vmatprep.subr.mxu1 %v16821_v62 }
 0xad4   : > { %15193 = vmatpush3.msra.mxu0 %v4001_v58  ;;  %15200 = vmatpush3.msra.mxu1 %v16821_v62 }
 0xad5   : > { %15195 = vmatmul.mubr.msk.f32.vlgmr.msra.gmra.mxu0 %vm3706_vm6, %v14010_v61  ;;  %15204 = vmatprep.subr.mxu0 %v4195_v59 }
 0xad6   : > { %v4193_v3 = vpop.permute.xlu0 %4192  ;;  %15205 = vmatpush3.msra.mxu0 %v4195_v59  ;;  %v4301_v60 = vpop.permute.xlu1 %4300  ;;  %15202 = vmatmul.mubr.msk.f32.vlgmr.msra.gmra.mxu1 %vm3706_vm6, %v14014_v63 }
 0xad7   : > { %15206 = vmatprep.subr.mxu0 %v4193_v3  ;;  %15211 = vmatprep.subr.mxu1 %v4301_v60 }
 0xad8   : > { %15207 = vmatpush3.msra.mxu0 %v4193_v3  ;;  %15208 = vmatprep.mubr.msk.f32.mxu0 %vm3706_vm6, %v14019_v1 }
 0xad9   : > { %15212 = vmatpush3.msra.mxu1 %v4301_v60  ;;  %15209 = vmatmul.mubr.msk.f32.vlgmr.msra.gmra.mxu0 %vm3706_vm6, %v14020_v6 }
 0xada   : > { %v4299_v62 = vpop.permute.xlu0 %4298  ;;  %v4407_v13 = vpop.permute.xlu1 %4406  ;;  %15215 = vmatprep.mubr.msk.f32.mxu1 %vm3706_vm6, %v14025_v7  ;;  %15222 = vmatprep.mubr.msk.f32.mxu0 %vm3706_vm6, %v14031_v8 }
 0xadb   : > { %15213 = vmatprep.subr.mxu1 %v4299_v62  ;;  %15218 = vmatprep.subr.mxu0 %v4407_v13 }
 0xadc   : > { %15214 = vmatpush3.msra.mxu1 %v4299_v62  ;;  %15219 = vmatpush3.msra.mxu0 %v4407_v13 }
 0xadd   : > { %15216 = vmatmul.mubr.msk.f32.vlgmr.msra.gmra.mxu1 %vm3706_vm6, %v14026_v15 }
 0xade   : > { %v4405_v21 = vpop.permute.xlu0 %4404  ;;  %v4513_v22 = vpop.permute.xlu1 %4512  ;;  %15229 = vmatprep.mubr.msk.f32.mxu1 %vm3706_vm6, %v14037_v17 }
 0xadf   : > { %15220 = vmatprep.subr.mxu0 %v4405_v21  ;;  %15225 = vmatprep.subr.mxu1 %v4513_v22 }
 0xae0   : > { %15221 = vmatpush3.msra.mxu0 %v4405_v21  ;;  %15226 = vmatpush3.msra.mxu1 %v4513_v22 }
 0xae1   : > { %15223 = vmatmul.mubr.msk.f32.vlgmr.msra.gmra.mxu0 %vm3706_vm6, %v14032_v10 }
 0xae2   : > { %v4511_v24 = vpop.permute.xlu0 %4510 }
 0xae3   : > { %15227 = vmatprep.subr.mxu1 %v4511_v24 }
 0xae4   : > { %15228 = vmatpush3.msra.mxu1 %v4511_v24 }
 0xae5   : > { %15230 = vmatmul.mubr.msk.f32.vlgmr.msra.gmra.mxu1 %vm3706_vm6, %v14038_v25 }
 0xaeb   : > { %v4609_v59 = vpop.permute.xlu1 %4608 }
 0xaef   : > { %v4604_v3 = vpop.permute.xlu0 %4603 }
 0xb89   : > { %v15175_v18 = vpop.f32.mrf.mxu0 }
 0xb8b   : > { %v3779_v26 = vpop.f32.mrf.mxu0 }
 0xb8d   : > { %v15182_v29 = vpop.f32.mrf.mxu0 }
 0xb8e   : > { %v3874_v31 = vadd.f32 %v15182_v29, %v15175_v18 }
 0xb8f   : > { %v3868_v32 = vpop.f32.mrf.mxu0 }
 0xb90   : > { %v3869_v37 = vadd.f32 %v3868_v32, %v3779_v26 }
 0xb91   : > { %v15189_v35 = vpop.f32.mrf.mxu1 }
 0xb92   : > { %v3982_v19 = vadd.f32 %v15189_v35, %v3874_v31 }
 0xb93   : > { %v3972_v38 = vpop.f32.mrf.mxu1 }
 0xb94   : > { %v3981_v40 = vadd.f32 %v3972_v38, %v3869_v37 }
 0xb95   : > { %v15196_v39 = vpop.f32.mrf.mxu0 }
 0xb96   : > { %v4088_v20 = vadd.f32 %v15196_v39, %v3982_v19  ;;  %v15203_v44 = vpop.f32.mrf.mxu1 }
 0xb97   : > { %v4078_v42 = vpop.f32.mrf.mxu0 }
 0xb98   : > { %v4087_v27 = vadd.f32 %v4078_v42, %v3981_v40  ;;  %v4174_v45 = vadd.f32 %v15203_v44, %v4088_v20  ;;  %v4164_v47 = vpop.f32.mrf.mxu1 }
 0xb99   : > { %v15210_v34 = vpop.f32.mrf.mxu0 }
 0xb9a   : > { %v4173_v49 = vadd.f32 %v4164_v47, %v4087_v27  ;;  %v4280_v50 = vadd.f32 %v15210_v34, %v4174_v45 }
 0xb9b   : > { %v4270_v36 = vpop.f32.mrf.mxu0 }
 0xb9c   : > { %v4279_v53 = vadd.f32 %v4270_v36, %v4173_v49 }
 0xb9d   : > { %v15217_v48 = vpop.f32.mrf.mxu1 }
 0xb9e   : > { %v4386_v54 = vadd.f32 %v15217_v48, %v4280_v50 }
 0xb9f   : > { %v4376_v51 = vpop.f32.mrf.mxu1 }
 0xba0   : > { %v4385_v56 = vadd.f32 %v4376_v51, %v4279_v53 }
 0xba1   : > { %v15224_v52 = vpop.f32.mrf.mxu0 }
 0xba2   : > { %v4492_v57 = vadd.f32 %v15224_v52, %v4386_v54 }
 0xba3   : > { %v4482_v55 = vpop.f32.mrf.mxu0 }
 0xba4   : > { %v4491_v61 = vadd.f32 %v4482_v55, %v4385_v56 }
 0xba5   : > { %v15231_v58 = vpop.f32.mrf.mxu1 }
 0xba6   : > { %v4598_v63 = vadd.f32 %v15231_v58, %v4492_v57 }
 0xba7   : > { %v4588_v1 = vpop.f32.mrf.mxu1 }
 0xba8   : > { %v16939_v60 = vadd.f32 %v4609_v59, %v4598_v63  ;;  %v4597_v6 = vadd.f32 %v4588_v1, %v4491_v61 }
 0xbaa   : > { %v16941_v7 = vadd.f32 %v4604_v3, %v4597_v6  ;;  %v4617_v8 = vsel %vm4613_vm7, %v16939_v60, 0.0  ;;  %v4621_v62 = vmul.f32 %v16939_v60, %v16939_v60 }
 0xbab   : > { %4618 = vadd.xlane.f32.xlu1 %v4617_v8 }
 0xbac   : > { %v4614_v13 = vsel %vm4613_vm7, %v16941_v7, 0.0  ;;  %v4620_v15 = vmul.f32 %v16941_v7, %v16941_v7  ;;  %v4625_v17 = vsel %vm4613_vm7, %v4621_v62, 0.0 }
 0xbad   : > { %4615 = vadd.xlane.f32.xlu0 %v4614_v13 }
 0xbae   : > { %v4622_v21 = vsel %vm4613_vm7, %v4620_v15, 0.0 }
 0xbaf   : > { %4626 = vadd.xlane.f32.xlu1 %v4625_v17 }
 0xbb1   : > { %4623 = vadd.xlane.f32.xlu0 %v4622_v21 }
 0xc34   : > { %v4619_v22 = vpop.xlane.xlu1 %4618 }
 0xc35   : > { %v4634_v10 = vrot.slane %v4619_v22, 4 }
 0xc36   : > { %v4616_v24 = vpop.xlane.xlu0 %4615 }
 0xc37   : > { %v4635_v25 = vadd.f32 %v4634_v10, %v4619_v22  ;;  %v4628_v18 = vrot.slane %v4616_v24, 4 }
 0xc38   : > { %v4627_v26 = vpop.xlane.xlu1 %4626 }
 0xc39   : > { %v4636_v29 = vrot.slane %v4635_v25, 2  ;;  %v4629_v31 = vadd.f32 %v4628_v18, %v4616_v24  ;;  %v4646_v32 = vrot.slane %v4627_v26, 4 }
 0xc3a   : > { %v4624_v35 = vpop.xlane.xlu0 %4623 }
 0xc3b   : > { %v4637_v37 = vadd.f32 %v4636_v29, %v4635_v25  ;;  %v4630_v19 = vrot.slane %v4629_v31, 2  ;;  %v4647_v38 = vadd.f32 %v4646_v32, %v4627_v26  ;;  %v4640_v39 = vrot.slane %v4624_v35, 4 }
 0xc3d   : > { %v4638_v40 = vrot.slane %v4637_v37, 1  ;;  %v4631_v20 = vadd.f32 %v4630_v19, %v4629_v31  ;;  %v4648_v42 = vrot.slane %v4647_v38, 2  ;;  %v4641_v44 = vadd.f32 %v4640_v39, %v4624_v35 }
 0xc3f   : > { %v4632_v27 = vrot.slane %v4631_v20, 1  ;;  %v4649_v45 = vadd.f32 %v4648_v42, %v4647_v38  ;;  %v4642_v47 = vrot.slane %v4641_v44, 2  ;;  %v4639_v34 = vadd.f32 %v4638_v40, %v4637_v37  ;;  %v14041_v40 = vld [vmem:[%s16353_s24 + $0x10] sm:$0xff] }
 0xc40   : > { %15236 = vmatprep.mubr.msk.f32.mxu0 %vm3706_vm6, %v14041_v40 }
 0xc41   : > { %v4650_v48 = vrot.slane %v4649_v45, 1  ;;  %v4643_v49 = vadd.f32 %v4642_v47, %v4641_v44  ;;  %v4654_v50 = vmul.f32 0.00390625, %v4639_v34  ;;  %v4633_v36 = vadd.f32 %v4632_v27, %v4631_v20 }
 0xc43   : > { %v4651_v51 = vadd.f32 %v4650_v48, %v4649_v45  ;;  %v4644_v52 = vrot.slane %v4643_v49, 1  ;;  %v4653_v53 = vmul.f32 0.00390625, %v4633_v36  ;;  %v4662_v56 = vmul.f32 %v4654_v50, %v4654_v50  ;;  %v4728_v45 = vld [vmem:[%s16353_s24] sm:$0xff] }
 0xc44   : > { %15243 = vmatprep.mubr.msk.f32.mxu1 %vm3706_vm6, %v4728_v45  ;;  %v14072_v45 = vld [vmem:[%s16353_s24 + $0x88] sm:$0xff] }
 0xc45   : > { %v4661_v54 = vmul.f32 0.00390625, %v4651_v51  ;;  %v4645_v55 = vadd.f32 %v4644_v52, %v4643_v49  ;;  %v4656_v59 = vmul.f32 %v4653_v53, %v4653_v53 }
 0xc47   : > { %v4655_v57 = vmul.f32 0.00390625, %v4645_v55  ;;  %v4663_v58 = vsub.f32 %v4661_v54, %v4662_v56 }
 0xc49   : > { %v4664_v61 = vmax.f32 %v4663_v58, 0.0  ;;  %v4657_v63 = vsub.f32 %v4655_v57, %v4656_v59 }
 0xc4b   : > { %v4665_v1 = vadd.f32 1e-05, %v4664_v61  ;;  %v4658_v3 = vmax.f32 %v4657_v63, 0.0 }
 0xc4d   : > { %16168 = vrsqrt.f32 %v4665_v1  ;;  %v4659_v6 = vadd.f32 1e-05, %v4658_v3 }
 0xc4f   : > { %16170 = vrsqrt.f32 %v4659_v6 }
 0xc5a   : > { %v16169_v8 = vpop.eup %16168 }
 0xc5b   : > { %v4675_v62 = vmul.f32 %v16169_v8, %v16892_v28  ;;  %v14042_v8 = vld [vmem:[%s16353_s24 + $0x18] sm:$0xff] }
 0xc5c   : > { %v16171_v13 = vpop.eup %16170 }
 0xc5d   : > { %v4677_v15 = vmul.f32 %v4675_v62, %v4654_v50  ;;  %v4674_v17 = vmul.f32 %v16171_v13, %v16898_v46 }
 0xc5f   : > { %4682 = vrot.lane.b32.xlu1 %v4677_v15, %s18421_s15  ;;  %v4676_v21 = vmul.f32 %v4674_v17, %v4653_v53 }
 0xc61   : > { %4680 = vrot.lane.b32.xlu0 %v4676_v21, %s18421_s15  ;;  %v14051_v21 = vld [vmem:[%s16353_s24 + $0x30] sm:$0xff] }
 0xc63   : > { %4695 = vperm.xlu1 %16125, %v4675_v62   ;;  %v14047_v62 = vld [vmem:[%s16353_s24 + $0x20] sm:$0xff] }
 0xc67   : > { %4690 = vperm.xlu1 %16125, %v4674_v17   ;;  %v4729_v17 = vld [vmem:[%s16353_s24 + $0x8] sm:$0xff] }
 0xc6b   : > { %16127 = vset.pattern.permute.xlu1 %v16268_v4 }
 0xcd1   : > { %v4683_v22 = vpop.permute.xlu1 %4682 }
 0xcd2   : > { %v4687_v10 = vsub.f32 %v16892_v28, %v4683_v22 }
 0xcd3   : > { %v4681_v24 = vpop.permute.xlu0 %4680 }
 0xcd4   : > { %v4686_v25 = vsub.f32 %v16898_v46, %v4681_v24  ;;  %4707 = vperm.xlu0 %16126, %v4687_v10   ;;  %v14048_v24 = vld [vmem:[%s16353_s24 + $0x28] sm:$0xff] }
 0xcd6   : > { %4702 = vperm.xlu1 %16127, %v4686_v25  }
 0xcd8   : > { %16129 = vset.pattern.permute.xlu0 %v16258_v2 }
 0xcda   : > { %16128 = vset.pattern.permute.xlu1 %v16258_v2 }
 0xcde   : > { %v4696_v18 = vpop.permute.xlu1 %4695 }
 0xcdf   : > { %v4699_v29 = vmul.f32 %v4696_v18, %v16939_v60 }
 0xce2   : > { %v4691_v26 = vpop.permute.xlu1 %4690 }
 0xce3   : > { %v4698_v32 = vmul.f32 %v4691_v26, %v16941_v7  ;;  %v14052_v26 = vld [vmem:[%s16353_s24 + $0x38] sm:$0xff] }
 0xd4f   : > { %v4708_v31 = vpop.permute.xlu0 %4707 }
 0xd50   : > { %v4711_v35 = vadd.f32 %v4708_v31, %v4699_v29  ;;  %v14055_v29 = vld [vmem:[%s16353_s24 + $0x40] sm:$0xff] }
 0xd51   : > { %v4703_v37 = vpop.permute.xlu1 %4702 }
 0xd52   : > { %v16964_v28 = vmax.f32 %v4711_v35, 0.0  ;;  %v4710_v19 = vadd.f32 %v4703_v37, %v4698_v32  ;;  %v14056_v32 = vld [vmem:[%s16353_s24 + $0x48] sm:$0xff]  ;;  %v14059_v35 = vld [vmem:[%s16353_s24 + $0x50] sm:$0xff] }
 0xd54   : > { %v16966_v46 = vmax.f32 %v4710_v19, 0.0  ;;  %4717 = vrot.lane.b32.xlu1 %v16964_v28, %s18409_s26 }
 0xd56   : > { %4714 = vrot.lane.b32.xlu0 %v16966_v46, %s18409_s26 }
 0xdc6   : > { %v4718_v38 = vpop.permute.xlu1 %4717 }
 0xdc7   : > { %v4719_v60 = vsel %vm3657_vm5, %v4718_v38, %v16964_v28  ;;  %v14063_v38 = vld [vmem:[%s16353_s24 + $0x60] sm:$0xff] }
 0xdc8   : > { %v4715_v39 = vpop.permute.xlu0 %4714  ;;  %4722 = vrot.lane.b32.xlu1 %v4719_v60, %s18409_s26 }
 0xdc9   : > { %v4716_v7 = vsel %vm3657_vm5, %v4715_v39, %v16966_v46  ;;  %v14064_v39 = vld [vmem:[%s16353_s24 + $0x68] sm:$0xff] }
 0xdca   : > { %4720 = vrot.lane.b32.xlu0 %v4716_v7, %s18409_s26  ;;  %v14071_v7 = vld [vmem:[%s16353_s24 + $0x80] sm:$0xff]  ;;  %s16286_s26 = smov 5  }
 0xe3a   : > { %v4723_v20 = vpop.permute.xlu1 %4722 }
 0xe3b   : > { %v4725_v42 = vsel %vm3657_vm5, %v4723_v20, %v16964_v28 }
 0xe3c   : > { %v4721_v44 = vpop.permute.xlu0 %4720  ;;  %v4731_v27 = vmul.f32 %v4725_v42, %v16837_v16  ;;  %v4727_v48 = vmul.f32 %v4725_v42, %v16846_v9  ;;  %v4914_v50 = vmul.f32 %v4725_v42, %v16855_v30  ;;  %v5010_v51 = vmul.f32 %v4725_v42, %v16861_v33 }
 0xe3d   : > { %v4724_v47 = vsel %vm3657_vm5, %v4721_v44, %v16966_v46  ;;  %v5192_v53 = vmul.f32 %v4725_v42, %v16865_v12  ;;  %v5288_v55 = vmul.f32 %v4725_v42, %v16873_v11  ;;  %v5384_v57 = vmul.f32 %v4725_v42, %v16877_v41 }
 0xe3e   : > { %4739 = vrot.lane.b32.xlu1 %v4731_v27, %s18397_s2  ;;  %v4730_v34 = vmul.f32 %v4724_v47, %v16837_v16  ;;  %v4726_v49 = vmul.f32 %v4724_v47, %v16846_v9  ;;  %v4913_v36 = vmul.f32 %v4724_v47, %v16855_v30  ;;  %v5009_v52 = vmul.f32 %v4724_v47, %v16861_v33 }
 0xe3f   : > { %v5191_v54 = vmul.f32 %v4724_v47, %v16865_v12  ;;  %v5287_v56 = vmul.f32 %v4724_v47, %v16873_v11  ;;  %v5383_v58 = vmul.f32 %v4724_v47, %v16877_v41  ;;  %v5480_v59 = vmul.f32 %v4725_v42, %v16883_v43  ;;  %v14068_v42 = vld [vmem:[%s16353_s24 + $0x78] sm:$0xff] }
 0xe40   : > { %4737 = vrot.lane.b32.xlu0 %v4730_v34, %s18397_s2  ;;  %s18474_s2 = sld [smem:[#allocation6_spill]]  ;;  %v5479_v61 = vmul.f32 %v4724_v47, %v16883_v43 }
 0xe42   : > { %4828 = vrot.lane.b32.xlu1 %v4727_v48, %s18407_s18 }
 0xe44   : > { %4826 = vrot.lane.b32.xlu0 %v4726_v49, %s18407_s18  ;;  %s16285_s18 = smov 3  }
 0xe46   : > { %4922 = vrot.lane.b32.xlu1 %v4914_v50, %s18405_s22  ;;  %v17018_v63 = vld [vmem:[%s18474_s2 + $0x8] sm:$0xff]  ;;  %v17022_v1 = vld [vmem:[%s18474_s2] sm:$0xff]  ;;  %s18491_s2 = sld [smem:[#allocation14_spill]] }
 0xe48   : > { %4920 = vrot.lane.b32.xlu0 %v4913_v36, %s18405_s22  ;;  %s16284_s22 = smov 4  }
 0xe4a   : > { %5018 = vrot.lane.b32.xlu1 %v5010_v51, %s18403_s7 }
 0xe4c   : > { %5016 = vrot.lane.b32.xlu0 %v5009_v52, %s18403_s7  ;;  %s18477_s7 = sld [smem:[#allocation28_spill]] }
 0xe4e   : > { %5200 = vrot.lane.b32.xlu1 %v5192_v53, %s18411_s16 }
 0xe50   : > { %5198 = vrot.lane.b32.xlu0 %v5191_v54, %s18411_s16  ;;  %s18478_s16 = smov 7  }
 0xe52   : > { %5296 = vrot.lane.b32.xlu1 %v5288_v55, %s18415_s10 }
 0xe54   : > { %5294 = vrot.lane.b32.xlu0 %v5287_v56, %s18415_s10 }
 0xe56   : > { %5392 = vrot.lane.b32.xlu1 %v5384_v57, %s18401_s11 }
 0xe58   : > { %5390 = vrot.lane.b32.xlu0 %v5383_v58, %s18401_s11  ;;  %s18476_s11 = sld [smem:[#allocation8_spill]] }
 0xe5a   : > { %5488 = vrot.lane.b32.xlu1 %v5480_v59, %s18399_s0 }
 0xe5c   : > { %5486 = vrot.lane.b32.xlu0 %v5479_v61, %s18399_s0  ;;  %s18475_s0 = sld [smem:[#allocation7_spill]] }
 0xe5e   : > { %5584 = vperm.xlu1 %16128, %v17018_v63  }
 0xe60   : > { %5579 = vperm.xlu0 %16129, %v17022_v1  }
 0xe62   : > { %16130 = vset.pattern.permute.xlu1 %v18419_v14 }
 0xe64   : > { %16131 = vset.pattern.permute.xlu0 %v16268_v4 }
 0xeb0   : > { %v4740_v3 = vpop.permute.xlu1 %4739 }
 0xeb1   : > { %15232 = vmatprep.subr.mxu0 %v4740_v3 }
 0xeb2   : > { %v4738_v6 = vpop.permute.xlu0 %4737  ;;  %15233 = vmatpush3.msra.mxu0 %v4740_v3 }
 0xeb3   : > { %15234 = vmatprep.subr.mxu0 %v4738_v6 }
 0xeb4   : > { %15235 = vmatpush3.msra.mxu0 %v4738_v6  ;;  %v4829_v13 = vpop.permute.xlu1 %4828 }
 0xeb5   : > { %15239 = vmatprep.subr.mxu1 %v4829_v13  ;;  %15237 = vmatmul.mubr.msk.f32.vlgmr.msra.gmra.mxu0 %vm3706_vm6, %v14042_v8 }
 0xeb6   : > { %v4827_v15 = vpop.permute.xlu0 %4826  ;;  %15240 = vmatpush3.msra.mxu1 %v4829_v13  ;;  %15250 = vmatprep.mubr.msk.f32.mxu0 %vm3706_vm6, %v14047_v62 }
 0xeb7   : > { %15241 = vmatprep.subr.mxu1 %v4827_v15 }
 0xeb8   : > { %15242 = vmatpush3.msra.mxu1 %v4827_v15  ;;  %v4923_v22 = vpop.permute.xlu1 %4922 }
 0xeb9   : > { %15246 = vmatprep.subr.mxu0 %v4923_v22  ;;  %15244 = vmatmul.mubr.msk.f32.vlgmr.msra.gmra.mxu1 %vm3706_vm6, %v4729_v17 }
 0xeba   : > { %v4921_v10 = vpop.permute.xlu0 %4920  ;;  %15247 = vmatpush3.msra.mxu0 %v4923_v22  ;;  %15257 = vmatprep.mubr.msk.f32.mxu1 %vm3706_vm6, %v14051_v21 }
 0xebb   : > { %15248 = vmatprep.subr.mxu0 %v4921_v10 }
 0xebc   : > { %15249 = vmatpush3.msra.mxu0 %v4921_v10  ;;  %v5019_v25 = vpop.permute.xlu1 %5018 }
 0xebd   : > { %15253 = vmatprep.subr.mxu1 %v5019_v25  ;;  %15260 = vmatprep.subr.mxu0 %v16964_v28 }
 0xebe   : > { %v5017_v18 = vpop.permute.xlu0 %5016  ;;  %15251 = vmatmul.mubr.msk.f32.vlgmr.msra.gmra.mxu0 %vm3706_vm6, %v14048_v24  ;;  %15254 = vmatpush3.msra.mxu1 %v5019_v25 }
 0xebf   : > { %15261 = vmatpush3.msra.mxu0 %v16964_v28  ;;  %15255 = vmatprep.subr.mxu1 %v5017_v18  ;;  %v14060_v28 = vld [vmem:[%s16353_s24 + $0x58] sm:$0xff] }
 0xec0   : > { %15262 = vmatprep.subr.mxu0 %v16966_v46  ;;  %15256 = vmatpush3.msra.mxu1 %v5017_v18  ;;  %v5201_v31 = vpop.permute.xlu1 %5200 }
 0xec1   : > { %15263 = vmatpush3.msra.mxu0 %v16966_v46  ;;  %15267 = vmatprep.subr.mxu1 %v5201_v31  ;;  %v14067_v46 = vld [vmem:[%s16353_s24 + $0x70] sm:$0xff] }
 0xec2   : > { %v5199_v37 = vpop.permute.xlu0 %5198  ;;  %15258 = vmatmul.mubr.msk.f32.vlgmr.msra.gmra.mxu1 %vm3706_vm6, %v14052_v26  ;;  %15264 = vmatprep.mubr.msk.f32.mxu0 %vm3706_vm6, %v14055_v29 }
 0xec3   : > { %15268 = vmatpush3.msra.mxu1 %v5201_v31  ;;  %15265 = vmatmul.mubr.msk.f32.vlgmr.msra.gmra.mxu0 %vm3706_vm6, %v14056_v32 }
 0xec4   : > { %15269 = vmatprep.subr.mxu1 %v5199_v37  ;;  %v5297_v19 = vpop.permute.xlu1 %5296  ;;  %15271 = vmatprep.mubr.msk.f32.mxu1 %vm3706_vm6, %v14059_v35 }
 0xec5   : > { %15270 = vmatpush3.msra.mxu1 %v5199_v37  ;;  %15274 = vmatprep.subr.mxu0 %v5297_v19 }
 0xec6   : > { %v5295_v60 = vpop.permute.xlu0 %5294  ;;  %15275 = vmatpush3.msra.mxu0 %v5297_v19  ;;  %15272 = vmatmul.mubr.msk.f32.vlgmr.msra.gmra.mxu1 %vm3706_vm6, %v14060_v28 }
 0xec7   : > { %15276 = vmatprep.subr.mxu0 %v5295_v60  ;;  %15278 = vmatprep.mubr.msk.f32.mxu0 %vm3706_vm6, %v14063_v38 }
 0xec8   : > { %15277 = vmatpush3.msra.mxu0 %v5295_v60  ;;  %v5393_v40 = vpop.permute.xlu1 %5392  ;;  %15285 = vmatprep.mubr.msk.f32.mxu1 %vm3706_vm6, %v14067_v46 }
 0xec9   : > { %15279 = vmatmul.mubr.msk.f32.vlgmr.msra.gmra.mxu0 %vm3706_vm6, %v14064_v39  ;;  %15281 = vmatprep.subr.mxu1 %v5393_v40 }
 0xeca   : > { %v5391_v20 = vpop.permute.xlu0 %5390  ;;  %15282 = vmatpush3.msra.mxu1 %v5393_v40  ;;  %15292 = vmatprep.mubr.msk.f32.mxu0 %vm3706_vm6, %v14071_v7 }
 0xecb   : > { %15283 = vmatprep.subr.mxu1 %v5391_v20 }
 0xecc   : > { %15284 = vmatpush3.msra.mxu1 %v5391_v20  ;;  %v5489_v44 = vpop.permute.xlu1 %5488 }
 0xecd   : > { %15286 = vmatmul.mubr.msk.f32.vlgmr.msra.gmra.mxu1 %vm3706_vm6, %v14068_v42  ;;  %15288 = vmatprep.subr.mxu0 %v5489_v44 }
 0xece   : > { %v5487_v27 = vpop.permute.xlu0 %5486  ;;  %15289 = vmatpush3.msra.mxu0 %v5489_v44  ;;  %15295 = vmatprep.subr.mxu1 %v18417_v0 }
 0xecf   : > { %15290 = vmatprep.subr.mxu0 %v5487_v27  ;;  %15299 = vmatprep.mubr.msk.f32.mxu1 %vm16257_vm0, %v18417_v0 }
 0xed0   : > { %15291 = vmatpush3.msra.mxu0 %v5487_v27 }
 0xed1   : > { %15293 = vmatmul.mubr.msk.f32.vlgmr.msra.gmra.mxu0 %vm3706_vm6, %v14072_v45  ;;  %15308 = vmatprep.subr.mxu0 %v18417_v0 }
 0xed2   : > { %15312 = vmatprep.mubr.msk.f32.mxu0 %vm16257_vm0, %v18417_v0 }
 0xed9   : > { %v5585_v29 = vpop.permute.xlu1 %5584 }
 0xedb   : > { %v5580_v37 = vpop.permute.xlu0 %5579 }
 0xf75   : > { %v15238_v47 = vpop.f32.mrf.mxu0 }
 0xf77   : > { %v4815_v48 = vpop.f32.mrf.mxu0 }
 0xf79   : > { %v15245_v34 = vpop.f32.mrf.mxu1 }
 0xf7a   : > { %v4910_v49 = vadd.f32 %v15245_v34, %v15238_v47 }
 0xf7b   : > { %v4904_v50 = vpop.f32.mrf.mxu1 }
 0xf7c   : > { %v4905_v36 = vadd.f32 %v4904_v50, %v4815_v48 }
 0xf7e   : > { %v15252_v51 = vpop.f32.mrf.mxu0 }
 0xf7f   : > { %v5008_v52 = vadd.f32 %v15252_v51, %v4910_v49 }
 0xf80   : > { %v4998_v53 = vpop.f32.mrf.mxu0 }
 0xf81   : > { %v5007_v54 = vadd.f32 %v4998_v53, %v4905_v36 }
 0xf82   : > { %v15259_v55 = vpop.f32.mrf.mxu1 }
 0xf83   : > { %v5104_v56 = vadd.f32 %v15259_v55, %v5008_v52  ;;  %v15266_v57 = vpop.f32.mrf.mxu0 }
 0xf84   : > { %v5094_v58 = vpop.f32.mrf.mxu1 }
 0xf85   : > { %v5103_v59 = vadd.f32 %v5094_v58, %v5007_v54  ;;  %v5190_v61 = vadd.f32 %v15266_v57, %v5104_v56  ;;  %v5180_v3 = vpop.f32.mrf.mxu0 }
 0xf86   : > { %v15273_v6 = vpop.f32.mrf.mxu1 }
 0xf87   : > { %v5189_v8 = vadd.f32 %v5180_v3, %v5103_v59  ;;  %v5286_v62 = vadd.f32 %v15273_v6, %v5190_v61 }
 0xf88   : > { %v5276_v13 = vpop.f32.mrf.mxu1 }
 0xf89   : > { %v15280_v15 = vpop.f32.mrf.mxu0  ;;  %v5285_v17 = vadd.f32 %v5276_v13, %v5189_v8 }
 0xf8a   : > { %v5382_v21 = vadd.f32 %v15280_v15, %v5286_v62 }
 0xf8b   : > { %v5372_v22 = vpop.f32.mrf.mxu0 }
 0xf8c   : > { %v5381_v25 = vadd.f32 %v5372_v22, %v5285_v17 }
 0xf8d   : > { %v15287_v10 = vpop.f32.mrf.mxu1 }
 0xf8e   : > { %v5478_v18 = vadd.f32 %v15287_v10, %v5382_v21 }
 0xf8f   : > { %v5468_v24 = vpop.f32.mrf.mxu1 }
 0xf90   : > { %v5477_v31 = vadd.f32 %v5468_v24, %v5381_v25 }
 0xf91   : > { %v15294_v26 = vpop.f32.mrf.mxu0 }
 0xf92   : > { %v5574_v32 = vadd.f32 %v15294_v26, %v5478_v18 }
 0xf93   : > { %v5564_v35 = vpop.f32.mrf.mxu0 }
 0xf94   : > { %v5573_v28 = vadd.f32 %v5564_v35, %v5477_v31  ;;  %v17070_v19 = vadd.f32 %v5585_v29, %v5574_v32 }
 0xf96   : > { %v17072_v38 = vadd.f32 %v5580_v37, %v5573_v28  ;;  %v5592_v46 = vsel %vm4613_vm7, %v17070_v19, 0.0  ;;  %v5596_v60 = vmul.f32 %v17070_v19, %v17070_v19 }
 0xf97   : > { %5593 = vadd.xlane.f32.xlu1 %v5592_v46 }
 0xf98   : > { %v5589_v39 = vsel %vm4613_vm7, %v17072_v38, 0.0  ;;  %v5595_v7 = vmul.f32 %v17072_v38, %v17072_v38  ;;  %v5600_v40 = vsel %vm4613_vm7, %v5596_v60, 0.0 }
 0xf99   : > { %5590 = vadd.xlane.f32.xlu0 %v5589_v39 }
 0xf9a   : > { %v5597_v20 = vsel %vm4613_vm7, %v5595_v7, 0.0 }
 0xf9b   : > { %5601 = vadd.xlane.f32.xlu1 %v5600_v40 }
 0xf9d   : > { %5598 = vadd.xlane.f32.xlu0 %v5597_v20 }
0x1020   : > { %v5594_v42 = vpop.xlane.xlu1 %5593 }
0x1021   : > { %v5609_v44 = vrot.slane %v5594_v42, 4 }
0x1022   : > { %v5591_v27 = vpop.xlane.xlu0 %5590 }
0x1023   : > { %v5610_v45 = vadd.f32 %v5609_v44, %v5594_v42  ;;  %v5603_v47 = vrot.slane %v5591_v27, 4 }
0x1024   : > { %v5602_v34 = vpop.xlane.xlu1 %5601 }
0x1025   : > { %v5611_v48 = vrot.slane %v5610_v45, 2  ;;  %v5604_v49 = vadd.f32 %v5603_v47, %v5591_v27  ;;  %v5621_v50 = vrot.slane %v5602_v34, 4 }
0x1026   : > { %v5599_v36 = vpop.xlane.xlu0 %5598 }
0x1027   : > { %v5612_v51 = vadd.f32 %v5611_v48, %v5610_v45  ;;  %v5605_v52 = vrot.slane %v5604_v49, 2  ;;  %v5622_v53 = vadd.f32 %v5621_v50, %v5602_v34  ;;  %v5615_v54 = vrot.slane %v5599_v36, 4 }
0x1029   : > { %v5613_v55 = vrot.slane %v5612_v51, 1  ;;  %v5606_v56 = vadd.f32 %v5605_v52, %v5604_v49  ;;  %v5623_v57 = vrot.slane %v5622_v53, 2  ;;  %v5616_v58 = vadd.f32 %v5615_v54, %v5599_v36  ;;  %v5780_v54 = vld [vmem:[%s16493_s20 + $0x18] sm:$0xff] }
0x102b   : > { %v5614_v59 = vadd.f32 %v5613_v55, %v5612_v51  ;;  %v5607_v61 = vrot.slane %v5606_v56, 1  ;;  %v5624_v3 = vadd.f32 %v5623_v57, %v5622_v53  ;;  %v5617_v6 = vrot.slane %v5616_v58, 2  ;;  %v5685_v53 = vld [vmem:[%s18475_s0] sm:$0xff]  ;;  %v5686_v55 = vld [vmem:[%s18475_s0 + $0x8] sm:$0xff]  ;;  %v14086_v57 = vld [vmem:[%s16493_s20 + $0x30] sm:$0xff] }
0x102d   : > { %v5628_v8 = vmul.f32 0.00390625, %v5614_v59  ;;  %v5625_v62 = vrot.slane %v5624_v3, 1  ;;  %v5618_v13 = vadd.f32 %v5617_v6, %v5616_v58  ;;  %v5608_v15 = vadd.f32 %v5607_v61, %v5606_v56  ;;  %v14079_v56 = vld [vmem:[%s18475_s0 + $0x20] sm:$0xff]  ;;  %v5779_v58 = vld [vmem:[%s16493_s20 + $0x10] sm:$0xff]  ;;  %v14080_v61 = vld [vmem:[%s18475_s0 + $0x28] sm:$0xff] }
0x102e   : > { %v5687_v59 = vld [vmem:[%s18475_s0 + $0x10] sm:$0xff]  ;;  %v5778_v6 = vld [vmem:[%s16493_s20 + $0x8] sm:$0xff] }
0x102f   : > { %v5626_v17 = vadd.f32 %v5625_v62, %v5624_v3  ;;  %v5619_v21 = vrot.slane %v5618_v13, 1  ;;  %v5627_v22 = vmul.f32 0.00390625, %v5608_v15  ;;  %v5636_v10 = vmul.f32 %v5628_v8, %v5628_v8  ;;  %v14085_v3 = vld [vmem:[%s16493_s20 + $0x28] sm:$0xff]  ;;  %v5777_v62 = vld [vmem:[%s16493_s20] sm:$0xff] }
0x1031   : > { %v5635_v24 = vmul.f32 0.00390625, %v5626_v17  ;;  %v5620_v25 = vadd.f32 %v5619_v21, %v5618_v13  ;;  %v5630_v29 = vmul.f32 %v5627_v22, %v5627_v22 }
0x1033   : > { %v5637_v18 = vsub.f32 %v5635_v24, %v5636_v10  ;;  %v5629_v26 = vmul.f32 0.00390625, %v5620_v25 }
0x1035   : > { %v5638_v31 = vmax.f32 %v5637_v18, 0.0  ;;  %v5631_v32 = vsub.f32 %v5629_v26, %v5630_v29 }
0x1037   : > { %v5639_v35 = vadd.f32 1e-05, %v5638_v31  ;;  %v5632_v37 = vmax.f32 %v5631_v32, 0.0  ;;  %v14094_v31 = vld [vmem:[%s18475_s0 + $0x30] sm:$0xff] }
0x1039   : > { %16172 = vrsqrt.f32 %v5639_v35  ;;  %v5633_v28 = vadd.f32 1e-05, %v5632_v37  ;;  %v14095_v35 = vld [vmem:[%s18475_s0 + $0x38] sm:$0xff]  ;;  %v14096_v37 = vld [vmem:[%s18475_s0 + $0x40] sm:$0xff] }
0x103b   : > { %16174 = vrsqrt.f32 %v5633_v28  ;;  %v14107_v28 = vld [vmem:[%s18475_s0 + $0x48] sm:$0xff] }
0x1046   : > { %v16173_v46 = vpop.eup %16172 }
0x1047   : > { %v5646_v60 = vmul.f32 %v16173_v46, %v17018_v63  ;;  %v14108_v46 = vld [vmem:[%s18475_s0 + $0x50] sm:$0xff] }
0x1048   : > { %v16175_v39 = vpop.eup %16174 }
0x1049   : > { %v5648_v7 = vmul.f32 %v5646_v60, %v5628_v8  ;;  %v5645_v40 = vmul.f32 %v16175_v39, %v17022_v1  ;;  %v14084_v8 = vld [vmem:[%s16493_s20 + $0x20] sm:$0xff]  ;;  %v14103_v39 = vld [vmem:[%s16493_s20 + $0x58] sm:$0xff] }
0x104b   : > { %5653 = vrot.lane.b32.xlu1 %v5648_v7, %s18421_s15  ;;  %v5647_v20 = vmul.f32 %v5645_v40, %v5627_v22  ;;  %v14102_v7 = vld [vmem:[%s16493_s20 + $0x50] sm:$0xff] }
0x104d   : > { %5651 = vrot.lane.b32.xlu0 %v5647_v20, %s18421_s15  ;;  %v14100_v20 = vld [vmem:[%s16493_s20 + $0x40] sm:$0xff] }
0x104f   : > { %5666 = vperm.xlu1 %16130, %v5646_v60   ;;  %v14109_v60 = vld [vmem:[%s18475_s0 + $0x58] sm:$0xff] }
0x1053   : > { %5661 = vperm.xlu1 %16130, %v5645_v40   ;;  %v14101_v40 = vld [vmem:[%s16493_s20 + $0x48] sm:$0xff] }
0x1057   : > { %16132 = vset.pattern.permute.xlu1 %v16268_v4 }
0x10bd   : > { %v5654_v42 = vpop.permute.xlu1 %5653 }
0x10be   : > { %v5658_v44 = vsub.f32 %v17018_v63, %v5654_v42  ;;  %v6439_v42 = vld [vmem:[%s18476_s11 + $0x10] sm:$0xff] }
0x10bf   : > { %v5652_v27 = vpop.permute.xlu0 %5651 }
0x10c0   : > { %v5657_v45 = vsub.f32 %v17022_v1, %v5652_v27  ;;  %5678 = vperm.xlu0 %16131, %v5658_v44   ;;  %v6438_v44 = vld [vmem:[%s18476_s11 + $0x8] sm:$0xff]  ;;  %v6437_v27 = vld [vmem:[%s18476_s11] sm:$0xff]  ;;  %s18500_s11 = smov 119  }
0x10c2   : > { %5673 = vperm.xlu1 %16132, %v5657_v45  }
0x10c4   : > { %16134 = vset.pattern.permute.xlu0 %v16258_v2 }
0x10c5   : > { %6447 = vperm.xlu0 %16134, %v6438_v44  }
0x10c6   : > { %16133 = vset.pattern.permute.xlu1 %v16258_v2 }
0x10c7   : > { %6452 = vperm.xlu1 %16133, %v6439_v42  }
0x10ca   : > { %v5667_v47 = vpop.permute.xlu1 %5666 }
0x10cb   : > { %v5670_v48 = vmul.f32 %v5667_v47, %v17070_v19  ;;  %v14078_v19 = vld [vmem:[%s18475_s0 + $0x18] sm:$0xff]  ;;  %6442 = vperm.xlu1 %16133, %v6437_v27   ;;  %s18485_s0 = smov 123  }
0x10ce   : > { %v5662_v34 = vpop.permute.xlu1 %5661 }
0x10cf   : > { %v5669_v50 = vmul.f32 %v5662_v34, %v17072_v38  ;;  %v14087_v38 = vld [vmem:[%s16493_s20 + $0x38] sm:$0xff] }
0x113b   : > { %v5679_v49 = vpop.permute.xlu0 %5678 }
0x113c   : > { %v5682_v63 = vadd.f32 %v5679_v49, %v5670_v48 }
0x113d   : > { %v5674_v36 = vpop.permute.xlu1 %5673 }
0x113e   : > { %v17095_v1 = vmax.f32 %v5682_v63, 0.0  ;;  %v5681_v51 = vadd.f32 %v5674_v36, %v5669_v50 }
0x1140   : > { %v17097_v52 = vmax.f32 %v5681_v51, 0.0  ;;  %15296 = vmatpush3.msra.mxu1 %v17095_v1  ;;  %15309 = vmatpush3.msra.mxu0 %v17095_v1 }
0x1141   : > { %15297 = vmatprep.subr.mxu1 %v18417_v0  ;;  %15310 = vmatprep.subr.mxu0 %v18417_v0 }
0x1142   : > { %15298 = vmatpush3.msra.mxu1 %v17097_v52  ;;  %15311 = vmatpush3.msra.mxu0 %v17097_v52 }
0x1143   : > { %15300 = vmatmul.mubr.msk.f32.vlgmr.msra.gmra.mxu1 %vm3706_vm6, %v5685_v53  ;;  %15313 = vmatmul.mubr.msk.f32.vlgmr.msra.gmra.mxu0 %vm3706_vm6, %v14078_v19 }
0x1144   : > { %15302 = vmatprep.mubr.msk.f32.mxu1 %vm16257_vm0, %v18417_v0  ;;  %15315 = vmatprep.mubr.msk.f32.mxu0 %vm16257_vm0, %v18417_v0 }
0x1145   : > { %15321 = vmatprep.subr.mxu1 %v18417_v0  ;;  %15338 = vmatprep.subr.mxu0 %v18417_v0 }
0x1146   : > { %15322 = vmatpush3.msra.mxu1 %v14087_v38  ;;  %15339 = vmatpush3.msra.mxu0 %v5780_v54 }
0x1147   : > { %15303 = vmatmul.mubr.msk.f32.gmra.mxu1 %vm3706_vm6, %v5686_v55  ;;  %15316 = vmatmul.mubr.msk.f32.gmra.mxu0 %vm3706_vm6, %v14079_v56 }
0x1148   : > { %15305 = vmatprep.mubr.msk.f32.mxu1 %vm16257_vm0, %v18417_v0  ;;  %15318 = vmatprep.mubr.msk.f32.mxu0 %vm16257_vm0, %v18417_v0 }
0x1149   : > { %15323 = vmatprep.subr.mxu1 %v18417_v0  ;;  %15340 = vmatprep.subr.mxu0 %v18417_v0 }
0x114a   : > { %15324 = vmatpush3.msra.mxu1 %v14086_v57  ;;  %15341 = vmatpush3.msra.mxu0 %v5779_v58  ;;  %v14116_v57 = vld [vmem:[%s16493_s20 + $0x78] sm:$0xff] }
0x114b   : > { %15306 = vmatmul.mubr.msk.f32.gmra.mxu1 %vm3706_vm6, %v5687_v59  ;;  %15319 = vmatmul.mubr.msk.f32.gmra.mxu0 %vm3706_vm6, %v14080_v61  ;;  %v14115_v59 = vld [vmem:[%s16493_s20 + $0x70] sm:$0xff] }
0x114c   : > { %15325 = vmatprep.subr.mxu1 %v18417_v0  ;;  %15342 = vmatprep.subr.mxu0 %v18417_v0 }
0x114d   : > { %15326 = vmatpush3.msra.mxu1 %v14085_v3  ;;  %15343 = vmatpush3.msra.mxu0 %v5778_v6  ;;  %v14114_v3 = vld [vmem:[%s16493_s20 + $0x68] sm:$0xff] }
0x114e   : > { %15327 = vmatprep.subr.mxu1 %v18417_v0  ;;  %15344 = vmatprep.subr.mxu0 %v18417_v0 }
0x114f   : > { %15328 = vmatpush3.msra.mxu1 %v14084_v8  ;;  %15329 = vmatprep.mubr.msk.f32.mxu1 %vm16257_vm0, %v18417_v0  ;;  %v14113_v8 = vld [vmem:[%s16493_s20 + $0x60] sm:$0xff] }
0x1150   : > { %15346 = vmatprep.mubr.msk.f32.mxu0 %vm16257_vm0, %v18417_v0  ;;  %15355 = vmatprep.subr.mxu1 %v18417_v0 }
0x1151   : > { %15345 = vmatpush3.msra.mxu0 %v5777_v62 }
0x1152   : > { %15368 = vmatprep.subr.mxu0 %v18417_v0 }
0x1203   : > { %v5763_v13 = vpop.f32.mrf.mxu1  ;;  %v5860_v15 = vpop.f32.mrf.mxu0 }
0x1204   : > { %15330 = vmatmul.mubr.msk.f32.vlgmr.msra.gmra.mxu1 %vm4613_vm7, %v5860_v15  ;;  %15347 = vmatmul.mubr.msk.f32.vlgmr.msra.gmra.mxu0 %vm4613_vm7, %v5763_v13 }
0x1205   : > { %15356 = vmatpush3.msra.mxu1 %v17095_v1  ;;  %v15301_v17 = vpop.f32.mrf.mxu1  ;;  %v15314_v21 = vpop.f32.mrf.mxu0  ;;  %15332 = vmatprep.mubr.msk.f32.mxu1 %vm16257_vm0, %v18417_v0 }
0x1206   : > { %15357 = vmatprep.subr.mxu1 %v18417_v0  ;;  %15349 = vmatprep.mubr.msk.f32.mxu0 %vm16257_vm0, %v18417_v0 }
0x1207   : > { %15358 = vmatpush3.msra.mxu1 %v17097_v52  ;;  %v5768_v22 = vpop.f32.mrf.mxu1  ;;  %v5865_v10 = vpop.f32.mrf.mxu0  ;;  %15369 = vmatpush3.msra.mxu0 %v14103_v39 }
0x1208   : > { %15333 = vmatmul.mubr.msk.f32.gmra.mxu1 %vm4613_vm7, %v5865_v10  ;;  %15350 = vmatmul.mubr.msk.f32.gmra.mxu0 %vm4613_vm7, %v5768_v22 }
0x1209   : > { %v15304_v24 = vpop.f32.mrf.mxu1  ;;  %v15317_v25 = vpop.f32.mrf.mxu0  ;;  %15335 = vmatprep.mubr.msk.f32.mxu1 %vm16257_vm0, %v18417_v0  ;;  %15352 = vmatprep.mubr.msk.f32.mxu0 %vm16257_vm0, %v18417_v0 }
0x120a   : > { %15385 = vmatprep.subr.mxu1 %v18417_v0  ;;  %15370 = vmatprep.subr.mxu0 %v18417_v0 }
0x120b   : > { %v5773_v18 = vpop.f32.mrf.mxu1  ;;  %v5870_v26 = vpop.f32.mrf.mxu0  ;;  %15371 = vmatpush3.msra.mxu0 %v14102_v7 }
0x120c   : > { %15336 = vmatmul.mubr.msk.f32.gmra.mxu1 %vm4613_vm7, %v5870_v26  ;;  %15353 = vmatmul.mubr.msk.f32.gmra.mxu0 %vm4613_vm7, %v5773_v18  ;;  %v6448_v7 = vpop.permute.xlu0 %6447 }
0x120d   : > { %v15320_v29 = vpop.f32.mrf.mxu0  ;;  %15359 = vmatprep.mubr.msk.f32.mxu1 %vm16257_vm0, %v18417_v0  ;;  %v15307_v32 = vpop.f32.mrf.mxu1  ;;  %15376 = vmatprep.mubr.msk.f32.mxu0 %vm16257_vm0, %v18417_v0 }
0x120e   : > { %15372 = vmatprep.subr.mxu0 %v18417_v0 }
0x120f   : > { %15373 = vmatpush3.msra.mxu0 %v14101_v40 }
0x1210   : > { %15360 = vmatmul.mubr.msk.f32.vlgmr.msra.gmra.mxu1 %vm3706_vm6, %v14094_v31  ;;  %15374 = vmatprep.subr.mxu0 %v18417_v0 }
0x1211   : > { %15386 = vmatpush3.msra.mxu1 %v17095_v1  ;;  %15362 = vmatprep.mubr.msk.f32.mxu1 %vm16257_vm0, %v18417_v0 }
0x1212   : > { %15387 = vmatprep.subr.mxu1 %v18417_v0  ;;  %15375 = vmatpush3.msra.mxu0 %v14100_v20 }
0x1213   : > { %15388 = vmatpush3.msra.mxu1 %v17097_v52  ;;  %15398 = vmatprep.subr.mxu0 %v18417_v0 }
0x1214   : > { %15363 = vmatmul.mubr.msk.f32.gmra.mxu1 %vm3706_vm6, %v14095_v35  ;;  %15415 = vmatprep.subr.mxu1 %v18417_v0 }
0x1215   : > { %15365 = vmatprep.mubr.msk.f32.mxu1 %vm16257_vm0, %v18417_v0 }
0x1218   : > { %15366 = vmatmul.mubr.msk.f32.gmra.mxu1 %vm3706_vm6, %v14096_v37 }
0x1219   : > { %15389 = vmatprep.mubr.msk.f32.mxu1 %vm16257_vm0, %v18417_v0 }
0x121c   : > { %15390 = vmatmul.mubr.msk.f32.vlgmr.msra.gmra.mxu1 %vm3706_vm6, %v14107_v28 }
0x121d   : > { %15392 = vmatprep.mubr.msk.f32.mxu1 %vm16257_vm0, %v18417_v0 }
0x1220   : > { %15393 = vmatmul.mubr.msk.f32.gmra.mxu1 %vm3706_vm6, %v14108_v46 }
0x1221   : > { %15395 = vmatprep.mubr.msk.f32.mxu1 %vm16257_vm0, %v18417_v0 }
0x1224   : > { %15396 = vmatmul.mubr.msk.f32.gmra.mxu1 %vm3706_vm6, %v14109_v60  ;;  %v6453_v60 = vpop.permute.xlu1 %6452 }
0x1225   : > { %15421 = vmatprep.mubr.msk.f32.mxu1 %vm16257_vm0, %v18417_v0 }
0x12c4   : > { %v5954_v45 = vpop.f32.mrf.mxu1  ;;  %v6043_v47 = vpop.f32.mrf.mxu0 }
0x12c5   : > { %v17208_v34 = vadd.f32 %v6043_v47, %v5954_v45 }
0x12c6   : > { %v15331_v48 = vpop.f32.mrf.mxu1  ;;  %v15348_v49 = vpop.f32.mrf.mxu0 }
0x12c8   : > { %v5959_v50 = vpop.f32.mrf.mxu1  ;;  %v6048_v63 = vpop.f32.mrf.mxu0 }
0x12c9   : > { %v6049_v36 = vadd.f32 %v6048_v63, %v5959_v50  ;;  %v6443_v50 = vpop.permute.xlu1 %6442 }
0x12ca   : > { %v15334_v51 = vpop.f32.mrf.mxu1  ;;  %v15351_v53 = vpop.f32.mrf.mxu0 }
0x12cc   : > { %v5964_v19 = vpop.f32.mrf.mxu1  ;;  %v6053_v38 = vpop.f32.mrf.mxu0 }
0x12cd   : > { %v6054_v54 = vadd.f32 %v6053_v38, %v5964_v19  ;;  %v14122_v19 = vld [vmem:[%s18477_s7 + $0x1] ss:$0 sm:$0xff] }
0x12ce   : > { %v15337_v55 = vpop.f32.mrf.mxu1  ;;  %v15354_v56 = vpop.f32.mrf.mxu0 }
0x12d0   : > { %v6136_v58 = vpop.f32.mrf.mxu1 }
0x12d1   : > { %15377 = vmatmul.mubr.msk.f32.vlgmr.msra.gmra.mxu0 %vm4613_vm7, %v6136_v58 }
0x12d2   : > { %v15361_v61 = vpop.f32.mrf.mxu1  ;;  %15379 = vmatprep.mubr.msk.f32.mxu0 %vm16257_vm0, %v18417_v0  ;;  %15399 = vmatpush3.msra.mxu0 %v14116_v57 }
0x12d3   : > { %15400 = vmatprep.subr.mxu0 %v18417_v0  ;;  %v14133_v61 = vld [vmem:[%s18477_s7 + $0x2] ss:$0 sm:$0xff] }
0x12d4   : > { %v6141_v6 = vpop.f32.mrf.mxu1  ;;  %15401 = vmatpush3.msra.mxu0 %v14115_v59  ;;  %v14120_v59 = vld [vmem:[%s18477_s7] ss:$0 sm:$0xff] }
0x12d5   : > { %15380 = vmatmul.mubr.msk.f32.gmra.mxu0 %vm4613_vm7, %v6141_v6  ;;  %15402 = vmatprep.subr.mxu0 %v18417_v0  ;;  %v14155_v6 = vld [vmem:[%s18477_s7 + $0x5] ss:$0 sm:$0xff] }
0x12d6   : > { %v15364_v62 = vpop.f32.mrf.mxu1  ;;  %15382 = vmatprep.mubr.msk.f32.mxu0 %vm16257_vm0, %v18417_v0  ;;  %15403 = vmatpush3.msra.mxu0 %v14114_v3  ;;  %v14141_v3 = vld [vmem:[%s18477_s7 + $0x3] ss:$0 sm:$0xff] }
0x12d7   : > { %15404 = vmatprep.subr.mxu0 %v18417_v0  ;;  %v14171_v62 = vld [vmem:[%s18477_s7 + $0x7] ss:$0 sm:$0xff] }
0x12d8   : > { %v6146_v13 = vpop.f32.mrf.mxu1  ;;  %15405 = vmatpush3.msra.mxu0 %v14113_v8  ;;  %v14163_v8 = vld [vmem:[%s18477_s7 + $0x6] ss:$0 sm:$0xff] }
0x12d9   : > { %15383 = vmatmul.mubr.msk.f32.gmra.mxu0 %vm4613_vm7, %v6146_v13  ;;  %15430 = vmatprep.subr.mxu0 %v18417_v0  ;;  %v14179_v13 = vld [vmem:[%s18477_s7 + $0x8] ss:$0 sm:$0xff]  ;;  %s18496_s7 = smov 103  }
0x12da   : > { %v15367_v15 = vpop.f32.mrf.mxu1  ;;  %15406 = vmatprep.mubr.msk.f32.mxu0 %vm16257_vm0, %v18417_v0 }
0x12dc   : > { %v6326_v17 = vpop.f32.mrf.mxu1 }
0x12dd   : > { %15407 = vmatmul.mubr.msk.f32.vlgmr.msra.gmra.mxu0 %vm4613_vm7, %v6326_v17 }
0x12de   : > { %v15391_v21 = vpop.f32.mrf.mxu1  ;;  %15409 = vmatprep.mubr.msk.f32.mxu0 %vm16257_vm0, %v18417_v0 }
0x12e0   : > { %v6331_v22 = vpop.f32.mrf.mxu1 }
0x12e1   : > { %15410 = vmatmul.mubr.msk.f32.gmra.mxu0 %vm4613_vm7, %v6331_v22 }
0x12e2   : > { %v15394_v10 = vpop.f32.mrf.mxu1  ;;  %15412 = vmatprep.mubr.msk.f32.mxu0 %vm16257_vm0, %v18417_v0 }
0x12e4   : > { %v6336_v24 = vpop.f32.mrf.mxu1 }
0x12e5   : > { %15413 = vmatmul.mubr.msk.f32.gmra.mxu0 %vm4613_vm7, %v6336_v24 }
0x12e6   : > { %v15397_v25 = vpop.f32.mrf.mxu1  ;;  %15436 = vmatprep.mubr.msk.f32.mxu0 %vm16257_vm0, %v18417_v0 }
0x1391   : > { %v6230_v18 = vpop.f32.mrf.mxu0 }
0x1392   : > { %v6244_v42 = vadd.f32 %v6230_v18, %v17208_v34 }
0x1393   : > { %v15378_v26 = vpop.f32.mrf.mxu0 }
0x1395   : > { %v6235_v29 = vpop.f32.mrf.mxu0 }
0x1396   : > { %v6245_v46 = vadd.f32 %v6235_v29, %v6049_v36 }
0x1397   : > { %v15381_v31 = vpop.f32.mrf.mxu0 }
0x1399   : > { %v6240_v32 = vpop.f32.mrf.mxu0 }
0x139a   : > { %v6246_v44 = vadd.f32 %v6240_v32, %v6054_v54 }
0x139b   : > { %v15384_v35 = vpop.f32.mrf.mxu0 }
0x139d   : > { %v6420_v37 = vpop.f32.mrf.mxu0 }
0x139e   : > { %v6434_v47 = vadd.f32 %v6420_v37, %v6244_v42 }
0x139f   : > { %v15408_v28 = vpop.f32.mrf.mxu0 }
0x13a0   : > { %v6455_v36 = vadd.f32 %v6443_v50, %v6434_v47 }
0x13a1   : > { %v6425_v39 = vpop.f32.mrf.mxu0 }
0x13a2   : > { %v6435_v40 = vadd.f32 %v6425_v39, %v6245_v46  ;;  %v17245_v34 = vmax.f32 %v6455_v36, 0.0 }
0x13a3   : > { %v15411_v20 = vpop.f32.mrf.mxu0 }
0x13a4   : > { %v6456_v27 = vadd.f32 %v6448_v7, %v6435_v40 }
0x13a5   : > { %v6430_v45 = vpop.f32.mrf.mxu0 }
0x13a6   : > { %v17237_v48 = vmax.f32 %v6456_v27, 0.0  ;;  %v6436_v49 = vadd.f32 %v6430_v45, %v6246_v44 }
0x13a7   : > { %v15414_v63 = vpop.f32.mrf.mxu0 }
0x13a8   : > { %v6457_v51 = vadd.f32 %v6453_v60, %v6436_v49  ;;  %6465 = vrot.lane.b32.xlu0 %v17237_v48, %s18413_s23 }
0x13aa   : > { %v17241_v53 = vmax.f32 %v6457_v51, 0.0 }
0x13ac   : > { %6468 = vrot.lane.b32.xlu1 %v17241_v53, %s18413_s23 }
0x13b0   : > { %6462 = vrot.lane.b32.xlu1 %v17245_v34, %s18413_s23 }
0x13b4   : > { %6502 = vrot.lane.b32.xlu1 %v14122_v19, %s16284_s22 }
0x141a   : > { %v6466_v55 = vpop.permute.xlu0 %6465 }
0x141b   : > { %v6467_v57 = vsel %vm6461_vm8, %v6466_v55, %v17237_v48 }
0x141e   : > { %v6469_v38 = vpop.permute.xlu1 %6468 }
0x141f   : > { %v6470_v54 = vsel %vm6461_vm8, %v6469_v38, %v17241_v53 }
0x1420   : > { %6475 = vrot.lane.b32.xlu0 %v6470_v54, %s18413_s23 }
0x1422   : > { %v6463_v56 = vpop.permute.xlu1 %6462 }
0x1423   : > { %v6464_v58 = vsel %vm6461_vm8, %v6463_v56, %v17245_v34 }
0x1424   : > { %6473 = vrot.lane.b32.xlu0 %v6467_v57, %s18413_s23  ;;  %6471 = vrot.lane.b32.xlu1 %v6464_v58, %s18413_s23  ;;  %s16287_s23 = smov 124  }
0x1426   : > { %v17268_v15 = vpop.permute.xlu1 %6502 }
0x1428   : > { %6486 = vrot.lane.b32.xlu0 %v14120_v59, %s16285_s18  ;;  %6722 = vrot.lane.b32.xlu1 %v14133_v61, %s16286_s26 }
0x142c   : > { %6843 = vrot.lane.b32.xlu0 %v14141_v3, %s18478_s16  ;;  %7060 = vrot.lane.b32.xlu1 %v14155_v6, %s18421_s15  ;;  %s16288_s16 = smov 125  }
0x1430   : > { %7181 = vrot.lane.b32.xlu0 %v14163_v8, %s16285_s18  ;;  %7302 = vrot.lane.b32.xlu1 %v14171_v62, %s16284_s22  ;;  %s18423_s18 = smov 123   ;;  %s18479_s22 = smov 127  }
0x1434   : > { %7423 = vrot.lane.b32.xlu0 %v14179_v13, %s16286_s26  ;;  %s18480_s26 = sld [smem:[#allocation10_spill]] }
0x143a   : > { %v17337_v58 = vld [vmem:[%s18480_s26 + $0x8] sm:$0xff]  ;;  %v17343_v61 = vld [vmem:[%s18480_s26] sm:$0xff]  ;;  %v17346_v3 = vld [vmem:[%s18480_s26 + $0x10] sm:$0xff] }
0x1492   : > { %v6476_v17 = vpop.permute.xlu0 %6475 }
0x1493   : > { %v6479_v21 = vsel %vm6461_vm8, %v6476_v17, %v17241_v53 }
0x1494   : > { %v6507_v22 = vmul.f32 %v17268_v15, %v6479_v21 }
0x1496   : > { %v6474_v10 = vpop.permute.xlu0 %6473  ;;  %6519 = vrot.lane.b32.xlu1 %v6507_v22, %s16287_s23  ;;  %v6472_v24 = vpop.permute.xlu1 %6471 }
0x1497   : > { %v6478_v25 = vsel %vm6461_vm8, %v6474_v10, %v17237_v48  ;;  %v6477_v18 = vsel %vm6461_vm8, %v6472_v24, %v17245_v34 }
0x1498   : > { %v6506_v26 = vmul.f32 %v17268_v15, %v6478_v25  ;;  %v6505_v29 = vmul.f32 %v17268_v15, %v6477_v18 }
0x149a   : > { %v17280_v31 = vpop.permute.xlu0 %6486  ;;  %6517 = vrot.lane.b32.xlu0 %v6506_v26, %s16287_s23  ;;  %6515 = vrot.lane.b32.xlu1 %v6505_v29, %s16287_s23  ;;  %v17286_v37 = vpop.permute.xlu1 %6722 }
0x149b   : > { %v6491_v32 = vmul.f32 %v17280_v31, %v6479_v21  ;;  %v6490_v35 = vmul.f32 %v17280_v31, %v6478_v25  ;;  %v6489_v28 = vmul.f32 %v17280_v31, %v6477_v18  ;;  %v6727_v46 = vmul.f32 %v17286_v37, %v6479_v21 }
0x149c   : > { %v6726_v60 = vmul.f32 %v17286_v37, %v6478_v25  ;;  %v6725_v39 = vmul.f32 %v17286_v37, %v6477_v18 }
0x149e   : > { %6621 = vrot.lane.b32.xlu0 %v6491_v32, %s16288_s16  ;;  %6619 = vrot.lane.b32.xlu1 %v6490_v35, %s16288_s16  ;;  %v17296_v7 = vpop.permute.xlu0 %6843  ;;  %v17302_v42 = vpop.permute.xlu1 %7060 }
0x149f   : > { %v6848_v40 = vmul.f32 %v17296_v7, %v6479_v21  ;;  %v6847_v20 = vmul.f32 %v17296_v7, %v6478_v25  ;;  %v6846_v44 = vmul.f32 %v17296_v7, %v6477_v18  ;;  %v7065_v27 = vmul.f32 %v17302_v42, %v6479_v21 }
0x14a0   : > { %v7064_v49 = vmul.f32 %v17302_v42, %v6478_v25  ;;  %v7063_v63 = vmul.f32 %v17302_v42, %v6477_v18 }
0x14a2   : > { %6617 = vrot.lane.b32.xlu1 %v6489_v28, %s16288_s16  ;;  %6739 = vrot.lane.b32.xlu0 %v6727_v46, %s18423_s18  ;;  %v17308_v45 = vpop.permute.xlu0 %7181  ;;  %v17318_v51 = vpop.permute.xlu1 %7302 }
0x14a3   : > { %v7186_v47 = vmul.f32 %v17308_v45, %v6479_v21  ;;  %v7185_v50 = vmul.f32 %v17308_v45, %v6478_v25  ;;  %v7184_v36 = vmul.f32 %v17308_v45, %v6477_v18  ;;  %v7307_v19 = vmul.f32 %v17318_v51, %v6479_v21 }
0x14a4   : > { %v7306_v55 = vmul.f32 %v17318_v51, %v6478_v25  ;;  %v7305_v57 = vmul.f32 %v17318_v51, %v6477_v18 }
0x14a6   : > { %6737 = vrot.lane.b32.xlu0 %v6726_v60, %s18423_s18  ;;  %6735 = vrot.lane.b32.xlu1 %v6725_v39, %s18423_s18  ;;  %v17324_v38 = vpop.permute.xlu0 %7423 }
0x14a7   : > { %v7428_v54 = vmul.f32 %v17324_v38, %v6479_v21  ;;  %v7427_v56 = vmul.f32 %v17324_v38, %v6478_v25  ;;  %v7426_v59 = vmul.f32 %v17324_v38, %v6477_v18 }
0x14aa   : > { %6860 = vrot.lane.b32.xlu0 %v6848_v40, %s18415_s10  ;;  %6858 = vrot.lane.b32.xlu1 %v6847_v20, %s18415_s10 }
0x14ae   : > { %6856 = vrot.lane.b32.xlu0 %v6846_v44, %s18415_s10  ;;  %7077 = vrot.lane.b32.xlu1 %v7065_v27, %s18479_s22  ;;  %s18481_s10 = sld [smem:[#allocation9_spill]] }
0x14b2   : > { %7198 = vrot.lane.b32.xlu1 %v7186_v47, %s16288_s16  ;;  %7075 = vrot.lane.b32.xlu0 %v7064_v49, %s18479_s22 }
0x14b4   : > { %v14123_v13 = vld [vmem:[%s18481_s10 + $0x18] sm:$0xff]  ;;  %v14124_v22 = vld [vmem:[%s18481_s10 + $0x20] sm:$0xff]  ;;  %v14125_v18 = vld [vmem:[%s18481_s10 + $0x28] sm:$0xff] }
0x14b5   : > { %v6492_v10 = vld [vmem:[%s18481_s10] sm:$0xff]  ;;  %v6493_v26 = vld [vmem:[%s18481_s10 + $0x8] sm:$0xff]  ;;  %v14134_v35 = vld [vmem:[%s18481_s10 + $0x30] sm:$0xff] }
0x14b6   : > { %7196 = vrot.lane.b32.xlu1 %v7185_v50, %s16288_s16  ;;  %7073 = vrot.lane.b32.xlu0 %v7063_v63, %s18479_s22  ;;  %v6494_v28 = vld [vmem:[%s18481_s10 + $0x10] sm:$0xff]  ;;  %v14135_v39 = vld [vmem:[%s18481_s10 + $0x38] sm:$0xff] }
0x14b7   : > { %v14136_v44 = vld [vmem:[%s18481_s10 + $0x40] sm:$0xff]  ;;  %v14143_v47 = vld [vmem:[%s18481_s10 + $0x50] sm:$0xff]  ;;  %v14144_v63 = vld [vmem:[%s18481_s10 + $0x58] sm:$0xff] }
0x14ba   : > { %7194 = vrot.lane.b32.xlu0 %v7184_v36, %s16288_s16  ;;  %7319 = vrot.lane.b32.xlu1 %v7307_v19, %s16287_s23  ;;  %v14149_v36 = vld [vmem:[%s18481_s10 + $0x68] sm:$0xff] }
0x14be   : > { %7440 = vrot.lane.b32.xlu1 %v7428_v54, %s18423_s18  ;;  %7317 = vrot.lane.b32.xlu0 %v7306_v55, %s16287_s23  ;;  %v14156_v55 = vld [vmem:[%s18481_s10 + $0x78] sm:$0xff] }
0x14c2   : > { %7438 = vrot.lane.b32.xlu1 %v7427_v56, %s18423_s18  ;;  %7315 = vrot.lane.b32.xlu0 %v7305_v57, %s16287_s23  ;;  %v14150_v56 = vld [vmem:[%s18481_s10 + $0x70] sm:$0xff] }
0x14c6   : > { %7547 = vperm.xlu1 %16133, %v17337_v58   ;;  %7436 = vrot.lane.b32.xlu0 %v7426_v59, %s18423_s18 }
0x14ca   : > { %7542 = vperm.xlu1 %16133, %v17343_v61   ;;  %7552 = vperm.xlu0 %16134, %v17346_v3  }
0x14ce   : > { %16136 = vset.pattern.permute.xlu0 %v18419_v14  ;;  %16135 = vset.pattern.permute.xlu1 %v18419_v14 }
0x1508   : > { %v6520_v6 = vpop.permute.xlu1 %6519 }
0x1509   : > { %15416 = vmatpush3.msra.mxu1 %v6520_v6  ;;  %v14157_v6 = vld [vmem:[%s18481_s10 + $0x80] sm:$0xff] }
0x150a   : > { %15417 = vmatprep.subr.mxu1 %v18417_v0 }
0x150c   : > { %v6518_v8 = vpop.permute.xlu0 %6517  ;;  %v6516_v62 = vpop.permute.xlu1 %6515 }
0x150d   : > { %15418 = vmatpush3.msra.mxu1 %v6518_v8  ;;  %v14164_v8 = vld [vmem:[%s18481_s10 + $0x90] sm:$0xff] }
0x150e   : > { %15419 = vmatprep.subr.mxu1 %v18417_v0 }
0x150f   : > { %15420 = vmatpush3.msra.mxu1 %v6516_v62 }
0x1510   : > { %v6622_v17 = vpop.permute.xlu0 %6621  ;;  %15422 = vmatmul.mubr.msk.f32.vlgmr.msra.gmra.mxu1 %vm6524_vm9, %v14123_v13  ;;  %v6620_v21 = vpop.permute.xlu1 %6619  ;;  %15445 = vmatprep.subr.mxu1 %v18417_v0  ;;  %v14158_v13 = vld [vmem:[%s18481_s10 + $0x88] sm:$0xff] }
0x1511   : > { %15431 = vmatpush3.msra.mxu0 %v6622_v17  ;;  %15424 = vmatprep.mubr.msk.f32.mxu1 %vm16257_vm0, %v18417_v0 }
0x1512   : > { %15432 = vmatprep.subr.mxu0 %v18417_v0 }
0x1513   : > { %15433 = vmatpush3.msra.mxu0 %v6620_v21  ;;  %v14165_v21 = vld [vmem:[%s18481_s10 + $0x98] sm:$0xff] }
0x1514   : > { %v6740_v24 = vpop.permute.xlu0 %6739  ;;  %15425 = vmatmul.mubr.msk.f32.gmra.mxu1 %vm6524_vm9, %v14124_v22  ;;  %15434 = vmatprep.subr.mxu0 %v18417_v0  ;;  %v6618_v25 = vpop.permute.xlu1 %6617 }
0x1515   : > { %15435 = vmatpush3.msra.mxu0 %v6618_v25  ;;  %15446 = vmatpush3.msra.mxu1 %v6740_v24  ;;  %v14166_v24 = vld [vmem:[%s18481_s10 + $0xa0] sm:$0xff]  ;;  %v14173_v25 = vld [vmem:[%s18481_s10 + $0xb0] sm:$0xff] }
0x1516   : > { %15437 = vmatmul.mubr.msk.f32.vlgmr.msra.gmra.mxu0 %vm6524_vm9, %v6492_v10  ;;  %15427 = vmatprep.mubr.msk.f32.mxu1 %vm16257_vm0, %v18417_v0  ;;  %v14172_v10 = vld [vmem:[%s18481_s10 + $0xa8] sm:$0xff] }
0x1517   : > { %15447 = vmatprep.subr.mxu1 %v18417_v0  ;;  %15439 = vmatprep.mubr.msk.f32.mxu0 %vm16257_vm0, %v18417_v0 }
0x1518   : > { %v6738_v29 = vpop.permute.xlu0 %6737  ;;  %15428 = vmatmul.mubr.msk.f32.gmra.mxu1 %vm6524_vm9, %v14125_v18  ;;  %v6736_v32 = vpop.permute.xlu1 %6735  ;;  %15460 = vmatprep.subr.mxu0 %v18417_v0  ;;  %v14180_v18 = vld [vmem:[%s18481_s10 + $0xc0] sm:$0xff] }
0x1519   : > { %15448 = vmatpush3.msra.mxu1 %v6738_v29  ;;  %15451 = vmatprep.mubr.msk.f32.mxu1 %vm16257_vm0, %v18417_v0  ;;  %v14181_v29 = vld [vmem:[%s18481_s10 + $0xc8] sm:$0xff] }
0x151a   : > { %15440 = vmatmul.mubr.msk.f32.gmra.mxu0 %vm6524_vm9, %v6493_v26  ;;  %15449 = vmatprep.subr.mxu1 %v18417_v0  ;;  %v14174_v26 = vld [vmem:[%s18481_s10 + $0xb8] sm:$0xff] }
0x151b   : > { %15450 = vmatpush3.msra.mxu1 %v6736_v32  ;;  %15442 = vmatprep.mubr.msk.f32.mxu0 %vm16257_vm0, %v18417_v0  ;;  %v14182_v32 = vld [vmem:[%s18481_s10 + $0xd0] sm:$0xff] }
0x151c   : > { %v6861_v46 = vpop.permute.xlu0 %6860  ;;  %15452 = vmatmul.mubr.msk.f32.vlgmr.msra.gmra.mxu1 %vm6524_vm9, %v14134_v35  ;;  %15475 = vmatprep.subr.mxu1 %v18417_v0  ;;  %v6859_v60 = vpop.permute.xlu1 %6858 }
0x151d   : > { %15461 = vmatpush3.msra.mxu0 %v6861_v46  ;;  %15476 = vmatpush3.msra.mxu1 %v17241_v53  ;;  %v14142_v53 = vld [vmem:[%s18481_s10 + $0x48] sm:$0xff] }
0x151e   : > { %15443 = vmatmul.mubr.msk.f32.gmra.mxu0 %vm6524_vm9, %v6494_v28  ;;  %15462 = vmatprep.subr.mxu0 %v18417_v0 }
0x151f   : > { %15477 = vmatprep.subr.mxu1 %v18417_v0  ;;  %15454 = vmatprep.mubr.msk.f32.mxu1 %vm16257_vm0, %v18417_v0 }
0x1520   : > { %15463 = vmatpush3.msra.mxu0 %v6859_v60  ;;  %15478 = vmatpush3.msra.mxu1 %v17237_v48  ;;  %v6857_v40 = vpop.permute.xlu0 %6856  ;;  %v7078_v20 = vpop.permute.xlu1 %7077 }
0x1521   : > { %15455 = vmatmul.mubr.msk.f32.gmra.mxu1 %vm6524_vm9, %v14135_v39  ;;  %15464 = vmatprep.subr.mxu0 %v18417_v0 }
0x1522   : > { %15479 = vmatprep.subr.mxu1 %v18417_v0  ;;  %15465 = vmatpush3.msra.mxu0 %v6857_v40 }
0x1523   : > { %15466 = vmatprep.mubr.msk.f32.mxu0 %vm16257_vm0, %v18417_v0  ;;  %15480 = vmatpush3.msra.mxu1 %v17245_v34  ;;  %v14148_v34 = vld [vmem:[%s18481_s10 + $0x60] sm:$0xff]  ;;  %s18499_s10 = smov 120  }
0x1524   : > { %15467 = vmatmul.mubr.msk.f32.vlgmr.msra.gmra.mxu0 %vm6524_vm9, %v14142_v53  ;;  %15490 = vmatprep.subr.mxu0 %v18417_v0  ;;  %v7076_v48 = vpop.permute.xlu0 %7075  ;;  %v7199_v27 = vpop.permute.xlu1 %7198 }
0x1525   : > { %15457 = vmatprep.mubr.msk.f32.mxu1 %vm16257_vm0, %v18417_v0  ;;  %15491 = vmatpush3.msra.mxu0 %v7078_v20 }
0x1526   : > { %15458 = vmatmul.mubr.msk.f32.gmra.mxu1 %vm6524_vm9, %v14136_v44  ;;  %15492 = vmatprep.subr.mxu0 %v18417_v0 }
0x1527   : > { %15469 = vmatprep.mubr.msk.f32.mxu0 %vm16257_vm0, %v18417_v0  ;;  %15493 = vmatpush3.msra.mxu0 %v7076_v48 }
0x1528   : > { %15470 = vmatmul.mubr.msk.f32.gmra.mxu0 %vm6524_vm9, %v14143_v47  ;;  %15481 = vmatprep.mubr.msk.f32.mxu1 %vm16257_vm0, %v18417_v0  ;;  %v7074_v49 = vpop.permute.xlu0 %7073  ;;  %v7197_v50 = vpop.permute.xlu1 %7196 }
0x1529   : > { %15505 = vmatprep.subr.mxu1 %v18417_v0  ;;  %15494 = vmatprep.subr.mxu0 %v18417_v0 }
0x152a   : > { %15482 = vmatmul.mubr.msk.f32.vlgmr.msra.gmra.mxu1 %vm6524_vm9, %v14148_v34  ;;  %15472 = vmatprep.mubr.msk.f32.mxu0 %vm16257_vm0, %v18417_v0 }
0x152b   : > { %15506 = vmatpush3.msra.mxu1 %v7199_v27  ;;  %15495 = vmatpush3.msra.mxu0 %v7074_v49 }
0x152c   : > { %15507 = vmatprep.subr.mxu1 %v18417_v0  ;;  %15473 = vmatmul.mubr.msk.f32.gmra.mxu0 %vm6524_vm9, %v14144_v63  ;;  %v7195_v19 = vpop.permute.xlu0 %7194  ;;  %v7320_v54 = vpop.permute.xlu1 %7319 }
0x152d   : > { %15508 = vmatpush3.msra.mxu1 %v7197_v50  ;;  %15484 = vmatprep.mubr.msk.f32.mxu1 %vm16257_vm0, %v18417_v0 }
0x152e   : > { %15485 = vmatmul.mubr.msk.f32.gmra.mxu1 %vm6524_vm9, %v14149_v36  ;;  %15509 = vmatprep.subr.mxu1 %v18417_v0 }
0x152f   : > { %15496 = vmatprep.mubr.msk.f32.mxu0 %vm16257_vm0, %v18417_v0  ;;  %15510 = vmatpush3.msra.mxu1 %v7195_v19 }
0x1530   : > { %15520 = vmatprep.subr.mxu0 %v18417_v0  ;;  %15497 = vmatmul.mubr.msk.f32.vlgmr.msra.gmra.mxu0 %vm6524_vm9, %v14156_v55  ;;  %v7318_v57 = vpop.permute.xlu0 %7317  ;;  %v7441_v59 = vpop.permute.xlu1 %7440 }
0x1531   : > { %15521 = vmatpush3.msra.mxu0 %v7320_v54  ;;  %15487 = vmatprep.mubr.msk.f32.mxu1 %vm16257_vm0, %v18417_v0 }
0x1532   : > { %15488 = vmatmul.mubr.msk.f32.gmra.mxu1 %vm6524_vm9, %v14150_v56  ;;  %15522 = vmatprep.subr.mxu0 %v18417_v0 }
0x1533   : > { %15499 = vmatprep.mubr.msk.f32.mxu0 %vm16257_vm0, %v18417_v0  ;;  %15523 = vmatpush3.msra.mxu0 %v7318_v57 }
0x1534   : > { %15500 = vmatmul.mubr.msk.f32.gmra.mxu0 %vm6524_vm9, %v14157_v6  ;;  %15511 = vmatprep.mubr.msk.f32.mxu1 %vm16257_vm0, %v18417_v0  ;;  %v7316_v62 = vpop.permute.xlu0 %7315  ;;  %v7439_v17 = vpop.permute.xlu1 %7438 }
0x1535   : > { %15535 = vmatprep.subr.mxu1 %v18417_v0  ;;  %15524 = vmatprep.subr.mxu0 %v18417_v0 }
0x1536   : > { %15512 = vmatmul.mubr.msk.f32.vlgmr.msra.gmra.mxu1 %vm6524_vm9, %v14164_v8  ;;  %15502 = vmatprep.mubr.msk.f32.mxu0 %vm16257_vm0, %v18417_v0 }
0x1537   : > { %15536 = vmatpush3.msra.mxu1 %v7441_v59  ;;  %15525 = vmatpush3.msra.mxu0 %v7316_v62 }
0x1538   : > { %15537 = vmatprep.subr.mxu1 %v18417_v0  ;;  %15503 = vmatmul.mubr.msk.f32.gmra.mxu0 %vm6524_vm9, %v14158_v13  ;;  %v7437_v22 = vpop.permute.xlu0 %7436 }
0x1539   : > { %15538 = vmatpush3.msra.mxu1 %v7439_v17  ;;  %15514 = vmatprep.mubr.msk.f32.mxu1 %vm16257_vm0, %v18417_v0 }
0x153a   : > { %15515 = vmatmul.mubr.msk.f32.gmra.mxu1 %vm6524_vm9, %v14165_v21  ;;  %15539 = vmatprep.subr.mxu1 %v18417_v0 }
0x153b   : > { %15526 = vmatprep.mubr.msk.f32.mxu0 %vm16257_vm0, %v18417_v0  ;;  %15540 = vmatpush3.msra.mxu1 %v7437_v22 }
0x153c   : > { %15527 = vmatmul.mubr.msk.f32.vlgmr.msra.gmra.mxu0 %vm6524_vm9, %v14172_v10  ;;  %15517 = vmatprep.mubr.msk.f32.mxu1 %vm16257_vm0, %v18417_v0 }
0x153d   : > { %15529 = vmatprep.mubr.msk.f32.mxu0 %vm16257_vm0, %v18417_v0  ;;  %15550 = vmatprep.subr.mxu0 %v18417_v0 }
0x153e   : > { %15518 = vmatmul.mubr.msk.f32.gmra.mxu1 %vm6524_vm9, %v14166_v24  ;;  %15565 = vmatprep.subr.mxu1 %v18417_v0 }
0x153f   : > { %15541 = vmatprep.mubr.msk.f32.mxu1 %vm16257_vm0, %v18417_v0 }
0x1540   : > { %15530 = vmatmul.mubr.msk.f32.gmra.mxu0 %vm6524_vm9, %v14173_v25 }
0x1541   : > { %15532 = vmatprep.mubr.msk.f32.mxu0 %vm16257_vm0, %v18417_v0 }
0x1542   : > { %15542 = vmatmul.mubr.msk.f32.vlgmr.msra.gmra.mxu1 %vm6524_vm9, %v14180_v18 }
0x1543   : > { %15544 = vmatprep.mubr.msk.f32.mxu1 %vm16257_vm0, %v18417_v0 }
0x1544   : > { %15533 = vmatmul.mubr.msk.f32.gmra.mxu0 %vm6524_vm9, %v14174_v26 }
0x1545   : > { %15556 = vmatprep.mubr.msk.f32.mxu0 %vm16257_vm0, %v18417_v0 }
0x1546   : > { %15545 = vmatmul.mubr.msk.f32.gmra.mxu1 %vm6524_vm9, %v14181_v29 }
0x1547   : > { %15547 = vmatprep.mubr.msk.f32.mxu1 %vm16257_vm0, %v18417_v0 }
0x154a   : > { %15548 = vmatmul.mubr.msk.f32.gmra.mxu1 %vm6524_vm9, %v14182_v32 }
0x154b   : > { %15571 = vmatprep.mubr.msk.f32.mxu1 %vm16257_vm0, %v18417_v0 }
0x15d0   : > { %v6600_v35 = vpop.f32.mrf.mxu1 }
0x15d2   : > { %v15423_v28 = vpop.f32.mrf.mxu1 }
0x15d4   : > { %v6605_v46 = vpop.f32.mrf.mxu1 }
0x15d6   : > { %v15426_v60 = vpop.f32.mrf.mxu1  ;;  %v6701_v39 = vpop.f32.mrf.mxu0 }
0x15d8   : > { %v6610_v40 = vpop.f32.mrf.mxu1  ;;  %v15438_v20 = vpop.f32.mrf.mxu0 }
0x15da   : > { %v15429_v53 = vpop.f32.mrf.mxu1  ;;  %v6706_v44 = vpop.f32.mrf.mxu0 }
0x15db   : > { %v6707_v28 = vadd.f32 %v6706_v44, %v6605_v46 }
0x15dc   : > { %v15441_v48 = vpop.f32.mrf.mxu0  ;;  %v6819_v27 = vpop.f32.mrf.mxu1 }
0x15de   : > { %v6711_v47 = vpop.f32.mrf.mxu0  ;;  %v15453_v34 = vpop.f32.mrf.mxu1 }
0x15e0   : > { %v15444_v49 = vpop.f32.mrf.mxu0 }
0x15e1   : > { %v6824_v50 = vpop.f32.mrf.mxu1  ;;  %v6702_v49 = vadd.f32 %v6701_v39, %v6600_v35 }
0x15e2   : > { %v6834_v53 = vadd.f32 %v6824_v50, %v6707_v28 }
0x15e3   : > { %v15456_v63 = vpop.f32.mrf.mxu1 }
0x15e4   : > { %v6940_v36 = vpop.f32.mrf.mxu0  ;;  %v6712_v63 = vadd.f32 %v6711_v47, %v6610_v40 }
0x15e6   : > { %v6829_v19 = vpop.f32.mrf.mxu1  ;;  %v15468_v54 = vpop.f32.mrf.mxu0 }
0x15e8   : > { %v15459_v55 = vpop.f32.mrf.mxu1  ;;  %v6945_v56 = vpop.f32.mrf.mxu0 }
0x15e9   : > { %v6955_v54 = vadd.f32 %v6945_v56, %v6834_v53  ;;  %v7548_v53 = vpop.permute.xlu1 %7547 }
0x15ea   : > { %v15471_v57 = vpop.f32.mrf.mxu0  ;;  %v7036_v59 = vpop.f32.mrf.mxu1 }
0x15ec   : > { %v6950_v6 = vpop.f32.mrf.mxu0  ;;  %v15483_v8 = vpop.f32.mrf.mxu1 }
0x15ed   : > { %v6833_v8 = vadd.f32 %v6819_v27, %v6702_v49 }
0x15ee   : > { %v15474_v62 = vpop.f32.mrf.mxu0  ;;  %v7041_v13 = vpop.f32.mrf.mxu1 }
0x15ef   : > { %v6835_v62 = vadd.f32 %v6829_v19, %v6712_v63 }
0x15f0   : > { %v15486_v17 = vpop.f32.mrf.mxu1  ;;  %v7157_v21 = vpop.f32.mrf.mxu0 }
0x15f1   : > { %v7051_v17 = vadd.f32 %v7041_v13, %v6955_v54  ;;  %v6956_v0 = vadd.f32 %v6950_v6, %v6835_v62 }
0x15f2   : > { %v7046_v22 = vpop.f32.mrf.mxu1  ;;  %v15498_v10 = vpop.f32.mrf.mxu0 }
0x15f4   : > { %v15489_v24 = vpop.f32.mrf.mxu1  ;;  %v7162_v25 = vpop.f32.mrf.mxu0 }
0x15f5   : > { %v7172_v14 = vadd.f32 %v7162_v25, %v7051_v17 }
0x15f6   : > { %v15501_v18 = vpop.f32.mrf.mxu0  ;;  %v7278_v26 = vpop.f32.mrf.mxu1 }
0x15f7   : > { %v6954_v18 = vadd.f32 %v6940_v36, %v6833_v8 }
0x15f8   : > { %v7167_v29 = vpop.f32.mrf.mxu0  ;;  %v15513_v32 = vpop.f32.mrf.mxu1 }
0x15f9   : > { %v7050_v44 = vadd.f32 %v7036_v59, %v6954_v18 }
0x15fa   : > { %v15504_v60 = vpop.f32.mrf.mxu0  ;;  %v7283_v20 = vpop.f32.mrf.mxu1 }
0x15fb   : > { %v7052_v60 = vadd.f32 %v7046_v22, %v6956_v0  ;;  %v7293_v50 = vadd.f32 %v7283_v20, %v7172_v14  ;;  %v7171_v35 = vadd.f32 %v7157_v21, %v7050_v44  ;;  %v7553_v22 = vpop.permute.xlu0 %7552  ;;  %v7543_v20 = vpop.permute.xlu1 %7542 }
0x15fc   : > { %v15516_v48 = vpop.f32.mrf.mxu1  ;;  %v7399_v34 = vpop.f32.mrf.mxu0 }
0x15fd   : > { %v7173_v39 = vadd.f32 %v7167_v29, %v7052_v60  ;;  %v7292_v27 = vadd.f32 %v7278_v26, %v7171_v35 }
0x15fe   : > { %v7288_v55 = vpop.f32.mrf.mxu1  ;;  %v15528_v57 = vpop.f32.mrf.mxu0 }
0x15ff   : > { %v7294_v19 = vadd.f32 %v7288_v55, %v7173_v39  ;;  %v7413_v36 = vadd.f32 %v7399_v34, %v7292_v27 }
0x1600   : > { %v15519_v10 = vpop.f32.mrf.mxu1  ;;  %v7404_v24 = vpop.f32.mrf.mxu0 }
0x1601   : > { %v7414_v40 = vadd.f32 %v7404_v24, %v7293_v50 }
0x1602   : > { %v15531_v32 = vpop.f32.mrf.mxu0  ;;  %v7520_v46 = vpop.f32.mrf.mxu1 }
0x1603   : > { %v7534_v59 = vadd.f32 %v7520_v46, %v7413_v36 }
0x1604   : > { %v7409_v28 = vpop.f32.mrf.mxu0  ;;  %v15543_v48 = vpop.f32.mrf.mxu1 }
0x1605   : > { %v7415_v6 = vadd.f32 %v7409_v28, %v7294_v19  ;;  %v17498_v54 = vadd.f32 %v7543_v20, %v7534_v59 }
0x1606   : > { %v7525_v47 = vpop.f32.mrf.mxu1  ;;  %v15534_v56 = vpop.f32.mrf.mxu0 }
0x1607   : > { %v7535_v13 = vadd.f32 %v7525_v47, %v7414_v40  ;;  %v7558_v62 = vsel %vm1317_vm3, %v17498_v54, 0.0  ;;  %v7567_v17 = vmul.f32 %v17498_v54, %v17498_v54 }
0x1608   : > { %v15546_v49 = vpop.f32.mrf.mxu1 }
0x1609   : > { %v17490_v25 = vadd.f32 %v7548_v53, %v7535_v13  ;;  %v7570_v10 = vsel %vm1317_vm3, %v7567_v17, 0.0 }
0x160a   : > { %v7530_v63 = vpop.f32.mrf.mxu1 }
0x160b   : > { %v7536_v0 = vadd.f32 %v7530_v63, %v7415_v6  ;;  %v7561_v14 = vsel %vm1317_vm3, %v17490_v25, 0.0  ;;  %v7568_v21 = vmul.f32 %v17490_v25, %v17490_v25 }
0x160c   : > { %v15549_v29 = vpop.f32.mrf.mxu1  ;;  %7562 = vadd.xlane.f32.xlu0 %v7561_v14 }
0x160d   : > { %v17496_v26 = vadd.f32 %v7553_v22, %v7536_v0  ;;  %v7573_v55 = vsel %vm1317_vm3, %v7568_v21, 0.0 }
0x160f   : > { %v7564_v34 = vsel %vm1317_vm3, %v17496_v26, 0.0  ;;  %v7569_v57 = vmul.f32 %v17496_v26, %v17496_v26 }
0x1610   : > { %7565 = vadd.xlane.f32.xlu1 %v7564_v34  ;;  %7574 = vadd.xlane.f32.xlu0 %v7573_v55 }
0x1611   : > { %v7576_v8 = vsel %vm1317_vm3, %v7569_v57, 0.0 }
0x1614   : > { %7577 = vadd.xlane.f32.xlu0 %v7576_v8  ;;  %7559 = vadd.xlane.f32.xlu1 %v7558_v62 }
0x1618   : > { %7571 = vadd.xlane.f32.xlu0 %v7570_v10 }
0x1695   : > { %v7563_v24 = vpop.xlane.xlu0 %7562 }
0x1696   : > { %v7589_v46 = vrot.slane %v7563_v24, 4  ;;  %v7579_v35 = vsel %vm1218_vm1, %v7563_v24, 0.0 }
0x1699   : > { %v7575_v18 = vpop.xlane.xlu0 %7574  ;;  %v7566_v32 = vpop.xlane.xlu1 %7565 }
0x169a   : > { %v7590_v44 = vrot.slane %v7566_v32, 4  ;;  %v7612_v40 = vrot.slane %v7575_v18, 4  ;;  %v7602_v6 = vsel %vm1218_vm1, %v7575_v18, 0.0 }
0x169c   : > { %v7591_v60 = vsel %vm1218_vm1, %v7589_v46, %v7590_v44  ;;  %v7594_v50 = vsel %vm1218_vm1, %v7590_v44, 0.0 }
0x169d   : > { %v7595_v28 = vadd.f32 %v7594_v50, %v7591_v60  ;;  %v7578_v48 = vpop.xlane.xlu0 %7577  ;;  %v7560_v39 = vpop.xlane.xlu1 %7559 }
0x169e   : > { %v7613_v47 = vrot.slane %v7578_v48, 4  ;;  %v7580_v56 = vadd.f32 %v7579_v35, %v7560_v39 }
0x169f   : > { %v7596_v27 = vrot.slane %v7595_v28, 4 }
0x16a0   : > { %v7614_v19 = vsel %vm1218_vm1, %v7612_v40, %v7613_v47  ;;  %v7617_v13 = vsel %vm1218_vm1, %v7613_v47, 0.0  ;;  %v7581_v53 = vrot.slane %v7580_v56, 4 }
0x16a1   : > { %v7597_v49 = vadd.f32 %v7596_v27, %v7595_v28  ;;  %v7618_v36 = vadd.f32 %v7617_v13, %v7614_v19  ;;  %v7572_v63 = vpop.xlane.xlu0 %7571 }
0x16a2   : > { %v7582_v59 = vadd.f32 %v7581_v53, %v7580_v56  ;;  %v7603_v0 = vadd.f32 %v7602_v6, %v7572_v63  ;;  %v17518_v6 = vadd.s32 8, %v16628_v5 }
0x16a3   : > { %v7598_v14 = vrot.slane %v7597_v49, 2  ;;  %v7619_v21 = vrot.slane %v7618_v36, 4 }
0x16a4   : > { %v7583_v22 = vrot.slane %v7582_v59, 2  ;;  %v7604_v29 = vrot.slane %v7603_v0, 4  ;;  %vm7642_vm10 = vcmp.lt.s32.totalorder %v17518_v6, 12 }
0x16a5   : > { %v7599_v20 = vadd.f32 %v7598_v14, %v7597_v49  ;;  %v7620_v34 = vadd.f32 %v7619_v21, %v7618_v36 }
0x16a6   : > { %v7584_v55 = vadd.f32 %v7583_v22, %v7582_v59  ;;  %v7605_v57 = vadd.f32 %v7604_v29, %v7603_v0 }
0x16a7   : > { %v7600_v8 = vrot.slane %v7599_v20, 1  ;;  %v7621_v62 = vrot.slane %v7620_v34, 2 }
0x16a8   : > { %v7585_v17 = vrot.slane %v7584_v55, 1  ;;  %v7606_v10 = vrot.slane %v7605_v57, 2 }
0x16a9   : > { %v7601_v24 = vadd.f32 %v7600_v8, %v7599_v20  ;;  %v7622_v32 = vadd.f32 %v7621_v62, %v7620_v34 }
0x16aa   : > { %v7586_v46 = vadd.f32 %v7585_v17, %v7584_v55  ;;  %v7607_v44 = vadd.f32 %v7606_v10, %v7605_v57 }
0x16ab   : > { %v7627_v18 = vmul.f32 0.010416667, %v7601_v24  ;;  %v7623_v60 = vrot.slane %v7622_v32, 1 }
0x16ac   : > { %v7626_v50 = vmul.f32 0.010416667, %v7586_v46  ;;  %v7608_v28 = vrot.slane %v7607_v44, 1 }
0x16ad   : > { %v7624_v48 = vadd.f32 %v7623_v60, %v7622_v32  ;;  %v7635_v40 = vmul.f32 %v7627_v18, %v7627_v18 }
0x16ae   : > { %v7609_v35 = vadd.f32 %v7608_v28, %v7607_v44  ;;  %v7629_v56 = vmul.f32 %v7626_v50, %v7626_v50  ;;  %v7645_v20 = vsel %vm7642_vm10, %v7626_v50, %v7627_v18 }
0x16af   : > { %v7634_v39 = vmul.f32 0.010416667, %v7624_v48 }
0x16b0   : > { %v7628_v47 = vmul.f32 0.010416667, %v7609_v35 }
0x16b1   : > { %v7636_v27 = vsub.f32 %v7634_v39, %v7635_v40 }
0x16b2   : > { %v7630_v19 = vsub.f32 %v7628_v47, %v7629_v56 }
0x16b3   : > { %v7637_v13 = vmax.f32 %v7636_v27, 0.0 }
0x16b4   : > { %v7631_v53 = vmax.f32 %v7630_v19, 0.0 }
0x16b5   : > { %v7638_v49 = vadd.f32 1e-05, %v7637_v13 }
0x16b6   : > { %v7632_v36 = vadd.f32 1e-05, %v7631_v53 }
0x16b7   : > { %16176 = vrsqrt.f32 %v7638_v49 }
0x16b8   : > { %16178 = vrsqrt.f32 %v7632_v36 }
0x16c4   : > { %v16177_v63 = vpop.eup %16176 }
0x16c5   : > { %v16179_v59 = vpop.eup %16178  ;;  %v7652_v0 = vmul.f32 %v16177_v63, %v17346_v3 }
0x16c6   : > { %v7648_v14 = vsel %vm7642_vm10, %v16179_v59, %v16177_v63  ;;  %v7650_v29 = vmul.f32 %v16179_v59, %v17343_v61 }
0x16c7   : > { %v7655_v21 = vmul.f32 %v7652_v0, %v7627_v18  ;;  %v7651_v22 = vmul.f32 %v7648_v14, %v17337_v58 }
0x16c8   : > { %v7653_v55 = vmul.f32 %v7650_v29, %v7626_v50 }
0x16c9   : > { %7663 = vrot.lane.b32.xlu1 %v7655_v21, %s18421_s15  ;;  %v7654_v34 = vmul.f32 %v7651_v22, %v7645_v20 }
0x16cb   : > { %7661 = vrot.lane.b32.xlu0 %v7654_v34, %s18421_s15 }
0x16cd   : > { %7659 = vrot.lane.b32.xlu1 %v7653_v55, %s18421_s15  ;;  %s18482_s15 = smov 8  }
0x16cf   : > { %7678 = vperm.xlu0 %16136, %v7651_v22  }
0x16d1   : > { %7683 = vperm.xlu1 %16135, %v7652_v0  }
0x16d3   : > { %16138 = vset.pattern.permute.xlu0 %v16268_v4 }
0x16d5   : > { %7673 = vperm.xlu1 %16135, %v7650_v29  }
0x16d9   : > { %16137 = vset.pattern.permute.xlu1 %v16268_v4 }
0x173b   : > { %v7664_v57 = vpop.permute.xlu1 %7663 }
0x173c   : > { %v7670_v8 = vsub.f32 %v17346_v3, %v7664_v57 }
0x173d   : > { %v7662_v62 = vpop.permute.xlu0 %7661 }
0x173e   : > { %v7669_v17 = vsub.f32 %v17337_v58, %v7662_v62  ;;  %7701 = vperm.xlu1 %16137, %v7670_v8  }
0x173f   : > { %v7660_v10 = vpop.permute.xlu1 %7659 }
0x1740   : > { %v7668_v24 = vsub.f32 %v17343_v61, %v7660_v10  ;;  %7696 = vperm.xlu0 %16138, %v7669_v17  }
0x1742   : > { %7691 = vperm.xlu1 %16137, %v7668_v24  }
0x1744   : > { %16140 = vset.pattern.permute.xlu0 %v16258_v2 }
0x1746   : > { %16139 = vset.pattern.permute.xlu1 %v16258_v2 }
0x174a   : > { %v7679_v44 = vpop.permute.xlu0 %7678 }
0x174b   : > { %v7687_v3 = vmul.f32 %v7679_v44, %v17490_v25 }
0x174c   : > { %v7684_v32 = vpop.permute.xlu1 %7683 }
0x174d   : > { %v7688_v18 = vmul.f32 %v7684_v32, %v17496_v26 }
0x1750   : > { %v7674_v46 = vpop.permute.xlu1 %7673 }
0x1751   : > { %v7686_v28 = vmul.f32 %v7674_v46, %v17498_v54 }
0x17b9   : > { %v7702_v60 = vpop.permute.xlu1 %7701 }
0x17ba   : > { %v7706_v50 = vadd.f32 %v7702_v60, %v7688_v18 }
0x17bb   : > { %v7697_v58 = vpop.permute.xlu0 %7696 }
0x17bc   : > { %v17541_v48 = vmax.f32 %v7706_v50, 0.0  ;;  %v7705_v61 = vadd.f32 %v7697_v58, %v7687_v3  ;;  %v18487_v50 = vmov 1  }
0x17bd   : > { %v7692_v35 = vpop.permute.xlu1 %7691 }
0x17be   : > { %v17543_v39 = vmax.f32 %v7705_v61, 0.0  ;;  %v7704_v40 = vadd.f32 %v7692_v35, %v7686_v28  ;;  %7716 = vrot.lane.b32.xlu1 %v17541_v48, %s18482_s15  ;;  %v18488_v28 = vmov 0.0  }
0x17c0   : > { %v17547_v47 = vmax.f32 %v7704_v40, 0.0  ;;  %7713 = vrot.lane.b32.xlu0 %v17543_v39, %s18482_s15 }
0x17c2   : > { %7710 = vrot.lane.b32.xlu1 %v17547_v47, %s18482_s15 }
0x1830   : > { %v7717_v25 = vpop.permute.xlu1 %7716 }
0x1831   : > { %v7718_v26 = vsel %vm6461_vm8, %v7717_v25, %v17541_v48 }
0x1832   : > { %v7714_v54 = vpop.permute.xlu0 %7713  ;;  %7723 = vrot.lane.b32.xlu0 %v7718_v26, %s18482_s15 }
0x1833   : > { %v7715_v56 = vsel %vm6461_vm8, %v7714_v54, %v17543_v39 }
0x1834   : > { %7721 = vrot.lane.b32.xlu1 %v7715_v56, %s18482_s15  ;;  %v7711_v27 = vpop.permute.xlu1 %7710 }
0x1835   : > { %v7712_v19 = vsel %vm6461_vm8, %v7711_v27, %v17547_v47 }
0x1836   : > { %7719 = vrot.lane.b32.xlu0 %v7712_v19, %s18482_s15  ;;  %s18483_s15 = smov 121  }
0x18a4   : > { %v7724_v13 = vpop.permute.xlu0 %7723 }
0x18a5   : > { %v7727_v53 = vsel %vm6461_vm8, %v7724_v13, %v17541_v48 }
0x18a6   : > { %v7722_v49 = vpop.permute.xlu1 %7721  ;;  %v7736_v36 = vmul.f32 %v7727_v53, %v17268_v15  ;;  %v7730_v22 = vmul.f32 %v7727_v53, %v17280_v31  ;;  %v7945_v20 = vmul.f32 %v7727_v53, %v17286_v37  ;;  %v8056_v57 = vmul.f32 %v7727_v53, %v17296_v7 }
0x18a7   : > { %v7726_v63 = vsel %vm6461_vm8, %v7722_v49, %v17543_v39  ;;  %v8263_v62 = vmul.f32 %v7727_v53, %v17302_v42  ;;  %v8374_v17 = vmul.f32 %v7727_v53, %v17308_v45  ;;  %v8485_v32 = vmul.f32 %v7727_v53, %v17318_v51 }
0x18a8   : > { %7748 = vrot.lane.b32.xlu1 %v7736_v36, %s16287_s23  ;;  %v7720_v59 = vpop.permute.xlu0 %7719  ;;  %v7735_v0 = vmul.f32 %v7726_v63, %v17268_v15  ;;  %v7729_v34 = vmul.f32 %v7726_v63, %v17280_v31  ;;  %v8055_v8 = vmul.f32 %v7726_v63, %v17296_v7  ;;  %v8262_v10 = vmul.f32 %v7726_v63, %v17302_v42 }
0x18a9   : > { %v7725_v14 = vsel %vm6461_vm8, %v7720_v59, %v17547_v47  ;;  %v8484_v44 = vmul.f32 %v7726_v63, %v17318_v51 }
0x18aa   : > { %7746 = vrot.lane.b32.xlu0 %v7735_v0, %s16287_s23  ;;  %v7734_v21 = vmul.f32 %v7725_v14, %v17268_v15  ;;  %v7728_v29 = vmul.f32 %v7725_v14, %v17280_v31  ;;  %v7944_v15 = vmul.f32 %v7726_v63, %v17286_v37  ;;  %v7943_v55 = vmul.f32 %v7725_v14, %v17286_v37 }
0x18ab   : > { %v8054_v31 = vmul.f32 %v7725_v14, %v17296_v7  ;;  %v8261_v37 = vmul.f32 %v7725_v14, %v17302_v42  ;;  %v8373_v7 = vmul.f32 %v7726_v63, %v17308_v45  ;;  %v8372_v24 = vmul.f32 %v7725_v14, %v17308_v45 }
0x18ac   : > { %7744 = vrot.lane.b32.xlu1 %v7734_v21, %s16287_s23  ;;  %v8483_v46 = vmul.f32 %v7725_v14, %v17318_v51  ;;  %v8596_v42 = vmul.f32 %v7727_v53, %v17324_v38  ;;  %v8595_v45 = vmul.f32 %v7726_v63, %v17324_v38  ;;  %v8594_v18 = vmul.f32 %v7725_v14, %v17324_v38 }
0x18ae   : > { %7849 = vrot.lane.b32.xlu0 %v7730_v22, %s16288_s16 }
0x18b0   : > { %7845 = vrot.lane.b32.xlu1 %v7728_v29, %s16288_s16 }
0x18b2   : > { %7957 = vrot.lane.b32.xlu0 %v7945_v20, %s18423_s18 }
0x18b4   : > { %7847 = vrot.lane.b32.xlu1 %v7729_v34, %s16288_s16 }
0x18b6   : > { %7955 = vrot.lane.b32.xlu0 %v7944_v15, %s18423_s18 }
0x18b8   : > { %7953 = vrot.lane.b32.xlu1 %v7943_v55, %s18423_s18  ;;  %s18484_s18 = sld [smem:[#allocation12_spill]] }
0x18ba   : > { %8068 = vrot.lane.b32.xlu0 %v8056_v57, %s18483_s15 }
0x18bc   : > { %8066 = vrot.lane.b32.xlu1 %v8055_v8, %s18483_s15 }
0x18be   : > { %8064 = vrot.lane.b32.xlu0 %v8054_v31, %s18483_s15  ;;  %v17617_v60 = vld [vmem:[%s18484_s18 + $0x8] sm:$0xff]  ;;  %v17620_v3 = vld [vmem:[%s18484_s18 + $0x10] sm:$0xff]  ;;  %v17625_v51 = vld [vmem:[%s18484_s18] sm:$0xff] }
0x18c0   : > { %8275 = vrot.lane.b32.xlu1 %v8263_v62, %s18479_s22 }
0x18c2   : > { %8271 = vrot.lane.b32.xlu0 %v8261_v37, %s18479_s22 }
0x18c4   : > { %8386 = vrot.lane.b32.xlu1 %v8374_v17, %s16288_s16 }
0x18c6   : > { %8273 = vrot.lane.b32.xlu0 %v8262_v10, %s18479_s22 }
0x18c8   : > { %8384 = vrot.lane.b32.xlu1 %v8373_v7, %s16288_s16 }
0x18ca   : > { %8382 = vrot.lane.b32.xlu0 %v8372_v24, %s16288_s16  ;;  %s18486_s16 = sld [smem:[#allocation11_spill]] }
0x18cc   : > { %8497 = vrot.lane.b32.xlu1 %v8485_v32, %s16287_s23 }
0x18ce   : > { %8493 = vrot.lane.b32.xlu0 %v8483_v46, %s16287_s23 }
0x18d0   : > { %8608 = vrot.lane.b32.xlu1 %v8596_v42, %s18485_s0  ;;  %v14186_v61 = vld [vmem:[%s18486_s16 + $0x18] sm:$0xff]  ;;  %v14187_v25 = vld [vmem:[%s18486_s16 + $0x20] sm:$0xff]  ;;  %v14188_v56 = vld [vmem:[%s18486_s16 + $0x28] sm:$0xff] }
0x18d1   : > { %v7731_v19 = vld [vmem:[%s18486_s16] sm:$0xff]  ;;  %v14195_v53 = vld [vmem:[%s18486_s16 + $0x30] sm:$0xff]  ;;  %v7732_v63 = vld [vmem:[%s18486_s16 + $0x8] sm:$0xff] }
0x18d2   : > { %8495 = vrot.lane.b32.xlu0 %v8484_v44, %s16287_s23  ;;  %v14196_v0 = vld [vmem:[%s18486_s16 + $0x38] sm:$0xff]  ;;  %v14197_v22 = vld [vmem:[%s18486_s16 + $0x40] sm:$0xff]  ;;  %v14202_v15 = vld [vmem:[%s18486_s16 + $0x50] sm:$0xff]  ;;  %s18490_s23 = sld [smem:[#allocation13_spill]] }
0x18d3   : > { %v14208_v8 = vld [vmem:[%s18486_s16 + $0x68] sm:$0xff]  ;;  %v14203_v62 = vld [vmem:[%s18486_s16 + $0x58] sm:$0xff]  ;;  %v14209_v17 = vld [vmem:[%s18486_s16 + $0x70] sm:$0xff] }
0x18d4   : > { %8606 = vrot.lane.b32.xlu1 %v8595_v45, %s18485_s0  ;;  %v14213_v10 = vld [vmem:[%s18486_s16 + $0x78] sm:$0xff]  ;;  %v14219_v32 = vld [vmem:[%s18486_s16 + $0x90] sm:$0xff]  ;;  %v14214_v46 = vld [vmem:[%s18486_s16 + $0x80] sm:$0xff] }
0x18d5   : > { %v14220_v44 = vld [vmem:[%s18486_s16 + $0x98] sm:$0xff] }
0x18d6   : > { %8604 = vrot.lane.b32.xlu0 %v8594_v18, %s18485_s0  ;;  %v14215_v18 = vld [vmem:[%s18486_s16 + $0x88] sm:$0xff]  ;;  %s18489_s0 = smov 1  }
0x18d8   : > { %8715 = vperm.xlu1 %16139, %v17617_v60  }
0x18da   : > { %8720 = vperm.xlu0 %16140, %v17620_v3  }
0x18dc   : > { %8710 = vperm.xlu1 %16139, %v17625_v51  }
0x18de   : > { %16141 = vset.pattern.permute.xlu0 %v18487_v50 }
0x18e0   : > { %16142 = vset.pattern.permute.xlu1 %v18487_v50 }
0x191a   : > { %v7749_v38 = vpop.permute.xlu1 %7748 }
0x191b   : > { %15551 = vmatpush3.msra.mxu0 %v7749_v38  ;;  %v14221_v38 = vld [vmem:[%s18486_s16 + $0xa0] sm:$0xff] }
0x191c   : > { %v7747_v58 = vpop.permute.xlu0 %7746  ;;  %15552 = vmatprep.subr.mxu0 %v18488_v28 }
0x191d   : > { %15553 = vmatpush3.msra.mxu0 %v7747_v58  ;;  %v14225_v58 = vld [vmem:[%s18486_s16 + $0xa8] sm:$0xff] }
0x191e   : > { %15554 = vmatprep.subr.mxu0 %v18488_v28  ;;  %v7745_v35 = vpop.permute.xlu1 %7744 }
0x191f   : > { %15555 = vmatpush3.msra.mxu0 %v7745_v35  ;;  %v14226_v35 = vld [vmem:[%s18486_s16 + $0xb0] sm:$0xff] }
0x1920   : > { %v7850_v40 = vpop.permute.xlu0 %7849  ;;  %15557 = vmatmul.mubr.msk.f32.vlgmr.msra.gmra.mxu0 %vm6524_vm9, %v14186_v61  ;;  %15580 = vmatprep.subr.mxu0 %v18488_v28  ;;  %v14231_v61 = vld [vmem:[%s18486_s16 + $0xc0] sm:$0xff] }
0x1921   : > { %15566 = vmatpush3.msra.mxu1 %v7850_v40  ;;  %15559 = vmatprep.mubr.msk.f32.mxu0 %vm16257_vm0, %v18488_v28  ;;  %v14232_v40 = vld [vmem:[%s18486_s16 + $0xc8] sm:$0xff] }
0x1922   : > { %v7846_v26 = vpop.permute.xlu1 %7845  ;;  %15567 = vmatprep.subr.mxu1 %v18488_v28 }
0x1924   : > { %v7958_v54 = vpop.permute.xlu0 %7957  ;;  %15560 = vmatmul.mubr.msk.f32.gmra.mxu0 %vm6524_vm9, %v14187_v25  ;;  %v14227_v25 = vld [vmem:[%s18486_s16 + $0xb8] sm:$0xff] }
0x1925   : > { %15581 = vmatpush3.msra.mxu0 %v7958_v54  ;;  %15562 = vmatprep.mubr.msk.f32.mxu0 %vm16257_vm0, %v18488_v28 }
0x1926   : > { %v7848_v27 = vpop.permute.xlu1 %7847  ;;  %15582 = vmatprep.subr.mxu0 %v18488_v28 }
0x1927   : > { %15568 = vmatpush3.msra.mxu1 %v7848_v27 }
0x1928   : > { %v7956_v13 = vpop.permute.xlu0 %7955  ;;  %15563 = vmatmul.mubr.msk.f32.gmra.mxu0 %vm6524_vm9, %v14188_v56  ;;  %15569 = vmatprep.subr.mxu1 %v18488_v28 }
0x1929   : > { %15570 = vmatpush3.msra.mxu1 %v7846_v26  ;;  %15583 = vmatpush3.msra.mxu0 %v7956_v13  ;;  %v14233_v26 = vld [vmem:[%s18486_s16 + $0xd0] sm:$0xff] }
0x192a   : > { %15572 = vmatmul.mubr.msk.f32.vlgmr.msra.gmra.mxu1 %vm6524_vm9, %v7731_v19  ;;  %15584 = vmatprep.subr.mxu0 %v18488_v28  ;;  %v7954_v49 = vpop.permute.xlu1 %7953 }
0x192b   : > { %15585 = vmatpush3.msra.mxu0 %v7954_v49  ;;  %15586 = vmatprep.mubr.msk.f32.mxu0 %vm16257_vm0, %v18488_v28 }
0x192c   : > { %v8069_v36 = vpop.permute.xlu0 %8068  ;;  %15587 = vmatmul.mubr.msk.f32.vlgmr.msra.gmra.mxu0 %vm6524_vm9, %v14195_v53  ;;  %15595 = vmatprep.subr.mxu1 %v18488_v28 }
0x192d   : > { %15610 = vmatprep.subr.mxu0 %v18488_v28  ;;  %15574 = vmatprep.mubr.msk.f32.mxu1 %vm16257_vm0, %v18488_v28 }
0x192e   : > { %15596 = vmatpush3.msra.mxu1 %v8069_v36  ;;  %15611 = vmatpush3.msra.mxu0 %v17541_v48  ;;  %v8067_v59 = vpop.permute.xlu1 %8066  ;;  %v7733_v48 = vld [vmem:[%s18486_s16 + $0x10] sm:$0xff] }
0x192f   : > { %15575 = vmatmul.mubr.msk.f32.gmra.mxu1 %vm6524_vm9, %v7732_v63  ;;  %15597 = vmatprep.subr.mxu1 %v18488_v28 }
0x1930   : > { %15612 = vmatprep.subr.mxu0 %v18488_v28  ;;  %15589 = vmatprep.mubr.msk.f32.mxu0 %vm16257_vm0, %v18488_v28  ;;  %v8065_v14 = vpop.permute.xlu0 %8064 }
0x1931   : > { %15598 = vmatpush3.msra.mxu1 %v8067_v59  ;;  %15613 = vmatpush3.msra.mxu0 %v17543_v39  ;;  %v14201_v39 = vld [vmem:[%s18486_s16 + $0x48] sm:$0xff] }
0x1932   : > { %15590 = vmatmul.mubr.msk.f32.gmra.mxu0 %vm6524_vm9, %v14196_v0  ;;  %15599 = vmatprep.subr.mxu1 %v18488_v28  ;;  %v8276_v21 = vpop.permute.xlu1 %8275 }
0x1933   : > { %15614 = vmatprep.subr.mxu0 %v18488_v28  ;;  %15577 = vmatprep.mubr.msk.f32.mxu1 %vm16257_vm0, %v18488_v28 }
0x1934   : > { %15600 = vmatpush3.msra.mxu1 %v8065_v14  ;;  %15615 = vmatpush3.msra.mxu0 %v17547_v47  ;;  %v8272_v29 = vpop.permute.xlu0 %8271  ;;  %v14207_v47 = vld [vmem:[%s18486_s16 + $0x60] sm:$0xff] }
0x1935   : > { %15578 = vmatmul.mubr.msk.f32.gmra.mxu1 %vm6524_vm9, %v7733_v48  ;;  %15592 = vmatprep.mubr.msk.f32.mxu0 %vm16257_vm0, %v18488_v28 }
0x1936   : > { %15593 = vmatmul.mubr.msk.f32.gmra.mxu0 %vm6524_vm9, %v14197_v22  ;;  %15601 = vmatprep.mubr.msk.f32.mxu1 %vm16257_vm0, %v18488_v28  ;;  %v8387_v20 = vpop.permute.xlu1 %8386 }
0x1937   : > { %15625 = vmatprep.subr.mxu1 %v18488_v28  ;;  %15616 = vmatprep.mubr.msk.f32.mxu0 %vm16257_vm0, %v18488_v28 }
0x1938   : > { %15640 = vmatprep.subr.mxu0 %v18488_v28  ;;  %v8274_v34 = vpop.permute.xlu0 %8273 }
0x1939   : > { %15602 = vmatmul.mubr.msk.f32.vlgmr.msra.gmra.mxu1 %vm6524_vm9, %v14201_v39 }
0x193a   : > { %15626 = vmatpush3.msra.mxu1 %v8276_v21  ;;  %15617 = vmatmul.mubr.msk.f32.vlgmr.msra.gmra.mxu0 %vm6524_vm9, %v14207_v47  ;;  %v8385_v55 = vpop.permute.xlu1 %8384 }
0x193b   : > { %15627 = vmatprep.subr.mxu1 %v18488_v28  ;;  %15641 = vmatpush3.msra.mxu0 %v8387_v20 }
0x193c   : > { %15604 = vmatprep.mubr.msk.f32.mxu1 %vm16257_vm0, %v18488_v28  ;;  %15628 = vmatpush3.msra.mxu1 %v8274_v34  ;;  %v8383_v57 = vpop.permute.xlu0 %8382 }
0x193d   : > { %15605 = vmatmul.mubr.msk.f32.gmra.mxu1 %vm6524_vm9, %v14202_v15  ;;  %15629 = vmatprep.subr.mxu1 %v18488_v28 }
0x193e   : > { %15642 = vmatprep.subr.mxu0 %v18488_v28  ;;  %15619 = vmatprep.mubr.msk.f32.mxu0 %vm16257_vm0, %v18488_v28  ;;  %v8498_v31 = vpop.permute.xlu1 %8497 }
0x193f   : > { %15630 = vmatpush3.msra.mxu1 %v8272_v29  ;;  %15643 = vmatpush3.msra.mxu0 %v8385_v55 }
0x1940   : > { %15620 = vmatmul.mubr.msk.f32.gmra.mxu0 %vm6524_vm9, %v14208_v8  ;;  %15644 = vmatprep.subr.mxu0 %v18488_v28  ;;  %v8494_v37 = vpop.permute.xlu0 %8493 }
0x1941   : > { %15607 = vmatprep.mubr.msk.f32.mxu1 %vm16257_vm0, %v18488_v28  ;;  %15645 = vmatpush3.msra.mxu0 %v8383_v57 }
0x1942   : > { %15608 = vmatmul.mubr.msk.f32.gmra.mxu1 %vm6524_vm9, %v14203_v62  ;;  %15622 = vmatprep.mubr.msk.f32.mxu0 %vm16257_vm0, %v18488_v28  ;;  %v8609_v7 = vpop.permute.xlu1 %8608 }
0x1943   : > { %15631 = vmatprep.mubr.msk.f32.mxu1 %vm16257_vm0, %v18488_v28  ;;  %15655 = vmatprep.subr.mxu1 %v18488_v28 }
0x1944   : > { %15623 = vmatmul.mubr.msk.f32.gmra.mxu0 %vm6524_vm9, %v14209_v17  ;;  %15670 = vmatprep.subr.mxu0 %v18488_v28  ;;  %v8496_v24 = vpop.permute.xlu0 %8495 }
0x1945   : > { %15646 = vmatprep.mubr.msk.f32.mxu0 %vm16257_vm0, %v18488_v28 }
0x1946   : > { %15632 = vmatmul.mubr.msk.f32.vlgmr.msra.gmra.mxu1 %vm6524_vm9, %v14213_v10  ;;  %v8607_v42 = vpop.permute.xlu1 %8606 }
0x1947   : > { %15656 = vmatpush3.msra.mxu1 %v8498_v31  ;;  %15634 = vmatprep.mubr.msk.f32.mxu1 %vm16257_vm0, %v18488_v28 }
0x1948   : > { %15647 = vmatmul.mubr.msk.f32.vlgmr.msra.gmra.mxu0 %vm6524_vm9, %v14219_v32  ;;  %15657 = vmatprep.subr.mxu1 %v18488_v28  ;;  %v8605_v45 = vpop.permute.xlu0 %8604 }
0x1949   : > { %15671 = vmatpush3.msra.mxu0 %v8609_v7  ;;  %15658 = vmatpush3.msra.mxu1 %v8496_v24 }
0x194a   : > { %15635 = vmatmul.mubr.msk.f32.gmra.mxu1 %vm6524_vm9, %v14214_v46  ;;  %15659 = vmatprep.subr.mxu1 %v18488_v28 }
0x194b   : > { %15672 = vmatprep.subr.mxu0 %v18488_v28  ;;  %15649 = vmatprep.mubr.msk.f32.mxu0 %vm16257_vm0, %v18488_v28 }
0x194c   : > { %15660 = vmatpush3.msra.mxu1 %v8494_v37  ;;  %15673 = vmatpush3.msra.mxu0 %v8607_v42 }
0x194d   : > { %15650 = vmatmul.mubr.msk.f32.gmra.mxu0 %vm6524_vm9, %v14220_v44  ;;  %15674 = vmatprep.subr.mxu0 %v18488_v28 }
0x194e   : > { %15637 = vmatprep.mubr.msk.f32.mxu1 %vm16257_vm0, %v18488_v28  ;;  %15675 = vmatpush3.msra.mxu0 %v8605_v45 }
0x194f   : > { %15638 = vmatmul.mubr.msk.f32.gmra.mxu1 %vm6524_vm9, %v14215_v18  ;;  %15652 = vmatprep.mubr.msk.f32.mxu0 %vm16257_vm0, %v18488_v28 }
0x1950   : > { %15661 = vmatprep.mubr.msk.f32.mxu1 %vm16257_vm0, %v18488_v28 }
0x1951   : > { %15653 = vmatmul.mubr.msk.f32.gmra.mxu0 %vm6524_vm9, %v14221_v38 }
0x1952   : > { %15676 = vmatprep.mubr.msk.f32.mxu0 %vm16257_vm0, %v18488_v28 }
0x1953   : > { %15662 = vmatmul.mubr.msk.f32.vlgmr.msra.gmra.mxu1 %vm6524_vm9, %v14225_v58 }
0x1954   : > { %15664 = vmatprep.mubr.msk.f32.mxu1 %vm16257_vm0, %v18488_v28 }
0x1955   : > { %15677 = vmatmul.mubr.msk.f32.vlgmr.msra.gmra.mxu0 %vm6524_vm9, %v14231_v61 }
0x1956   : > { %15679 = vmatprep.mubr.msk.f32.mxu0 %vm16257_vm0, %v18488_v28 }
0x1957   : > { %15665 = vmatmul.mubr.msk.f32.gmra.mxu1 %vm6524_vm9, %v14226_v35 }
0x1958   : > { %15667 = vmatprep.mubr.msk.f32.mxu1 %vm16257_vm0, %v18488_v28 }
0x1959   : > { %15680 = vmatmul.mubr.msk.f32.gmra.mxu0 %vm6524_vm9, %v14232_v40 }
0x195a   : > { %15682 = vmatprep.mubr.msk.f32.mxu0 %vm16257_vm0, %v18488_v28 }
0x195b   : > { %15668 = vmatmul.mubr.msk.f32.gmra.mxu1 %vm6524_vm9, %v14227_v25 }
0x195d   : > { %15683 = vmatmul.mubr.msk.f32.gmra.mxu0 %vm6524_vm9, %v14233_v26 }
0x19e0   : > { %v7828_v54 = vpop.f32.mrf.mxu0 }
0x19e2   : > { %v15558_v56 = vpop.f32.mrf.mxu0 }
0x19e4   : > { %v7833_v27 = vpop.f32.mrf.mxu0 }
0x19e6   : > { %v15561_v19 = vpop.f32.mrf.mxu0 }
0x19e8   : > { %v7838_v13 = vpop.f32.mrf.mxu0 }
0x19ea   : > { %v15564_v53 = vpop.f32.mrf.mxu0  ;;  %v7929_v49 = vpop.f32.mrf.mxu1 }
0x19eb   : > { %v7930_v7 = vadd.f32 %v7929_v49, %v7828_v54 }
0x19ec   : > { %v15573_v36 = vpop.f32.mrf.mxu1  ;;  %v8037_v63 = vpop.f32.mrf.mxu0 }
0x19ed   : > { %v8051_v45 = vadd.f32 %v8037_v63, %v7930_v7 }
0x19ee   : > { %v15588_v59 = vpop.f32.mrf.mxu0 }
0x19ef   : > { %v7934_v0 = vpop.f32.mrf.mxu1 }
0x19f0   : > { %v7935_v24 = vadd.f32 %v7934_v0, %v7833_v27 }
0x19f1   : > { %v15576_v14 = vpop.f32.mrf.mxu1 }
0x19f2   : > { %v8042_v48 = vpop.f32.mrf.mxu0 }
0x19f3   : > { %v8052_v18 = vadd.f32 %v8042_v48, %v7935_v24 }
0x19f4   : > { %v15591_v21 = vpop.f32.mrf.mxu0 }
0x19f5   : > { %v7939_v22 = vpop.f32.mrf.mxu1 }
0x19f6   : > { %v8047_v29 = vpop.f32.mrf.mxu0  ;;  %v7940_v38 = vadd.f32 %v7939_v22, %v7838_v13 }
0x19f7   : > { %v15579_v39 = vpop.f32.mrf.mxu1 }
0x19f8   : > { %v15594_v20 = vpop.f32.mrf.mxu0  ;;  %v8053_v56 = vadd.f32 %v8047_v29, %v7940_v38 }
0x19f9   : > { %v8148_v47 = vpop.f32.mrf.mxu1 }
0x19fa   : > { %v8244_v34 = vpop.f32.mrf.mxu0  ;;  %v8162_v35 = vadd.f32 %v8148_v47, %v8051_v45 }
0x19fb   : > { %v15603_v15 = vpop.f32.mrf.mxu1 }
0x19fc   : > { %v15618_v55 = vpop.f32.mrf.mxu0  ;;  %v8258_v36 = vadd.f32 %v8244_v34, %v8162_v35  ;;  %v8716_v15 = vpop.permute.xlu1 %8715 }
0x19fd   : > { %v8153_v57 = vpop.f32.mrf.mxu1 }
0x19fe   : > { %v8163_v40 = vadd.f32 %v8153_v57, %v8052_v18 }
0x19ff   : > { %v15606_v8 = vpop.f32.mrf.mxu1 }
0x1a00   : > { %v8249_v31 = vpop.f32.mrf.mxu0 }
0x1a01   : > { %v8259_v59 = vadd.f32 %v8249_v31, %v8163_v40 }
0x1a02   : > { %v8158_v62 = vpop.f32.mrf.mxu1  ;;  %v15621_v37 = vpop.f32.mrf.mxu0 }
0x1a03   : > { %v8164_v54 = vadd.f32 %v8158_v62, %v8053_v56 }
0x1a04   : > { %v15609_v17 = vpop.f32.mrf.mxu1  ;;  %v8254_v10 = vpop.f32.mrf.mxu0 }
0x1a05   : > { %v8260_v48 = vadd.f32 %v8254_v10, %v8164_v54 }
0x1a06   : > { %v15624_v32 = vpop.f32.mrf.mxu0  ;;  %v8355_v46 = vpop.f32.mrf.mxu1 }
0x1a07   : > { %v8369_v0 = vadd.f32 %v8355_v46, %v8258_v36  ;;  %v8711_v32 = vpop.permute.xlu1 %8710 }
0x1a08   : > { %v15633_v42 = vpop.f32.mrf.mxu1  ;;  %v8466_v44 = vpop.f32.mrf.mxu0 }
0x1a09   : > { %v8480_v39 = vadd.f32 %v8466_v44, %v8369_v0  ;;  %v8721_v42 = vpop.permute.xlu0 %8720 }
0x1a0a   : > { %v8360_v58 = vpop.f32.mrf.mxu1  ;;  %v15648_v61 = vpop.f32.mrf.mxu0 }
0x1a0b   : > { %v8370_v14 = vadd.f32 %v8360_v58, %v8259_v59 }
0x1a0c   : > { %v15636_v25 = vpop.f32.mrf.mxu1 }
0x1a0d   : > { %v8471_v26 = vpop.f32.mrf.mxu0 }
0x1a0e   : > { %v8481_v20 = vadd.f32 %v8471_v26, %v8370_v14 }
0x1a0f   : > { %v8365_v19 = vpop.f32.mrf.mxu1  ;;  %v15651_v53 = vpop.f32.mrf.mxu0 }
0x1a10   : > { %v8371_v47 = vadd.f32 %v8365_v19, %v8260_v48 }
0x1a11   : > { %v15639_v27 = vpop.f32.mrf.mxu1  ;;  %v8476_v49 = vpop.f32.mrf.mxu0 }
0x1a12   : > { %v8482_v62 = vadd.f32 %v8476_v49, %v8371_v47 }
0x1a13   : > { %v15654_v21 = vpop.f32.mrf.mxu0  ;;  %v8577_v63 = vpop.f32.mrf.mxu1 }
0x1a14   : > { %v8591_v57 = vadd.f32 %v8577_v63, %v8480_v39 }
0x1a15   : > { %v15663_v13 = vpop.f32.mrf.mxu1  ;;  %v8688_v22 = vpop.f32.mrf.mxu0 }
0x1a16   : > { %v8702_v24 = vadd.f32 %v8688_v22, %v8591_v57 }
0x1a17   : > { %v8582_v55 = vpop.f32.mrf.mxu1  ;;  %v15678_v29 = vpop.f32.mrf.mxu0 }
0x1a18   : > { %v8592_v8 = vadd.f32 %v8582_v55, %v8481_v20  ;;  %v17768_v35 = vadd.f32 %v8711_v32, %v8702_v24 }
0x1a19   : > { %v15666_v34 = vpop.f32.mrf.mxu1  ;;  %v8693_v31 = vpop.f32.mrf.mxu0 }
0x1a1a   : > { %v8703_v37 = vadd.f32 %v8693_v31, %v8592_v8  ;;  %v8735_v53 = vmul.f32 %v17768_v35, %v17768_v35  ;;  %v8726_v59 = vsel %vm1317_vm3, %v17768_v35, 0.0 }
0x1a1b   : > { %v8587_v17 = vpop.f32.mrf.mxu1  ;;  %v15681_v7 = vpop.f32.mrf.mxu0 }
0x1a1c   : > { %v17762_v46 = vadd.f32 %v8716_v15, %v8703_v37  ;;  %v8593_v10 = vadd.f32 %v8587_v17, %v8482_v62  ;;  %v8738_v36 = vsel %vm1317_vm3, %v8735_v53, 0.0 }
0x1a1d   : > { %v8698_v44 = vpop.f32.mrf.mxu0  ;;  %v15669_v45 = vpop.f32.mrf.mxu1 }
0x1a1e   : > { %v8704_v18 = vadd.f32 %v8698_v44, %v8593_v10  ;;  %v8729_v38 = vsel %vm1317_vm3, %v17762_v46, 0.0  ;;  %v8736_v58 = vmul.f32 %v17762_v46, %v17762_v46 }
0x1a1f   : > { %8730 = vadd.xlane.f32.xlu1 %v8729_v38  ;;  %v15684_v61 = vpop.f32.mrf.mxu0 }
0x1a20   : > { %v17770_v40 = vadd.f32 %v8721_v42, %v8704_v18  ;;  %v8741_v25 = vsel %vm1317_vm3, %v8736_v58, 0.0 }
0x1a21   : > { %8742 = vadd.xlane.f32.xlu0 %v8741_v25 }
0x1a22   : > { %v8737_v26 = vmul.f32 %v17770_v40, %v17770_v40  ;;  %v8732_v56 = vsel %vm1317_vm3, %v17770_v40, 0.0 }
0x1a24   : > { %v8744_v19 = vsel %vm1317_vm3, %v8737_v26, 0.0 }
0x1a25   : > { %8733 = vadd.xlane.f32.xlu0 %v8732_v56  ;;  %8745 = vadd.xlane.f32.xlu1 %v8744_v19 }
0x1a29   : > { %8739 = vadd.xlane.f32.xlu1 %v8738_v36  ;;  %8727 = vadd.xlane.f32.xlu0 %v8726_v59 }
0x1aa8   : > { %v8731_v54 = vpop.xlane.xlu1 %8730 }
0x1aa9   : > { %v8757_v14 = vrot.slane %v8731_v54, 4  ;;  %v8747_v29 = vsel %vm1218_vm1, %v8731_v54, 0.0 }
0x1aaa   : > { %v8743_v27 = vpop.xlane.xlu0 %8742 }
0x1aab   : > { %v8780_v21 = vrot.slane %v8743_v27, 4  ;;  %v8770_v57 = vsel %vm1218_vm1, %v8743_v27, 0.0 }
0x1aae   : > { %v8734_v49 = vpop.xlane.xlu0 %8733  ;;  %v8746_v0 = vpop.xlane.xlu1 %8745 }
0x1aaf   : > { %v8758_v63 = vrot.slane %v8734_v49, 4  ;;  %v8781_v48 = vrot.slane %v8746_v0, 4 }
0x1ab1   : > { %v8759_v13 = vsel %vm1218_vm1, %v8757_v14, %v8758_v63  ;;  %v8762_v22 = vsel %vm1218_vm1, %v8758_v63, 0.0  ;;  %v8782_v39 = vsel %vm1218_vm1, %v8780_v21, %v8781_v48  ;;  %v8785_v20 = vsel %vm1218_vm1, %v8781_v48, 0.0 }
0x1ab2   : > { %v8763_v47 = vadd.f32 %v8762_v22, %v8759_v13  ;;  %v8786_v15 = vadd.f32 %v8785_v20, %v8782_v39  ;;  %v8728_v55 = vpop.xlane.xlu0 %8727  ;;  %v8740_v8 = vpop.xlane.xlu1 %8739 }
0x1ab3   : > { %v8748_v34 = vadd.f32 %v8747_v29, %v8728_v55  ;;  %v8771_v31 = vadd.f32 %v8770_v57, %v8740_v8 }
0x1ab4   : > { %v8764_v62 = vrot.slane %v8763_v47, 4  ;;  %v8787_v37 = vrot.slane %v8786_v15, 4 }
0x1ab5   : > { %v8749_v17 = vrot.slane %v8748_v34, 4  ;;  %v8772_v7 = vrot.slane %v8771_v31, 4 }
0x1ab6   : > { %v8765_v24 = vadd.f32 %v8764_v62, %v8763_v47  ;;  %v8788_v32 = vadd.f32 %v8787_v37, %v8786_v15 }
0x1ab7   : > { %v8750_v10 = vadd.f32 %v8749_v17, %v8748_v34  ;;  %v8773_v42 = vadd.f32 %v8772_v7, %v8771_v31 }
0x1ab8   : > { %v8766_v44 = vrot.slane %v8765_v24, 2  ;;  %v8789_v45 = vrot.slane %v8788_v32, 2 }
0x1ab9   : > { %v8751_v18 = vrot.slane %v8750_v10, 2  ;;  %v8774_v38 = vrot.slane %v8773_v42, 2 }
0x1aba   : > { %v8767_v58 = vadd.f32 %v8766_v44, %v8765_v24  ;;  %v8790_v61 = vadd.f32 %v8789_v45, %v8788_v32 }
0x1abb   : > { %v8752_v25 = vadd.f32 %v8751_v18, %v8750_v10  ;;  %v8775_v26 = vadd.f32 %v8774_v38, %v8773_v42  ;;  %v8873_v18 = vld [vmem:[%s18490_s23] sm:$0xff]  ;;  %v14239_v38 = vld [vmem:[%s18490_s23 + $0x10] sm:$0xff] }
0x1abc   : > { %v8768_v56 = vrot.slane %v8767_v58, 1  ;;  %v8791_v19 = vrot.slane %v8790_v61, 1  ;;  %15691 = vmatprep.mubr.msk.f32.mxu1 %vm6524_vm9, %v8873_v18  ;;  %15700 = vmatprep.mubr.msk.f32.mxu0 %vm6524_vm9, %v14239_v38 }
0x1abd   : > { %v8753_v53 = vrot.slane %v8752_v25, 1  ;;  %v8776_v36 = vrot.slane %v8775_v26, 1 }
0x1abe   : > { %v8769_v59 = vadd.f32 %v8768_v56, %v8767_v58  ;;  %v8792_v54 = vadd.f32 %v8791_v19, %v8790_v61 }
0x1abf   : > { %v8754_v27 = vadd.f32 %v8753_v53, %v8752_v25  ;;  %v8777_v49 = vadd.f32 %v8776_v36, %v8775_v26 }
0x1ac0   : > { %v8794_v0 = vmul.f32 0.010416667, %v8769_v59  ;;  %v8801_v63 = vmul.f32 0.010416667, %v8792_v54 }
0x1ac1   : > { %v8793_v14 = vmul.f32 0.010416667, %v8754_v27  ;;  %v8795_v13 = vmul.f32 0.010416667, %v8777_v49  ;;  %v14240_v49 = vld [vmem:[%s18490_s23 + $0x18] sm:$0xff] }
0x1ac2   : > { %v8802_v21 = vmul.f32 %v8794_v0, %v8794_v0 }
0x1ac3   : > { %v8796_v48 = vmul.f32 %v8793_v14, %v8793_v14  ;;  %v8808_v37 = vsel %vm7642_vm10, %v8793_v14, %v8794_v0 }
0x1ac4   : > { %v8803_v22 = vsub.f32 %v8801_v63, %v8802_v21 }
0x1ac5   : > { %v8797_v39 = vsub.f32 %v8795_v13, %v8796_v48  ;;  %v14248_v13 = vld [vmem:[%s18490_s23 + $0x20] sm:$0xff] }
0x1ac6   : > { %v8804_v20 = vmax.f32 %v8803_v22, 0.0  ;;  %v14249_v22 = vld [vmem:[%s18490_s23 + $0x28] sm:$0xff] }
0x1ac7   : > { %v8798_v47 = vmax.f32 %v8797_v39, 0.0  ;;  %v14255_v39 = vld [vmem:[%s18490_s23 + $0x30] sm:$0xff] }
0x1ac8   : > { %v8805_v15 = vadd.f32 1e-05, %v8804_v20  ;;  %v14256_v20 = vld [vmem:[%s18490_s23 + $0x38] sm:$0xff] }
0x1ac9   : > { %v8799_v55 = vadd.f32 1e-05, %v8798_v47  ;;  %v14252_v47 = vld [vmem:[%s18470_s6 + $0x10] sm:$0xff] }
0x1aca   : > { %16180 = vrsqrt.f32 %v8805_v15  ;;  %v14259_v15 = vld [vmem:[%s18470_s6 + $0x18] sm:$0xff] }
0x1acb   : > { %16182 = vrsqrt.f32 %v8799_v55  ;;  %v9544_v55 = vld [vmem:[%s18491_s2 + $0x8] sm:$0xff] }
0x1ad7   : > { %v16181_v29 = vpop.eup %16180 }
0x1ad8   : > { %v16183_v57 = vpop.eup %16182  ;;  %v8815_v8 = vmul.f32 %v16181_v29, %v17620_v3 }
0x1ad9   : > { %v8811_v34 = vsel %vm7642_vm10, %v16183_v57, %v16181_v29  ;;  %v8813_v7 = vmul.f32 %v16183_v57, %v17625_v51  ;;  %v9543_v29 = vld [vmem:[%s18491_s2] sm:$0xff]  ;;  %s18492_s2 = sld [smem:[#allocation15_spill]] }
0x1ada   : > { %v8818_v31 = vmul.f32 %v8815_v8, %v8794_v0  ;;  %v8814_v62 = vmul.f32 %v8811_v34, %v17617_v60  ;;  %v8956_v0 = vld [vmem:[%s18470_s6] sm:$0xff] }
0x1adb   : > { %v8816_v24 = vmul.f32 %v8813_v7, %v8793_v14 }
0x1adc   : > { %8826 = vrot.lane.b32.xlu0 %v8818_v31, %s18489_s0  ;;  %v8817_v17 = vmul.f32 %v8814_v62, %v8808_v37 }
0x1ade   : > { %8824 = vrot.lane.b32.xlu1 %v8817_v17, %s18489_s0 }
0x1ae0   : > { %8846 = vperm.xlu0 %16141, %v8815_v8  }
0x1ae2   : > { %8822 = vrot.lane.b32.xlu1 %v8816_v24, %s18489_s0 }
0x1ae4   : > { %8836 = vperm.xlu0 %16141, %v8813_v7  }
0x1ae6   : > { %8841 = vperm.xlu1 %16142, %v8814_v62  }
0x1ae8   : > { %16144 = vset.pattern.permute.xlu0 %v16268_v4 }
0x1aea   : > { %16143 = vset.pattern.permute.xlu1 %v16268_v4 }
0x1b4e   : > { %v8827_v6 = vpop.permute.xlu0 %8826 }
0x1b4f   : > { %v8833_v32 = vsub.f32 %v17620_v3, %v8827_v6 }
0x1b50   : > { %v8825_v10 = vpop.permute.xlu1 %8824 }
0x1b51   : > { %8864 = vperm.xlu1 %16143, %v8833_v32   ;;  %v8832_v42 = vsub.f32 %v17617_v60, %v8825_v10 }
0x1b54   : > { %v8823_v44 = vpop.permute.xlu1 %8822 }
0x1b55   : > { %v8831_v45 = vsub.f32 %v17625_v51, %v8823_v44  ;;  %8859 = vperm.xlu1 %16143, %v8832_v42  }
0x1b57   : > { %8854 = vperm.xlu0 %16144, %v8831_v45  }
0x1b59   : > { %16145 = vset.pattern.permute.xlu1 %v16258_v2 }
0x1b5a   : > { %9552 = vperm.xlu1 %16145, %v9544_v55  }
0x1b5b   : > { %16146 = vset.pattern.permute.xlu0 %v16258_v2  ;;  %v8847_v3 = vpop.permute.xlu0 %8846 }
0x1b5c   : > { %v8851_v61 = vmul.f32 %v8847_v3, %v17770_v40 }
0x1b5e   : > { %9547 = vperm.xlu1 %16145, %v9543_v29  }
0x1b5f   : > { %v8837_v26 = vpop.permute.xlu0 %8836 }
0x1b60   : > { %v8849_v53 = vmul.f32 %v8837_v26, %v17768_v35  ;;  %v14243_v35 = vld [vmem:[%s18470_s6 + $0x8] sm:$0xff]  ;;  %s18495_s6 = smov 105  }
0x1b61   : > { %v8842_v58 = vpop.permute.xlu1 %8841 }
0x1b62   : > { %v8850_v51 = vmul.f32 %v8842_v58, %v17762_v46  ;;  %v8874_v46 = vld [vmem:[%s18490_s23 + $0x8] sm:$0xff] }
0x1bcc   : > { %v8865_v60 = vpop.permute.xlu1 %8864 }
0x1bcd   : > { %v8869_v25 = vadd.f32 %v8865_v60, %v8851_v61 }
0x1bcf   : > { %v8872_v56 = vmax.f32 %v8869_v25, 0.0 }
0x1bd0   : > { %v8860_v19 = vpop.permute.xlu1 %8859 }
0x1bd1   : > { %v8868_v36 = vadd.f32 %v8860_v19, %v8850_v51  ;;  %15685 = vmatprep.subr.mxu1 %v8872_v56  ;;  %15694 = vmatprep.subr.mxu0 %v8872_v56 }
0x1bd2   : > { %v8855_v59 = vpop.permute.xlu0 %8854  ;;  %15686 = vmatpush3.msra.mxu1 %v8872_v56  ;;  %15695 = vmatpush3.msra.mxu0 %v8872_v56 }
0x1bd3   : > { %v8871_v54 = vmax.f32 %v8868_v36, 0.0  ;;  %v8867_v40 = vadd.f32 %v8855_v59, %v8849_v53 }
0x1bd5   : > { %v8870_v27 = vmax.f32 %v8867_v40, 0.0  ;;  %15687 = vmatprep.subr.mxu1 %v8871_v54  ;;  %15696 = vmatprep.subr.mxu0 %v8871_v54  ;;  %v9553_v10 = vpop.permute.xlu1 %9552 }
0x1bd6   : > { %15688 = vmatpush3.msra.mxu1 %v8871_v54  ;;  %15697 = vmatpush3.msra.mxu0 %v8871_v54 }
0x1bd7   : > { %15689 = vmatprep.subr.mxu1 %v8870_v27  ;;  %15698 = vmatprep.subr.mxu0 %v8870_v27 }
0x1bd8   : > { %15690 = vmatpush3.msra.mxu1 %v8870_v27  ;;  %15699 = vmatpush3.msra.mxu0 %v8870_v27 }
0x1bd9   : > { %15692 = vmatmul.mubr.msk.f32.vlgmr.msra.gmra.mxu1 %vm6524_vm9, %v8874_v46  ;;  %15701 = vmatmul.mubr.msk.f32.vlgmr.msra.gmra.mxu0 %vm6524_vm9, %v14240_v49  ;;  %v9548_v60 = vpop.permute.xlu1 %9547  ;;  %v9575_v49 = vld [vmem:[%s18492_s2] sm:$0xff] }
0x1bda   : > { %15703 = vmatprep.subr.mxu1 %v14243_v35  ;;  %15708 = vmatprep.subr.mxu0 %v8956_v0 }
0x1bdb   : > { %15704 = vmatpush3.msra.mxu1 %v14243_v35  ;;  %15709 = vmatpush3.msra.mxu0 %v8956_v0 }
0x1bdc   : > { %15713 = vmatprep.subr.mxu1 %v8872_v56  ;;  %15722 = vmatprep.subr.mxu0 %v14252_v47 }
0x1c99   : > { %v15693_v14 = vpop.f32.mrf.mxu1  ;;  %v15702_v21 = vpop.f32.mrf.mxu0 }
0x1c9b   : > { %v8947_v63 = vpop.f32.mrf.mxu1  ;;  %v9032_v48 = vpop.f32.mrf.mxu0 }
0x1c9c   : > { %15705 = vmatprep.mubr.msk.f32.mxu1 %vm1317_vm3, %v9032_v48  ;;  %15710 = vmatprep.mubr.msk.f32.mxu0 %vm1317_vm3, %v8947_v63 }
0x1c9d   : > { %15706 = vmatmul.mubr.msk.f32.vlgmr.msra.gmra.mxu1 %vm1317_vm3, %v15702_v21  ;;  %15711 = vmatmul.mubr.msk.f32.vlgmr.msra.gmra.mxu0 %vm1317_vm3, %v15693_v14 }
0x1c9e   : > { %15714 = vmatpush3.msra.mxu1 %v8872_v56  ;;  %15719 = vmatprep.mubr.msk.f32.mxu1 %vm6524_vm9, %v14248_v13 }
0x1c9f   : > { %15715 = vmatprep.subr.mxu1 %v8871_v54  ;;  %15723 = vmatpush3.msra.mxu0 %v14252_v47 }
0x1ca0   : > { %15716 = vmatpush3.msra.mxu1 %v8871_v54  ;;  %15736 = vmatprep.subr.mxu0 %v14259_v15 }
0x1ca1   : > { %15717 = vmatprep.subr.mxu1 %v8870_v27 }
0x1ca2   : > { %15718 = vmatpush3.msra.mxu1 %v8870_v27 }
0x1ca3   : > { %15720 = vmatmul.mubr.msk.f32.vlgmr.msra.gmra.mxu1 %vm6524_vm9, %v14249_v22  ;;  %15727 = vmatprep.subr.mxu1 %v8872_v56 }
0x1ca4   : > { %15728 = vmatpush3.msra.mxu1 %v8872_v56  ;;  %15733 = vmatprep.mubr.msk.f32.mxu1 %vm6524_vm9, %v14255_v39 }
0x1ca5   : > { %15729 = vmatprep.subr.mxu1 %v8871_v54 }
0x1ca6   : > { %15730 = vmatpush3.msra.mxu1 %v8871_v54 }
0x1ca7   : > { %15731 = vmatprep.subr.mxu1 %v8870_v27 }
0x1ca8   : > { %15732 = vmatpush3.msra.mxu1 %v8870_v27 }
0x1ca9   : > { %15734 = vmatmul.mubr.msk.f32.vlgmr.msra.gmra.mxu1 %vm6524_vm9, %v14256_v20 }
0x1caa   : > { %15752 = vmatprep.mubr.msk.f32.mxu1 %vm3706_vm6, %v9575_v49  ;;  %v14293_v49 = vld [vmem:[%s18492_s2 + $0x88] sm:$0xff] }
0x1d5d   : > { %v15707_v57 = vpop.f32.mrf.mxu1  ;;  %v15712_v17 = vpop.f32.mrf.mxu0 }
0x1d5e   : > { %v9202_v6 = vadd.f32 %v15712_v17, %v15707_v57  ;;  %v14263_v17 = vld [vmem:[%s18492_s2 + $0x18] sm:$0xff] }
0x1d5f   : > { %v9115_v8 = vpop.f32.mrf.mxu1  ;;  %v9196_v7 = vpop.f32.mrf.mxu0 }
0x1d60   : > { %v9197_v42 = vadd.f32 %v9196_v7, %v9115_v8  ;;  %v14268_v7 = vld [vmem:[%s18492_s2 + $0x20] sm:$0xff] }
0x1d63   : > { %v15721_v34 = vpop.f32.mrf.mxu1 }
0x1d65   : > { %v9280_v31 = vpop.f32.mrf.mxu1 }
0x1d66   : > { %15724 = vmatprep.mubr.msk.f32.mxu0 %vm1317_vm3, %v9280_v31  ;;  %v17899_v31 = vld [vmem:[%s18498_s9] sm:$0xff] }
0x1d67   : > { %15725 = vmatmul.mubr.msk.f32.vlgmr.msra.gmra.mxu0 %vm1317_vm3, %v15721_v34  ;;  %v17895_v34 = vld [vmem:[%s18498_s9 + $0x8] sm:$0xff] }
0x1d68   : > { %15737 = vmatpush3.msra.mxu0 %v14259_v15 }
0x1d69   : > { %v15735_v62 = vpop.f32.mrf.mxu1 }
0x1d6b   : > { %v9449_v37 = vpop.f32.mrf.mxu1 }
0x1d6c   : > { %15738 = vmatprep.mubr.msk.f32.mxu0 %vm1317_vm3, %v9449_v37 }
0x1d6d   : > { %15739 = vmatmul.mubr.msk.f32.vlgmr.msra.gmra.mxu0 %vm1317_vm3, %v15735_v62 }
0x1e27   : > { %v15726_v24 = vpop.f32.mrf.mxu0 }
0x1e28   : > { %v9373_v44 = vadd.f32 %v15726_v24, %v9202_v6 }
0x1e29   : > { %v9363_v32 = vpop.f32.mrf.mxu0 }
0x1e2a   : > { %v9372_v18 = vadd.f32 %v9363_v32, %v9197_v42  ;;  %v9576_v32 = vld [vmem:[%s18492_s2 + $0x8] sm:$0xff] }
0x1e2d   : > { %v15740_v45 = vpop.f32.mrf.mxu0 }
0x1e2e   : > { %v9542_v38 = vadd.f32 %v15740_v45, %v9373_v44  ;;  %v14269_v45 = vld [vmem:[%s18492_s2 + $0x28] sm:$0xff] }
0x1e2f   : > { %v9532_v3 = vpop.f32.mrf.mxu0 }
0x1e30   : > { %v9556_v58 = vadd.f32 %v9553_v10, %v9542_v38  ;;  %v9541_v61 = vadd.f32 %v9532_v3, %v9372_v18  ;;  %v14272_v10 = vld [vmem:[%s18492_s2 + $0x30] sm:$0xff]  ;;  %v14273_v3 = vld [vmem:[%s18492_s2 + $0x38] sm:$0xff] }
0x1e32   : > { %v9558_v25 = vmax.f32 %v9556_v58, 0.0  ;;  %v9555_v26 = vadd.f32 %v9548_v60, %v9541_v61  ;;  %v14276_v58 = vld [vmem:[%s18492_s2 + $0x40] sm:$0xff]  ;;  %v14277_v60 = vld [vmem:[%s18492_s2 + $0x48] sm:$0xff] }
0x1e34   : > { %v17840_v51 = vmul.f32 %v9558_v25, %v17095_v1  ;;  %v9557_v56 = vmax.f32 %v9555_v26, 0.0  ;;  %v14280_v25 = vld [vmem:[%s18492_s2 + $0x50] sm:$0xff] }
0x1e36   : > { %v17843_v19 = vmul.f32 %v9557_v56, %v17097_v52  ;;  %9564 = vrot.lane.b32.xlu0 %v17840_v51, %s18493_s3  ;;  %v14262_v52 = vld [vmem:[%s18492_s2 + $0x10] sm:$0xff] }
0x1e37   : > { %15745 = vmatprep.mubr.msk.f32.mxu0 %vm3706_vm6, %v14262_v52 }
0x1e38   : > { %9561 = vrot.lane.b32.xlu1 %v17843_v19, %s18493_s3 }
0x1ea8   : > { %v9565_v53 = vpop.permute.xlu0 %9564 }
0x1ea9   : > { %v9566_v36 = vsel %vm3657_vm5, %v9565_v53, %v17840_v51  ;;  %v14284_v53 = vld [vmem:[%s18492_s2 + $0x60] sm:$0xff] }
0x1eaa   : > { %9569 = vrot.lane.b32.xlu0 %v9566_v36, %s18493_s3  ;;  %v9562_v59 = vpop.permute.xlu1 %9561 }
0x1eab   : > { %v9563_v1 = vsel %vm3657_vm5, %v9562_v59, %v17843_v19  ;;  %v14285_v59 = vld [vmem:[%s18492_s2 + $0x68] sm:$0xff] }
0x1eac   : > { %9567 = vrot.lane.b32.xlu1 %v9563_v1, %s18493_s3  ;;  %v14292_v1 = vld [vmem:[%s18492_s2 + $0x80] sm:$0xff] }
0x1f1c   : > { %v9570_v54 = vpop.permute.xlu0 %9569 }
0x1f1d   : > { %v9572_v40 = vsel %vm3657_vm5, %v9570_v54, %v17840_v51 }
0x1f1e   : > { %v9568_v27 = vpop.permute.xlu1 %9567  ;;  %v9578_v46 = vmul.f32 %v9572_v40, %v16837_v16  ;;  %v9574_v14 = vmul.f32 %v9572_v40, %v16846_v9  ;;  %v9761_v63 = vmul.f32 %v9572_v40, %v16855_v30  ;;  %v9857_v13 = vmul.f32 %v9572_v40, %v16861_v33 }
0x1f1f   : > { %v9571_v35 = vsel %vm3657_vm5, %v9568_v27, %v17843_v19  ;;  %v10039_v39 = vmul.f32 %v9572_v40, %v16865_v12  ;;  %v10135_v47 = vmul.f32 %v9572_v40, %v16873_v11  ;;  %v10231_v55 = vmul.f32 %v9572_v40, %v16877_v41 }
0x1f20   : > { %9586 = vrot.lane.b32.xlu0 %v9578_v46, %s18494_s5  ;;  %v9577_v0 = vmul.f32 %v9571_v35, %v16837_v16  ;;  %v9573_v21 = vmul.f32 %v9571_v35, %v16846_v9  ;;  %v9760_v48 = vmul.f32 %v9571_v35, %v16855_v30  ;;  %v9856_v22 = vmul.f32 %v9571_v35, %v16861_v33 }
0x1f21   : > { %v10038_v20 = vmul.f32 %v9571_v35, %v16865_v12  ;;  %v10134_v15 = vmul.f32 %v9571_v35, %v16873_v11  ;;  %v10230_v29 = vmul.f32 %v9571_v35, %v16877_v41  ;;  %v10327_v57 = vmul.f32 %v9572_v40, %v16883_v43  ;;  %v14289_v40 = vld [vmem:[%s18492_s2 + $0x78] sm:$0xff] }
0x1f22   : > { %9584 = vrot.lane.b32.xlu1 %v9577_v0, %s18494_s5  ;;  %v10326_v8 = vmul.f32 %v9571_v35, %v16883_v43 }
0x1f24   : > { %9675 = vrot.lane.b32.xlu0 %v9574_v14, %s18495_s6 }
0x1f26   : > { %9673 = vrot.lane.b32.xlu1 %v9573_v21, %s18495_s6 }
0x1f28   : > { %9769 = vrot.lane.b32.xlu0 %v9761_v63, %s18496_s7 }
0x1f2a   : > { %9767 = vrot.lane.b32.xlu1 %v9760_v48, %s18496_s7 }
0x1f2c   : > { %9865 = vrot.lane.b32.xlu0 %v9857_v13, %s18497_s8 }
0x1f2e   : > { %9863 = vrot.lane.b32.xlu1 %v9856_v22, %s18497_s8 }
0x1f30   : > { %10047 = vrot.lane.b32.xlu0 %v10039_v39, %s18479_s22 }
0x1f32   : > { %10045 = vrot.lane.b32.xlu1 %v10038_v20, %s18479_s22 }
0x1f34   : > { %10143 = vrot.lane.b32.xlu0 %v10135_v47, %s18483_s15 }
0x1f36   : > { %10141 = vrot.lane.b32.xlu1 %v10134_v15, %s18483_s15 }
0x1f38   : > { %10239 = vrot.lane.b32.xlu0 %v10231_v55, %s18499_s10 }
0x1f3a   : > { %10237 = vrot.lane.b32.xlu1 %v10230_v29, %s18499_s10 }
0x1f3c   : > { %10335 = vrot.lane.b32.xlu0 %v10327_v57, %s18500_s11 }
0x1f3e   : > { %10333 = vrot.lane.b32.xlu1 %v10326_v8, %s18500_s11 }
0x1f40   : > { %10431 = vperm.xlu0 %16146, %v17895_v34  }
0x1f42   : > { %10426 = vperm.xlu1 %16145, %v17899_v31  }
0x1f44   : > { %16148 = vset.pattern.permute.xlu0 %v18487_v50 }
0x1f46   : > { %16147 = vset.pattern.permute.xlu1 %v18487_v50 }
0x1f92   : > { %v9587_v62 = vpop.permute.xlu0 %9586 }
0x1f93   : > { %15741 = vmatprep.subr.mxu0 %v9587_v62 }
0x1f94   : > { %15742 = vmatpush3.msra.mxu0 %v9587_v62  ;;  %v9585_v37 = vpop.permute.xlu1 %9584 }
0x1f95   : > { %15743 = vmatprep.subr.mxu0 %v9585_v37 }
0x1f96   : > { %v9676_v24 = vpop.permute.xlu0 %9675  ;;  %15744 = vmatpush3.msra.mxu0 %v9585_v37 }
0x1f97   : > { %15748 = vmatprep.subr.mxu1 %v9676_v24  ;;  %15746 = vmatmul.mubr.msk.f32.vlgmr.msra.gmra.mxu0 %vm3706_vm6, %v14263_v17 }
0x1f98   : > { %15749 = vmatpush3.msra.mxu1 %v9676_v24  ;;  %v9674_v6 = vpop.permute.xlu1 %9673  ;;  %15759 = vmatprep.mubr.msk.f32.mxu0 %vm3706_vm6, %v14268_v7 }
0x1f99   : > { %15750 = vmatprep.subr.mxu1 %v9674_v6 }
0x1f9a   : > { %v9770_v42 = vpop.permute.xlu0 %9769  ;;  %15751 = vmatpush3.msra.mxu1 %v9674_v6 }
0x1f9b   : > { %15755 = vmatprep.subr.mxu0 %v9770_v42  ;;  %15753 = vmatmul.mubr.msk.f32.vlgmr.msra.gmra.mxu1 %vm3706_vm6, %v9576_v32 }
0x1f9c   : > { %15756 = vmatpush3.msra.mxu0 %v9770_v42  ;;  %v9768_v44 = vpop.permute.xlu1 %9767  ;;  %15766 = vmatprep.mubr.msk.f32.mxu1 %vm3706_vm6, %v14272_v10 }
0x1f9d   : > { %15757 = vmatprep.subr.mxu0 %v9768_v44 }
0x1f9e   : > { %v9866_v18 = vpop.permute.xlu0 %9865  ;;  %15758 = vmatpush3.msra.mxu0 %v9768_v44 }
0x1f9f   : > { %15762 = vmatprep.subr.mxu1 %v9866_v18  ;;  %15769 = vmatprep.subr.mxu0 %v17840_v51 }
0x1fa0   : > { %15760 = vmatmul.mubr.msk.f32.vlgmr.msra.gmra.mxu0 %vm3706_vm6, %v14269_v45  ;;  %15763 = vmatpush3.msra.mxu1 %v9866_v18  ;;  %v9864_v38 = vpop.permute.xlu1 %9863 }
0x1fa1   : > { %15770 = vmatpush3.msra.mxu0 %v17840_v51  ;;  %15764 = vmatprep.subr.mxu1 %v9864_v38  ;;  %v14281_v51 = vld [vmem:[%s18492_s2 + $0x58] sm:$0xff] }
0x1fa2   : > { %15771 = vmatprep.subr.mxu0 %v17843_v19  ;;  %v10048_v61 = vpop.permute.xlu0 %10047  ;;  %15765 = vmatpush3.msra.mxu1 %v9864_v38 }
0x1fa3   : > { %15772 = vmatpush3.msra.mxu0 %v17843_v19  ;;  %15776 = vmatprep.subr.mxu1 %v10048_v61  ;;  %v14288_v19 = vld [vmem:[%s18492_s2 + $0x70] sm:$0xff]  ;;  %s18501_s2 = sld [smem:[#allocation17_spill]] }
0x1fa4   : > { %15767 = vmatmul.mubr.msk.f32.vlgmr.msra.gmra.mxu1 %vm3706_vm6, %v14273_v3  ;;  %v10046_v26 = vpop.permute.xlu1 %10045  ;;  %15773 = vmatprep.mubr.msk.f32.mxu0 %vm3706_vm6, %v14276_v58 }
0x1fa5   : > { %15777 = vmatpush3.msra.mxu1 %v10048_v61  ;;  %15774 = vmatmul.mubr.msk.f32.vlgmr.msra.gmra.mxu0 %vm3706_vm6, %v14277_v60 }
0x1fa6   : > { %15778 = vmatprep.subr.mxu1 %v10046_v26  ;;  %v10144_v56 = vpop.permute.xlu0 %10143  ;;  %15780 = vmatprep.mubr.msk.f32.mxu1 %vm3706_vm6, %v14280_v25 }
0x1fa7   : > { %15779 = vmatpush3.msra.mxu1 %v10046_v26  ;;  %15783 = vmatprep.subr.mxu0 %v10144_v56 }
0x1fa8   : > { %15784 = vmatpush3.msra.mxu0 %v10144_v56  ;;  %v10142_v36 = vpop.permute.xlu1 %10141  ;;  %15781 = vmatmul.mubr.msk.f32.vlgmr.msra.gmra.mxu1 %vm3706_vm6, %v14281_v51 }
0x1fa9   : > { %15785 = vmatprep.subr.mxu0 %v10142_v36  ;;  %15787 = vmatprep.mubr.msk.f32.mxu0 %vm3706_vm6, %v14284_v53 }
0x1faa   : > { %v10240_v52 = vpop.permute.xlu0 %10239  ;;  %15786 = vmatpush3.msra.mxu0 %v10142_v36  ;;  %15794 = vmatprep.mubr.msk.f32.mxu1 %vm3706_vm6, %v14288_v19 }
0x1fab   : > { %15790 = vmatprep.subr.mxu1 %v10240_v52  ;;  %15788 = vmatmul.mubr.msk.f32.vlgmr.msra.gmra.mxu0 %vm3706_vm6, %v14285_v59 }
0x1fac   : > { %15791 = vmatpush3.msra.mxu1 %v10240_v52  ;;  %v10238_v54 = vpop.permute.xlu1 %10237  ;;  %15801 = vmatprep.mubr.msk.f32.mxu0 %vm3706_vm6, %v14292_v1 }
0x1fad   : > { %15792 = vmatprep.subr.mxu1 %v10238_v54 }
0x1fae   : > { %v10336_v27 = vpop.permute.xlu0 %10335  ;;  %15793 = vmatpush3.msra.mxu1 %v10238_v54 }
0x1faf   : > { %15797 = vmatprep.subr.mxu0 %v10336_v27  ;;  %15795 = vmatmul.mubr.msk.f32.vlgmr.msra.gmra.mxu1 %vm3706_vm6, %v14289_v40 }
0x1fb0   : > { %15798 = vmatpush3.msra.mxu0 %v10336_v27  ;;  %v10334_v46 = vpop.permute.xlu1 %10333 }
0x1fb1   : > { %15799 = vmatprep.subr.mxu0 %v10334_v46 }
0x1fb2   : > { %15800 = vmatpush3.msra.mxu0 %v10334_v46 }
0x1fb3   : > { %15802 = vmatmul.mubr.msk.f32.vlgmr.msra.gmra.mxu0 %vm3706_vm6, %v14293_v49 }
0x1fbb   : > { %v10432_v58 = vpop.permute.xlu0 %10431 }
0x1fbd   : > { %v10427_v56 = vpop.permute.xlu1 %10426 }
0x2057   : > { %v15747_v35 = vpop.f32.mrf.mxu0 }
0x2059   : > { %v9662_v14 = vpop.f32.mrf.mxu0 }
0x205b   : > { %v15754_v0 = vpop.f32.mrf.mxu1 }
0x205c   : > { %v9757_v21 = vadd.f32 %v15754_v0, %v15747_v35 }
0x205d   : > { %v9751_v63 = vpop.f32.mrf.mxu1 }
0x205e   : > { %v9752_v48 = vadd.f32 %v9751_v63, %v9662_v14 }
0x2060   : > { %v15761_v13 = vpop.f32.mrf.mxu0 }
0x2061   : > { %v9855_v22 = vadd.f32 %v15761_v13, %v9757_v21 }
0x2062   : > { %v9845_v39 = vpop.f32.mrf.mxu0 }
0x2063   : > { %v9854_v20 = vadd.f32 %v9845_v39, %v9752_v48 }
0x2064   : > { %v15768_v47 = vpop.f32.mrf.mxu1 }
0x2065   : > { %v9951_v15 = vadd.f32 %v15768_v47, %v9855_v22  ;;  %v15775_v55 = vpop.f32.mrf.mxu0 }
0x2066   : > { %v9941_v29 = vpop.f32.mrf.mxu1 }
0x2067   : > { %v9950_v57 = vadd.f32 %v9941_v29, %v9854_v20  ;;  %v10037_v8 = vadd.f32 %v15775_v55, %v9951_v15  ;;  %v10027_v62 = vpop.f32.mrf.mxu0 }
0x2068   : > { %v15782_v37 = vpop.f32.mrf.mxu1 }
0x2069   : > { %v10036_v17 = vadd.f32 %v10027_v62, %v9950_v57  ;;  %v10133_v7 = vadd.f32 %v15782_v37, %v10037_v8 }
0x206a   : > { %v10123_v24 = vpop.f32.mrf.mxu1 }
0x206b   : > { %v15789_v6 = vpop.f32.mrf.mxu0  ;;  %v10132_v32 = vadd.f32 %v10123_v24, %v10036_v17 }
0x206c   : > { %v10229_v10 = vadd.f32 %v15789_v6, %v10133_v7 }
0x206d   : > { %v10219_v42 = vpop.f32.mrf.mxu0 }
0x206e   : > { %v10228_v18 = vadd.f32 %v10219_v42, %v10132_v32 }
0x206f   : > { %v15796_v44 = vpop.f32.mrf.mxu1 }
0x2070   : > { %v10325_v38 = vadd.f32 %v15796_v44, %v10229_v10 }
0x2071   : > { %v10315_v45 = vpop.f32.mrf.mxu1 }
0x2072   : > { %v10324_v61 = vadd.f32 %v10315_v45, %v10228_v18 }
0x2073   : > { %v15803_v3 = vpop.f32.mrf.mxu0 }
0x2074   : > { %v10421_v60 = vadd.f32 %v15803_v3, %v10325_v38 }
0x2075   : > { %v10411_v25 = vpop.f32.mrf.mxu0 }
0x2076   : > { %v17941_v26 = vadd.f32 %v10432_v58, %v10421_v60  ;;  %v10420_v51 = vadd.f32 %v10411_v25, %v10324_v61 }
0x2078   : > { %v17943_v53 = vadd.f32 %v10427_v56, %v10420_v51  ;;  %v10439_v19 = vsel %vm4613_vm7, %v17941_v26, 0.0  ;;  %v10443_v1 = vmul.f32 %v17941_v26, %v17941_v26 }
0x2079   : > { %10440 = vadd.xlane.f32.xlu1 %v10439_v19 }
0x207a   : > { %v10436_v36 = vsel %vm4613_vm7, %v17943_v53, 0.0  ;;  %v10442_v59 = vmul.f32 %v17943_v53, %v17943_v53  ;;  %v10447_v54 = vsel %vm4613_vm7, %v10443_v1, 0.0 }
0x207b   : > { %10437 = vadd.xlane.f32.xlu0 %v10436_v36 }
0x207c   : > { %v10444_v52 = vsel %vm4613_vm7, %v10442_v59, 0.0 }
0x207d   : > { %10445 = vadd.xlane.f32.xlu1 %v10444_v52 }
0x207f   : > { %10448 = vadd.xlane.f32.xlu0 %v10447_v54 }
0x2102   : > { %v10441_v40 = vpop.xlane.xlu1 %10440 }
0x2103   : > { %v10456_v27 = vrot.slane %v10441_v40, 4 }
0x2104   : > { %v10438_v46 = vpop.xlane.xlu0 %10437 }
0x2105   : > { %v10457_v49 = vadd.f32 %v10456_v27, %v10441_v40  ;;  %v10450_v35 = vrot.slane %v10438_v46, 4 }
0x2106   : > { %v10446_v0 = vpop.xlane.xlu1 %10445 }
0x2107   : > { %v10458_v14 = vrot.slane %v10457_v49, 2  ;;  %v10451_v21 = vadd.f32 %v10450_v35, %v10438_v46  ;;  %v10462_v63 = vrot.slane %v10446_v0, 4 }
0x2108   : > { %v10449_v48 = vpop.xlane.xlu0 %10448 }
0x2109   : > { %v10459_v13 = vadd.f32 %v10458_v14, %v10457_v49  ;;  %v10452_v22 = vrot.slane %v10451_v21, 2  ;;  %v10463_v39 = vadd.f32 %v10462_v63, %v10446_v0  ;;  %v10468_v20 = vrot.slane %v10449_v48, 4 }
0x210b   : > { %v10460_v47 = vrot.slane %v10459_v13, 1  ;;  %v10453_v15 = vadd.f32 %v10452_v22, %v10451_v21  ;;  %v10464_v55 = vrot.slane %v10463_v39, 2  ;;  %v10469_v29 = vadd.f32 %v10468_v20, %v10449_v48 }
0x210d   : > { %v10461_v57 = vadd.f32 %v10460_v47, %v10459_v13  ;;  %v10454_v8 = vrot.slane %v10453_v15, 1  ;;  %v10465_v62 = vadd.f32 %v10464_v55, %v10463_v39  ;;  %v10470_v37 = vrot.slane %v10469_v29, 2  ;;  %v14296_v47 = vld [vmem:[%s18501_s2 + $0x10] sm:$0xff] }
0x210e   : > { %15808 = vmatprep.mubr.msk.f32.mxu1 %vm3706_vm6, %v14296_v47 }
0x210f   : > { %v10455_v17 = vadd.f32 %v10454_v8, %v10453_v15  ;;  %v10466_v7 = vrot.slane %v10465_v62, 1  ;;  %v10471_v24 = vadd.f32 %v10470_v37, %v10469_v29  ;;  %v10475_v6 = vmul.f32 0.00390625, %v10461_v57  ;;  %v10546_v57 = vld [vmem:[%s18501_s2] sm:$0xff] }
0x2110   : > { %15815 = vmatprep.mubr.msk.f32.mxu0 %vm3706_vm6, %v10546_v57 }
0x2111   : > { %v10474_v32 = vmul.f32 0.00390625, %v10455_v17  ;;  %v10467_v10 = vadd.f32 %v10466_v7, %v10465_v62  ;;  %v10472_v42 = vrot.slane %v10471_v24, 1  ;;  %v10483_v38 = vmul.f32 %v10475_v6, %v10475_v6 }
0x2113   : > { %v10477_v44 = vmul.f32 %v10474_v32, %v10474_v32  ;;  %v10476_v45 = vmul.f32 0.00390625, %v10467_v10  ;;  %v10473_v18 = vadd.f32 %v10472_v42, %v10471_v24 }
0x2115   : > { %v10478_v3 = vsub.f32 %v10476_v45, %v10477_v44  ;;  %v10482_v58 = vmul.f32 0.00390625, %v10473_v18 }
0x2117   : > { %v10479_v61 = vmax.f32 %v10478_v3, 0.0  ;;  %v10484_v60 = vsub.f32 %v10482_v58, %v10483_v38  ;;  %v14302_v58 = vld [vmem:[%s18501_s2 + $0x20] sm:$0xff] }
0x2119   : > { %v10480_v25 = vadd.f32 1e-05, %v10479_v61  ;;  %v10485_v51 = vmax.f32 %v10484_v60, 0.0 }
0x211b   : > { %16184 = vrsqrt.f32 %v10480_v25  ;;  %v10486_v56 = vadd.f32 1e-05, %v10485_v51  ;;  %v10547_v25 = vld [vmem:[%s18501_s2 + $0x8] sm:$0xff]  ;;  %v14306_v51 = vld [vmem:[%s18501_s2 + $0x30] sm:$0xff] }
0x211d   : > { %16186 = vrsqrt.f32 %v10486_v56 }
0x2128   : > { %v16185_v19 = vpop.eup %16184 }
0x2129   : > { %v10492_v36 = vmul.f32 %v16185_v19, %v17899_v31 }
0x212a   : > { %v16187_v59 = vpop.eup %16186 }
0x212b   : > { %v10494_v1 = vmul.f32 %v10492_v36, %v10474_v32  ;;  %v10493_v52 = vmul.f32 %v16187_v59, %v17895_v34  ;;  %v14310_v59 = vld [vmem:[%s18501_s2 + $0x40] sm:$0xff] }
0x212d   : > { %10498 = vrot.lane.b32.xlu1 %v10494_v1, %s18489_s0  ;;  %v10495_v54 = vmul.f32 %v10493_v52, %v10475_v6 }
0x212f   : > { %10500 = vrot.lane.b32.xlu0 %v10495_v54, %s18489_s0  ;;  %v14307_v54 = vld [vmem:[%s18501_s2 + $0x38] sm:$0xff] }
0x2131   : > { %10513 = vperm.xlu1 %16147, %v10493_v52  }
0x2133   : > { %10508 = vperm.xlu0 %16148, %v10492_v36   ;;  %v14303_v36 = vld [vmem:[%s18501_s2 + $0x28] sm:$0xff] }
0x2135   : > { %16149 = vset.pattern.permute.xlu1 %v16268_v4 }
0x2137   : > { %16150 = vset.pattern.permute.xlu0 %v16258_v2 }
0x219f   : > { %v10499_v46 = vpop.permute.xlu1 %10498 }
0x21a0   : > { %v10504_v49 = vsub.f32 %v17899_v31, %v10499_v46 }
0x21a1   : > { %v10501_v40 = vpop.permute.xlu0 %10500 }
0x21a2   : > { %v10505_v27 = vsub.f32 %v17895_v34, %v10501_v40  ;;  %v14311_v40 = vld [vmem:[%s18501_s2 + $0x48] sm:$0xff] }
0x21a4   : > { %10525 = vperm.xlu1 %16149, %v10505_v27  }
0x21a8   : > { %10520 = vperm.xlu1 %16149, %v10504_v49   ;;  %v14314_v49 = vld [vmem:[%s18501_s2 + $0x50] sm:$0xff] }
0x21ac   : > { %16151 = vset.pattern.permute.xlu1 %v16258_v2  ;;  %v10514_v35 = vpop.permute.xlu1 %10513 }
0x21ad   : > { %v10517_v0 = vmul.f32 %v10514_v35, %v17941_v26  ;;  %v14318_v35 = vld [vmem:[%s18501_s2 + $0x60] sm:$0xff] }
0x21ae   : > { %v10509_v14 = vpop.permute.xlu0 %10508 }
0x21af   : > { %v10516_v48 = vmul.f32 %v10509_v14, %v17943_v53 }
0x221f   : > { %v10526_v21 = vpop.permute.xlu1 %10525 }
0x2220   : > { %v10529_v63 = vadd.f32 %v10526_v21, %v10517_v0  ;;  %v14315_v0 = vld [vmem:[%s18501_s2 + $0x58] sm:$0xff] }
0x2222   : > { %v17966_v13 = vmax.f32 %v10529_v63, 0.0  ;;  %v14319_v63 = vld [vmem:[%s18501_s2 + $0x68] sm:$0xff] }
0x2223   : > { %v10521_v22 = vpop.permute.xlu1 %10520 }
0x2224   : > { %v10528_v34 = vadd.f32 %v10521_v22, %v10516_v48  ;;  %10535 = vrot.lane.b32.xlu0 %v17966_v13, %s18493_s3  ;;  %v14322_v48 = vld [vmem:[%s18501_s2 + $0x70] sm:$0xff] }
0x2226   : > { %v17970_v31 = vmax.f32 %v10528_v34, 0.0 }
0x2228   : > { %10532 = vrot.lane.b32.xlu1 %v17970_v31, %s18493_s3 }
0x2296   : > { %v10536_v26 = vpop.permute.xlu0 %10535 }
0x2297   : > { %v10537_v39 = vsel %vm3657_vm5, %v10536_v26, %v17966_v13 }
0x2298   : > { %10540 = vrot.lane.b32.xlu0 %v10537_v39, %s18493_s3  ;;  %v14327_v39 = vld [vmem:[%s18501_s2 + $0x88] sm:$0xff] }
0x229a   : > { %v10533_v53 = vpop.permute.xlu1 %10532 }
0x229b   : > { %v10534_v20 = vsel %vm3657_vm5, %v10533_v53, %v17970_v31 }
0x229c   : > { %10538 = vrot.lane.b32.xlu1 %v10534_v20, %s18493_s3  ;;  %s18503_s3 = sld [smem:[#allocation19_spill]] }
0x230a   : > { %v10541_v15 = vpop.permute.xlu0 %10540 }
0x230b   : > { %v10543_v55 = vsel %vm3657_vm5, %v10541_v15, %v17966_v13 }
0x230c   : > { %v10549_v29 = vmul.f32 %v10543_v55, %v16837_v16  ;;  %v10545_v37 = vmul.f32 %v10543_v55, %v16846_v9  ;;  %v10732_v7 = vmul.f32 %v10543_v55, %v16855_v30  ;;  %v10828_v6 = vmul.f32 %v10543_v55, %v16861_v33 }
0x230e   : > { %10557 = vrot.lane.b32.xlu0 %v10549_v29, %s18494_s5  ;;  %v10539_v8 = vpop.permute.xlu1 %10538 }
0x230f   : > { %v10542_v62 = vsel %vm3657_vm5, %v10539_v8, %v17970_v31 }
0x2310   : > { %v10548_v17 = vmul.f32 %v10542_v62, %v16837_v16  ;;  %v10544_v24 = vmul.f32 %v10542_v62, %v16846_v9  ;;  %v10731_v32 = vmul.f32 %v10542_v62, %v16855_v30  ;;  %v11010_v16 = vmul.f32 %v10543_v55, %v16865_v12 }
0x2311   : > { %v10827_v10 = vmul.f32 %v10542_v62, %v16861_v33  ;;  %v11106_v9 = vmul.f32 %v10543_v55, %v16873_v11  ;;  %v11009_v42 = vmul.f32 %v10542_v62, %v16865_v12  ;;  %v11202_v30 = vmul.f32 %v10543_v55, %v16877_v41 }
0x2312   : > { %10646 = vrot.lane.b32.xlu0 %v10545_v37, %s18495_s6  ;;  %10555 = vrot.lane.b32.xlu1 %v10548_v17, %s18494_s5  ;;  %s18502_s5 = sld [smem:[#allocation18_spill]]  ;;  %v11105_v44 = vmul.f32 %v10542_v62, %v16873_v11  ;;  %v11298_v33 = vmul.f32 %v10543_v55, %v16883_v43  ;;  %v11201_v45 = vmul.f32 %v10542_v62, %v16877_v41 }
0x2313   : > { %v11297_v18 = vmul.f32 %v10542_v62, %v16883_v43  ;;  %v14297_v43 = vld [vmem:[%s18501_s2 + $0x18] sm:$0xff] }
0x2316   : > { %10740 = vrot.lane.b32.xlu0 %v10732_v7, %s18496_s7  ;;  %10644 = vrot.lane.b32.xlu1 %v10544_v24, %s18495_s6  ;;  %s18505_s6 = sld [smem:[#allocation20_spill]] }
0x2318   : > { %v18019_v12 = vld [vmem:[%s18502_s5 + $0x8] sm:$0xff]  ;;  %v18025_v11 = vld [vmem:[%s18502_s5] sm:$0xff]  ;;  %s18513_s5 = smov 111  }
0x231a   : > { %10836 = vrot.lane.b32.xlu0 %v10828_v6, %s18497_s8  ;;  %10738 = vrot.lane.b32.xlu1 %v10731_v32, %s18496_s7  ;;  %s18506_s7 = sld [smem:[#allocation22_spill]] }
0x231e   : > { %11018 = vrot.lane.b32.xlu0 %v11010_v16, %s18479_s22  ;;  %10834 = vrot.lane.b32.xlu1 %v10827_v10, %s18497_s8  ;;  %s18504_s8 = sld [smem:[#allocation29_spill]] }
0x2322   : > { %11114 = vrot.lane.b32.xlu0 %v11106_v9, %s18483_s15  ;;  %11016 = vrot.lane.b32.xlu1 %v11009_v42, %s18479_s22 }
0x2326   : > { %11210 = vrot.lane.b32.xlu0 %v11202_v30, %s18499_s10  ;;  %11112 = vrot.lane.b32.xlu1 %v11105_v44, %s18483_s15  ;;  %s18509_s15 = sld [smem:[#allocation21_spill]] }
0x232a   : > { %11306 = vrot.lane.b32.xlu0 %v11298_v33, %s18500_s11  ;;  %11208 = vrot.lane.b32.xlu1 %v11201_v45, %s18499_s10  ;;  %s18507_s10 = smov 15  }
0x232e   : > { %11304 = vrot.lane.b32.xlu1 %v11297_v18, %s18500_s11  ;;  %11402 = vperm.xlu0 %16150, %v18019_v12   ;;  %s18508_s11 = smov 16  }
0x2332   : > { %11397 = vperm.xlu1 %16151, %v18025_v11   ;;  %16153 = vset.pattern.permute.xlu0 %v18487_v50 }
0x2336   : > { %16152 = vset.pattern.permute.xlu1 %v18487_v50 }
0x2380   : > { %v10558_v41 = vpop.permute.xlu0 %10557 }
0x2381   : > { %15804 = vmatprep.subr.mxu1 %v10558_v41 }
0x2382   : > { %15805 = vmatpush3.msra.mxu1 %v10558_v41 }
0x2384   : > { %v10647_v38 = vpop.permute.xlu0 %10646  ;;  %v10556_v3 = vpop.permute.xlu1 %10555 }
0x2385   : > { %15806 = vmatprep.subr.mxu1 %v10556_v3  ;;  %15811 = vmatprep.subr.mxu0 %v10647_v38 }
0x2386   : > { %15807 = vmatpush3.msra.mxu1 %v10556_v3  ;;  %15812 = vmatpush3.msra.mxu0 %v10647_v38 }
0x2387   : > { %15809 = vmatmul.mubr.msk.f32.vlgmr.msra.gmra.mxu1 %vm3706_vm6, %v14297_v43 }
0x2388   : > { %v10741_v61 = vpop.permute.xlu0 %10740  ;;  %v10645_v60 = vpop.permute.xlu1 %10644  ;;  %15822 = vmatprep.mubr.msk.f32.mxu1 %vm3706_vm6, %v14302_v58 }
0x2389   : > { %15813 = vmatprep.subr.mxu0 %v10645_v60  ;;  %15818 = vmatprep.subr.mxu1 %v10741_v61 }
0x238a   : > { %15814 = vmatpush3.msra.mxu0 %v10645_v60  ;;  %15819 = vmatpush3.msra.mxu1 %v10741_v61 }
0x238b   : > { %15816 = vmatmul.mubr.msk.f32.vlgmr.msra.gmra.mxu0 %vm3706_vm6, %v10547_v25 }
0x238c   : > { %v10837_v56 = vpop.permute.xlu0 %10836  ;;  %v10739_v19 = vpop.permute.xlu1 %10738  ;;  %15829 = vmatprep.mubr.msk.f32.mxu0 %vm3706_vm6, %v14306_v51 }
0x238d   : > { %15820 = vmatprep.subr.mxu1 %v10739_v19  ;;  %15825 = vmatprep.subr.mxu0 %v10837_v56 }
0x238e   : > { %15821 = vmatpush3.msra.mxu1 %v10739_v19  ;;  %15826 = vmatpush3.msra.mxu0 %v10837_v56 }
0x238f   : > { %15832 = vmatprep.subr.mxu1 %v17966_v13  ;;  %15823 = vmatmul.mubr.msk.f32.vlgmr.msra.gmra.mxu1 %vm3706_vm6, %v14303_v36 }
0x2390   : > { %v11019_v1 = vpop.permute.xlu0 %11018  ;;  %15833 = vmatpush3.msra.mxu1 %v17966_v13  ;;  %v10835_v52 = vpop.permute.xlu1 %10834  ;;  %15836 = vmatprep.mubr.msk.f32.mxu1 %vm3706_vm6, %v14310_v59  ;;  %v14326_v13 = vld [vmem:[%s18501_s2 + $0x80] sm:$0xff] }
0x2391   : > { %15827 = vmatprep.subr.mxu0 %v10835_v52  ;;  %15834 = vmatprep.subr.mxu1 %v17970_v31 }
0x2392   : > { %15828 = vmatpush3.msra.mxu0 %v10835_v52  ;;  %15835 = vmatpush3.msra.mxu1 %v17970_v31  ;;  %v14323_v31 = vld [vmem:[%s18501_s2 + $0x78] sm:$0xff]  ;;  %s18511_s2 = smov 112  }
0x2393   : > { %15839 = vmatprep.subr.mxu0 %v11019_v1  ;;  %15830 = vmatmul.mubr.msk.f32.vlgmr.msra.gmra.mxu0 %vm3706_vm6, %v14307_v54 }
0x2394   : > { %v11115_v27 = vpop.permute.xlu0 %11114  ;;  %15840 = vmatpush3.msra.mxu0 %v11019_v1  ;;  %v11017_v46 = vpop.permute.xlu1 %11016  ;;  %15837 = vmatmul.mubr.msk.f32.vlgmr.msra.gmra.mxu1 %vm3706_vm6, %v14311_v40 }
0x2395   : > { %15841 = vmatprep.subr.mxu0 %v11017_v46  ;;  %15846 = vmatprep.subr.mxu1 %v11115_v27 }
0x2396   : > { %15842 = vmatpush3.msra.mxu0 %v11017_v46  ;;  %15847 = vmatpush3.msra.mxu1 %v11115_v27 }
0x2397   : > { %15843 = vmatprep.mubr.msk.f32.mxu0 %vm3706_vm6, %v14314_v49  ;;  %15850 = vmatprep.mubr.msk.f32.mxu1 %vm3706_vm6, %v14318_v35 }
0x2398   : > { %v11211_v14 = vpop.permute.xlu0 %11210  ;;  %v11113_v21 = vpop.permute.xlu1 %11112  ;;  %15844 = vmatmul.mubr.msk.f32.vlgmr.msra.gmra.mxu0 %vm3706_vm6, %v14315_v0 }
0x2399   : > { %15848 = vmatprep.subr.mxu1 %v11113_v21  ;;  %15853 = vmatprep.subr.mxu0 %v11211_v14 }
0x239a   : > { %15849 = vmatpush3.msra.mxu1 %v11113_v21  ;;  %15854 = vmatpush3.msra.mxu0 %v11211_v14 }
0x239b   : > { %15851 = vmatmul.mubr.msk.f32.vlgmr.msra.gmra.mxu1 %vm3706_vm6, %v14319_v63  ;;  %15857 = vmatprep.mubr.msk.f32.mxu0 %vm3706_vm6, %v14322_v48 }
0x239c   : > { %v11307_v22 = vpop.permute.xlu0 %11306  ;;  %v11209_v34 = vpop.permute.xlu1 %11208  ;;  %15864 = vmatprep.mubr.msk.f32.mxu1 %vm3706_vm6, %v14326_v13 }
0x239d   : > { %15855 = vmatprep.subr.mxu0 %v11209_v34  ;;  %15860 = vmatprep.subr.mxu1 %v11307_v22 }
0x239e   : > { %15856 = vmatpush3.msra.mxu0 %v11209_v34  ;;  %15861 = vmatpush3.msra.mxu1 %v11307_v22 }
0x239f   : > { %15858 = vmatmul.mubr.msk.f32.vlgmr.msra.gmra.mxu0 %vm3706_vm6, %v14323_v31  ;;  %15867 = vmatprep.subr.mxu0 %v18488_v28 }
0x23a0   : > { %v11305_v26 = vpop.permute.xlu1 %11304  ;;  %15871 = vmatprep.mubr.msk.f32.mxu0 %vm16257_vm0, %v18488_v28 }
0x23a1   : > { %15862 = vmatprep.subr.mxu1 %v11305_v26 }
0x23a2   : > { %15863 = vmatpush3.msra.mxu1 %v11305_v26 }
0x23a3   : > { %15865 = vmatmul.mubr.msk.f32.vlgmr.msra.gmra.mxu1 %vm3706_vm6, %v14327_v39  ;;  %15874 = vmatprep.subr.mxu1 %v18488_v28 }
0x23a4   : > { %15878 = vmatprep.mubr.msk.f32.mxu1 %vm16257_vm0, %v18488_v28 }
0x23a9   : > { %v11403_v60 = vpop.permute.xlu0 %11402 }
0x23ad   : > { %v11398_v19 = vpop.permute.xlu1 %11397 }
0x2447   : > { %v15810_v53 = vpop.f32.mrf.mxu1 }
0x2449   : > { %v10633_v20 = vpop.f32.mrf.mxu1 }
0x244b   : > { %v15817_v47 = vpop.f32.mrf.mxu0 }
0x244c   : > { %v10728_v15 = vadd.f32 %v15817_v47, %v15810_v53 }
0x244d   : > { %v10722_v55 = vpop.f32.mrf.mxu0 }
0x244e   : > { %v10723_v29 = vadd.f32 %v10722_v55, %v10633_v20 }
0x244f   : > { %v15824_v57 = vpop.f32.mrf.mxu1 }
0x2450   : > { %v10826_v8 = vadd.f32 %v15824_v57, %v10728_v15 }
0x2451   : > { %v10816_v62 = vpop.f32.mrf.mxu1 }
0x2452   : > { %v10825_v37 = vadd.f32 %v10816_v62, %v10723_v29 }
0x2453   : > { %v15831_v17 = vpop.f32.mrf.mxu0 }
0x2454   : > { %v10922_v7 = vadd.f32 %v15831_v17, %v10826_v8  ;;  %v15838_v24 = vpop.f32.mrf.mxu1 }
0x2455   : > { %v10912_v6 = vpop.f32.mrf.mxu0 }
0x2456   : > { %v10921_v32 = vadd.f32 %v10912_v6, %v10825_v37  ;;  %v11008_v16 = vadd.f32 %v15838_v24, %v10922_v7  ;;  %v10998_v10 = vpop.f32.mrf.mxu1 }
0x2458   : > { %v15845_v9 = vpop.f32.mrf.mxu0  ;;  %v11007_v42 = vadd.f32 %v10998_v10, %v10921_v32 }
0x2459   : > { %v11104_v30 = vadd.f32 %v15845_v9, %v11008_v16 }
0x245a   : > { %v11094_v44 = vpop.f32.mrf.mxu0 }
0x245b   : > { %v15852_v33 = vpop.f32.mrf.mxu1  ;;  %v11103_v45 = vadd.f32 %v11094_v44, %v11007_v42 }
0x245c   : > { %v11200_v18 = vadd.f32 %v15852_v33, %v11104_v30 }
0x245d   : > { %v11190_v41 = vpop.f32.mrf.mxu1 }
0x245e   : > { %v11199_v43 = vadd.f32 %v11190_v41, %v11103_v45 }
0x245f   : > { %v15859_v38 = vpop.f32.mrf.mxu0 }
0x2460   : > { %v11296_v58 = vadd.f32 %v15859_v38, %v11200_v18 }
0x2461   : > { %v11286_v3 = vpop.f32.mrf.mxu0 }
0x2462   : > { %v11295_v25 = vadd.f32 %v11286_v3, %v11199_v43 }
0x2463   : > { %v15866_v61 = vpop.f32.mrf.mxu1 }
0x2464   : > { %v11392_v51 = vadd.f32 %v15866_v61, %v11296_v58 }
0x2465   : > { %v11382_v56 = vpop.f32.mrf.mxu1 }
0x2466   : > { %v18072_v36 = vadd.f32 %v11403_v60, %v11392_v51  ;;  %v11391_v59 = vadd.f32 %v11382_v56, %v11295_v25 }
0x2468   : > { %v18074_v1 = vadd.f32 %v11398_v19, %v11391_v59  ;;  %v11410_v52 = vsel %vm4613_vm7, %v18072_v36, 0.0  ;;  %v11414_v27 = vmul.f32 %v18072_v36, %v18072_v36 }
0x2469   : > { %11411 = vadd.xlane.f32.xlu1 %v11410_v52 }
0x246a   : > { %v11407_v54 = vsel %vm4613_vm7, %v18074_v1, 0.0  ;;  %v11413_v40 = vmul.f32 %v18074_v1, %v18074_v1  ;;  %v11418_v49 = vsel %vm4613_vm7, %v11414_v27, 0.0 }
0x246b   : > { %11408 = vadd.xlane.f32.xlu0 %v11407_v54 }
0x246c   : > { %v11415_v46 = vsel %vm4613_vm7, %v11413_v40, 0.0 }
0x246d   : > { %11416 = vadd.xlane.f32.xlu1 %v11415_v46 }
0x246f   : > { %11419 = vadd.xlane.f32.xlu0 %v11418_v49 }
0x24f2   : > { %v11412_v35 = vpop.xlane.xlu1 %11411 }
0x24f3   : > { %v11427_v0 = vrot.slane %v11412_v35, 4 }
0x24f4   : > { %v11409_v14 = vpop.xlane.xlu0 %11408 }
0x24f5   : > { %v11428_v21 = vadd.f32 %v11427_v0, %v11412_v35  ;;  %v11421_v63 = vrot.slane %v11409_v14, 4 }
0x24f6   : > { %v11417_v48 = vpop.xlane.xlu1 %11416 }
0x24f7   : > { %v11429_v13 = vrot.slane %v11428_v21, 2  ;;  %v11422_v22 = vadd.f32 %v11421_v63, %v11409_v14  ;;  %v11433_v34 = vrot.slane %v11417_v48, 4  ;;  %v14336_v63 = vld [vmem:[%s18504_s8 + $0x38] sm:$0xff] }
0x24f8   : > { %v11420_v31 = vpop.xlane.xlu0 %11419 }
0x24f9   : > { %v11430_v26 = vadd.f32 %v11429_v13, %v11428_v21  ;;  %v11423_v39 = vrot.slane %v11422_v22, 2  ;;  %v11434_v53 = vadd.f32 %v11433_v34, %v11417_v48  ;;  %v11439_v20 = vrot.slane %v11420_v31, 4  ;;  %v11503_v21 = vld [vmem:[%s18503_s3] sm:$0xff]  ;;  %v11580_v48 = vld [vmem:[%s18504_s8 + $0x18] sm:$0xff]  ;;  %v14334_v13 = vld [vmem:[%s18504_s8 + $0x28] sm:$0xff] }
0x24fa   : > { %v11579_v34 = vld [vmem:[%s18504_s8 + $0x10] sm:$0xff] }
0x24fb   : > { %v11431_v47 = vrot.slane %v11430_v26, 1  ;;  %v11424_v15 = vadd.f32 %v11423_v39, %v11422_v22  ;;  %v11435_v55 = vrot.slane %v11434_v53, 2  ;;  %v11440_v29 = vadd.f32 %v11439_v20, %v11420_v31  ;;  %v14333_v22 = vld [vmem:[%s18504_s8 + $0x20] sm:$0xff]  ;;  %v11578_v31 = vld [vmem:[%s18504_s8 + $0x8] sm:$0xff]  ;;  %v14344_v20 = vld [vmem:[%s18504_s8 + $0x58] sm:$0xff] }
0x24fd   : > { %v11432_v57 = vadd.f32 %v11431_v47, %v11430_v26  ;;  %v11425_v8 = vrot.slane %v11424_v15, 1  ;;  %v11436_v62 = vadd.f32 %v11435_v55, %v11434_v53  ;;  %v11441_v37 = vrot.slane %v11440_v29, 2  ;;  %v11577_v26 = vld [vmem:[%s18504_s8] sm:$0xff] }
0x24ff   : > { %v11426_v17 = vadd.f32 %v11425_v8, %v11424_v15  ;;  %v11437_v7 = vrot.slane %v11436_v62, 1  ;;  %v11442_v24 = vadd.f32 %v11441_v37, %v11440_v29  ;;  %v11446_v6 = vmul.f32 0.00390625, %v11432_v57  ;;  %v14339_v15 = vld [vmem:[%s18503_s3 + $0x10] sm:$0xff]  ;;  %v14346_v29 = vld [vmem:[%s18503_s3 + $0x18] sm:$0xff]  ;;  %v14342_v8 = vld [vmem:[%s18504_s8 + $0x48] sm:$0xff] }
0x2500   : > { %v14343_v57 = vld [vmem:[%s18504_s8 + $0x50] sm:$0xff]  ;;  %v14341_v37 = vld [vmem:[%s18504_s8 + $0x40] sm:$0xff] }
0x2501   : > { %v11445_v32 = vmul.f32 0.00390625, %v11426_v17  ;;  %v11438_v16 = vadd.f32 %v11437_v7, %v11436_v62  ;;  %v11443_v10 = vrot.slane %v11442_v24, 1  ;;  %v11454_v44 = vmul.f32 %v11446_v6, %v11446_v6  ;;  %v14351_v62 = vld [vmem:[%s18504_s8 + $0x78] sm:$0xff]  ;;  %v14350_v17 = vld [vmem:[%s18504_s8 + $0x70] sm:$0xff]  ;;  %v14349_v7 = vld [vmem:[%s18504_s8 + $0x68] sm:$0xff] }
0x2503   : > { %v11448_v9 = vmul.f32 %v11445_v32, %v11445_v32  ;;  %v11447_v42 = vmul.f32 0.00390625, %v11438_v16  ;;  %v11444_v30 = vadd.f32 %v11443_v10, %v11442_v24  ;;  %v14348_v24 = vld [vmem:[%s18504_s8 + $0x60] sm:$0xff] }
0x2505   : > { %v11449_v33 = vsub.f32 %v11447_v42, %v11448_v9  ;;  %v11453_v45 = vmul.f32 0.00390625, %v11444_v30 }
0x2507   : > { %v11450_v18 = vmax.f32 %v11449_v33, 0.0  ;;  %v11455_v41 = vsub.f32 %v11453_v45, %v11454_v44 }
0x2509   : > { %v11451_v38 = vadd.f32 1e-05, %v11450_v18  ;;  %v11456_v3 = vmax.f32 %v11455_v41, 0.0 }
0x250b   : > { %16188 = vrsqrt.f32 %v11451_v38  ;;  %v11457_v43 = vadd.f32 1e-05, %v11456_v3 }
0x250d   : > { %16190 = vrsqrt.f32 %v11457_v43 }
0x2518   : > { %v16189_v58 = vpop.eup %16188 }
0x2519   : > { %v11463_v61 = vmul.f32 %v16189_v58, %v18025_v11 }
0x251a   : > { %v16191_v60 = vpop.eup %16190 }
0x251b   : > { %v11465_v25 = vmul.f32 %v11463_v61, %v11445_v32  ;;  %v11464_v51 = vmul.f32 %v16191_v60, %v18019_v12 }
0x251d   : > { %11469 = vrot.lane.b32.xlu1 %v11465_v25, %s18489_s0  ;;  %v11466_v56 = vmul.f32 %v11464_v51, %v11446_v6  ;;  %v12115_v6 = vld [vmem:[%s18505_s6] sm:$0xff]  ;;  %s18510_s6 = smov 17  }
0x251f   : > { %11471 = vrot.lane.b32.xlu0 %v11466_v56, %s18489_s0  ;;  %v18174_v56 = vld [vmem:[%s18506_s7] sm:$0xff]  ;;  %s18514_s7 = sld [smem:[#allocation24_spill]] }
0x2521   : > { %11484 = vperm.xlu1 %16152, %v11464_v51  }
0x2523   : > { %11479 = vperm.xlu0 %16153, %v11463_v61  }
0x2525   : > { %16154 = vset.pattern.permute.xlu1 %v16268_v4 }
0x2527   : > { %16155 = vset.pattern.permute.xlu0 %v16258_v2 }
0x2528   : > { %12118 = vperm.xlu0 %16155, %v12115_v6  }
0x258f   : > { %v11470_v52 = vpop.permute.xlu1 %11469 }
0x2590   : > { %v11475_v54 = vsub.f32 %v18025_v11, %v11470_v52 }
0x2591   : > { %v11472_v19 = vpop.permute.xlu0 %11471 }
0x2592   : > { %v11476_v59 = vsub.f32 %v18019_v12, %v11472_v19 }
0x2594   : > { %11496 = vperm.xlu1 %16154, %v11476_v59   ;;  %v18180_v59 = vld [vmem:[%s18468_s4 + $0x2] ss:$0 sm:$0xff] }
0x2598   : > { %11491 = vperm.xlu1 %16154, %v11475_v54   ;;  %v18184_v54 = vld [vmem:[%s18468_s4 + $0x1] ss:$0 sm:$0xff] }
0x259c   : > { %16156 = vset.pattern.permute.xlu1 %v18487_v50  ;;  %v11485_v40 = vpop.permute.xlu1 %11484 }
0x259d   : > { %v11488_v27 = vmul.f32 %v11485_v40, %v18072_v36  ;;  %v14331_v36 = vld [vmem:[%s18503_s3 + $0x8] sm:$0xff]  ;;  %s18512_s3 = smov 113  }
0x259e   : > { %v11480_v46 = vpop.permute.xlu0 %11479 }
0x259f   : > { %v11487_v35 = vmul.f32 %v11480_v46, %v18074_v1  ;;  %v14335_v1 = vld [vmem:[%s18504_s8 + $0x30] sm:$0xff] }
0x25a0   : > { %v14356_v46 = vld [vmem:[%s18509_s15 + $0x10] sm:$0xff] }
0x25a3   : > { %v12119_v43 = vpop.permute.xlu0 %12118 }
0x260f   : > { %v11497_v49 = vpop.permute.xlu1 %11496 }
0x2610   : > { %v11500_v2 = vadd.f32 %v11497_v49, %v11488_v27  ;;  %v14353_v27 = vld [vmem:[%s18509_s15 + $0x8] sm:$0xff] }
0x2612   : > { %v11502_v12 = vmax.f32 %v11500_v2, 0.0  ;;  %v18192_v2 = vld [vmem:[%s18468_s4] ss:$0 sm:$0xff] }
0x2613   : > { %v11492_v0 = vpop.permute.xlu1 %11491 }
0x2614   : > { %v11499_v14 = vadd.f32 %v11492_v0, %v11487_v35  ;;  %15868 = vmatpush3.msra.mxu0 %v11502_v12  ;;  %15875 = vmatpush3.msra.mxu1 %v11502_v12 }
0x2615   : > { %15869 = vmatprep.subr.mxu0 %v18488_v28  ;;  %15876 = vmatprep.subr.mxu1 %v18488_v28 }
0x2616   : > { %v11501_v11 = vmax.f32 %v11499_v14, 0.0  ;;  %v14360_v14 = vld [vmem:[%s18509_s15 + $0x20] sm:$0xff] }
0x2618   : > { %15870 = vmatpush3.msra.mxu0 %v11501_v11  ;;  %15877 = vmatpush3.msra.mxu1 %v11501_v11 }
0x2619   : > { %15879 = vmatmul.mubr.msk.f32.vlgmr.msra.gmra.mxu1 %vm3706_vm6, %v14331_v36  ;;  %15872 = vmatmul.mubr.msk.f32.vlgmr.msra.gmra.mxu0 %vm3706_vm6, %v11503_v21  ;;  %v18206_v36 = vld [vmem:[%s18468_s4 + $0x3] ss:$0 sm:$0xff] }
0x261a   : > { %15881 = vmatprep.subr.mxu0 %v18488_v28  ;;  %15892 = vmatprep.subr.mxu1 %v18488_v28 }
0x261b   : > { %15882 = vmatpush3.msra.mxu0 %v14336_v63  ;;  %15893 = vmatpush3.msra.mxu1 %v11580_v48  ;;  %v14358_v63 = vld [vmem:[%s18509_s15 + $0x18] sm:$0xff]  ;;  %v18217_v48 = vld [vmem:[%s18468_s4 + $0x5] ss:$0 sm:$0xff] }
0x261c   : > { %15883 = vmatprep.subr.mxu0 %v18488_v28  ;;  %15894 = vmatprep.subr.mxu1 %v18488_v28 }
0x261d   : > { %15884 = vmatpush3.msra.mxu0 %v14335_v1  ;;  %15889 = vmatprep.mubr.msk.f32.mxu0 %vm16257_vm0, %v18488_v28 }
0x261e   : > { %15885 = vmatprep.subr.mxu0 %v18488_v28  ;;  %15900 = vmatprep.mubr.msk.f32.mxu1 %vm16257_vm0, %v18488_v28 }
0x261f   : > { %15886 = vmatpush3.msra.mxu0 %v14334_v13  ;;  %15895 = vmatpush3.msra.mxu1 %v11579_v34  ;;  %v18223_v34 = vld [vmem:[%s18468_s4 + $0x6] ss:$0 sm:$0xff] }
0x2620   : > { %15887 = vmatprep.subr.mxu0 %v18488_v28  ;;  %15896 = vmatprep.subr.mxu1 %v18488_v28 }
0x2621   : > { %15888 = vmatpush3.msra.mxu0 %v14333_v22  ;;  %15897 = vmatpush3.msra.mxu1 %v11578_v31 }
0x2622   : > { %15903 = vmatprep.subr.mxu0 %v18488_v28  ;;  %15898 = vmatprep.subr.mxu1 %v18488_v28 }
0x2623   : > { %15899 = vmatpush3.msra.mxu1 %v11577_v26  ;;  %v14362_v26 = vld [vmem:[%s18509_s15 + $0x28] sm:$0xff] }
0x2624   : > { %15910 = vmatprep.subr.mxu1 %v18488_v28 }
0x26d9   : > { %v11652_v39 = vpop.f32.mrf.mxu1  ;;  %v11573_v53 = vpop.f32.mrf.mxu0 }
0x26da   : > { %15890 = vmatmul.mubr.msk.f32.vlgmr.msra.gmra.mxu0 %vm4613_vm7, %v11652_v39  ;;  %15901 = vmatmul.mubr.msk.f32.vlgmr.msra.gmra.mxu1 %vm4613_vm7, %v11573_v53  ;;  %v14364_v39 = vld [vmem:[%s18509_s15 + $0x30] sm:$0xff]  ;;  %v18232_v53 = vld [vmem:[%s18468_s4 + $0x7] ss:$0 sm:$0xff] }
0x26db   : > { %15904 = vmatpush3.msra.mxu0 %v11502_v12  ;;  %v15880_v47 = vpop.f32.mrf.mxu1  ;;  %15907 = vmatprep.mubr.msk.f32.mxu0 %vm16257_vm0, %v18488_v28  ;;  %v15873_v55 = vpop.f32.mrf.mxu0 }
0x26dc   : > { %15905 = vmatprep.subr.mxu0 %v18488_v28  ;;  %15911 = vmatpush3.msra.mxu1 %v14344_v20 }
0x26dd   : > { %15906 = vmatpush3.msra.mxu0 %v11501_v11  ;;  %15912 = vmatprep.subr.mxu1 %v18488_v28 }
0x26de   : > { %15921 = vmatprep.subr.mxu0 %v18488_v28  ;;  %15908 = vmatmul.mubr.msk.f32.vlgmr.msra.gmra.mxu0 %vm3706_vm6, %v14339_v15  ;;  %v18238_v15 = vld [vmem:[%s18468_s4 + $0x8] ss:$0 sm:$0xff]  ;;  %s18515_s4 = sld [smem:[#allocation23_spill]] }
0x26df   : > { %15922 = vmatpush3.msra.mxu0 %v11502_v12  ;;  %15925 = vmatprep.mubr.msk.f32.mxu0 %vm16257_vm0, %v18488_v28  ;;  %v12127_v12 = vld [vmem:[%s18509_s15] sm:$0xff] }
0x26e0   : > { %15923 = vmatprep.subr.mxu0 %v18488_v28  ;;  %15918 = vmatprep.mubr.msk.f32.mxu1 %vm16257_vm0, %v18488_v28 }
0x26e1   : > { %15924 = vmatpush3.msra.mxu0 %v11501_v11  ;;  %15913 = vmatpush3.msra.mxu1 %v14343_v57  ;;  %v14368_v57 = vld [vmem:[%s18509_s15 + $0x40] sm:$0xff] }
0x26e2   : > { %15926 = vmatmul.mubr.msk.f32.vlgmr.msra.gmra.mxu0 %vm3706_vm6, %v14346_v29  ;;  %15928 = vmatprep.subr.mxu0 %v18488_v28  ;;  %v14366_v29 = vld [vmem:[%s18509_s15 + $0x38] sm:$0xff] }
0x26e3   : > { %15936 = vmatprep.mubr.msk.f32.mxu0 %vm16257_vm0, %v18488_v28  ;;  %15914 = vmatprep.subr.mxu1 %v18488_v28 }
0x26e4   : > { %15915 = vmatpush3.msra.mxu1 %v14342_v8  ;;  %15929 = vmatpush3.msra.mxu0 %v14351_v62 }
0x26e5   : > { %15916 = vmatprep.subr.mxu1 %v18488_v28  ;;  %15930 = vmatprep.subr.mxu0 %v18488_v28 }
0x26e6   : > { %15917 = vmatpush3.msra.mxu1 %v14341_v37  ;;  %15931 = vmatpush3.msra.mxu0 %v14350_v17 }
0x26e7   : > { %15932 = vmatprep.subr.mxu0 %v18488_v28  ;;  %15939 = vmatprep.subr.mxu1 %v18488_v28 }
0x26e8   : > { %15933 = vmatpush3.msra.mxu0 %v14349_v7 }
0x26e9   : > { %15934 = vmatprep.subr.mxu0 %v18488_v28 }
0x26ea   : > { %15935 = vmatpush3.msra.mxu0 %v14348_v24 }
0x26eb   : > { %15949 = vmatprep.subr.mxu0 %v18488_v28 }
0x279a   : > { %v11730_v32 = vpop.f32.mrf.mxu0  ;;  %v11803_v16 = vpop.f32.mrf.mxu1 }
0x279b   : > { %v11804_v10 = vadd.f32 %v11803_v16, %v11730_v32 }
0x279c   : > { %v15891_v9 = vpop.f32.mrf.mxu0  ;;  %v15902_v42 = vpop.f32.mrf.mxu1 }
0x279e   : > { %v11878_v30 = vpop.f32.mrf.mxu0 }
0x279f   : > { %15919 = vmatmul.mubr.msk.f32.vlgmr.msra.gmra.mxu1 %vm4613_vm7, %v11878_v30 }
0x27a0   : > { %v15909_v44 = vpop.f32.mrf.mxu0  ;;  %15941 = vmatprep.mubr.msk.f32.mxu1 %vm16257_vm0, %v18488_v28 }
0x27a2   : > { %v12032_v33 = vpop.f32.mrf.mxu0 }
0x27a3   : > { %15937 = vmatmul.mubr.msk.f32.vlgmr.msra.gmra.mxu0 %vm4613_vm7, %v12032_v33 }
0x27a4   : > { %v15927_v45 = vpop.f32.mrf.mxu0  ;;  %15951 = vmatprep.mubr.msk.f32.mxu0 %vm16257_vm0, %v18488_v28 }
0x285f   : > { %v11956_v18 = vpop.f32.mrf.mxu1 }
0x2860   : > { %v11960_v38 = vadd.f32 %v11956_v18, %v11804_v10 }
0x2861   : > { %v15920_v41 = vpop.f32.mrf.mxu1 }
0x2863   : > { %v12110_v3 = vpop.f32.mrf.mxu0 }
0x2864   : > { %v12114_v58 = vadd.f32 %v12110_v3, %v11960_v38 }
0x2865   : > { %v15938_v61 = vpop.f32.mrf.mxu0 }
0x2866   : > { %v12121_v60 = vadd.f32 %v12119_v43, %v12114_v58 }
0x2868   : > { %v12122_v25 = vmax.f32 %v12121_v60, 0.0 }
0x286a   : > { %v12123_v51 = vmul.f32 %v12122_v25, %v16724_v23 }
0x286c   : > { %12279 = vrot.lane.b32.xlu0 %v12123_v51, %s18507_s10  ;;  %12128 = vrot.lane.b32.xlu1 %v12123_v51, %s18508_s11 }
0x2870   : > { %12513 = vrot.lane.b32.xlu0 %v12123_v51, %s18479_s22  ;;  %12124 = vrot.lane.b32.xlu1 %v12123_v51, %s18510_s6 }
0x2874   : > { %12671 = vrot.lane.b32.xlu0 %v12123_v51, %s18511_s2  ;;  %12358 = vrot.lane.b32.xlu1 %v12123_v51, %s18489_s0 }
0x2878   : > { %12832 = vperm.xlu0 %16155, %v18174_v56   ;;  %12592 = vrot.lane.b32.xlu1 %v12123_v51, %s18512_s3 }
0x287c   : > { %12750 = vrot.lane.b32.xlu1 %v12123_v51, %s18513_s5 }
0x28de   : > { %v12280_v23 = vpop.permute.xlu0 %12279  ;;  %v12129_v19 = vpop.permute.xlu1 %12128 }
0x28df   : > { %v12281_v52 = vmul.f32 %v18180_v59, %v12280_v23  ;;  %v12130_v40 = vmul.f32 %v18184_v54, %v12129_v19 }
0x28e1   : > { %15940 = vmatpush3.msra.mxu1 %v12130_v40  ;;  %15950 = vmatpush3.msra.mxu0 %v12281_v52 }
0x28e2   : > { %15959 = vmatprep.subr.mxu0 %v18488_v28  ;;  %15942 = vmatmul.mubr.msk.f32.vlgmr.msra.gmra.mxu1 %vm1317_vm3, %v14353_v27  ;;  %v12125_v49 = vpop.permute.xlu1 %12124  ;;  %v12514_v0 = vpop.permute.xlu0 %12513 }
0x28e3   : > { %v12126_v35 = vmul.f32 %v18192_v2, %v12125_v49  ;;  %15952 = vmatmul.mubr.msk.f32.vlgmr.msra.gmra.mxu0 %vm1317_vm3, %v14356_v46  ;;  %15944 = vmatprep.subr.mxu1 %v18488_v28  ;;  %v12515_v1 = vmul.f32 %v18217_v48, %v12514_v0 }
0x28e4   : > { %15960 = vmatpush3.msra.mxu0 %v12123_v51  ;;  %15946 = vmatprep.mubr.msk.f32.mxu1 %vm16257_vm0, %v18488_v28 }
0x28e5   : > { %15945 = vmatpush3.msra.mxu1 %v12126_v35  ;;  %15961 = vmatprep.mubr.msk.f32.mxu0 %vm16257_vm0, %v18488_v28 }
0x28e6   : > { %15947 = vmatmul.mubr.msk.f32.vlgmr.msra.gmra.mxu1 %vm1317_vm3, %v12127_v12  ;;  %v12359_v11 = vpop.permute.xlu1 %12358  ;;  %15954 = vmatprep.subr.mxu1 %v18488_v28  ;;  %v12672_v13 = vpop.permute.xlu0 %12671 }
0x28e7   : > { %v12360_v21 = vmul.f32 %v18206_v36, %v12359_v11  ;;  %15956 = vmatprep.mubr.msk.f32.mxu1 %vm16257_vm0, %v18488_v28  ;;  %15962 = vmatmul.mubr.msk.f32.vlgmr.msra.gmra.mxu0 %vm1317_vm3, %v14360_v14  ;;  %v12673_v20 = vmul.f32 %v18232_v53, %v12672_v13 }
0x28e8   : > { %15969 = vmatprep.subr.mxu0 %v18488_v28  ;;  %15971 = vmatprep.mubr.msk.f32.mxu0 %vm16257_vm0, %v18488_v28 }
0x28e9   : > { %15955 = vmatpush3.msra.mxu1 %v12360_v21 }
0x28ea   : > { %15957 = vmatmul.mubr.msk.f32.vlgmr.msra.gmra.mxu1 %vm1317_vm3, %v14358_v63  ;;  %15964 = vmatprep.subr.mxu1 %v18488_v28  ;;  %v12593_v22 = vpop.permute.xlu1 %12592 }
0x28eb   : > { %v12594_v31 = vmul.f32 %v18223_v34, %v12593_v22  ;;  %15965 = vmatpush3.msra.mxu1 %v12515_v1  ;;  %15966 = vmatprep.mubr.msk.f32.mxu1 %vm16257_vm0, %v18488_v28 }
0x28ec   : > { %15974 = vmatprep.subr.mxu1 %v18488_v28 }
0x28ed   : > { %15970 = vmatpush3.msra.mxu0 %v12594_v31 }
0x28ee   : > { %15967 = vmatmul.mubr.msk.f32.vlgmr.msra.gmra.mxu1 %vm1317_vm3, %v14362_v26  ;;  %v12751_v47 = vpop.permute.xlu1 %12750  ;;  %15972 = vmatmul.mubr.msk.f32.vlgmr.msra.gmra.mxu0 %vm1317_vm3, %v14364_v39 }
0x28ef   : > { %15975 = vmatpush3.msra.mxu1 %v12673_v20  ;;  %v12752_v55 = vmul.f32 %v18238_v15, %v12751_v47  ;;  %15979 = vmatprep.subr.mxu0 %v18488_v28 }
0x28f0   : > { %15976 = vmatprep.mubr.msk.f32.mxu1 %vm16257_vm0, %v18488_v28  ;;  %15981 = vmatprep.mubr.msk.f32.mxu0 %vm16257_vm0, %v18488_v28 }
0x28f1   : > { %15980 = vmatpush3.msra.mxu0 %v12752_v55  ;;  %15984 = vmatprep.subr.mxu1 %v18488_v28 }
0x28f2   : > { %15977 = vmatmul.mubr.msk.f32.vlgmr.msra.gmra.mxu1 %vm1317_vm3, %v14366_v29  ;;  %15982 = vmatmul.mubr.msk.f32.vlgmr.msra.gmra.mxu0 %vm1317_vm3, %v14368_v57 }
0x28f3   : > { %15989 = vmatprep.subr.mxu0 %v18488_v28  ;;  %15986 = vmatprep.mubr.msk.f32.mxu1 %vm16257_vm0, %v18488_v28  ;;  %v12833_v23 = vpop.permute.xlu0 %12832 }
0x28f4   : > { %15991 = vmatprep.mubr.msk.f32.mxu0 %vm16257_vm0, %v18488_v28 }
0x29a2   : > { %v12202_v8 = vpop.f32.mrf.mxu1 }
0x29a3   : > { %v12353_v62 = vpop.f32.mrf.mxu0 }
0x29a4   : > { %v15943_v37 = vpop.f32.mrf.mxu1 }
0x29a5   : > { %v15953_v17 = vpop.f32.mrf.mxu0 }
0x29a6   : > { %v12275_v7 = vpop.f32.mrf.mxu1 }
0x29a7   : > { %v12276_v24 = vadd.f32 %v12275_v7, %v12202_v8  ;;  %v12508_v6 = vpop.f32.mrf.mxu0 }
0x29a8   : > { %v15948_v32 = vpop.f32.mrf.mxu1 }
0x29a9   : > { %v12357_v16 = vadd.f32 %v12353_v62, %v12276_v24  ;;  %v15963_v10 = vpop.f32.mrf.mxu0 }
0x29aa   : > { %v12432_v9 = vpop.f32.mrf.mxu1 }
0x29ab   : > { %v12436_v42 = vadd.f32 %v12432_v9, %v12357_v16 }
0x29ac   : > { %v15958_v30 = vpop.f32.mrf.mxu1 }
0x29ad   : > { %v12512_v44 = vadd.f32 %v12508_v6, %v12436_v42 }
0x29ae   : > { %v12587_v33 = vpop.f32.mrf.mxu1  ;;  %v12666_v45 = vpop.f32.mrf.mxu0 }
0x29af   : > { %v12591_v18 = vadd.f32 %v12587_v33, %v12512_v44 }
0x29b0   : > { %v15968_v41 = vpop.f32.mrf.mxu1  ;;  %v15973_v38 = vpop.f32.mrf.mxu0 }
0x29b1   : > { %v12670_v3 = vadd.f32 %v12666_v45, %v12591_v18 }
0x29b2   : > { %v12745_v43 = vpop.f32.mrf.mxu1  ;;  %v12824_v58 = vpop.f32.mrf.mxu0 }
0x29b3   : > { %v12749_v61 = vadd.f32 %v12745_v43, %v12670_v3 }
0x29b4   : > { %v15978_v60 = vpop.f32.mrf.mxu1  ;;  %v15983_v25 = vpop.f32.mrf.mxu0 }
0x29b5   : > { %v12828_v51 = vadd.f32 %v12824_v58, %v12749_v61 }
0x29b7   : > { %v18256_v19 = vadd.f32 %v12833_v23, %v12828_v51 }
0x29b9   : > { %12836 = vadd.xlane.f32.xlu1 %v18256_v19  ;;  %v12838_v52 = vmul.f32 %v18256_v19, %v18256_v19 }
0x29bb   : > { %12839 = vadd.xlane.f32.xlu0 %v12838_v52 }
0x2a42   : > { %v12837_v40 = vpop.xlane.xlu1 %12836 }
0x2a43   : > { %v12841_v27 = vsel %vm1218_vm1, %v12837_v40, 0.0  ;;  %v12849_v46 = vrot.slane %v12837_v40, 4 }
0x2a44   : > { %v12842_v49 = vrot.slane %v12841_v27, 4  ;;  %v12840_v35 = vpop.xlane.xlu0 %12839 }
0x2a45   : > { %v12851_v12 = vsel %vm1218_vm1, %v12849_v46, 0.0  ;;  %v12858_v0 = vsel %vm1218_vm1, %v12840_v35, 0.0  ;;  %v12866_v14 = vrot.slane %v12840_v35, 4 }
0x2a46   : > { %v12843_v11 = vadd.f32 %v12842_v49, %v12841_v27  ;;  %v12852_v21 = vrot.slane %v12851_v12, 4  ;;  %v12859_v63 = vrot.slane %v12858_v0, 4 }
0x2a47   : > { %v12868_v1 = vsel %vm1218_vm1, %v12866_v14, 0.0 }
0x2a48   : > { %v12844_v13 = vrot.slane %v12843_v11, 2  ;;  %v12853_v22 = vadd.f32 %v12852_v21, %v12851_v12  ;;  %v12860_v31 = vadd.f32 %v12859_v63, %v12858_v0  ;;  %v12869_v26 = vrot.slane %v12868_v1, 4  ;;  %v14370_v21 = vld [vmem:[%s18515_s4 + $0x8] sm:$0xff]  ;;  %v12914_v63 = vld [vmem:[%s18515_s4] sm:$0xff] }
0x2a4a   : > { %v12845_v39 = vadd.f32 %v12844_v13, %v12843_v11  ;;  %v12854_v20 = vrot.slane %v12853_v22, 2  ;;  %v12861_v47 = vrot.slane %v12860_v31, 2  ;;  %v12870_v55 = vadd.f32 %v12869_v26, %v12868_v1 }
0x2a4c   : > { %v12846_v29 = vrot.slane %v12845_v39, 1  ;;  %v12855_v57 = vadd.f32 %v12854_v20, %v12853_v22  ;;  %v12862_v8 = vadd.f32 %v12861_v47, %v12860_v31  ;;  %v12871_v62 = vrot.slane %v12870_v55, 2  ;;  %v14377_v20 = vld [vmem:[%s18515_s4 + $0x20] sm:$0xff]  ;;  %v14379_v47 = vld [vmem:[%s18515_s4 + $0x28] sm:$0xff] }
0x2a4e   : > { %v12847_v37 = vadd.f32 %v12846_v29, %v12845_v39  ;;  %v12856_v17 = vrot.slane %v12855_v57, 1  ;;  %v12863_v7 = vrot.slane %v12862_v8, 1  ;;  %v12872_v24 = vadd.f32 %v12871_v62, %v12870_v55 }
0x2a50   : > { %v12857_v6 = vadd.f32 %v12856_v17, %v12855_v57  ;;  %v12875_v32 = vmul.f32 0.001953125, %v12847_v37  ;;  %v12864_v16 = vadd.f32 %v12863_v7, %v12862_v8  ;;  %v12873_v10 = vrot.slane %v12872_v24, 1  ;;  %v14381_v57 = vld [vmem:[%s18515_s4 + $0x30] sm:$0xff]  ;;  %v14383_v8 = vld [vmem:[%s18515_s4 + $0x38] sm:$0xff] }
0x2a52   : > { %v12876_v9 = vmul.f32 0.001953125, %v12857_v6  ;;  %v12878_v42 = vmul.f32 %v12875_v32, %v12875_v32  ;;  %v12874_v30 = vadd.f32 %v12873_v10, %v12872_v24  ;;  %v12877_v44 = vmul.f32 0.001953125, %v12864_v16 }
0x2a54   : > { %v12884_v33 = vmul.f32 %v12876_v9, %v12876_v9  ;;  %v12879_v45 = vsub.f32 %v12877_v44, %v12878_v42  ;;  %v12883_v18 = vmul.f32 0.001953125, %v12874_v30  ;;  %v12889_v23 = vsel %vm2125_vm4, %v12875_v32, %v12876_v9 }
0x2a56   : > { %v12880_v41 = vmax.f32 %v12879_v45, 0.0  ;;  %v12885_v38 = vsub.f32 %v12883_v18, %v12884_v33 }
0x2a58   : > { %v12881_v3 = vadd.f32 1e-05, %v12880_v41  ;;  %v12886_v43 = vmax.f32 %v12885_v38, 0.0 }
0x2a5a   : > { %v12887_v58 = vadd.f32 1e-05, %v12886_v43  ;;  %16192 = vrsqrt.f32 %v12881_v3 }
0x2a5c   : > { %16194 = vrsqrt.f32 %v12887_v58 }
0x2a67   : > { %v16193_v61 = vpop.eup %16192 }
0x2a69   : > { %v16195_v60 = vpop.eup %16194 }
0x2a6a   : > { %v12890_v25 = vsel %vm2125_vm4, %v16193_v61, %v16195_v60 }
0x2a6b   : > { %v12891_v51 = vmul.f32 %v12890_v25, %v18174_v56 }
0x2a6d   : > { %12900 = vperm.xlu1 %16156, %v12891_v51   ;;  %v12892_v52 = vmul.f32 %v12891_v51, %v12889_v23 }
0x2a6f   : > { %12894 = vrot.lane.b32.xlu0 %v12892_v52, %s18489_s0 }
0x2a71   : > { %16157 = vset.pattern.permute.xlu1 %v16268_v4 }
0x2ae1   : > { %v12895_v40 = vpop.permute.xlu0 %12894 }
0x2ae2   : > { %v12897_v27 = vsub.f32 %v18174_v56, %v12895_v40 }
0x2ae4   : > { %12906 = vperm.xlu1 %16157, %v12897_v27  }
0x2ae8   : > { %16158 = vset.pattern.permute.xlu1 %v18487_v50  ;;  %v12901_v46 = vpop.permute.xlu1 %12900  ;;  %v18284_v50 = vld [vmem:[%s18514_s7] sm:$0xff] }
0x2ae9   : > { %v12903_v49 = vmul.f32 %v12901_v46, %v18256_v19 }
0x2b5f   : > { %v12907_v35 = vpop.permute.xlu1 %12906 }
0x2b60   : > { %v12909_v12 = vadd.f32 %v12907_v35, %v12903_v49 }
0x2b62   : > { %v12910_v0 = vmax.f32 %v12909_v12, 0.0 }
0x2b64   : > { %12911 = vrot.lane.b32.xlu1 %v12910_v0, %s18510_s6  ;;  %12915 = vrot.lane.b32.xlu0 %v12910_v0, %s18508_s11 }
0x2b68   : > { %13145 = vrot.lane.b32.xlu1 %v12910_v0, %s18489_s0  ;;  %13066 = vrot.lane.b32.xlu0 %v12910_v0, %s18507_s10 }
0x2b6c   : > { %13379 = vrot.lane.b32.xlu1 %v12910_v0, %s18512_s3  ;;  %13300 = vrot.lane.b32.xlu0 %v12910_v0, %s18479_s22  ;;  %s18517_s22 = sld [smem:[#allocation25_spill]] }
0x2b70   : > { %13537 = vrot.lane.b32.xlu1 %v12910_v0, %s18513_s5  ;;  %13458 = vrot.lane.b32.xlu0 %v12910_v0, %s18511_s2  ;;  %s18516_s2 = sld [smem:[#allocation26_spill]] }
0x2b74   : > { %13619 = vperm.xlu0 %16155, %v18284_v50  }
0x2bd6   : > { %v12912_v56 = vpop.permute.xlu1 %12911  ;;  %v12916_v19 = vpop.permute.xlu0 %12915 }
0x2bd7   : > { %v12913_v14 = vmul.f32 %v18192_v2, %v12912_v56  ;;  %v12917_v11 = vmul.f32 %v18184_v54, %v12916_v19  ;;  %v14373_v54 = vld [vmem:[%s18515_s4 + $0x10] sm:$0xff]  ;;  %v14375_v2 = vld [vmem:[%s18515_s4 + $0x18] sm:$0xff] }
0x2bd9   : > { %15985 = vmatpush3.msra.mxu1 %v12917_v11  ;;  %15990 = vmatpush3.msra.mxu0 %v12913_v14 }
0x2bda   : > { %v13146_v1 = vpop.permute.xlu1 %13145  ;;  %15987 = vmatmul.mubr.msk.f32.vlgmr.msra.gmra.mxu1 %vm1317_vm3, %v14370_v21  ;;  %v13067_v13 = vpop.permute.xlu0 %13066  ;;  %15992 = vmatmul.mubr.msk.f32.vlgmr.msra.gmra.mxu0 %vm1317_vm3, %v12914_v63 }
0x2bdb   : > { %v13147_v22 = vmul.f32 %v18206_v36, %v13146_v1  ;;  %v13068_v31 = vmul.f32 %v18180_v59, %v13067_v13  ;;  %15994 = vmatprep.subr.mxu1 %v18488_v28  ;;  %15999 = vmatprep.subr.mxu0 %v18488_v28 }
0x2bdc   : > { %15996 = vmatprep.mubr.msk.f32.mxu1 %vm16257_vm0, %v18488_v28  ;;  %16001 = vmatprep.mubr.msk.f32.mxu0 %vm16257_vm0, %v18488_v28 }
0x2bdd   : > { %15995 = vmatpush3.msra.mxu1 %v13068_v31  ;;  %16000 = vmatpush3.msra.mxu0 %v13147_v22 }
0x2bde   : > { %v13380_v26 = vpop.permute.xlu1 %13379  ;;  %15997 = vmatmul.mubr.msk.f32.vlgmr.msra.gmra.mxu1 %vm1317_vm3, %v14373_v54  ;;  %16004 = vmatprep.subr.mxu1 %v18488_v28  ;;  %v13301_v59 = vpop.permute.xlu0 %13300 }
0x2bdf   : > { %v13381_v36 = vmul.f32 %v18223_v34, %v13380_v26  ;;  %v13302_v39 = vmul.f32 %v18217_v48, %v13301_v59  ;;  %16005 = vmatpush3.msra.mxu1 %v12910_v0  ;;  %16002 = vmatmul.mubr.msk.f32.vlgmr.msra.gmra.mxu0 %vm1317_vm3, %v14375_v2 }
0x2be0   : > { %16009 = vmatprep.subr.mxu0 %v18488_v28  ;;  %16006 = vmatprep.mubr.msk.f32.mxu1 %vm16257_vm0, %v18488_v28 }
0x2be1   : > { %16010 = vmatpush3.msra.mxu0 %v13302_v39  ;;  %16014 = vmatprep.subr.mxu1 %v18488_v28 }
0x2be2   : > { %v13538_v55 = vpop.permute.xlu1 %13537  ;;  %16007 = vmatmul.mubr.msk.f32.vlgmr.msra.gmra.mxu1 %vm1317_vm3, %v14377_v20  ;;  %v13459_v34 = vpop.permute.xlu0 %13458  ;;  %16011 = vmatprep.mubr.msk.f32.mxu0 %vm16257_vm0, %v18488_v28 }
0x2be3   : > { %v13539_v48 = vmul.f32 %v18238_v15, %v13538_v55  ;;  %16015 = vmatpush3.msra.mxu1 %v13381_v36  ;;  %v13460_v29 = vmul.f32 %v18232_v53, %v13459_v34  ;;  %16012 = vmatmul.mubr.msk.f32.vlgmr.msra.gmra.mxu0 %vm1317_vm3, %v14379_v47  ;;  %v14385_v53 = vld [vmem:[%s18515_s4 + $0x40] sm:$0xff] }
0x2be4   : > { %16019 = vmatprep.subr.mxu0 %v18488_v28  ;;  %16016 = vmatprep.mubr.msk.f32.mxu1 %vm16257_vm0, %v18488_v28 }
0x2be5   : > { %16020 = vmatpush3.msra.mxu0 %v13460_v29  ;;  %16024 = vmatprep.subr.mxu1 %v18488_v28 }
0x2be6   : > { %16017 = vmatmul.mubr.msk.f32.vlgmr.msra.gmra.mxu1 %vm1317_vm3, %v14381_v57  ;;  %16021 = vmatprep.mubr.msk.f32.mxu0 %vm16257_vm0, %v18488_v28 }
0x2be7   : > { %16025 = vmatpush3.msra.mxu1 %v13539_v48  ;;  %16022 = vmatmul.mubr.msk.f32.vlgmr.msra.gmra.mxu0 %vm1317_vm3, %v14383_v8 }
0x2be8   : > { %16026 = vmatprep.mubr.msk.f32.mxu1 %vm16257_vm0, %v18488_v28  ;;  %16029 = vmatprep.subr.mxu0 %v18488_v28 }
0x2be9   : > { %16031 = vmatprep.mubr.msk.f32.mxu0 %vm16257_vm0, %v18488_v28 }
0x2bea   : > { %16027 = vmatmul.mubr.msk.f32.vlgmr.msra.gmra.mxu1 %vm1317_vm3, %v14385_v53 }
0x2bef   : > { %v13620_v25 = vpop.permute.xlu0 %13619 }
0x2c9a   : > { %v12989_v15 = vpop.f32.mrf.mxu1  ;;  %v13062_v62 = vpop.f32.mrf.mxu0 }
0x2c9b   : > { %v13063_v7 = vadd.f32 %v13062_v62, %v12989_v15 }
0x2c9c   : > { %v15988_v37 = vpop.f32.mrf.mxu1  ;;  %v15993_v17 = vpop.f32.mrf.mxu0 }
0x2c9e   : > { %v13140_v24 = vpop.f32.mrf.mxu1 }
0x2c9f   : > { %v13144_v6 = vadd.f32 %v13140_v24, %v13063_v7  ;;  %v13219_v32 = vpop.f32.mrf.mxu0 }
0x2ca0   : > { %v15998_v16 = vpop.f32.mrf.mxu1 }
0x2ca1   : > { %v13223_v10 = vadd.f32 %v13219_v32, %v13144_v6  ;;  %v16003_v9 = vpop.f32.mrf.mxu0 }
0x2ca2   : > { %v13295_v42 = vpop.f32.mrf.mxu1 }
0x2ca3   : > { %v13299_v30 = vadd.f32 %v13295_v42, %v13223_v10  ;;  %v13374_v44 = vpop.f32.mrf.mxu0 }
0x2ca4   : > { %v16008_v33 = vpop.f32.mrf.mxu1 }
0x2ca5   : > { %v13378_v45 = vadd.f32 %v13374_v44, %v13299_v30  ;;  %v16013_v18 = vpop.f32.mrf.mxu0 }
0x2ca6   : > { %v13453_v28 = vpop.f32.mrf.mxu1 }
0x2ca7   : > { %v13457_v41 = vadd.f32 %v13453_v28, %v13378_v45  ;;  %v13532_v38 = vpop.f32.mrf.mxu0 }
0x2ca8   : > { %v16018_v3 = vpop.f32.mrf.mxu1 }
0x2ca9   : > { %v13536_v43 = vadd.f32 %v13532_v38, %v13457_v41  ;;  %v16023_v58 = vpop.f32.mrf.mxu0  ;;  %v13699_v41 = vld [vmem:[%s18516_s2] sm:$0xf] }
0x2caa   : > { %v13611_v61 = vpop.f32.mrf.mxu1 }
0x2cab   : > { %v13615_v60 = vadd.f32 %v13611_v61, %v13536_v43 }
0x2cac   : > { %v16028_v51 = vpop.f32.mrf.mxu1 }
0x2cad   : > { %v18337_v23 = vadd.f32 %v13620_v25, %v13615_v60  ;;  %v13698_v25 = vld [vmem:[%s18517_s22] sm:$0xf] }
0x2caf   : > { %13623 = vadd.xlane.f32.xlu1 %v18337_v23  ;;  %v13625_v52 = vmul.f32 %v18337_v23, %v18337_v23 }
0x2cb1   : > { %13626 = vadd.xlane.f32.xlu0 %v13625_v52 }
0x2d38   : > { %v13624_v40 = vpop.xlane.xlu1 %13623 }
0x2d39   : > { %v13628_v27 = vsel %vm1218_vm1, %v13624_v40, 0.0  ;;  %v13636_v46 = vrot.slane %v13624_v40, 4 }
0x2d3a   : > { %v13629_v49 = vrot.slane %v13628_v27, 4  ;;  %v13627_v35 = vpop.xlane.xlu0 %13626 }
0x2d3b   : > { %v13638_v12 = vsel %vm1218_vm1, %v13636_v46, 0.0  ;;  %v13645_v0 = vsel %vm1218_vm1, %v13627_v35, 0.0  ;;  %v13653_v56 = vrot.slane %v13627_v35, 4 }
0x2d3c   : > { %v13630_v19 = vadd.f32 %v13629_v49, %v13628_v27  ;;  %v13639_v14 = vrot.slane %v13638_v12, 4  ;;  %v13646_v11 = vrot.slane %v13645_v0, 4 }
0x2d3d   : > { %v13655_v21 = vsel %vm1218_vm1, %v13653_v56, 0.0 }
0x2d3e   : > { %v13631_v63 = vrot.slane %v13630_v19, 2  ;;  %v13640_v1 = vadd.f32 %v13639_v14, %v13638_v12  ;;  %v13647_v13 = vadd.f32 %v13646_v11, %v13645_v0  ;;  %v13656_v22 = vrot.slane %v13655_v21, 4 }
0x2d40   : > { %v13632_v31 = vadd.f32 %v13631_v63, %v13630_v19  ;;  %v13641_v54 = vrot.slane %v13640_v1, 2  ;;  %v13648_v2 = vrot.slane %v13647_v13, 2  ;;  %v13657_v26 = vadd.f32 %v13656_v22, %v13655_v21 }
0x2d42   : > { %v13633_v59 = vrot.slane %v13632_v31, 1  ;;  %v13642_v36 = vadd.f32 %v13641_v54, %v13640_v1  ;;  %v13649_v39 = vadd.f32 %v13648_v2, %v13647_v13  ;;  %v13658_v20 = vrot.slane %v13657_v26, 2 }
0x2d44   : > { %v13634_v47 = vadd.f32 %v13633_v59, %v13632_v31  ;;  %v13643_v55 = vrot.slane %v13642_v36, 1  ;;  %v13650_v34 = vrot.slane %v13649_v39, 1  ;;  %v13659_v48 = vadd.f32 %v13658_v20, %v13657_v26 }
0x2d46   : > { %v13644_v29 = vadd.f32 %v13643_v55, %v13642_v36  ;;  %v13662_v57 = vmul.f32 0.001953125, %v13634_v47  ;;  %v13651_v8 = vadd.f32 %v13650_v34, %v13649_v39  ;;  %v13660_v53 = vrot.slane %v13659_v48, 1 }
0x2d48   : > { %v13663_v15 = vmul.f32 0.001953125, %v13644_v29  ;;  %v13665_v62 = vmul.f32 %v13662_v57, %v13662_v57  ;;  %v13661_v37 = vadd.f32 %v13660_v53, %v13659_v48  ;;  %v13664_v17 = vmul.f32 0.001953125, %v13651_v8 }
0x2d4a   : > { %v13671_v7 = vmul.f32 %v13663_v15, %v13663_v15  ;;  %v13666_v24 = vsub.f32 %v13664_v17, %v13665_v62  ;;  %v13670_v6 = vmul.f32 0.001953125, %v13661_v37  ;;  %v13676_v18 = vsel %vm2125_vm4, %v13662_v57, %v13663_v15 }
0x2d4c   : > { %v13667_v32 = vmax.f32 %v13666_v24, 0.0  ;;  %v13672_v16 = vsub.f32 %v13670_v6, %v13671_v7 }
0x2d4e   : > { %v13668_v10 = vadd.f32 1e-05, %v13667_v32  ;;  %v13673_v9 = vmax.f32 %v13672_v16, 0.0 }
0x2d50   : > { %v13674_v42 = vadd.f32 1e-05, %v13673_v9  ;;  %16196 = vrsqrt.f32 %v13668_v10 }
0x2d52   : > { %16198 = vrsqrt.f32 %v13674_v42 }
0x2d5d   : > { %v16197_v30 = vpop.eup %16196 }
0x2d5f   : > { %v16199_v44 = vpop.eup %16198 }
0x2d60   : > { %v13677_v33 = vsel %vm2125_vm4, %v16197_v30, %v16199_v44 }
0x2d61   : > { %v13678_v45 = vmul.f32 %v13677_v33, %v18284_v50 }
0x2d63   : > { %13687 = vperm.xlu1 %16158, %v13678_v45   ;;  %v13679_v28 = vmul.f32 %v13678_v45, %v13676_v18 }
0x2d65   : > { %13681 = vrot.lane.b32.xlu0 %v13679_v28, %s18489_s0  ;;  %s18518_s0 = sshll.u32 %s18520_s1, 2 }
0x2d66   : > { %s1205_s5 = scalar_lea.vmem %s16498_s27, %s18518_s0 }
0x2d67   : > { %16159 = vset.pattern.permute.xlu1 %v16268_v4 }
0x2d69   : > { %13702 = vperm.xlu0 %16155, %v13699_v41  }
0x2dd7   : > { %v13682_v38 = vpop.permute.xlu0 %13681 }
0x2dd8   : > { %v13684_v3 = vsub.f32 %v18284_v50, %v13682_v38 }
0x2dda   : > { %13693 = vperm.xlu1 %16159, %v13684_v3  }
0x2dde   : > { %v13688_v43 = vpop.permute.xlu1 %13687 }
0x2ddf   : > { %v13690_v58 = vmul.f32 %v13688_v43, %v18337_v23 }
0x2de4   : > { %v13703_v51 = vpop.permute.xlu0 %13702 }
0x2e55   : > { %v13694_v5 = vpop.permute.xlu1 %13693 }
0x2e56   : > { %v13696_v61 = vadd.f32 %v13694_v5, %v13690_v58 }
0x2e58   : > { %v13697_v60 = vmax.f32 %v13696_v61, 0.0 }
0x2e5a   : > { %16030 = vmatpush3.msra.mxu0 %v13697_v60 }
0x2e5b   : > { %16032 = vmatmul.mubr.msk.f32.vlgmr.msra.gmra.mxu0 %vm1317_vm3, %v13698_v25 }
0x2f1b   : > { %v13774_v52 = vpop.f32.mrf.mxu0 }
0x2f1c   : > { %v13775_v4 = vadd.f32 %v13774_v52, %v13703_v51 }
0x2f1d   : > { %v16033_v40 = vpop.f32.mrf.mxu0 }
0x2f1e   : > { %13778 = vst [vmem:[%s1205_s5] sm:$0xf] %v13775_v4 }
0x2f1f PF: > { %s91_s28 = sadd.s32 1, %s16214_s28  }
0x2f20   : > { %p88_p4 = scmp.ge.s32.totalorder %s91_s28, 4  }
0x2f22   :  { %90 = sbr.rel (!%p88_p4) target bundleno = 74 (0x4a), region = 375 }

</bundles_post_ra>
